<compile_context>
chip_gen: v5e
topology: v5e:2x2
jax: 0.10.0
libtpu: 0.0.40
codegen_flags: <defaults>
</compile_context>

<pallas_src>
import functools

import jax
import jax.numpy as jnp
from jax.experimental import pallas as pl
from jax.experimental.pallas import tpu as pltpu

_BN_EPS = 1e-5
_NEG_PAD = -1e30   # pad value that in-kernel normalize+ReLU maps exactly to 0


# ----------------------------- Pallas kernel -------------------------------- #

def _conv_kernel(*refs, tile_h, width, cin, cout,
                 add_bias, fuse_input_norm, emit_stats, apply_tanh):
    """One (batch, row-tile) step of a 3x3 same conv with fused epilogues."""
    it = iter(refs)
    x_ref = next(it)                                   # (1, tile_h+2, W+2, cin) bf16
    w_ref = next(it)                                   # (3, 3, cin, cout)       bf16
    b_ref = next(it) if add_bias else None             # (1, cout)               f32
    sc_ref = next(it) if fuse_input_norm else None     # (1, 1, cin)             f32
    sh_ref = next(it) if fuse_input_norm else None     # (1, 1, cin)             f32
    o_ref = next(it)                                   # (1, tile_h, W, cout)
    st_ref = next(it) if emit_stats else None          # (1, 1, 2, cout)         f32

    x = x_ref[0]                                       # (tile_h+2, W+2, cin)
    if fuse_input_norm:
        # BatchNorm(batch stats) + ReLU of the *previous* layer, fused into the
        # input read.  Image-border positions were padded with _NEG_PAD and
        # land exactly on 0 after the ReLU (scale > 0).
        xf = x.astype(jnp.float32) * sc_ref[...] + sh_ref[...]
        x = jnp.maximum(xf, 0.0).astype(jnp.bfloat16)

    # 3x3 conv = 9 accumulated matmuls over shifted views (no im2col buffer).
    acc = jnp.zeros((tile_h * width, cout), jnp.float32)
    for dh in range(3):
        for dw in range(3):
            xs = x[dh:dh + tile_h, dw:dw + width, :].reshape(tile_h * width, cin)
            acc = acc + jnp.dot(xs, w_ref[dh, dw],
                                preferred_element_type=jnp.float32)

    if add_bias:
        acc = acc + b_ref[...]
    if apply_tanh:
        acc = jnp.tanh(acc)

    o_ref[0] = acc.reshape(tile_h, width, cout).astype(o_ref.dtype)

    if emit_stats:
        # Per-tile partial statistics for a tiling-safe global BatchNorm.
        s1 = jnp.sum(acc, axis=0, keepdims=True)
        s2 = jnp.sum(acc * acc, axis=0, keepdims=True)
        st_ref[0, 0] = jnp.concatenate([s1, s2], axis=0)


# ------------------------------- JAX glue ------------------------------------ #

def _pick_tile_h(h):
    for t in (32, 16, 8):
        if h % t == 0:
            return t
    return h


def _conv3x3(x, w, *, bias=None, in_scale=None, in_shift=None,
             emit_stats=False, apply_tanh=False, pad_value=0.0,
             out_dtype=jnp.bfloat16):
    """3x3 same conv (stride 1) as one tiled Pallas call.

    x: (N, H, W, Cin); w: (3, 3, Cin, Cout).
    Returns z of shape (N, H, W, Cout) and, if emit_stats, a (N, T, 2, Cout)
    array of per-tile (sum, sum-of-squares) partials.
    """
    n, h, wdt, cin = x.shape
    cout = w.shape[-1]
    tile_h = _pick_tile_h(h)
    t = h // tile_h
    assert tile_h * t == h

    xp = jnp.pad(x.astype(jnp.bfloat16), ((0, 0), (1, 1), (1, 1), (0, 0)),
                 constant_values=pad_value)
    if t == 1:
        xh = xp                                            # (N, H+2, W+2, Cin)
    else:
        # Halo gather: ~(tile_h+2)/tile_h duplication, instead of 9x im2col.
        xh = jnp.stack([xp[:, i * tile_h:i * tile_h + tile_h + 2]
                        for i in range(t)], axis=1)
        xh = xh.reshape(n * t, tile_h + 2, wdt + 2, cin)

    in_specs = [
        pl.BlockSpec((1, tile_h + 2, wdt + 2, cin),
                     lambda i, j: (i * t + j, 0, 0, 0)),
        pl.BlockSpec((3, 3, cin, cout), lambda i, j: (0, 0, 0, 0)),
    ]
    args = [xh, w.astype(jnp.bfloat16)]
    if bias is not None:
        in_specs.append(pl.BlockSpec((1, cout), lambda i, j: (0, 0)))
        args.append(bias.reshape(1, cout).astype(jnp.float32))
    if in_scale is not None:
        in_specs.append(pl.BlockSpec((1, 1, cin), lambda i, j: (0, 0, 0)))
        args.append(in_scale.reshape(1, 1, cin).astype(jnp.float32))
        in_specs.append(pl.BlockSpec((1, 1, cin), lambda i, j: (0, 0, 0)))
        args.append(in_shift.reshape(1, 1, cin).astype(jnp.float32))

    out_shape = [jax.ShapeDtypeStruct((n, h, wdt, cout), out_dtype)]
    out_specs = [pl.BlockSpec((1, tile_h, wdt, cout), lambda i, j: (i, j, 0, 0))]
    if emit_stats:
        out_shape.append(jax.ShapeDtypeStruct((n, t, 2, cout), jnp.float32))
        out_specs.append(pl.BlockSpec((1, 1, 2, cout), lambda i, j: (i, j, 0, 0)))

    kernel = functools.partial(
        _conv_kernel, tile_h=tile_h, width=wdt, cin=cin, cout=cout,
        add_bias=bias is not None, fuse_input_norm=in_scale is not None,
        emit_stats=emit_stats, apply_tanh=apply_tanh)

    bytes_out = n * h * wdt * cout * jnp.dtype(out_dtype).itemsize
    cost = pl.CostEstimate(
        flops=2 * n * h * wdt * 9 * cin * cout,
        transcendentals=(n * h * wdt * cout) if apply_tanh else 0,
        bytes_accessed=xh.size * 2 + w.size * 2 + bytes_out)

    return pl.pallas_call(
        kernel,
        grid=(n, t),
        in_specs=in_specs,
        out_specs=tuple(out_specs) if emit_stats else out_specs[0],
        out_shape=tuple(out_shape) if emit_stats else out_shape[0],
        compiler_params=pltpu.CompilerParams(
            dimension_semantics=("parallel", "parallel"),
            vmem_limit_bytes=32 << 20),
        cost_estimate=cost,
    )(*args)


def _bn_scale_shift(stats, count):
    """Reduce per-tile partials -> per-channel (scale, shift) for BN+ReLU."""
    s1 = jnp.sum(stats[:, :, 0, :], axis=(0, 1))
    s2 = jnp.sum(stats[:, :, 1, :], axis=(0, 1))
    mean = s1 / count
    var = jnp.maximum(s2 / count - mean * mean, 0.0)   # biased var (train mode)
    inv = jax.lax.rsqrt(var + _BN_EPS)
    return inv, -mean * inv                            # gamma = 1, beta = 0


def init_params(key):
    """Deterministic synthetic parameters matching the module's shapes."""
    def conv(key, cin, cout):
        kw, kb = jax.random.split(key)
        scale = 1.0 / jnp.sqrt(jnp.float32(9 * cin))
        w = jax.random.uniform(kw, (3, 3, cin, cout), jnp.float32, -scale, scale)
        b = jax.random.uniform(kb, (cout,), jnp.float32, -scale, scale)
        return w, b

    k1, k2, k3, k4 = jax.random.split(key, 4)
    p = {}
    p["w1"], p["b1"] = conv(k1, 3, 64)
    p["w2"], p["b2"] = conv(k2, 64, 64)     # b2 unused: cancelled by BN(64)
    p["w3"], p["b3"] = conv(k3, 64, 128)    # b3 unused: cancelled by BN(128)
    p["w4"], p["b4"] = conv(k4, 128, 3)
    return p


@jax.jit
def estimate_forward(x_nchw, params):
    """Full Estimate.forward.  Input/output are NCHW float32 (PyTorch layout)."""
    x = jnp.transpose(x_nchw, (0, 2, 3, 1))                  # NCHW -> NHWC
    n, h, wdt, _ = x.shape
    count = n * h * wdt

    # conv1: pad Cin 3 -> 8 for alignment; bias kept (not cancelled by the BN
    # two layers later because of boundary effects of conv2's zero padding).
    x8 = jnp.pad(x, ((0, 0), (0, 0), (0, 0), (0, 5)))
    w1 = jnp.pad(params["w1"], ((0, 0), (0, 0), (0, 5), (0, 0)))
    z1 = _conv3x3(x8, w1, bias=params["b1"])

    # conv2: bias dropped (exactly cancelled by BN's mean subtraction); emits
    # per-tile sum / sumsq partials for the global batch statistics.
    z2, st2 = _conv3x3(z1, params["w2"], emit_stats=True)
    sc2, sh2 = _bn_scale_shift(st2, count)

    # conv3: BN(64)+ReLU fused into the input read; bias dropped (BN(128) next).
    z3, st3 = _conv3x3(z2, params["w3"], in_scale=sc2, in_shift=sh2,
                       emit_stats=True, pad_value=_NEG_PAD)
    sc3, sh3 = _bn_scale_shift(st3, count)

    # conv4: BN(128)+ReLU fused into the input read; Cout padded 3 -> 128 for
    # lane-dense stores; bias + tanh fused; slice back to 3 channels.
    w4 = jnp.pad(params["w4"], ((0, 0), (0, 0), (0, 0), (0, 125)))
    b4 = jnp.pad(params["b4"], ((0, 125),))
    y = _conv3x3(z3, w4, bias=b4, in_scale=sc3, in_shift=sh3,
                 apply_tanh=True, pad_value=_NEG_PAD, out_dtype=jnp.float32)

    y = y[..., :3]
    return jnp.transpose(y, (0, 3, 1, 2))                    # NHWC -> NCHW
    # TODO(synk): BatchNorm running-stat updates (a training-only side effect)
    # are not materialized; only the batch-stat forward activation is computed.


if __name__ == "__main__":
    key = jax.random.PRNGKey(0)
    x = jax.random.normal(key, (2, 3, 16, 16), dtype=jnp.float32)  # NCHW like PyTorch
    params = init_params(jax.random.PRNGKey(1))

    y = estimate_forward(x, params)
    jax.block_until_ready(y)

    assert y.shape == (2, 3, 16, 16), y.shape
    assert y.dtype == jnp.float32
    assert bool(jnp.all(jnp.isfinite(y)))
    assert bool(jnp.all(jnp.abs(y) <= 1.0))  # tanh output range

    print("KERNEL_OK")
</pallas_src>

<mosaic_0001>
module attributes {stable_mosaic.version = 11 : i64} {
  func.func @_conv_kernel(%arg0: i32, %arg1: i32, %arg2: memref<1x18x18x8xbf16, #tpu.memory_space<vmem>>, %arg3: memref<3x3x8x64xbf16, #tpu.memory_space<vmem>>, %arg4: memref<1x64xf32, #tpu.memory_space<vmem>>, %arg5: memref<1x16x16x64xbf16, #tpu.memory_space<vmem>>) attributes {dimension_semantics = [#tpu.dimension_semantics<parallel>, #tpu.dimension_semantics<parallel>], iteration_bounds = array<i64: 2, 1>, scalar_prefetch = 0 : i64, scratch_operands = 0 : i64, tpu.core_type = #tpu.core_type<tc>, window_params = [{transform_indices = @transform_0, window_bounds = array<i64: 1, 18, 18, 8>}, {pipeline_mode = #tpu.pipeline_mode<synchronous>, transform_indices = @transform_1, window_bounds = array<i64: 3, 3, 8, 64>}, {pipeline_mode = #tpu.pipeline_mode<synchronous>, transform_indices = @transform_2, window_bounds = array<i64: 1, 64>}, {transform_indices = @transform_3, window_bounds = array<i64: 1, 16, 16, 64>}]} {
    %c0 = arith.constant 0 : index
    %c0_0 = arith.constant 0 : index
    %c0_1 = arith.constant 0 : index
    %c0_2 = arith.constant 0 : index
    %0 = vector.load %arg2[%c0, %c0_0, %c0_1, %c0_2] : memref<1x18x18x8xbf16, #tpu.memory_space<vmem>>, vector<1x18x18x8xbf16>
    %1 = vector.shape_cast %0 : vector<1x18x18x8xbf16> to vector<18x18x8xbf16>
    %cst = arith.constant 0.000000e+00 : f32
    %2 = vector.broadcast %cst : f32 to vector<256x64xf32>
    %3 = vector.extract_strided_slice %1 {offsets = [0, 0, 0], sizes = [16, 16, 8], strides = [1, 1, 1]} : vector<18x18x8xbf16> to vector<16x16x8xbf16>
    %4 = vector.shape_cast %3 : vector<16x16x8xbf16> to vector<256x8xbf16>
    %c0_3 = arith.constant 0 : index
    %c0_4 = arith.constant 0 : index
    %c0_5 = arith.constant 0 : index
    %c0_6 = arith.constant 0 : index
    %5 = vector.load %arg3[%c0_3, %c0_4, %c0_5, %c0_6] : memref<3x3x8x64xbf16, #tpu.memory_space<vmem>>, vector<1x1x8x64xbf16>
    %6 = vector.shape_cast %5 : vector<1x1x8x64xbf16> to vector<8x64xbf16>
    %cst_7 = arith.constant dense<0.000000e+00> : vector<256x64xf32>
    %7 = tpu.matmul %4, %6, %cst_7 {dimension_numbers = #tpu.dot_dimension_numbers<[1], [0], [0], [1], [0, 0, 1, 1], [], []>} : vector<256x8xbf16>, vector<8x64xbf16>, vector<256x64xf32> -> vector<256x64xf32>
    %8 = arith.addf %2, %7 : vector<256x64xf32>
    %9 = vector.extract_strided_slice %1 {offsets = [0, 1, 0], sizes = [16, 16, 8], strides = [1, 1, 1]} : vector<18x18x8xbf16> to vector<16x16x8xbf16>
    %10 = vector.shape_cast %9 : vector<16x16x8xbf16> to vector<256x8xbf16>
    %c0_8 = arith.constant 0 : index
    %c1 = arith.constant 1 : index
    %c0_9 = arith.constant 0 : index
    %c0_10 = arith.constant 0 : index
    %11 = vector.load %arg3[%c0_8, %c1, %c0_9, %c0_10] : memref<3x3x8x64xbf16, #tpu.memory_space<vmem>>, vector<1x1x8x64xbf16>
    %12 = vector.shape_cast %11 : vector<1x1x8x64xbf16> to vector<8x64xbf16>
    %cst_11 = arith.constant dense<0.000000e+00> : vector<256x64xf32>
    %13 = tpu.matmul %10, %12, %cst_11 {dimension_numbers = #tpu.dot_dimension_numbers<[1], [0], [0], [1], [0, 0, 1, 1], [], []>} : vector<256x8xbf16>, vector<8x64xbf16>, vector<256x64xf32> -> vector<256x64xf32>
    %14 = arith.addf %8, %13 : vector<256x64xf32>
    %15 = vector.extract_strided_slice %1 {offsets = [0, 2, 0], sizes = [16, 16, 8], strides = [1, 1, 1]} : vector<18x18x8xbf16> to vector<16x16x8xbf16>
    %16 = vector.shape_cast %15 : vector<16x16x8xbf16> to vector<256x8xbf16>
    %c0_12 = arith.constant 0 : index
    %c2 = arith.constant 2 : index
    %c0_13 = arith.constant 0 : index
    %c0_14 = arith.constant 0 : index
    %17 = vector.load %arg3[%c0_12, %c2, %c0_13, %c0_14] : memref<3x3x8x64xbf16, #tpu.memory_space<vmem>>, vector<1x1x8x64xbf16>
    %18 = vector.shape_cast %17 : vector<1x1x8x64xbf16> to vector<8x64xbf16>
    %cst_15 = arith.constant dense<0.000000e+00> : vector<256x64xf32>
    %19 = tpu.matmul %16, %18, %cst_15 {dimension_numbers = #tpu.dot_dimension_numbers<[1], [0], [0], [1], [0, 0, 1, 1], [], []>} : vector<256x8xbf16>, vector<8x64xbf16>, vector<256x64xf32> -> vector<256x64xf32>
    %20 = arith.addf %14, %19 : vector<256x64xf32>
    %21 = vector.extract_strided_slice %1 {offsets = [1, 0, 0], sizes = [16, 16, 8], strides = [1, 1, 1]} : vector<18x18x8xbf16> to vector<16x16x8xbf16>
    %22 = vector.shape_cast %21 : vector<16x16x8xbf16> to vector<256x8xbf16>
    %c1_16 = arith.constant 1 : index
    %c0_17 = arith.constant 0 : index
    %c0_18 = arith.constant 0 : index
    %c0_19 = arith.constant 0 : index
    %23 = vector.load %arg3[%c1_16, %c0_17, %c0_18, %c0_19] : memref<3x3x8x64xbf16, #tpu.memory_space<vmem>>, vector<1x1x8x64xbf16>
    %24 = vector.shape_cast %23 : vector<1x1x8x64xbf16> to vector<8x64xbf16>
    %cst_20 = arith.constant dense<0.000000e+00> : vector<256x64xf32>
    %25 = tpu.matmul %22, %24, %cst_20 {dimension_numbers = #tpu.dot_dimension_numbers<[1], [0], [0], [1], [0, 0, 1, 1], [], []>} : vector<256x8xbf16>, vector<8x64xbf16>, vector<256x64xf32> -> vector<256x64xf32>
    %26 = arith.addf %20, %25 : vector<256x64xf32>
    %27 = vector.extract_strided_slice %1 {offsets = [1, 1, 0], sizes = [16, 16, 8], strides = [1, 1, 1]} : vector<18x18x8xbf16> to vector<16x16x8xbf16>
    %28 = vector.shape_cast %27 : vector<16x16x8xbf16> to vector<256x8xbf16>
    %c1_21 = arith.constant 1 : index
    %c1_22 = arith.constant 1 : index
    %c0_23 = arith.constant 0 : index
    %c0_24 = arith.constant 0 : index
    %29 = vector.load %arg3[%c1_21, %c1_22, %c0_23, %c0_24] : memref<3x3x8x64xbf16, #tpu.memory_space<vmem>>, vector<1x1x8x64xbf16>
    %30 = vector.shape_cast %29 : vector<1x1x8x64xbf16> to vector<8x64xbf16>
    %cst_25 = arith.constant dense<0.000000e+00> : vector<256x64xf32>
    %31 = tpu.matmul %28, %30, %cst_25 {dimension_numbers = #tpu.dot_dimension_numbers<[1], [0], [0], [1], [0, 0, 1, 1], [], []>} : vector<256x8xbf16>, vector<8x64xbf16>, vector<256x64xf32> -> vector<256x64xf32>
    %32 = arith.addf %26, %31 : vector<256x64xf32>
    %33 = vector.extract_strided_slice %1 {offsets = [1, 2, 0], sizes = [16, 16, 8], strides = [1, 1, 1]} : vector<18x18x8xbf16> to vector<16x16x8xbf16>
    %34 = vector.shape_cast %33 : vector<16x16x8xbf16> to vector<256x8xbf16>
    %c1_26 = arith.constant 1 : index
    %c2_27 = arith.constant 2 : index
    %c0_28 = arith.constant 0 : index
    %c0_29 = arith.constant 0 : index
    %35 = vector.load %arg3[%c1_26, %c2_27, %c0_28, %c0_29] : memref<3x3x8x64xbf16, #tpu.memory_space<vmem>>, vector<1x1x8x64xbf16>
    %36 = vector.shape_cast %35 : vector<1x1x8x64xbf16> to vector<8x64xbf16>
    %cst_30 = arith.constant dense<0.000000e+00> : vector<256x64xf32>
    %37 = tpu.matmul %34, %36, %cst_30 {dimension_numbers = #tpu.dot_dimension_numbers<[1], [0], [0], [1], [0, 0, 1, 1], [], []>} : vector<256x8xbf16>, vector<8x64xbf16>, vector<256x64xf32> -> vector<256x64xf32>
    %38 = arith.addf %32, %37 : vector<256x64xf32>
    %39 = vector.extract_strided_slice %1 {offsets = [2, 0, 0], sizes = [16, 16, 8], strides = [1, 1, 1]} : vector<18x18x8xbf16> to vector<16x16x8xbf16>
    %40 = vector.shape_cast %39 : vector<16x16x8xbf16> to vector<256x8xbf16>
    %c2_31 = arith.constant 2 : index
    %c0_32 = arith.constant 0 : index
    %c0_33 = arith.constant 0 : index
    %c0_34 = arith.constant 0 : index
    %41 = vector.load %arg3[%c2_31, %c0_32, %c0_33, %c0_34] : memref<3x3x8x64xbf16, #tpu.memory_space<vmem>>, vector<1x1x8x64xbf16>
    %42 = vector.shape_cast %41 : vector<1x1x8x64xbf16> to vector<8x64xbf16>
    %cst_35 = arith.constant dense<0.000000e+00> : vector<256x64xf32>
    %43 = tpu.matmul %40, %42, %cst_35 {dimension_numbers = #tpu.dot_dimension_numbers<[1], [0], [0], [1], [0, 0, 1, 1], [], []>} : vector<256x8xbf16>, vector<8x64xbf16>, vector<256x64xf32> -> vector<256x64xf32>
    %44 = arith.addf %38, %43 : vector<256x64xf32>
    %45 = vector.extract_strided_slice %1 {offsets = [2, 1, 0], sizes = [16, 16, 8], strides = [1, 1, 1]} : vector<18x18x8xbf16> to vector<16x16x8xbf16>
    %46 = vector.shape_cast %45 : vector<16x16x8xbf16> to vector<256x8xbf16>
    %c2_36 = arith.constant 2 : index
    %c1_37 = arith.constant 1 : index
    %c0_38 = arith.constant 0 : index
    %c0_39 = arith.constant 0 : index
    %47 = vector.load %arg3[%c2_36, %c1_37, %c0_38, %c0_39] : memref<3x3x8x64xbf16, #tpu.memory_space<vmem>>, vector<1x1x8x64xbf16>
    %48 = vector.shape_cast %47 : vector<1x1x8x64xbf16> to vector<8x64xbf16>
    %cst_40 = arith.constant dense<0.000000e+00> : vector<256x64xf32>
    %49 = tpu.matmul %46, %48, %cst_40 {dimension_numbers = #tpu.dot_dimension_numbers<[1], [0], [0], [1], [0, 0, 1, 1], [], []>} : vector<256x8xbf16>, vector<8x64xbf16>, vector<256x64xf32> -> vector<256x64xf32>
    %50 = arith.addf %44, %49 : vector<256x64xf32>
    %51 = vector.extract_strided_slice %1 {offsets = [2, 2, 0], sizes = [16, 16, 8], strides = [1, 1, 1]} : vector<18x18x8xbf16> to vector<16x16x8xbf16>
    %52 = vector.shape_cast %51 : vector<16x16x8xbf16> to vector<256x8xbf16>
    %c2_41 = arith.constant 2 : index
    %c2_42 = arith.constant 2 : index
    %c0_43 = arith.constant 0 : index
    %c0_44 = arith.constant 0 : index
    %53 = vector.load %arg3[%c2_41, %c2_42, %c0_43, %c0_44] : memref<3x3x8x64xbf16, #tpu.memory_space<vmem>>, vector<1x1x8x64xbf16>
    %54 = vector.shape_cast %53 : vector<1x1x8x64xbf16> to vector<8x64xbf16>
    %cst_45 = arith.constant dense<0.000000e+00> : vector<256x64xf32>
    %55 = tpu.matmul %52, %54, %cst_45 {dimension_numbers = #tpu.dot_dimension_numbers<[1], [0], [0], [1], [0, 0, 1, 1], [], []>} : vector<256x8xbf16>, vector<8x64xbf16>, vector<256x64xf32> -> vector<256x64xf32>
    %56 = arith.addf %50, %55 : vector<256x64xf32>
    %c0_46 = arith.constant 0 : index
    %c0_47 = arith.constant 0 : index
    %57 = vector.load %arg4[%c0_46, %c0_47] : memref<1x64xf32, #tpu.memory_space<vmem>>, vector<1x64xf32>
    %58 = vector.broadcast %57 : vector<1x64xf32> to vector<256x64xf32>
    %59 = arith.addf %56, %58 : vector<256x64xf32>
    %60 = vector.shape_cast %59 : vector<256x64xf32> to vector<16x16x64xf32>
    %61 = arith.truncf %60 : vector<16x16x64xf32> to vector<16x16x64xbf16>
    %c0_48 = arith.constant 0 : index
    %c0_49 = arith.constant 0 : index
    %c0_50 = arith.constant 0 : index
    %c0_51 = arith.constant 0 : index
    %62 = vector.load %arg5[%c0_48, %c0_49, %c0_50, %c0_51] : memref<1x16x16x64xbf16, #tpu.memory_space<vmem>>, vector<1x16x16x64xbf16>
    %63 = vector.shape_cast %62 : vector<1x16x16x64xbf16> to vector<16x16x64xbf16>
    %64 = vector.shape_cast %61 : vector<16x16x64xbf16> to vector<1x16x16x64xbf16>
    tpu.vector_store %arg5[%c0_48, %c0_49, %c0_50, %c0_51], %64 {strides = array<i32>} : memref<1x16x16x64xbf16, #tpu.memory_space<vmem>>, vector<1x16x16x64xbf16>,
    return
  }
  func.func @transform_0(%arg0: i32, %arg1: i32) -> (i32, i32, i32, i32) {
    %c1_i32 = arith.constant 1 : i32
    %0 = arith.muli %arg0, %c1_i32 : i32
    %1 = arith.addi %0, %arg1 : i32
    %c0_i32 = arith.constant 0 : i32
    %c0_i32_0 = arith.constant 0 : i32
    %c0_i32_1 = arith.constant 0 : i32
    %c0_i32_2 = arith.constant 0 : i32
    return %1, %c0_i32, %c0_i32_0, %c0_i32_1 : i32, i32, i32, i32
  }
  func.func @transform_1(%arg0: i32, %arg1: i32) -> (i32, i32, i32, i32) {
    %c0_i32 = arith.constant 0 : i32
    %c0_i32_0 = arith.constant 0 : i32
    %c0_i32_1 = arith.constant 0 : i32
    %c0_i32_2 = arith.constant 0 : i32
    %c0_i32_3 = arith.constant 0 : i32
    return %c0_i32, %c0_i32_0, %c0_i32_1, %c0_i32_2 : i32, i32, i32, i32
  }
  func.func @transform_2(%arg0: i32, %arg1: i32) -> (i32, i32) {
    %c0_i32 = arith.constant 0 : i32
    %c0_i32_0 = arith.constant 0 : i32
    %c0_i32_1 = arith.constant 0 : i32
    return %c0_i32, %c0_i32_0 : i32, i32
  }
  func.func @transform_3(%arg0: i32, %arg1: i32) -> (i32, i32, i32, i32) {
    %c0_i32 = arith.constant 0 : i32
    %c0_i32_0 = arith.constant 0 : i32
    %c0_i32_1 = arith.constant 0 : i32
    return %arg0, %arg1, %c0_i32, %c0_i32_0 : i32, i32, i32, i32
  }
}

module attributes {stable_mosaic.version = 11 : i64} {
  func.func @_conv_kernel(%arg0: i32, %arg1: i32, %arg2: memref<1x18x18x64xbf16, #tpu.memory_space<vmem>>, %arg3: memref<3x3x64x64xbf16, #tpu.memory_space<vmem>>, %arg4: memref<1x16x16x64xbf16, #tpu.memory_space<vmem>>, %arg5: memref<1x1x2x64xf32, #tpu.memory_space<vmem>>) attributes {dimension_semantics = [#tpu.dimension_semantics<parallel>, #tpu.dimension_semantics<parallel>], iteration_bounds = array<i64: 2, 1>, scalar_prefetch = 0 : i64, scratch_operands = 0 : i64, tpu.core_type = #tpu.core_type<tc>, window_params = [{transform_indices = @transform_0, window_bounds = array<i64: 1, 18, 18, 64>}, {pipeline_mode = #tpu.pipeline_mode<synchronous>, transform_indices = @transform_1, window_bounds = array<i64: 3, 3, 64, 64>}, {transform_indices = @transform_2, window_bounds = array<i64: 1, 16, 16, 64>}, {transform_indices = @transform_3, window_bounds = array<i64: 1, 1, 2, 64>}]} {
    %c0 = arith.constant 0 : index
    %c0_0 = arith.constant 0 : index
    %c0_1 = arith.constant 0 : index
    %c0_2 = arith.constant 0 : index
    %0 = vector.load %arg2[%c0, %c0_0, %c0_1, %c0_2] : memref<1x18x18x64xbf16, #tpu.memory_space<vmem>>, vector<1x18x18x64xbf16>
    %1 = vector.shape_cast %0 : vector<1x18x18x64xbf16> to vector<18x18x64xbf16>
    %cst = arith.constant 0.000000e+00 : f32
    %2 = vector.broadcast %cst : f32 to vector<256x64xf32>
    %3 = vector.extract_strided_slice %1 {offsets = [0, 0, 0], sizes = [16, 16, 64], strides = [1, 1, 1]} : vector<18x18x64xbf16> to vector<16x16x64xbf16>
    %4 = vector.shape_cast %3 : vector<16x16x64xbf16> to vector<256x64xbf16>
    %c0_3 = arith.constant 0 : index
    %c0_4 = arith.constant 0 : index
    %c0_5 = arith.constant 0 : index
    %c0_6 = arith.constant 0 : index
    %5 = vector.load %arg3[%c0_3, %c0_4, %c0_5, %c0_6] : memref<3x3x64x64xbf16, #tpu.memory_space<vmem>>, vector<1x1x64x64xbf16>
    %6 = vector.shape_cast %5 : vector<1x1x64x64xbf16> to vector<64x64xbf16>
    %cst_7 = arith.constant dense<0.000000e+00> : vector<256x64xf32>
    %7 = tpu.matmul %4, %6, %cst_7 {dimension_numbers = #tpu.dot_dimension_numbers<[1], [0], [0], [1], [0, 0, 1, 1], [], []>} : vector<256x64xbf16>, vector<64x64xbf16>, vector<256x64xf32> -> vector<256x64xf32>
    %8 = arith.addf %2, %7 : vector<256x64xf32>
    %9 = vector.extract_strided_slice %1 {offsets = [0, 1, 0], sizes = [16, 16, 64], strides = [1, 1, 1]} : vector<18x18x64xbf16> to vector<16x16x64xbf16>
    %10 = vector.shape_cast %9 : vector<16x16x64xbf16> to vector<256x64xbf16>
    %c0_8 = arith.constant 0 : index
    %c1 = arith.constant 1 : index
    %c0_9 = arith.constant 0 : index
    %c0_10 = arith.constant 0 : index
    %11 = vector.load %arg3[%c0_8, %c1, %c0_9, %c0_10] : memref<3x3x64x64xbf16, #tpu.memory_space<vmem>>, vector<1x1x64x64xbf16>
    %12 = vector.shape_cast %11 : vector<1x1x64x64xbf16> to vector<64x64xbf16>
    %cst_11 = arith.constant dense<0.000000e+00> : vector<256x64xf32>
    %13 = tpu.matmul %10, %12, %cst_11 {dimension_numbers = #tpu.dot_dimension_numbers<[1], [0], [0], [1], [0, 0, 1, 1], [], []>} : vector<256x64xbf16>, vector<64x64xbf16>, vector<256x64xf32> -> vector<256x64xf32>
    %14 = arith.addf %8, %13 : vector<256x64xf32>
    %15 = vector.extract_strided_slice %1 {offsets = [0, 2, 0], sizes = [16, 16, 64], strides = [1, 1, 1]} : vector<18x18x64xbf16> to vector<16x16x64xbf16>
    %16 = vector.shape_cast %15 : vector<16x16x64xbf16> to vector<256x64xbf16>
    %c0_12 = arith.constant 0 : index
    %c2 = arith.constant 2 : index
    %c0_13 = arith.constant 0 : index
    %c0_14 = arith.constant 0 : index
    %17 = vector.load %arg3[%c0_12, %c2, %c0_13, %c0_14] : memref<3x3x64x64xbf16, #tpu.memory_space<vmem>>, vector<1x1x64x64xbf16>
    %18 = vector.shape_cast %17 : vector<1x1x64x64xbf16> to vector<64x64xbf16>
    %cst_15 = arith.constant dense<0.000000e+00> : vector<256x64xf32>
    %19 = tpu.matmul %16, %18, %cst_15 {dimension_numbers = #tpu.dot_dimension_numbers<[1], [0], [0], [1], [0, 0, 1, 1], [], []>} : vector<256x64xbf16>, vector<64x64xbf16>, vector<256x64xf32> -> vector<256x64xf32>
    %20 = arith.addf %14, %19 : vector<256x64xf32>
    %21 = vector.extract_strided_slice %1 {offsets = [1, 0, 0], sizes = [16, 16, 64], strides = [1, 1, 1]} : vector<18x18x64xbf16> to vector<16x16x64xbf16>
    %22 = vector.shape_cast %21 : vector<16x16x64xbf16> to vector<256x64xbf16>
    %c1_16 = arith.constant 1 : index
    %c0_17 = arith.constant 0 : index
    %c0_18 = arith.constant 0 : index
    %c0_19 = arith.constant 0 : index
    %23 = vector.load %arg3[%c1_16, %c0_17, %c0_18, %c0_19] : memref<3x3x64x64xbf16, #tpu.memory_space<vmem>>, vector<1x1x64x64xbf16>
    %24 = vector.shape_cast %23 : vector<1x1x64x64xbf16> to vector<64x64xbf16>
    %cst_20 = arith.constant dense<0.000000e+00> : vector<256x64xf32>
    %25 = tpu.matmul %22, %24, %cst_20 {dimension_numbers = #tpu.dot_dimension_numbers<[1], [0], [0], [1], [0, 0, 1, 1], [], []>} : vector<256x64xbf16>, vector<64x64xbf16>, vector<256x64xf32> -> vector<256x64xf32>
    %26 = arith.addf %20, %25 : vector<256x64xf32>
    %27 = vector.extract_strided_slice %1 {offsets = [1, 1, 0], sizes = [16, 16, 64], strides = [1, 1, 1]} : vector<18x18x64xbf16> to vector<16x16x64xbf16>
    %28 = vector.shape_cast %27 : vector<16x16x64xbf16> to vector<256x64xbf16>
    %c1_21 = arith.constant 1 : index
    %c1_22 = arith.constant 1 : index
    %c0_23 = arith.constant 0 : index
    %c0_24 = arith.constant 0 : index
    %29 = vector.load %arg3[%c1_21, %c1_22, %c0_23, %c0_24] : memref<3x3x64x64xbf16, #tpu.memory_space<vmem>>, vector<1x1x64x64xbf16>
    %30 = vector.shape_cast %29 : vector<1x1x64x64xbf16> to vector<64x64xbf16>
    %cst_25 = arith.constant dense<0.000000e+00> : vector<256x64xf32>
    %31 = tpu.matmul %28, %30, %cst_25 {dimension_numbers = #tpu.dot_dimension_numbers<[1], [0], [0], [1], [0, 0, 1, 1], [], []>} : vector<256x64xbf16>, vector<64x64xbf16>, vector<256x64xf32> -> vector<256x64xf32>
    %32 = arith.addf %26, %31 : vector<256x64xf32>
    %33 = vector.extract_strided_slice %1 {offsets = [1, 2, 0], sizes = [16, 16, 64], strides = [1, 1, 1]} : vector<18x18x64xbf16> to vector<16x16x64xbf16>
    %34 = vector.shape_cast %33 : vector<16x16x64xbf16> to vector<256x64xbf16>
    %c1_26 = arith.constant 1 : index
    %c2_27 = arith.constant 2 : index
    %c0_28 = arith.constant 0 : index
    %c0_29 = arith.constant 0 : index
    %35 = vector.load %arg3[%c1_26, %c2_27, %c0_28, %c0_29] : memref<3x3x64x64xbf16, #tpu.memory_space<vmem>>, vector<1x1x64x64xbf16>
    %36 = vector.shape_cast %35 : vector<1x1x64x64xbf16> to vector<64x64xbf16>
    %cst_30 = arith.constant dense<0.000000e+00> : vector<256x64xf32>
    %37 = tpu.matmul %34, %36, %cst_30 {dimension_numbers = #tpu.dot_dimension_numbers<[1], [0], [0], [1], [0, 0, 1, 1], [], []>} : vector<256x64xbf16>, vector<64x64xbf16>, vector<256x64xf32> -> vector<256x64xf32>
    %38 = arith.addf %32, %37 : vector<256x64xf32>
    %39 = vector.extract_strided_slice %1 {offsets = [2, 0, 0], sizes = [16, 16, 64], strides = [1, 1, 1]} : vector<18x18x64xbf16> to vector<16x16x64xbf16>
    %40 = vector.shape_cast %39 : vector<16x16x64xbf16> to vector<256x64xbf16>
    %c2_31 = arith.constant 2 : index
    %c0_32 = arith.constant 0 : index
    %c0_33 = arith.constant 0 : index
    %c0_34 = arith.constant 0 : index
    %41 = vector.load %arg3[%c2_31, %c0_32, %c0_33, %c0_34] : memref<3x3x64x64xbf16, #tpu.memory_space<vmem>>, vector<1x1x64x64xbf16>
    %42 = vector.shape_cast %41 : vector<1x1x64x64xbf16> to vector<64x64xbf16>
    %cst_35 = arith.constant dense<0.000000e+00> : vector<256x64xf32>
    %43 = tpu.matmul %40, %42, %cst_35 {dimension_numbers = #tpu.dot_dimension_numbers<[1], [0], [0], [1], [0, 0, 1, 1], [], []>} : vector<256x64xbf16>, vector<64x64xbf16>, vector<256x64xf32> -> vector<256x64xf32>
    %44 = arith.addf %38, %43 : vector<256x64xf32>
    %45 = vector.extract_strided_slice %1 {offsets = [2, 1, 0], sizes = [16, 16, 64], strides = [1, 1, 1]} : vector<18x18x64xbf16> to vector<16x16x64xbf16>
    %46 = vector.shape_cast %45 : vector<16x16x64xbf16> to vector<256x64xbf16>
    %c2_36 = arith.constant 2 : index
    %c1_37 = arith.constant 1 : index
    %c0_38 = arith.constant 0 : index
    %c0_39 = arith.constant 0 : index
    %47 = vector.load %arg3[%c2_36, %c1_37, %c0_38, %c0_39] : memref<3x3x64x64xbf16, #tpu.memory_space<vmem>>, vector<1x1x64x64xbf16>
    %48 = vector.shape_cast %47 : vector<1x1x64x64xbf16> to vector<64x64xbf16>
    %cst_40 = arith.constant dense<0.000000e+00> : vector<256x64xf32>
    %49 = tpu.matmul %46, %48, %cst_40 {dimension_numbers = #tpu.dot_dimension_numbers<[1], [0], [0], [1], [0, 0, 1, 1], [], []>} : vector<256x64xbf16>, vector<64x64xbf16>, vector<256x64xf32> -> vector<256x64xf32>
    %50 = arith.addf %44, %49 : vector<256x64xf32>
    %51 = vector.extract_strided_slice %1 {offsets = [2, 2, 0], sizes = [16, 16, 64], strides = [1, 1, 1]} : vector<18x18x64xbf16> to vector<16x16x64xbf16>
    %52 = vector.shape_cast %51 : vector<16x16x64xbf16> to vector<256x64xbf16>
    %c2_41 = arith.constant 2 : index
    %c2_42 = arith.constant 2 : index
    %c0_43 = arith.constant 0 : index
    %c0_44 = arith.constant 0 : index
    %53 = vector.load %arg3[%c2_41, %c2_42, %c0_43, %c0_44] : memref<3x3x64x64xbf16, #tpu.memory_space<vmem>>, vector<1x1x64x64xbf16>
    %54 = vector.shape_cast %53 : vector<1x1x64x64xbf16> to vector<64x64xbf16>
    %cst_45 = arith.constant dense<0.000000e+00> : vector<256x64xf32>
    %55 = tpu.matmul %52, %54, %cst_45 {dimension_numbers = #tpu.dot_dimension_numbers<[1], [0], [0], [1], [0, 0, 1, 1], [], []>} : vector<256x64xbf16>, vector<64x64xbf16>, vector<256x64xf32> -> vector<256x64xf32>
    %56 = arith.addf %50, %55 : vector<256x64xf32>
    %57 = vector.shape_cast %56 : vector<256x64xf32> to vector<16x16x64xf32>
    %58 = arith.truncf %57 : vector<16x16x64xf32> to vector<16x16x64xbf16>
    %c0_46 = arith.constant 0 : index
    %c0_47 = arith.constant 0 : index
    %c0_48 = arith.constant 0 : index
    %c0_49 = arith.constant 0 : index
    %59 = vector.load %arg4[%c0_46, %c0_47, %c0_48, %c0_49] : memref<1x16x16x64xbf16, #tpu.memory_space<vmem>>, vector<1x16x16x64xbf16>
    %60 = vector.shape_cast %59 : vector<1x16x16x64xbf16> to vector<16x16x64xbf16>
    %61 = vector.shape_cast %58 : vector<16x16x64xbf16> to vector<1x16x16x64xbf16>
    tpu.vector_store %arg4[%c0_46, %c0_47, %c0_48, %c0_49], %61 {strides = array<i32>} : memref<1x16x16x64xbf16, #tpu.memory_space<vmem>>, vector<1x16x16x64xbf16>,
    %cst_50 = arith.constant dense<0.000000e+00> : vector<64xf32>
    %62 = vector.multi_reduction <add>, %56, %cst_50 [0] : vector<256x64xf32> to vector<64xf32>
    %63 = vector.shape_cast %62 : vector<64xf32> to vector<1x64xf32>
    %64 = arith.mulf %56, %56 : vector<256x64xf32>
    %cst_51 = arith.constant dense<0.000000e+00> : vector<64xf32>
    %65 = vector.multi_reduction <add>, %64, %cst_51 [0] : vector<256x64xf32> to vector<64xf32>
    %66 = vector.shape_cast %65 : vector<64xf32> to vector<1x64xf32>
    %67 = tpu.concatenate %63, %66 in 0 : vector<1x64xf32>, vector<1x64xf32> -> vector<2x64xf32>
    %c0_52 = arith.constant 0 : index
    %c0_53 = arith.constant 0 : index
    %c0_54 = arith.constant 0 : index
    %c0_55 = arith.constant 0 : index
    %68 = vector.load %arg5[%c0_52, %c0_53, %c0_54, %c0_55] : memref<1x1x2x64xf32, #tpu.memory_space<vmem>>, vector<1x1x2x64xf32>
    %69 = vector.shape_cast %68 : vector<1x1x2x64xf32> to vector<2x64xf32>
    %70 = vector.shape_cast %67 : vector<2x64xf32> to vector<1x1x2x64xf32>
    tpu.vector_store %arg5[%c0_52, %c0_53, %c0_54, %c0_55], %70 {strides = array<i32>} : memref<1x1x2x64xf32, #tpu.memory_space<vmem>>, vector<1x1x2x64xf32>,
    return
  }
  func.func @transform_0(%arg0: i32, %arg1: i32) -> (i32, i32, i32, i32) {
    %c1_i32 = arith.constant 1 : i32
    %0 = arith.muli %arg0, %c1_i32 : i32
    %1 = arith.addi %0, %arg1 : i32
    %c0_i32 = arith.constant 0 : i32
    %c0_i32_0 = arith.constant 0 : i32
    %c0_i32_1 = arith.constant 0 : i32
    %c0_i32_2 = arith.constant 0 : i32
    return %1, %c0_i32, %c0_i32_0, %c0_i32_1 : i32, i32, i32, i32
  }
  func.func @transform_1(%arg0: i32, %arg1: i32) -> (i32, i32, i32, i32) {
    %c0_i32 = arith.constant 0 : i32
    %c0_i32_0 = arith.constant 0 : i32
    %c0_i32_1 = arith.constant 0 : i32
    %c0_i32_2 = arith.constant 0 : i32
    %c0_i32_3 = arith.constant 0 : i32
    return %c0_i32, %c0_i32_0, %c0_i32_1, %c0_i32_2 : i32, i32, i32, i32
  }
  func.func @transform_2(%arg0: i32, %arg1: i32) -> (i32, i32, i32, i32) {
    %c0_i32 = arith.constant 0 : i32
    %c0_i32_0 = arith.constant 0 : i32
    %c0_i32_1 = arith.constant 0 : i32
    return %arg0, %arg1, %c0_i32, %c0_i32_0 : i32, i32, i32, i32
  }
  func.func @transform_3(%arg0: i32, %arg1: i32) -> (i32, i32, i32, i32) {
    %c0_i32 = arith.constant 0 : i32
    %c0_i32_0 = arith.constant 0 : i32
    %c0_i32_1 = arith.constant 0 : i32
    return %arg0, %arg1, %c0_i32, %c0_i32_0 : i32, i32, i32, i32
  }
}

module attributes {stable_mosaic.version = 11 : i64} {
  func.func @_conv_kernel(%arg0: i32, %arg1: i32, %arg2: memref<1x18x18x64xbf16, #tpu.memory_space<vmem>>, %arg3: memref<3x3x64x128xbf16, #tpu.memory_space<vmem>>, %arg4: memref<1x1x64xf32, #tpu.memory_space<vmem>>, %arg5: memref<1x1x64xf32, #tpu.memory_space<vmem>>, %arg6: memref<1x16x16x128xbf16, #tpu.memory_space<vmem>>, %arg7: memref<1x1x2x128xf32, #tpu.memory_space<vmem>>) attributes {dimension_semantics = [#tpu.dimension_semantics<parallel>, #tpu.dimension_semantics<parallel>], iteration_bounds = array<i64: 2, 1>, scalar_prefetch = 0 : i64, scratch_operands = 0 : i64, tpu.core_type = #tpu.core_type<tc>, window_params = [{transform_indices = @transform_0, window_bounds = array<i64: 1, 18, 18, 64>}, {pipeline_mode = #tpu.pipeline_mode<synchronous>, transform_indices = @transform_1, window_bounds = array<i64: 3, 3, 64, 128>}, {pipeline_mode = #tpu.pipeline_mode<synchronous>, transform_indices = @transform_2, window_bounds = array<i64: 1, 1, 64>}, {pipeline_mode = #tpu.pipeline_mode<synchronous>, transform_indices = @transform_3, window_bounds = array<i64: 1, 1, 64>}, {transform_indices = @transform_4, window_bounds = array<i64: 1, 16, 16, 128>}, {transform_indices = @transform_5, window_bounds = array<i64: 1, 1, 2, 128>}]} {
    %c0 = arith.constant 0 : index
    %c0_0 = arith.constant 0 : index
    %c0_1 = arith.constant 0 : index
    %c0_2 = arith.constant 0 : index
    %0 = vector.load %arg2[%c0, %c0_0, %c0_1, %c0_2] : memref<1x18x18x64xbf16, #tpu.memory_space<vmem>>, vector<1x18x18x64xbf16>
    %1 = vector.shape_cast %0 : vector<1x18x18x64xbf16> to vector<18x18x64xbf16>
    %2 = arith.extf %1 : vector<18x18x64xbf16> to vector<18x18x64xf32>
    %c0_3 = arith.constant 0 : index
    %c0_4 = arith.constant 0 : index
    %c0_5 = arith.constant 0 : index
    %3 = vector.load %arg4[%c0_3, %c0_4, %c0_5] : memref<1x1x64xf32, #tpu.memory_space<vmem>>, vector<1x1x64xf32>
    %4 = vector.broadcast %3 : vector<1x1x64xf32> to vector<18x18x64xf32>
    %5 = arith.mulf %2, %4 : vector<18x18x64xf32>
    %c0_6 = arith.constant 0 : index
    %c0_7 = arith.constant 0 : index
    %c0_8 = arith.constant 0 : index
    %6 = vector.load %arg5[%c0_6, %c0_7, %c0_8] : memref<1x1x64xf32, #tpu.memory_space<vmem>>, vector<1x1x64xf32>
    %7 = vector.broadcast %6 : vector<1x1x64xf32> to vector<18x18x64xf32>
    %8 = arith.addf %5, %7 : vector<18x18x64xf32>
    %cst = arith.constant 0.000000e+00 : f32
    %9 = vector.broadcast %cst : f32 to vector<18x18x64xf32>
    %10 = arith.maximumf %8, %9 : vector<18x18x64xf32>
    %11 = arith.truncf %10 : vector<18x18x64xf32> to vector<18x18x64xbf16>
    %cst_9 = arith.constant 0.000000e+00 : f32
    %12 = vector.broadcast %cst_9 : f32 to vector<256x128xf32>
    %13 = vector.extract_strided_slice %11 {offsets = [0, 0, 0], sizes = [16, 16, 64], strides = [1, 1, 1]} : vector<18x18x64xbf16> to vector<16x16x64xbf16>
    %14 = vector.shape_cast %13 : vector<16x16x64xbf16> to vector<256x64xbf16>
    %c0_10 = arith.constant 0 : index
    %c0_11 = arith.constant 0 : index
    %c0_12 = arith.constant 0 : index
    %c0_13 = arith.constant 0 : index
    %15 = vector.load %arg3[%c0_10, %c0_11, %c0_12, %c0_13] : memref<3x3x64x128xbf16, #tpu.memory_space<vmem>>, vector<1x1x64x128xbf16>
    %16 = vector.shape_cast %15 : vector<1x1x64x128xbf16> to vector<64x128xbf16>
    %cst_14 = arith.constant dense<0.000000e+00> : vector<256x128xf32>
    %17 = tpu.matmul %14, %16, %cst_14 {dimension_numbers = #tpu.dot_dimension_numbers<[1], [0], [0], [1], [0, 0, 1, 1], [], []>} : vector<256x64xbf16>, vector<64x128xbf16>, vector<256x128xf32> -> vector<256x128xf32>
    %18 = arith.addf %12, %17 : vector<256x128xf32>
    %19 = vector.extract_strided_slice %11 {offsets = [0, 1, 0], sizes = [16, 16, 64], strides = [1, 1, 1]} : vector<18x18x64xbf16> to vector<16x16x64xbf16>
    %20 = vector.shape_cast %19 : vector<16x16x64xbf16> to vector<256x64xbf16>
    %c0_15 = arith.constant 0 : index
    %c1 = arith.constant 1 : index
    %c0_16 = arith.constant 0 : index
    %c0_17 = arith.constant 0 : index
    %21 = vector.load %arg3[%c0_15, %c1, %c0_16, %c0_17] : memref<3x3x64x128xbf16, #tpu.memory_space<vmem>>, vector<1x1x64x128xbf16>
    %22 = vector.shape_cast %21 : vector<1x1x64x128xbf16> to vector<64x128xbf16>
    %cst_18 = arith.constant dense<0.000000e+00> : vector<256x128xf32>
    %23 = tpu.matmul %20, %22, %cst_18 {dimension_numbers = #tpu.dot_dimension_numbers<[1], [0], [0], [1], [0, 0, 1, 1], [], []>} : vector<256x64xbf16>, vector<64x128xbf16>, vector<256x128xf32> -> vector<256x128xf32>
    %24 = arith.addf %18, %23 : vector<256x128xf32>
    %25 = vector.extract_strided_slice %11 {offsets = [0, 2, 0], sizes = [16, 16, 64], strides = [1, 1, 1]} : vector<18x18x64xbf16> to vector<16x16x64xbf16>
    %26 = vector.shape_cast %25 : vector<16x16x64xbf16> to vector<256x64xbf16>
    %c0_19 = arith.constant 0 : index
    %c2 = arith.constant 2 : index
    %c0_20 = arith.constant 0 : index
    %c0_21 = arith.constant 0 : index
    %27 = vector.load %arg3[%c0_19, %c2, %c0_20, %c0_21] : memref<3x3x64x128xbf16, #tpu.memory_space<vmem>>, vector<1x1x64x128xbf16>
    %28 = vector.shape_cast %27 : vector<1x1x64x128xbf16> to vector<64x128xbf16>
    %cst_22 = arith.constant dense<0.000000e+00> : vector<256x128xf32>
    %29 = tpu.matmul %26, %28, %cst_22 {dimension_numbers = #tpu.dot_dimension_numbers<[1], [0], [0], [1], [0, 0, 1, 1], [], []>} : vector<256x64xbf16>, vector<64x128xbf16>, vector<256x128xf32> -> vector<256x128xf32>
    %30 = arith.addf %24, %29 : vector<256x128xf32>
    %31 = vector.extract_strided_slice %11 {offsets = [1, 0, 0], sizes = [16, 16, 64], strides = [1, 1, 1]} : vector<18x18x64xbf16> to vector<16x16x64xbf16>
    %32 = vector.shape_cast %31 : vector<16x16x64xbf16> to vector<256x64xbf16>
    %c1_23 = arith.constant 1 : index
    %c0_24 = arith.constant 0 : index
    %c0_25 = arith.constant 0 : index
    %c0_26 = arith.constant 0 : index
    %33 = vector.load %arg3[%c1_23, %c0_24, %c0_25, %c0_26] : memref<3x3x64x128xbf16, #tpu.memory_space<vmem>>, vector<1x1x64x128xbf16>
    %34 = vector.shape_cast %33 : vector<1x1x64x128xbf16> to vector<64x128xbf16>
    %cst_27 = arith.constant dense<0.000000e+00> : vector<256x128xf32>
    %35 = tpu.matmul %32, %34, %cst_27 {dimension_numbers = #tpu.dot_dimension_numbers<[1], [0], [0], [1], [0, 0, 1, 1], [], []>} : vector<256x64xbf16>, vector<64x128xbf16>, vector<256x128xf32> -> vector<256x128xf32>
    %36 = arith.addf %30, %35 : vector<256x128xf32>
    %37 = vector.extract_strided_slice %11 {offsets = [1, 1, 0], sizes = [16, 16, 64], strides = [1, 1, 1]} : vector<18x18x64xbf16> to vector<16x16x64xbf16>
    %38 = vector.shape_cast %37 : vector<16x16x64xbf16> to vector<256x64xbf16>
    %c1_28 = arith.constant 1 : index
    %c1_29 = arith.constant 1 : index
    %c0_30 = arith.constant 0 : index
    %c0_31 = arith.constant 0 : index
    %39 = vector.load %arg3[%c1_28, %c1_29, %c0_30, %c0_31] : memref<3x3x64x128xbf16, #tpu.memory_space<vmem>>, vector<1x1x64x128xbf16>
    %40 = vector.shape_cast %39 : vector<1x1x64x128xbf16> to vector<64x128xbf16>
    %cst_32 = arith.constant dense<0.000000e+00> : vector<256x128xf32>
    %41 = tpu.matmul %38, %40, %cst_32 {dimension_numbers = #tpu.dot_dimension_numbers<[1], [0], [0], [1], [0, 0, 1, 1], [], []>} : vector<256x64xbf16>, vector<64x128xbf16>, vector<256x128xf32> -> vector<256x128xf32>
    %42 = arith.addf %36, %41 : vector<256x128xf32>
    %43 = vector.extract_strided_slice %11 {offsets = [1, 2, 0], sizes = [16, 16, 64], strides = [1, 1, 1]} : vector<18x18x64xbf16> to vector<16x16x64xbf16>
    %44 = vector.shape_cast %43 : vector<16x16x64xbf16> to vector<256x64xbf16>
    %c1_33 = arith.constant 1 : index
    %c2_34 = arith.constant 2 : index
    %c0_35 = arith.constant 0 : index
    %c0_36 = arith.constant 0 : index
    %45 = vector.load %arg3[%c1_33, %c2_34, %c0_35, %c0_36] : memref<3x3x64x128xbf16, #tpu.memory_space<vmem>>, vector<1x1x64x128xbf16>
    %46 = vector.shape_cast %45 : vector<1x1x64x128xbf16> to vector<64x128xbf16>
    %cst_37 = arith.constant dense<0.000000e+00> : vector<256x128xf32>
    %47 = tpu.matmul %44, %46, %cst_37 {dimension_numbers = #tpu.dot_dimension_numbers<[1], [0], [0], [1], [0, 0, 1, 1], [], []>} : vector<256x64xbf16>, vector<64x128xbf16>, vector<256x128xf32> -> vector<256x128xf32>
    %48 = arith.addf %42, %47 : vector<256x128xf32>
    %49 = vector.extract_strided_slice %11 {offsets = [2, 0, 0], sizes = [16, 16, 64], strides = [1, 1, 1]} : vector<18x18x64xbf16> to vector<16x16x64xbf16>
    %50 = vector.shape_cast %49 : vector<16x16x64xbf16> to vector<256x64xbf16>
    %c2_38 = arith.constant 2 : index
    %c0_39 = arith.constant 0 : index
    %c0_40 = arith.constant 0 : index
    %c0_41 = arith.constant 0 : index
    %51 = vector.load %arg3[%c2_38, %c0_39, %c0_40, %c0_41] : memref<3x3x64x128xbf16, #tpu.memory_space<vmem>>, vector<1x1x64x128xbf16>
    %52 = vector.shape_cast %51 : vector<1x1x64x128xbf16> to vector<64x128xbf16>
    %cst_42 = arith.constant dense<0.000000e+00> : vector<256x128xf32>
    %53 = tpu.matmul %50, %52, %cst_42 {dimension_numbers = #tpu.dot_dimension_numbers<[1], [0], [0], [1], [0, 0, 1, 1], [], []>} : vector<256x64xbf16>, vector<64x128xbf16>, vector<256x128xf32> -> vector<256x128xf32>
    %54 = arith.addf %48, %53 : vector<256x128xf32>
    %55 = vector.extract_strided_slice %11 {offsets = [2, 1, 0], sizes = [16, 16, 64], strides = [1, 1, 1]} : vector<18x18x64xbf16> to vector<16x16x64xbf16>
    %56 = vector.shape_cast %55 : vector<16x16x64xbf16> to vector<256x64xbf16>
    %c2_43 = arith.constant 2 : index
    %c1_44 = arith.constant 1 : index
    %c0_45 = arith.constant 0 : index
    %c0_46 = arith.constant 0 : index
    %57 = vector.load %arg3[%c2_43, %c1_44, %c0_45, %c0_46] : memref<3x3x64x128xbf16, #tpu.memory_space<vmem>>, vector<1x1x64x128xbf16>
    %58 = vector.shape_cast %57 : vector<1x1x64x128xbf16> to vector<64x128xbf16>
    %cst_47 = arith.constant dense<0.000000e+00> : vector<256x128xf32>
    %59 = tpu.matmul %56, %58, %cst_47 {dimension_numbers = #tpu.dot_dimension_numbers<[1], [0], [0], [1], [0, 0, 1, 1], [], []>} : vector<256x64xbf16>, vector<64x128xbf16>, vector<256x128xf32> -> vector<256x128xf32>
    %60 = arith.addf %54, %59 : vector<256x128xf32>
    %61 = vector.extract_strided_slice %11 {offsets = [2, 2, 0], sizes = [16, 16, 64], strides = [1, 1, 1]} : vector<18x18x64xbf16> to vector<16x16x64xbf16>
    %62 = vector.shape_cast %61 : vector<16x16x64xbf16> to vector<256x64xbf16>
    %c2_48 = arith.constant 2 : index
    %c2_49 = arith.constant 2 : index
    %c0_50 = arith.constant 0 : index
    %c0_51 = arith.constant 0 : index
    %63 = vector.load %arg3[%c2_48, %c2_49, %c0_50, %c0_51] : memref<3x3x64x128xbf16, #tpu.memory_space<vmem>>, vector<1x1x64x128xbf16>
    %64 = vector.shape_cast %63 : vector<1x1x64x128xbf16> to vector<64x128xbf16>
    %cst_52 = arith.constant dense<0.000000e+00> : vector<256x128xf32>
    %65 = tpu.matmul %62, %64, %cst_52 {dimension_numbers = #tpu.dot_dimension_numbers<[1], [0], [0], [1], [0, 0, 1, 1], [], []>} : vector<256x64xbf16>, vector<64x128xbf16>, vector<256x128xf32> -> vector<256x128xf32>
    %66 = arith.addf %60, %65 : vector<256x128xf32>
    %67 = vector.shape_cast %66 : vector<256x128xf32> to vector<16x16x128xf32>
    %68 = arith.truncf %67 : vector<16x16x128xf32> to vector<16x16x128xbf16>
    %c0_53 = arith.constant 0 : index
    %c0_54 = arith.constant 0 : index
    %c0_55 = arith.constant 0 : index
    %c0_56 = arith.constant 0 : index
    %69 = vector.load %arg6[%c0_53, %c0_54, %c0_55, %c0_56] : memref<1x16x16x128xbf16, #tpu.memory_space<vmem>>, vector<1x16x16x128xbf16>
    %70 = vector.shape_cast %69 : vector<1x16x16x128xbf16> to vector<16x16x128xbf16>
    %71 = vector.shape_cast %68 : vector<16x16x128xbf16> to vector<1x16x16x128xbf16>
    tpu.vector_store %arg6[%c0_53, %c0_54, %c0_55, %c0_56], %71 {strides = array<i32>} : memref<1x16x16x128xbf16, #tpu.memory_space<vmem>>, vector<1x16x16x128xbf16>,
    %cst_57 = arith.constant dense<0.000000e+00> : vector<128xf32>
    %72 = vector.multi_reduction <add>, %66, %cst_57 [0] : vector<256x128xf32> to vector<128xf32>
    %73 = vector.shape_cast %72 : vector<128xf32> to vector<1x128xf32>
    %74 = arith.mulf %66, %66 : vector<256x128xf32>
    %cst_58 = arith.constant dense<0.000000e+00> : vector<128xf32>
    %75 = vector.multi_reduction <add>, %74, %cst_58 [0] : vector<256x128xf32> to vector<128xf32>
    %76 = vector.shape_cast %75 : vector<128xf32> to vector<1x128xf32>
    %77 = tpu.concatenate %73, %76 in 0 : vector<1x128xf32>, vector<1x128xf32> -> vector<2x128xf32>
    %c0_59 = arith.constant 0 : index
    %c0_60 = arith.constant 0 : index
    %c0_61 = arith.constant 0 : index
    %c0_62 = arith.constant 0 : index
    %78 = vector.load %arg7[%c0_59, %c0_60, %c0_61, %c0_62] : memref<1x1x2x128xf32, #tpu.memory_space<vmem>>, vector<1x1x2x128xf32>
    %79 = vector.shape_cast %78 : vector<1x1x2x128xf32> to vector<2x128xf32>
    %80 = vector.shape_cast %77 : vector<2x128xf32> to vector<1x1x2x128xf32>
    tpu.vector_store %arg7[%c0_59, %c0_60, %c0_61, %c0_62], %80 {strides = array<i32>} : memref<1x1x2x128xf32, #tpu.memory_space<vmem>>, vector<1x1x2x128xf32>,
    return
  }
  func.func @transform_0(%arg0: i32, %arg1: i32) -> (i32, i32, i32, i32) {
    %c1_i32 = arith.constant 1 : i32
    %0 = arith.muli %arg0, %c1_i32 : i32
    %1 = arith.addi %0, %arg1 : i32
    %c0_i32 = arith.constant 0 : i32
    %c0_i32_0 = arith.constant 0 : i32
    %c0_i32_1 = arith.constant 0 : i32
    %c0_i32_2 = arith.constant 0 : i32
    return %1, %c0_i32, %c0_i32_0, %c0_i32_1 : i32, i32, i32, i32
  }
  func.func @transform_1(%arg0: i32, %arg1: i32) -> (i32, i32, i32, i32) {
    %c0_i32 = arith.constant 0 : i32
    %c0_i32_0 = arith.constant 0 : i32
    %c0_i32_1 = arith.constant 0 : i32
    %c0_i32_2 = arith.constant 0 : i32
    %c0_i32_3 = arith.constant 0 : i32
    return %c0_i32, %c0_i32_0, %c0_i32_1, %c0_i32_2 : i32, i32, i32, i32
  }
  func.func @transform_2(%arg0: i32, %arg1: i32) -> (i32, i32, i32) {
    %c0_i32 = arith.constant 0 : i32
    %c0_i32_0 = arith.constant 0 : i32
    %c0_i32_1 = arith.constant 0 : i32
    %c0_i32_2 = arith.constant 0 : i32
    return %c0_i32, %c0_i32_0, %c0_i32_1 : i32, i32, i32
  }
  func.func @transform_3(%arg0: i32, %arg1: i32) -> (i32, i32, i32) {
    %c0_i32 = arith.constant 0 : i32
    %c0_i32_0 = arith.constant 0 : i32
    %c0_i32_1 = arith.constant 0 : i32
    %c0_i32_2 = arith.constant 0 : i32
    return %c0_i32, %c0_i32_0, %c0_i32_1 : i32, i32, i32
  }
  func.func @transform_4(%arg0: i32, %arg1: i32) -> (i32, i32, i32, i32) {
    %c0_i32 = arith.constant 0 : i32
    %c0_i32_0 = arith.constant 0 : i32
    %c0_i32_1 = arith.constant 0 : i32
    return %arg0, %arg1, %c0_i32, %c0_i32_0 : i32, i32, i32, i32
  }
  func.func @transform_5(%arg0: i32, %arg1: i32) -> (i32, i32, i32, i32) {
    %c0_i32 = arith.constant 0 : i32
    %c0_i32_0 = arith.constant 0 : i32
    %c0_i32_1 = arith.constant 0 : i32
    return %arg0, %arg1, %c0_i32, %c0_i32_0 : i32, i32, i32, i32
  }
}

module attributes {stable_mosaic.version = 11 : i64} {
  func.func @_conv_kernel(%arg0: i32, %arg1: i32, %arg2: memref<1x18x18x128xbf16, #tpu.memory_space<vmem>>, %arg3: memref<3x3x128x128xbf16, #tpu.memory_space<vmem>>, %arg4: memref<1x128xf32, #tpu.memory_space<vmem>>, %arg5: memref<1x1x128xf32, #tpu.memory_space<vmem>>, %arg6: memref<1x1x128xf32, #tpu.memory_space<vmem>>, %arg7: memref<1x16x16x128xf32, #tpu.memory_space<vmem>>) attributes {dimension_semantics = [#tpu.dimension_semantics<parallel>, #tpu.dimension_semantics<parallel>], iteration_bounds = array<i64: 2, 1>, scalar_prefetch = 0 : i64, scratch_operands = 0 : i64, tpu.core_type = #tpu.core_type<tc>, window_params = [{transform_indices = @transform_0, window_bounds = array<i64: 1, 18, 18, 128>}, {pipeline_mode = #tpu.pipeline_mode<synchronous>, transform_indices = @transform_1, window_bounds = array<i64: 3, 3, 128, 128>}, {pipeline_mode = #tpu.pipeline_mode<synchronous>, transform_indices = @transform_2, window_bounds = array<i64: 1, 128>}, {pipeline_mode = #tpu.pipeline_mode<synchronous>, transform_indices = @transform_3, window_bounds = array<i64: 1, 1, 128>}, {pipeline_mode = #tpu.pipeline_mode<synchronous>, transform_indices = @transform_4, window_bounds = array<i64: 1, 1, 128>}, {transform_indices = @transform_5, window_bounds = array<i64: 1, 16, 16, 128>}]} {
    %c0 = arith.constant 0 : index
    %c0_0 = arith.constant 0 : index
    %c0_1 = arith.constant 0 : index
    %c0_2 = arith.constant 0 : index
    %0 = vector.load %arg2[%c0, %c0_0, %c0_1, %c0_2] : memref<1x18x18x128xbf16, #tpu.memory_space<vmem>>, vector<1x18x18x128xbf16>
    %1 = vector.shape_cast %0 : vector<1x18x18x128xbf16> to vector<18x18x128xbf16>
    %2 = arith.extf %1 : vector<18x18x128xbf16> to vector<18x18x128xf32>
    %c0_3 = arith.constant 0 : index
    %c0_4 = arith.constant 0 : index
    %c0_5 = arith.constant 0 : index
    %3 = vector.load %arg5[%c0_3, %c0_4, %c0_5] : memref<1x1x128xf32, #tpu.memory_space<vmem>>, vector<1x1x128xf32>
    %4 = vector.broadcast %3 : vector<1x1x128xf32> to vector<18x18x128xf32>
    %5 = arith.mulf %2, %4 : vector<18x18x128xf32>
    %c0_6 = arith.constant 0 : index
    %c0_7 = arith.constant 0 : index
    %c0_8 = arith.constant 0 : index
    %6 = vector.load %arg6[%c0_6, %c0_7, %c0_8] : memref<1x1x128xf32, #tpu.memory_space<vmem>>, vector<1x1x128xf32>
    %7 = vector.broadcast %6 : vector<1x1x128xf32> to vector<18x18x128xf32>
    %8 = arith.addf %5, %7 : vector<18x18x128xf32>
    %cst = arith.constant 0.000000e+00 : f32
    %9 = vector.broadcast %cst : f32 to vector<18x18x128xf32>
    %10 = arith.maximumf %8, %9 : vector<18x18x128xf32>
    %11 = arith.truncf %10 : vector<18x18x128xf32> to vector<18x18x128xbf16>
    %cst_9 = arith.constant 0.000000e+00 : f32
    %12 = vector.broadcast %cst_9 : f32 to vector<256x128xf32>
    %13 = vector.extract_strided_slice %11 {offsets = [0, 0, 0], sizes = [16, 16, 128], strides = [1, 1, 1]} : vector<18x18x128xbf16> to vector<16x16x128xbf16>
    %14 = vector.shape_cast %13 : vector<16x16x128xbf16> to vector<256x128xbf16>
    %c0_10 = arith.constant 0 : index
    %c0_11 = arith.constant 0 : index
    %c0_12 = arith.constant 0 : index
    %c0_13 = arith.constant 0 : index
    %15 = vector.load %arg3[%c0_10, %c0_11, %c0_12, %c0_13] : memref<3x3x128x128xbf16, #tpu.memory_space<vmem>>, vector<1x1x128x128xbf16>
    %16 = vector.shape_cast %15 : vector<1x1x128x128xbf16> to vector<128x128xbf16>
    %cst_14 = arith.constant dense<0.000000e+00> : vector<256x128xf32>
    %17 = tpu.matmul %14, %16, %cst_14 {dimension_numbers = #tpu.dot_dimension_numbers<[1], [0], [0], [1], [0, 0, 1, 1], [], []>} : vector<256x128xbf16>, vector<128x128xbf16>, vector<256x128xf32> -> vector<256x128xf32>
    %18 = arith.addf %12, %17 : vector<256x128xf32>
    %19 = vector.extract_strided_slice %11 {offsets = [0, 1, 0], sizes = [16, 16, 128], strides = [1, 1, 1]} : vector<18x18x128xbf16> to vector<16x16x128xbf16>
    %20 = vector.shape_cast %19 : vector<16x16x128xbf16> to vector<256x128xbf16>
    %c0_15 = arith.constant 0 : index
    %c1 = arith.constant 1 : index
    %c0_16 = arith.constant 0 : index
    %c0_17 = arith.constant 0 : index
    %21 = vector.load %arg3[%c0_15, %c1, %c0_16, %c0_17] : memref<3x3x128x128xbf16, #tpu.memory_space<vmem>>, vector<1x1x128x128xbf16>
    %22 = vector.shape_cast %21 : vector<1x1x128x128xbf16> to vector<128x128xbf16>
    %cst_18 = arith.constant dense<0.000000e+00> : vector<256x128xf32>
    %23 = tpu.matmul %20, %22, %cst_18 {dimension_numbers = #tpu.dot_dimension_numbers<[1], [0], [0], [1], [0, 0, 1, 1], [], []>} : vector<256x128xbf16>, vector<128x128xbf16>, vector<256x128xf32> -> vector<256x128xf32>
    %24 = arith.addf %18, %23 : vector<256x128xf32>
    %25 = vector.extract_strided_slice %11 {offsets = [0, 2, 0], sizes = [16, 16, 128], strides = [1, 1, 1]} : vector<18x18x128xbf16> to vector<16x16x128xbf16>
    %26 = vector.shape_cast %25 : vector<16x16x128xbf16> to vector<256x128xbf16>
    %c0_19 = arith.constant 0 : index
    %c2 = arith.constant 2 : index
    %c0_20 = arith.constant 0 : index
    %c0_21 = arith.constant 0 : index
    %27 = vector.load %arg3[%c0_19, %c2, %c0_20, %c0_21] : memref<3x3x128x128xbf16, #tpu.memory_space<vmem>>, vector<1x1x128x128xbf16>
    %28 = vector.shape_cast %27 : vector<1x1x128x128xbf16> to vector<128x128xbf16>
    %cst_22 = arith.constant dense<0.000000e+00> : vector<256x128xf32>
    %29 = tpu.matmul %26, %28, %cst_22 {dimension_numbers = #tpu.dot_dimension_numbers<[1], [0], [0], [1], [0, 0, 1, 1], [], []>} : vector<256x128xbf16>, vector<128x128xbf16>, vector<256x128xf32> -> vector<256x128xf32>
    %30 = arith.addf %24, %29 : vector<256x128xf32>
    %31 = vector.extract_strided_slice %11 {offsets = [1, 0, 0], sizes = [16, 16, 128], strides = [1, 1, 1]} : vector<18x18x128xbf16> to vector<16x16x128xbf16>
    %32 = vector.shape_cast %31 : vector<16x16x128xbf16> to vector<256x128xbf16>
    %c1_23 = arith.constant 1 : index
    %c0_24 = arith.constant 0 : index
    %c0_25 = arith.constant 0 : index
    %c0_26 = arith.constant 0 : index
    %33 = vector.load %arg3[%c1_23, %c0_24, %c0_25, %c0_26] : memref<3x3x128x128xbf16, #tpu.memory_space<vmem>>, vector<1x1x128x128xbf16>
    %34 = vector.shape_cast %33 : vector<1x1x128x128xbf16> to vector<128x128xbf16>
    %cst_27 = arith.constant dense<0.000000e+00> : vector<256x128xf32>
    %35 = tpu.matmul %32, %34, %cst_27 {dimension_numbers = #tpu.dot_dimension_numbers<[1], [0], [0], [1], [0, 0, 1, 1], [], []>} : vector<256x128xbf16>, vector<128x128xbf16>, vector<256x128xf32> -> vector<256x128xf32>
    %36 = arith.addf %30, %35 : vector<256x128xf32>
    %37 = vector.extract_strided_slice %11 {offsets = [1, 1, 0], sizes = [16, 16, 128], strides = [1, 1, 1]} : vector<18x18x128xbf16> to vector<16x16x128xbf16>
    %38 = vector.shape_cast %37 : vector<16x16x128xbf16> to vector<256x128xbf16>
    %c1_28 = arith.constant 1 : index
    %c1_29 = arith.constant 1 : index
    %c0_30 = arith.constant 0 : index
    %c0_31 = arith.constant 0 : index
    %39 = vector.load %arg3[%c1_28, %c1_29, %c0_30, %c0_31] : memref<3x3x128x128xbf16, #tpu.memory_space<vmem>>, vector<1x1x128x128xbf16>
    %40 = vector.shape_cast %39 : vector<1x1x128x128xbf16> to vector<128x128xbf16>
    %cst_32 = arith.constant dense<0.000000e+00> : vector<256x128xf32>
    %41 = tpu.matmul %38, %40, %cst_32 {dimension_numbers = #tpu.dot_dimension_numbers<[1], [0], [0], [1], [0, 0, 1, 1], [], []>} : vector<256x128xbf16>, vector<128x128xbf16>, vector<256x128xf32> -> vector<256x128xf32>
    %42 = arith.addf %36, %41 : vector<256x128xf32>
    %43 = vector.extract_strided_slice %11 {offsets = [1, 2, 0], sizes = [16, 16, 128], strides = [1, 1, 1]} : vector<18x18x128xbf16> to vector<16x16x128xbf16>
    %44 = vector.shape_cast %43 : vector<16x16x128xbf16> to vector<256x128xbf16>
    %c1_33 = arith.constant 1 : index
    %c2_34 = arith.constant 2 : index
    %c0_35 = arith.constant 0 : index
    %c0_36 = arith.constant 0 : index
    %45 = vector.load %arg3[%c1_33, %c2_34, %c0_35, %c0_36] : memref<3x3x128x128xbf16, #tpu.memory_space<vmem>>, vector<1x1x128x128xbf16>
    %46 = vector.shape_cast %45 : vector<1x1x128x128xbf16> to vector<128x128xbf16>
    %cst_37 = arith.constant dense<0.000000e+00> : vector<256x128xf32>
    %47 = tpu.matmul %44, %46, %cst_37 {dimension_numbers = #tpu.dot_dimension_numbers<[1], [0], [0], [1], [0, 0, 1, 1], [], []>} : vector<256x128xbf16>, vector<128x128xbf16>, vector<256x128xf32> -> vector<256x128xf32>
    %48 = arith.addf %42, %47 : vector<256x128xf32>
    %49 = vector.extract_strided_slice %11 {offsets = [2, 0, 0], sizes = [16, 16, 128], strides = [1, 1, 1]} : vector<18x18x128xbf16> to vector<16x16x128xbf16>
    %50 = vector.shape_cast %49 : vector<16x16x128xbf16> to vector<256x128xbf16>
    %c2_38 = arith.constant 2 : index
    %c0_39 = arith.constant 0 : index
    %c0_40 = arith.constant 0 : index
    %c0_41 = arith.constant 0 : index
    %51 = vector.load %arg3[%c2_38, %c0_39, %c0_40, %c0_41] : memref<3x3x128x128xbf16, #tpu.memory_space<vmem>>, vector<1x1x128x128xbf16>
    %52 = vector.shape_cast %51 : vector<1x1x128x128xbf16> to vector<128x128xbf16>
    %cst_42 = arith.constant dense<0.000000e+00> : vector<256x128xf32>
    %53 = tpu.matmul %50, %52, %cst_42 {dimension_numbers = #tpu.dot_dimension_numbers<[1], [0], [0], [1], [0, 0, 1, 1], [], []>} : vector<256x128xbf16>, vector<128x128xbf16>, vector<256x128xf32> -> vector<256x128xf32>
    %54 = arith.addf %48, %53 : vector<256x128xf32>
    %55 = vector.extract_strided_slice %11 {offsets = [2, 1, 0], sizes = [16, 16, 128], strides = [1, 1, 1]} : vector<18x18x128xbf16> to vector<16x16x128xbf16>
    %56 = vector.shape_cast %55 : vector<16x16x128xbf16> to vector<256x128xbf16>
    %c2_43 = arith.constant 2 : index
    %c1_44 = arith.constant 1 : index
    %c0_45 = arith.constant 0 : index
    %c0_46 = arith.constant 0 : index
    %57 = vector.load %arg3[%c2_43, %c1_44, %c0_45, %c0_46] : memref<3x3x128x128xbf16, #tpu.memory_space<vmem>>, vector<1x1x128x128xbf16>
    %58 = vector.shape_cast %57 : vector<1x1x128x128xbf16> to vector<128x128xbf16>
    %cst_47 = arith.constant dense<0.000000e+00> : vector<256x128xf32>
    %59 = tpu.matmul %56, %58, %cst_47 {dimension_numbers = #tpu.dot_dimension_numbers<[1], [0], [0], [1], [0, 0, 1, 1], [], []>} : vector<256x128xbf16>, vector<128x128xbf16>, vector<256x128xf32> -> vector<256x128xf32>
    %60 = arith.addf %54, %59 : vector<256x128xf32>
    %61 = vector.extract_strided_slice %11 {offsets = [2, 2, 0], sizes = [16, 16, 128], strides = [1, 1, 1]} : vector<18x18x128xbf16> to vector<16x16x128xbf16>
    %62 = vector.shape_cast %61 : vector<16x16x128xbf16> to vector<256x128xbf16>
    %c2_48 = arith.constant 2 : index
    %c2_49 = arith.constant 2 : index
    %c0_50 = arith.constant 0 : index
    %c0_51 = arith.constant 0 : index
    %63 = vector.load %arg3[%c2_48, %c2_49, %c0_50, %c0_51] : memref<3x3x128x128xbf16, #tpu.memory_space<vmem>>, vector<1x1x128x128xbf16>
    %64 = vector.shape_cast %63 : vector<1x1x128x128xbf16> to vector<128x128xbf16>
    %cst_52 = arith.constant dense<0.000000e+00> : vector<256x128xf32>
    %65 = tpu.matmul %62, %64, %cst_52 {dimension_numbers = #tpu.dot_dimension_numbers<[1], [0], [0], [1], [0, 0, 1, 1], [], []>} : vector<256x128xbf16>, vector<128x128xbf16>, vector<256x128xf32> -> vector<256x128xf32>
    %66 = arith.addf %60, %65 : vector<256x128xf32>
    %c0_53 = arith.constant 0 : index
    %c0_54 = arith.constant 0 : index
    %67 = vector.load %arg4[%c0_53, %c0_54] : memref<1x128xf32, #tpu.memory_space<vmem>>, vector<1x128xf32>
    %68 = vector.broadcast %67 : vector<1x128xf32> to vector<256x128xf32>
    %69 = arith.addf %66, %68 : vector<256x128xf32>
    %70 = math.tanh %69 : vector<256x128xf32>
    %71 = vector.shape_cast %70 : vector<256x128xf32> to vector<16x16x128xf32>
    %c0_55 = arith.constant 0 : index
    %c0_56 = arith.constant 0 : index
    %c0_57 = arith.constant 0 : index
    %c0_58 = arith.constant 0 : index
    %72 = vector.load %arg7[%c0_55, %c0_56, %c0_57, %c0_58] : memref<1x16x16x128xf32, #tpu.memory_space<vmem>>, vector<1x16x16x128xf32>
    %73 = vector.shape_cast %72 : vector<1x16x16x128xf32> to vector<16x16x128xf32>
    %74 = vector.shape_cast %71 : vector<16x16x128xf32> to vector<1x16x16x128xf32>
    tpu.vector_store %arg7[%c0_55, %c0_56, %c0_57, %c0_58], %74 {strides = array<i32>} : memref<1x16x16x128xf32, #tpu.memory_space<vmem>>, vector<1x16x16x128xf32>,
    return
  }
  func.func @transform_0(%arg0: i32, %arg1: i32) -> (i32, i32, i32, i32) {
    %c1_i32 = arith.constant 1 : i32
    %0 = arith.muli %arg0, %c1_i32 : i32
    %1 = arith.addi %0, %arg1 : i32
    %c0_i32 = arith.constant 0 : i32
    %c0_i32_0 = arith.constant 0 : i32
    %c0_i32_1 = arith.constant 0 : i32
    %c0_i32_2 = arith.constant 0 : i32
    return %1, %c0_i32, %c0_i32_0, %c0_i32_1 : i32, i32, i32, i32
  }
  func.func @transform_1(%arg0: i32, %arg1: i32) -> (i32, i32, i32, i32) {
    %c0_i32 = arith.constant 0 : i32
    %c0_i32_0 = arith.constant 0 : i32
    %c0_i32_1 = arith.constant 0 : i32
    %c0_i32_2 = arith.constant 0 : i32
    %c0_i32_3 = arith.constant 0 : i32
    return %c0_i32, %c0_i32_0, %c0_i32_1, %c0_i32_2 : i32, i32, i32, i32
  }
  func.func @transform_2(%arg0: i32, %arg1: i32) -> (i32, i32) {
    %c0_i32 = arith.constant 0 : i32
    %c0_i32_0 = arith.constant 0 : i32
    %c0_i32_1 = arith.constant 0 : i32
    return %c0_i32, %c0_i32_0 : i32, i32
  }
  func.func @transform_3(%arg0: i32, %arg1: i32) -> (i32, i32, i32) {
    %c0_i32 = arith.constant 0 : i32
    %c0_i32_0 = arith.constant 0 : i32
    %c0_i32_1 = arith.constant 0 : i32
    %c0_i32_2 = arith.constant 0 : i32
    return %c0_i32, %c0_i32_0, %c0_i32_1 : i32, i32, i32
  }
  func.func @transform_4(%arg0: i32, %arg1: i32) -> (i32, i32, i32) {
    %c0_i32 = arith.constant 0 : i32
    %c0_i32_0 = arith.constant 0 : i32
    %c0_i32_1 = arith.constant 0 : i32
    %c0_i32_2 = arith.constant 0 : i32
    return %c0_i32, %c0_i32_0, %c0_i32_1 : i32, i32, i32
  }
  func.func @transform_5(%arg0: i32, %arg1: i32) -> (i32, i32, i32, i32) {
    %c0_i32 = arith.constant 0 : i32
    %c0_i32_0 = arith.constant 0 : i32
    %c0_i32_1 = arith.constant 0 : i32
    return %arg0, %arg1, %c0_i32, %c0_i32_0 : i32, i32, i32, i32
  }
}

</mosaic_0001>

<bundles_post_ra>
// kernel: estimate_forward.4
= control target key start
LH: loop header
LB: loop body
LE: loop exit
PB: predicated region body
PF: predicated region fallthrough
CT: control target
= control target key end

     0   :  { %s2811_s12 = smov 0   ;;  %s2813_s13 = smov 0   ;;  %s3996_s0 = inlined_call_operand.vmem [shape: bf16[2,18,18,8], index: 0, kind: input, shape index: {}]   ;;  %s3997_s1 = inlined_call_operand.vmem [shape: bf16[3,3,8,64], index: 1, kind: input, shape index: {}]   ;;  %s3998_s2 = inlined_call_operand.vmem [shape: f32[1,64], index: 2, kind: input, shape index: {}]   ;;  %s3999_s3 = inlined_call_operand.vmem [shape: bf16[2,16,16,64], index: 3, kind: output, shape index: {}]  }
   0x1   :  { %s2815_s14 = smov 0  }
   0x2 LB: > { %s25_s15 = sadd.s32 1, %s2785_s13  ;;  %p2463_p0 = scmp.ge.s32.totalorder %s2789_s14, 1  ;;  %s2789_s14 = sphi %s2815_s14, %s13_s14   ;;  %s2785_s13 = sphi %s2813_s13, %s4139_s13   ;;  %s2781_s12 = sphi %s2811_s12, %s4138_s12  }
   0x3   : > { %p27_p1 = scmp.ge.s32.totalorder %s25_s15, 2  ;;  %p155_p2 = scmp.lt.s32.totalorder %s2789_s14, 3 }
   0x5   : > { %s4141_s15 = smov (%p27_p1, %s25_s15), 0  ;;  %p156_p3 = pnand %p2463_p0, %p155_p2 }
   0x7   : > { %159 = sbr.rel (%p156_p3) target bundleno = 759 (0x2f7), region = 32 }
   0xc   : > { %v2467_v0 = vld [vmem:[%s3997_s1 + $0x4] sm:$0xf]  ;;  %vm745_vm0 = vcmask 1043456   ;;  %p186_p4 = scmp.lt.s32.totalorder %s2781_s12, 1  ;;  %v2580_v2 = vld [vmem:[%s3997_s1 + $0x8] sm:$0xf] }
   0xd   : > { %v747_v1 = vsel %vm745_vm0, %v2467_v0, 0  ;;  %v1288_v3 = vsel %vm745_vm0, %v2580_v2, 0  ;;  %v2597_v4 = vld [vmem:[%s3997_s1 + $0xc] sm:$0xf]  ;;  %v258_v5 = vld [vmem:[%s3997_s1] sm:$0xf] }
   0xe   : > { %2730 = vmatpush.bf16.msra.mxu1 %v747_v1  ;;  %2731 = vmatpush.bf16.msra.mxu2 %v747_v1  ;;  %s4143_s12 = smov (!%p186_p4, %s2781_s12), 1  ;;  %v2618_v6 = vld [vmem:[%s3997_s1 + $0x10] sm:$0xf]  ;;  %v1422_v7 = vsel %vm745_vm0, %v2597_v4, 0  ;;  %v967_v8 = vsel %vm745_vm0, %v258_v5, 0  ;;  %vm696_vm4 = vcmask 64512  }
   0xf   : > { %2732 = vmatpush.bf16.msra.mxu3 %v747_v1  ;;  %756 = vmatpush.bf16.msra.mxu0 %v747_v1  ;;  %s2733_s26 = smul.u32 216, %s4143_s12  ;;  %v1578_v9 = vsel %vm745_vm0, %v2618_v6, 0  ;;  %vm259_vm1 = vsmask.f32 3328  ;;  %vm260_vm2 = vsmask.f32 7440 }
  0x10   : > { %vm2882_vm3 = vmor %vm259_vm1, %vm260_vm2  ;;  %vm1074_vm5 = vcmask 1042432   ;;  %vm1075_vm6 = vcmask 1046532   ;;  %s2711_s17 = sshll.u32 %s4143_s12, 7  ;;  %vm2339_vm8 = vcmask 519168  }
  0x11   : > { %s2855_s29 = scalar_lea.vmem %s3996_s0, %s2733_s26  ;;  %vm3185_vm7 = vmor %vm1074_vm5, %vm1075_vm6  ;;  %s3782_s20 = scalar_lea.vmem %s3999_s3, %s2711_s17 }
  0x12   : > { %1297 = vmatpush.bf16.msrb.mxu2 %v1288_v3  ;;  %976 = vmatpush.bf16.msrb.mxu1 %v967_v8  ;;  %v2858_v10 = vld [vmem:[%s2855_s29 + $0x30] sm:$0xf]  ;;  %v2861_v11 = vld [vmem:[%s2855_s29 + $0x34] sm:$0xf]  ;;  %v2864_v12 = vld [vmem:[%s2855_s29 + $0x38] sm:$0x1] }
  0x13   : > { %1431 = vmatpush.bf16.msrb.mxu3 %v1422_v7  ;;  %1587 = vmatpush.bf16.msrb.mxu0 %v1578_v9  ;;  %v359_v13 = vshrl.u32 %v2858_v10, 16  ;;  %v362_v14 = vshll.u32 %v2858_v10, 16  ;;  %v368_v15 = vshll.u32 %v2861_v11, 16  ;;  %v372_v16 = vshrl.u32 %v2861_v11, 16  ;;  %v228_v17 = vld [vmem:[%s2855_s29 + $0x60] sm:$0xf] }
  0x14   : > { %v378_v18 = vshll.u32 %v2864_v12, 16  ;;  %v2873_v19 = vld [vmem:[%s2855_s29 + $0x64] sm:$0xf]  ;;  %v230_v20 = vld [vmem:[%s2855_s29 + $0x68] sm:$0x1]  ;;  %v455_v21 = vshrl.u32 %v228_v17, 16 }
  0x15   : > { %v361_v22 = vrot.slane %v359_v13, 4  ;;  %v364_v23 = vrot.slane %v362_v14, 5  ;;  %v370_v24 = vrot.slane %v368_v15, 5  ;;  %v374_v25 = vrot.slane %v372_v16, 4  ;;  %v240_v26 = vld [vmem:[%s2855_s29 + $0x90] sm:$0xf] }
  0x16   : > { %v380_v27 = vrot.slane %v378_v18, 5  ;;  %v457_v28 = vrot.slane %v455_v21, 4  ;;  %v458_v29 = vshll.u32 %v228_v17, 16  ;;  %v464_v30 = vshll.u32 %v2873_v19, 16  ;;  %v241_v35 = vld [vmem:[%s2855_s29 + $0x94] sm:$0xf] }
  0x17   : > { %v365_v31 = vor.u32 %v364_v23, %v361_v22  ;;  %v375_v32 = vor.u32 %v374_v25, %v370_v24  ;;  %v468_v33 = vshrl.u32 %v2873_v19, 16  ;;  %v474_v34 = vshll.u32 %v230_v20, 16  ;;  %v242_v45 = vld [vmem:[%s2855_s29 + $0x98] sm:$0x1]  ;;  %v2892_v61 = vld [vmem:[%s2855_s29] sm:$0xf] }
  0x18   : > { %v460_v37 = vrot.slane %v458_v29, 5  ;;  %v466_v38 = vrot.slane %v464_v30, 5  ;;  %v551_v39 = vshrl.u32 %v240_v26, 16  ;;  %v554_v47 = vshll.u32 %v240_v26, 16  ;;  %v2899_v1 = vld [vmem:[%s2855_s29 + $0x4] sm:$0xf] }
  0x19   : > { %v366_v40 = vrot.slane %v365_v31, 4  ;;  %v376_v41 = vrot.slane %v375_v32, 4  ;;  %v470_v42 = vrot.slane %v468_v33, 4  ;;  %v476_v43 = vrot.slane %v474_v34, 5  ;;  %v2902_v2 = vld [vmem:[%s2855_s29 + $0x8] sm:$0x1] }
  0x1a   : > { %v461_v44 = vor.u32 %v460_v37, %v457_v28  ;;  %v553_v46 = vrot.slane %v551_v39, 4  ;;  %v560_v48 = vshll.u32 %v241_v35, 16  ;;  %v564_v52 = vshrl.u32 %v241_v35, 16  ;;  %v2918_v23 = vld [vmem:[%s2855_s29 + $0x3c] sm:$0xf] }
  0x1b   : > { %v371_v49 = vsel %vm2882_vm3, %v366_v40, %v370_v24  ;;  %v381_v50 = vsel %vm2882_vm3, %v376_v41, %v380_v27  ;;  %v471_v51 = vor.u32 %v470_v42, %v466_v38  ;;  %v556_v56 = vrot.slane %v554_v47, 5  ;;  %v2921_v24 = vld [vmem:[%s2855_s29 + $0x40] sm:$0xf]  ;;  %v2926_v29 = vld [vmem:[%s2855_s29 + $0x44] sm:$0x1] }
  0x1c   : > { %v656_v53 = vunpack.c.l.b16 %v371_v49  ;;  %v657_v54 = vunpack.c.l.b16 %v381_v50  ;;  %v462_v55 = vrot.slane %v461_v44, 4  ;;  %v562_v58 = vrot.slane %v560_v48, 5  ;;  %v2941_v47 = vld [vmem:[%s2855_s29 + $0x70] sm:$0xf] }
  0x1d   : > { %v472_v57 = vrot.slane %v471_v51, 4  ;;  %v566_v59 = vrot.slane %v564_v52, 4  ;;  %v570_v60 = vshll.u32 %v242_v45, 16  ;;  %v557_v0 = vor.u32 %v556_v56, %v553_v46  ;;  %v2948_v51 = vld [vmem:[%s2855_s29 + $0x74] sm:$0x1] }
  0x1e   : > { %v2894_v62 = vpack.c.b16 %v657_v54, %v656_v53  ;;  %v467_v63 = vsel %vm2882_vm3, %v462_v55, %v466_v38  ;;  %v263_v9 = vshrl.u32 %v2892_v61, 16  ;;  %v266_v13 = vshll.u32 %v2892_v61, 16  ;;  %v2934_v38 = vld [vmem:[%s2855_s29 + $0x6c] sm:$0xf] }
  0x1f   : > { %v477_v3 = vsel %vm2882_vm3, %v472_v57, %v476_v43  ;;  %v664_v4 = vunpack.c.l.b16 %v467_v63  ;;  %v567_v5 = vor.u32 %v566_v59, %v562_v58  ;;  %v572_v6 = vrot.slane %v570_v60, 5 }
  0x20   : > { %2472 = vmatmul.msk.bf16.vlgmr.msra.gmra.mxu1 %vm696_vm4, %v2894_v62  ;;  %v665_v7 = vunpack.c.l.b16 %v477_v3  ;;  %v558_v8 = vrot.slane %v557_v0, 4  ;;  %v272_v15 = vshll.u32 %v2899_v1, 16  ;;  %v276_v16 = vshrl.u32 %v2899_v1, 16 }
  0x21   : > { %v568_v14 = vrot.slane %v567_v5, 4  ;;  %v282_v17 = vshll.u32 %v2902_v2, 16  ;;  %v265_v21 = vrot.slane %v263_v9, 4  ;;  %v268_v22 = vrot.slane %v266_v13, 5  ;;  %v243_v5 = vld [vmem:[%s2855_s29 + $0x9c] sm:$0xf] }
  0x22   : > { %v2913_v18 = vpack.c.b16 %v665_v7, %v664_v4  ;;  %v563_v20 = vsel %vm2882_vm3, %v558_v8, %v562_v58  ;;  %v274_v27 = vrot.slane %v272_v15, 5  ;;  %v278_v28 = vrot.slane %v276_v16, 4  ;;  %v244_v9 = vld [vmem:[%s2855_s29 + $0xa0] sm:$0xf] }
  0x23   : > { %v573_v25 = vsel %vm2882_vm3, %v568_v14, %v572_v6  ;;  %v672_v26 = vunpack.c.l.b16 %v563_v20  ;;  %v269_v31 = vor.u32 %v268_v22, %v265_v21  ;;  %v284_v32 = vrot.slane %v282_v17, 5  ;;  %v245_v17 = vld [vmem:[%s2855_s29 + $0xa4] sm:$0x1] }
  0x24   : > { %4042 = vst [vmem:[#allocation2_spill] sm:$0xff] %v2913_v18  ;;  %2476 = vmatmul.msk.bf16.vlgmr.msra.gmra.mxu2 %vm696_vm4, %v2913_v18  ;;  %v673_v30 = vunpack.c.l.b16 %v573_v25  ;;  %v279_v33 = vor.u32 %v278_v28, %v274_v27  ;;  %v383_v34 = vshrl.u32 %v2918_v23, 16  ;;  %v386_v35 = vshll.u32 %v2918_v23, 16 }
  0x25   : > { %v392_v37 = vshll.u32 %v2921_v24, 16  ;;  %v270_v40 = vrot.slane %v269_v31, 4  ;;  %v396_v41 = vshrl.u32 %v2921_v24, 16  ;;  %v402_v42 = vshll.u32 %v2926_v29, 16 }
  0x26   : > { %v2936_v39 = vpack.c.b16 %v673_v30, %v672_v26  ;;  %v280_v43 = vrot.slane %v279_v33, 4  ;;  %v385_v44 = vrot.slane %v383_v34, 4  ;;  %v388_v45 = vrot.slane %v386_v35, 5  ;;  %v2966_v35 = vld [vmem:[%s2855_s29 + $0xc] sm:$0xf] }
  0x27   : > { %v394_v46 = vrot.slane %v392_v37, 5  ;;  %v275_v48 = vsel %vm2882_vm3, %v270_v40, %v274_v27  ;;  %v398_v49 = vrot.slane %v396_v41, 4  ;;  %v404_v50 = vrot.slane %v402_v42, 5 }
  0x28   : > { %4043 = vst [vmem:[#allocation3_spill] sm:$0xff] %v2936_v39  ;;  %2480 = vmatmul.msk.bf16.vlgmr.msra.gmra.mxu3 %vm696_vm4, %v2936_v39  ;;  %v479_v52 = vshrl.u32 %v2934_v38, 16  ;;  %v285_v53 = vsel %vm2882_vm3, %v280_v43, %v284_v32  ;;  %v648_v54 = vunpack.c.l.b16 %v275_v48  ;;  %v389_v55 = vor.u32 %v388_v45, %v385_v44  ;;  %v2973_v43 = vld [vmem:[%s2855_s29 + $0x10] sm:$0xf]  ;;  %v2976_v48 = vld [vmem:[%s2855_s29 + $0x14] sm:$0x1] }
  0x29   : > { %v482_v56 = vshll.u32 %v2934_v38, 16  ;;  %v649_v57 = vunpack.c.l.b16 %v285_v53  ;;  %v399_v58 = vor.u32 %v398_v49, %v394_v46  ;;  %v488_v60 = vshll.u32 %v2941_v47, 16  ;;  %v3153_v39 = vld [vmem:[%s2855_s29 + $0x2c] sm:$0x1] }
  0x2a   : > { %v481_v59 = vrot.slane %v479_v52, 4  ;;  %v390_v63 = vrot.slane %v389_v55, 4  ;;  %v492_v3 = vshrl.u32 %v2941_v47, 16  ;;  %v498_v4 = vshll.u32 %v2948_v51, 16 }
  0x2b   : > { %v484_v0 = vrot.slane %v482_v56, 5  ;;  %v680_v6 = vpack.c.b16 %v649_v57, %v648_v54  ;;  %v400_v7 = vrot.slane %v399_v58, 4  ;;  %v490_v8 = vrot.slane %v488_v60, 5  ;;  %v2986_v58 = vld [vmem:[%s2855_s29 + $0x48] sm:$0xf] }
  0x2c   : > { %v395_v13 = vsel %vm2882_vm3, %v390_v63, %v394_v46  ;;  %v494_v15 = vrot.slane %v492_v3, 4  ;;  %v500_v16 = vrot.slane %v498_v4, 5  ;;  %v575_v22 = vshrl.u32 %v243_v5, 16  ;;  %v2991_v3 = vld [vmem:[%s2855_s29 + $0x4c] sm:$0xf] }
  0x2d   : > { %v485_v14 = vor.u32 %v484_v0, %v481_v59  ;;  %2468 = vmatmul.msk.bf16.vlgmr.msra.gmra.mxu0 %vm696_vm4, %v680_v6  ;;  %v405_v20 = vsel %vm2882_vm3, %v400_v7, %v404_v50  ;;  %v658_v21 = vunpack.c.l.b16 %v395_v13  ;;  %v578_v25 = vshll.u32 %v243_v5, 16 }
  0x2e   : > { %v659_v26 = vunpack.c.l.b16 %v405_v20  ;;  %v495_v28 = vor.u32 %v494_v15, %v490_v8  ;;  %v584_v30 = vshll.u32 %v244_v9, 16  ;;  %v577_v31 = vrot.slane %v575_v22, 4  ;;  %v2998_v15 = vld [vmem:[%s2855_s29 + $0x50] sm:$0x1] }
  0x2f   : > { %v486_v27 = vrot.slane %v485_v14, 4  ;;  %v580_v32 = vrot.slane %v578_v25, 5  ;;  %v588_v33 = vshrl.u32 %v244_v9, 16  ;;  %v594_v34 = vshll.u32 %v245_v17, 16 }
  0x30   : > { %v2968_v37 = vpack.c.b16 %v659_v26, %v658_v21  ;;  %v496_v41 = vrot.slane %v495_v28, 4  ;;  %v586_v42 = vrot.slane %v584_v30, 5  ;;  %v287_v52 = vshrl.u32 %v2966_v35, 16  ;;  %v3009_v28 = vld [vmem:[%s2855_s29 + $0x78] sm:$0xf] }
  0x31   : > { %v491_v40 = vsel %vm2882_vm3, %v486_v27, %v490_v8  ;;  %v581_v45 = vor.u32 %v580_v32, %v577_v31  ;;  %v590_v46 = vrot.slane %v588_v33, 4  ;;  %v596_v50 = vrot.slane %v594_v34, 5  ;;  %v3013_v34 = vld [vmem:[%s2855_s29 + $0x7c] sm:$0xf] }
  0x32   : > { %v666_v44 = vunpack.c.l.b16 %v491_v40  ;;  %2473 = vmatmul.msk.bf16.gmra.mxu1 %vm696_vm4, %v2968_v37  ;;  %v501_v49 = vsel %vm2882_vm3, %v496_v41, %v500_v16  ;;  %v290_v53 = vshll.u32 %v2966_v35, 16  ;;  %v296_v57 = vshll.u32 %v2973_v43, 16 }
  0x33   : > { %v667_v54 = vunpack.c.l.b16 %v501_v49  ;;  %v582_v55 = vrot.slane %v581_v45, 4  ;;  %v591_v56 = vor.u32 %v590_v46, %v586_v42  ;;  %v289_v59 = vrot.slane %v287_v52, 4 }
  0x34   : > { %v292_v60 = vrot.slane %v290_v53, 5  ;;  %v300_v63 = vshrl.u32 %v2973_v43, 16  ;;  %v306_v0 = vshll.u32 %v2976_v48, 16  ;;  %v298_v7 = vrot.slane %v296_v57, 5 }
  0x35   : > { %v2993_v4 = vpack.c.b16 %v667_v54, %v666_v44  ;;  %v587_v5 = vsel %vm2882_vm3, %v582_v55, %v586_v42  ;;  %v592_v6 = vrot.slane %v591_v56, 4  ;;  %v407_v17 = vshrl.u32 %v2986_v58, 16 }
  0x36   : > { %v674_v8 = vunpack.c.l.b16 %v587_v5  ;;  %v293_v9 = vor.u32 %v292_v60, %v289_v59  ;;  %v302_v13 = vrot.slane %v300_v63, 4  ;;  %v308_v14 = vrot.slane %v306_v0, 5 }
  0x37   : > { %2477 = vmatmul.msk.bf16.gmra.mxu2 %vm696_vm4, %v2993_v4  ;;  %v597_v16 = vsel %vm2882_vm3, %v592_v6, %v596_v50  ;;  %v410_v20 = vshll.u32 %v2986_v58, 16  ;;  %v416_v21 = vshll.u32 %v2991_v3, 16  ;;  %v420_v27 = vshrl.u32 %v2991_v3, 16  ;;  %v3020_v50 = vld [vmem:[%s2855_s29 + $0x80] sm:$0x1] }
  0x38   : > { %v675_v22 = vunpack.c.l.b16 %v597_v16  ;;  %v294_v25 = vrot.slane %v293_v9, 4  ;;  %v303_v26 = vor.u32 %v302_v13, %v298_v7  ;;  %v409_v30 = vrot.slane %v407_v17, 4  ;;  %v3039_v16 = vld [vmem:[%s2855_s29 + $0xac] sm:$0xf]  ;;  %v3042_v17 = vld [vmem:[%s2855_s29 + $0xb0] sm:$0x1] }
  0x39   : > { %v412_v31 = vrot.slane %v410_v20, 5  ;;  %v418_v32 = vrot.slane %v416_v21, 5  ;;  %v426_v33 = vshll.u32 %v2998_v15, 16  ;;  %v422_v44 = vrot.slane %v420_v27, 4  ;;  %4046 = vst [vmem:[#allocation6_spill] sm:$0xff] %v3039_v16 }
  0x3a   : > { %v3015_v40 = vpack.c.b16 %v675_v22, %v674_v8  ;;  %v299_v41 = vsel %vm2882_vm3, %v294_v25, %v298_v7  ;;  %v304_v42 = vrot.slane %v303_v26, 4  ;;  %v503_v52 = vshrl.u32 %v3009_v28, 16  ;;  %v3032_v8 = vld [vmem:[%s2855_s29 + $0xa8] sm:$0xf]  ;;  %4047 = vst [vmem:[#allocation7_spill] sm:$0xff] %v3042_v17 }
  0x3b   : > { %v650_v45 = vunpack.c.l.b16 %v299_v41  ;;  %v413_v46 = vor.u32 %v412_v31, %v409_v30  ;;  %v428_v49 = vrot.slane %v426_v33, 5  ;;  %v423_v54 = vor.u32 %v422_v44, %v418_v32  ;;  %4045 = vst [vmem:[#allocation5_spill] sm:$0xff] %v3032_v8 }
  0x3c   : > { %4044 = vst [vmem:[#allocation4_spill] sm:$0xff] %v3015_v40  ;;  %2481 = vmatmul.msk.bf16.gmra.mxu3 %vm696_vm4, %v3015_v40  ;;  %v309_v53 = vsel %vm2882_vm3, %v304_v42, %v308_v14  ;;  %v506_v55 = vshll.u32 %v3009_v28, 16  ;;  %v512_v56 = vshll.u32 %v3013_v34, 16  ;;  %v505_v60 = vrot.slane %v503_v52, 4  ;;  %v3056_v52 = vld [vmem:[%s2855_s29 + $0x18] sm:$0xf] }
  0x3d   : > { %v651_v57 = vunpack.c.l.b16 %v309_v53  ;;  %v414_v59 = vrot.slane %v413_v46, 4  ;;  %v516_v63 = vshrl.u32 %v3013_v34, 16  ;;  %v424_v0 = vrot.slane %v423_v54, 4  ;;  %v3142_v40 = vld [vmem:[%s2855_s29 + $0x24] sm:$0xf] }
  0x3e   : > { %v508_v5 = vrot.slane %v506_v55, 5  ;;  %v514_v6 = vrot.slane %v512_v56, 5  ;;  %v522_v7 = vshll.u32 %v3020_v50, 16  ;;  %v599_v30 = vshrl.u32 %v3032_v8, 16  ;;  %v3061_v56 = vld [vmem:[%s2855_s29 + $0x1c] sm:$0xf] }
  0x3f   : > { %v3034_v9 = vpack.c.b16 %v651_v57, %v650_v45  ;;  %v419_v13 = vsel %vm2882_vm3, %v414_v59, %v418_v32  ;;  %v518_v14 = vrot.slane %v516_v63, 4  ;;  %v429_v20 = vsel %vm2882_vm3, %v424_v0, %v428_v49  ;;  %v3064_v57 = vld [vmem:[%s2855_s29 + $0x20] sm:$0x1] }
  0x40   : > { %v660_v21 = vunpack.c.l.b16 %v419_v13  ;;  %v509_v22 = vor.u32 %v508_v5, %v505_v60  ;;  %v524_v25 = vrot.slane %v522_v7, 5  ;;  %v661_v26 = vunpack.c.l.b16 %v429_v20 }
  0x41   : > { %2469 = vmatmul.msk.bf16.gmra.mxu0 %vm696_vm4, %v3034_v9  ;;  %v519_v27 = vor.u32 %v518_v14, %v514_v6  ;;  %v602_v31 = vshll.u32 %v3032_v8, 16  ;;  %v608_v33 = vshll.u32 %v3039_v16, 16  ;;  %v612_v41 = vshrl.u32 %v3039_v16, 16 }
  0x42   : > { %v510_v32 = vrot.slane %v509_v22, 4  ;;  %v618_v42 = vshll.u32 %v3042_v17, 16  ;;  %v3053_v44 = vpack.c.b16 %v661_v26, %v660_v21  ;;  %v601_v46 = vrot.slane %v599_v30, 4  ;;  %v3076_v26 = vld [vmem:[%s2855_s29 + $0x54] sm:$0xf] }
  0x43   : > { %v520_v45 = vrot.slane %v519_v27, 4  ;;  %v604_v49 = vrot.slane %v602_v31, 5  ;;  %v610_v54 = vrot.slane %v608_v33, 5  ;;  %v614_v55 = vrot.slane %v612_v41, 4  ;;  %v3120_v17 = vld [vmem:[%s2855_s29 + $0xb4] sm:$0xf] }
  0x44   : > { %4048 = vst [vmem:[#allocation8_spill] sm:$0xff] %v3053_v44  ;;  %v515_v53 = vsel %vm2882_vm3, %v510_v32, %v514_v6  ;;  %2474 = vmatmul.msk.bf16.gmra.mxu1 %vm696_vm4, %v3053_v44  ;;  %v620_v0 = vrot.slane %v618_v42, 5  ;;  %v311_v6 = vshrl.u32 %v3056_v52, 16  ;;  %v314_v13 = vshll.u32 %v3056_v52, 16  ;;  %v3081_v32 = vld [vmem:[%s2855_s29 + $0x58] sm:$0xf] }
  0x45   : > { %v525_v59 = vsel %vm2882_vm3, %v520_v45, %v524_v25  ;;  %v668_v60 = vunpack.c.l.b16 %v515_v53  ;;  %v605_v63 = vor.u32 %v604_v49, %v601_v46  ;;  %v615_v7 = vor.u32 %v614_v55, %v610_v54  ;;  %v3086_v46 = vld [vmem:[%s2855_s29 + $0x5c] sm:$0x1]  ;;  %4051 = vst [vmem:[#allocation11_spill] sm:$0xff] %v3120_v17 }
  0x46   : > { %v669_v5 = vunpack.c.l.b16 %v525_v59  ;;  %v320_v20 = vshll.u32 %v3061_v56, 16  ;;  %v324_v21 = vshrl.u32 %v3061_v56, 16  ;;  %v330_v22 = vshll.u32 %v3064_v57, 16 }
  0x47   : > { %v606_v14 = vrot.slane %v605_v63, 4  ;;  %v616_v27 = vrot.slane %v615_v7, 4  ;;  %v313_v30 = vrot.slane %v311_v6, 4  ;;  %v316_v31 = vrot.slane %v314_v13, 5  ;;  %v3096_v7 = vld [vmem:[%s2855_s29 + $0x84] sm:$0xf] }
  0x48   : > { %v3078_v25 = vpack.c.b16 %v669_v5, %v668_v60  ;;  %v322_v41 = vrot.slane %v320_v20, 5  ;;  %v326_v42 = vrot.slane %v324_v21, 4  ;;  %v332_v45 = vrot.slane %v330_v22, 5  ;;  %4049 = vst [vmem:[#allocation9_spill] sm:$0xff] %v3096_v7 }
  0x49   : > { %v611_v33 = vsel %vm2882_vm3, %v606_v14, %v610_v54  ;;  %v621_v49 = vsel %vm2882_vm3, %v616_v27, %v620_v0  ;;  %v317_v55 = vor.u32 %v316_v31, %v313_v30  ;;  %v431_v59 = vshrl.u32 %v3076_v26, 16  ;;  %v3103_v30 = vld [vmem:[%s2855_s29 + $0x88] sm:$0xf] }
  0x4a   : > { %2478 = vmatmul.msk.bf16.gmra.mxu2 %vm696_vm4, %v3078_v25  ;;  %v676_v53 = vunpack.c.l.b16 %v611_v33  ;;  %v677_v60 = vunpack.c.l.b16 %v621_v49  ;;  %v327_v63 = vor.u32 %v326_v42, %v322_v41  ;;  %v434_v54 = vshll.u32 %v3076_v26, 16  ;;  %v3108_v49 = vld [vmem:[%s2855_s29 + $0x8c] sm:$0x1] }
  0x4b   : > { %v440_v5 = vshll.u32 %v3081_v32, 16  ;;  %v318_v6 = vrot.slane %v317_v55, 4  ;;  %v433_v13 = vrot.slane %v431_v59, 4  ;;  %v444_v14 = vshrl.u32 %v3081_v32, 16 }
  0x4c   : > { %v450_v0 = vshll.u32 %v3086_v46, 16  ;;  %v3100_v20 = vpack.c.b16 %v677_v60, %v676_v53  ;;  %v328_v21 = vrot.slane %v327_v63, 4  ;;  %v436_v22 = vrot.slane %v434_v54, 5 }
  0x4d   : > { %v442_v27 = vrot.slane %v440_v5, 5  ;;  %v323_v31 = vsel %vm2882_vm3, %v318_v6, %v322_v41  ;;  %v446_v33 = vrot.slane %v444_v14, 4  ;;  %v527_v55 = vshrl.u32 %v3096_v7, 16 }
  0x4e   : > { %4050 = vst [vmem:[#allocation10_spill] sm:$0xff] %v3100_v20  ;;  %v452_v42 = vrot.slane %v450_v0, 5  ;;  %2482 = vmatmul.msk.bf16.gmra.mxu3 %vm696_vm4, %v3100_v20  ;;  %v333_v53 = vsel %vm2882_vm3, %v328_v21, %v332_v45  ;;  %v652_v59 = vunpack.c.l.b16 %v323_v31  ;;  %v437_v60 = vor.u32 %v436_v22, %v433_v13  ;;  %v3125_v22 = vld [vmem:[%s2855_s29 + $0xb8] sm:$0xf] }
  0x4f   : > { %v530_v63 = vshll.u32 %v3096_v7, 16  ;;  %v653_v54 = vunpack.c.l.b16 %v333_v53  ;;  %v447_v41 = vor.u32 %v446_v33, %v442_v27  ;;  %v529_v5 = vrot.slane %v527_v55, 4  ;;  %4052 = vst [vmem:[#allocation12_spill] sm:$0xff] %v3125_v22 }
  0x50   : > { %v536_v6 = vshll.u32 %v3103_v30, 16  ;;  %v438_v14 = vrot.slane %v437_v60, 4  ;;  %v540_v8 = vshrl.u32 %v3103_v30, 16  ;;  %v546_v20 = vshll.u32 %v3108_v49, 16  ;;  %v3130_v60 = vld [vmem:[%s2855_s29 + $0xbc] sm:$0x1] }
  0x51   : > { %v532_v0 = vrot.slane %v530_v63, 5  ;;  %v3122_v45 = vpack.c.b16 %v653_v54, %v652_v59  ;;  %v448_v21 = vrot.slane %v447_v41, 4  ;;  %4053 = vst [vmem:[#allocation13_spill] sm:$0xff] %v3130_v60  ;;  %v623_v54 = vshrl.u32 %v3120_v17, 16 }
  0x52   : > { %v538_v13 = vrot.slane %v536_v6, 5  ;;  %v443_v31 = vsel %vm2882_vm3, %v438_v14, %v442_v27  ;;  %v542_v55 = vrot.slane %v540_v8, 4  ;;  %v548_v53 = vrot.slane %v546_v20, 5 }
  0x53   : > { %v533_v33 = vor.u32 %v532_v0, %v529_v5  ;;  %2470 = vmatmul.msk.bf16.gmra.mxu0 %vm696_vm4, %v3122_v45  ;;  %v453_v59 = vsel %vm2882_vm3, %v448_v21, %v452_v42  ;;  %v662_v63 = vunpack.c.l.b16 %v443_v31  ;;  %v626_v41 = vshll.u32 %v3120_v17, 16 }
  0x54   : > { %v663_v6 = vunpack.c.l.b16 %v453_v59  ;;  %v543_v5 = vor.u32 %v542_v55, %v538_v13  ;;  %v632_v8 = vshll.u32 %v3125_v22, 16  ;;  %v625_v20 = vrot.slane %v623_v54, 4 }
  0x55   : > { %v534_v27 = vrot.slane %v533_v33, 4  ;;  %v628_v14 = vrot.slane %v626_v41, 5  ;;  %v636_v0 = vshrl.u32 %v3125_v22, 16  ;;  %v642_v16 = vshll.u32 %v3130_v60, 16  ;;  %v3149_v33 = vld [vmem:[%s2855_s29 + $0x28] sm:$0xf] }
  0x56   : > { %v3144_v42 = vpack.c.b16 %v663_v6, %v662_v63  ;;  %v544_v31 = vrot.slane %v543_v5, 4  ;;  %v634_v59 = vrot.slane %v632_v8, 5  ;;  %v1082_v55 = vrot.slane %v2902_v2, 5 }
  0x57   : > { %v539_v21 = vsel %vm2882_vm3, %v534_v27, %v538_v13  ;;  %v629_v54 = vor.u32 %v628_v14, %v625_v20  ;;  %v638_v41 = vrot.slane %v636_v0, 4  ;;  %v644_v6 = vrot.slane %v642_v16, 5 }
  0x58   : > { %4054 = vst [vmem:[#allocation14_spill] sm:$0xff] %v3144_v42  ;;  %v670_v17 = vunpack.c.l.b16 %v539_v21  ;;  %2475 = vmatmul.msk.bf16.gmra.mxu1 %vm696_vm4, %v3144_v42  ;;  %v549_v63 = vsel %vm2882_vm3, %v544_v31, %v548_v53  ;;  %v335_v13 = vshrl.u32 %v3142_v40, 16  ;;  %v338_v27 = vshll.u32 %v3142_v40, 16 }
  0x59   : > { %v671_v5 = vunpack.c.l.b16 %v549_v63  ;;  %v630_v8 = vrot.slane %v629_v54, 4  ;;  %v639_v60 = vor.u32 %v638_v41, %v634_v59  ;;  %v344_v2 = vshll.u32 %v3149_v33, 16  ;;  %v2653_v54 = vld [vmem:[%s3997_s1 + $0x18] sm:$0xf]  ;;  %v2674_v41 = vld [vmem:[%s3997_s1 + $0x1c] sm:$0xf] }
  0x5a   : > { %v337_v20 = vrot.slane %v335_v13, 4  ;;  %v340_v14 = vrot.slane %v338_v27, 5  ;;  %v348_v0 = vshrl.u32 %v3149_v33, 16  ;;  %v354_v21 = vshll.u32 %v3153_v39, 16 }
  0x5b   : > { %v3164_v22 = vpack.c.b16 %v671_v5, %v670_v17  ;;  %v635_v16 = vsel %vm2882_vm3, %v630_v8, %v634_v59  ;;  %v640_v53 = vrot.slane %v639_v60, 4  ;;  %v346_v31 = vrot.slane %v344_v2, 5  ;;  %v2636_v17 = vld [vmem:[%s3997_s1 + $0x14] sm:$0xf]  ;;  %v2692_v60 = vld [vmem:[%s3997_s1 + $0x20] sm:$0xf] }
  0x5c   : > { %v678_v63 = vunpack.c.l.b16 %v635_v16  ;;  %v341_v13 = vor.u32 %v340_v14, %v337_v20  ;;  %v350_v27 = vrot.slane %v348_v0, 4  ;;  %v356_v7 = vrot.slane %v354_v21, 5 }
  0x5d   : > { %4055 = vst [vmem:[#allocation15_spill] sm:$0xff] %v3164_v22  ;;  %2479 = vmatmul.msk.bf16.gmra.mxu2 %vm696_vm4, %v3164_v22  ;;  %v645_v59 = vsel %vm2882_vm3, %v640_v53, %v644_v6  ;;  %v2564_v5 = vrot.slane %v2892_v61, 9  ;;  %v1079_v0 = vrot.slane %v2899_v1, 5  ;;  %v1852_v21 = vsel %vm745_vm0, %v2653_v54, 0 }
  0x5e   : > { %v679_v8 = vunpack.c.l.b16 %v645_v59  ;;  %v342_v2 = vrot.slane %v341_v13, 4  ;;  %v351_v20 = vor.u32 %v350_v27, %v346_v31  ;;  %v2008_v16 = vsel %vm745_vm0, %v2674_v41, 0  ;;  %1861 = vmatpush.bf16.msra.mxu2 %v1852_v21  ;;  %v2713_v21 = vld [vmem:[%s2855_s29 + $0xc] sm:$0xff] }
  0x5f   : > { %v1718_v22 = vsel %vm745_vm0, %v2636_v17, 0  ;;  %v2148_v6 = vsel %vm745_vm0, %v2692_v60, 0  ;;  %v1080_v27 = vsel %vm3185_vm7, %v2564_v5, %v1079_v0  ;;  %2017 = vmatpush.bf16.msra.mxu3 %v2008_v16  ;;  %v1081_v54 = vrot.slane %v1079_v0, 4 }
  0x60   : > { %v3194_v53 = vpack.c.b16 %v679_v8, %v678_v63  ;;  %v347_v61 = vsel %vm2882_vm3, %v342_v2, %v346_v31  ;;  %v352_v13 = vrot.slane %v351_v20, 4  ;;  %1727 = vmatpush.bf16.msra.mxu1 %v1718_v22  ;;  %2157 = vmatpush.bf16.msra.mxu0 %v2148_v6  ;;  %v2565_v41 = vrot.slane %v2966_v35, 9  ;;  %v2712_v22 = vld [vmem:[%s2855_s29] sm:$0xff]  ;;  %v3231_v6 = vld [vmem:[%s2855_s29 + $0x18] sm:$0xff] }
  0x61   : > { %v654_v1 = vunpack.c.l.b16 %v347_v61  ;;  %v1191_v31 = vunpack.c.l.b16 %v1080_v27  ;;  %v1086_v17 = vrot.slane %v2973_v43, 5  ;;  %v1089_v60 = vrot.slane %v2976_v48, 5 }
  0x62   : > { %2483 = vmatmul.msk.bf16.gmra.mxu3 %vm696_vm4, %v3194_v53  ;;  %v357_v63 = vsel %vm2882_vm3, %v352_v13, %v356_v7  ;;  %v1083_v5 = vsel %vm3185_vm7, %v1081_v54, %v1082_v55  ;;  %v1093_v16 = vrot.slane %v3061_v56, 5  ;;  %v2566_v61 = vrot.slane %v3056_v52, 9 }
  0x63   : > { %v655_v59 = vunpack.c.l.b16 %v357_v63  ;;  %v1192_v8 = vunpack.c.l.b16 %v1083_v5  ;;  %v1087_v35 = vsel %vm3185_vm7, %v2565_v41, %v1086_v17  ;;  %v1088_v2 = vrot.slane %v1086_v17, 4  ;;  %v3251_v41 = vld [vmem:[%s2855_s29 + $0x24] sm:$0xff] }
  0x64   : > { %v1193_v7 = vunpack.c.l.b16 %v1087_v35  ;;  %v1095_v13 = vrot.slane %v1093_v16, 4  ;;  %v1096_v27 = vrot.slane %v3064_v57, 5  ;;  %v1100_v57 = vrot.slane %v3149_v33, 5 }
  0x65   : > { %v3212_v20 = vpack.c.b16 %v655_v59, %v654_v1  ;;  %v1223_v0 = vpack.c.b16 %v1192_v8, %v1191_v31  ;;  %v1090_v43 = vsel %vm3185_vm7, %v1088_v2, %v1089_v60  ;;  %v2567_v63 = vrot.slane %v3142_v40, 9  ;;  %v3273_v8 = vld [vmem:[%s2855_s29 + $0x30] sm:$0xff] }
  0x66   : > { %v1194_v48 = vunpack.c.l.b16 %v1090_v43  ;;  %v1097_v56 = vsel %vm3185_vm7, %v1095_v13, %v1096_v27  ;;  %v1102_v31 = vrot.slane %v1100_v57, 4  ;;  %v1103_v17 = vrot.slane %v3153_v39, 5  ;;  %v3301_v27 = vld [vmem:[%s2855_s29 + $0x3c] sm:$0xff] }
  0x67   : > { %2471 = vmatmul.msk.bf16.gmra.mxu0 %vm696_vm4, %v3212_v20  ;;  %v1196_v54 = vunpack.c.l.b16 %v1097_v56  ;;  %v1101_v60 = vsel %vm3185_vm7, %v2567_v63, %v1100_v57  ;;  %v1107_v39 = vrot.slane %v2861_v11, 5  ;;  %v2568_v35 = vrot.slane %v2858_v10, 9 }
  0x68   : > { %2548 = vmatmul.msk.bf16.vlgmr.msrb.gmra.mxu1 %vm696_vm4, %v2712_v22  ;;  %v3219_v55 = vpack.c.b16 %v1194_v48, %v1193_v7  ;;  %v1104_v33 = vsel %vm3185_vm7, %v1102_v31, %v1103_v17  ;;  %v1197_v59 = vunpack.c.l.b16 %v1101_v60  ;;  %v1110_v7 = vrot.slane %v2864_v12, 5 }
  0x69   : > { %v1198_v5 = vunpack.c.l.b16 %v1104_v33  ;;  %v1109_v2 = vrot.slane %v1107_v39, 4  ;;  %v1114_v13 = vrot.slane %v2921_v24, 5  ;;  %v2569_v56 = vrot.slane %v2918_v23, 9 }
  0x6b   : > { %v3265_v40 = vpack.c.b16 %v1198_v5, %v1197_v59  ;;  %v1111_v11 = vsel %vm3185_vm7, %v1109_v2, %v1110_v7  ;;  %v1115_v24 = vsel %vm3185_vm7, %v2569_v56, %v1114_v13  ;;  %v1121_v5 = vrot.slane %v2991_v3, 5 }
  0x6c   : > { %v1201_v23 = vunpack.c.l.b16 %v1115_v24  ;;  %v2570_v7 = vrot.slane %v2986_v58, 9  ;;  %v1128_v24 = vrot.slane %v3081_v32, 5 }
  0x6d   : > { %2581 = vmatmul.msk.bf16.vlgmr.msrb.gmra.mxu2 %vm696_vm4, %v1223_v0  ;;  %v1108_v0 = vsel %vm3185_vm7, %v2568_v35, %v1107_v39  ;;  %v3335_v35 = vld [vmem:[%s2855_s29 + $0x48] sm:$0xff] }
  0x6e   : > { %v1199_v48 = vunpack.c.l.b16 %v1108_v0  ;;  %4060 = vst [vmem:[#allocation18_spill] sm:$0xff] %v3335_v35  ;;  %v1123_v0 = vrot.slane %v1121_v5, 4 }
  0x72   : > { %2602 = vmatmul.msk.bf16.vlgmr.msrb.gmra.mxu3 %vm696_vm4, %v2713_v21 }
  0x77   : > { %2619 = vmatmul.msk.bf16.vlgmr.msrb.gmra.mxu0 %vm696_vm4, %v3034_v9  ;;  %v1094_v9 = vsel %vm3185_vm7, %v2566_v61, %v1093_v16 }
  0x78   : > { %2549 = vmatmul.msk.bf16.gmra.mxu1 %vm696_vm4, %v2713_v21  ;;  %v1195_v1 = vunpack.c.l.b16 %v1094_v9  ;;  %v1200_v21 = vunpack.c.l.b16 %v1111_v11  ;;  %v1124_v11 = vrot.slane %v2998_v15, 5 }
  0x7a   : > { %v3245_v52 = vpack.c.b16 %v1196_v54, %v1195_v1  ;;  %v3293_v12 = vpack.c.b16 %v1200_v21, %v1199_v48  ;;  %v1116_v1 = vrot.slane %v1114_v13, 4  ;;  %v1117_v54 = vrot.slane %v2926_v29, 5 }
  0x7b   : > { %v1122_v21 = vsel %vm3185_vm7, %v2570_v7, %v1121_v5  ;;  %v1125_v13 = vsel %vm3185_vm7, %v1123_v0, %v1124_v11  ;;  %v2571_v5 = vrot.slane %v3076_v26, 9  ;;  %v1130_v7 = vrot.slane %v1128_v24, 4 }
  0x7c   : > { %v1118_v63 = vsel %vm3185_vm7, %v1116_v1, %v1117_v54  ;;  %v1203_v56 = vunpack.c.l.b16 %v1122_v21  ;;  %v1204_v1 = vunpack.c.l.b16 %v1125_v13  ;;  %v1131_v0 = vrot.slane %v3086_v46, 5 }
  0x7d   : > { %2582 = vmatmul.msk.bf16.gmra.mxu2 %vm696_vm4, %v3219_v55  ;;  %v1202_v60 = vunpack.c.l.b16 %v1118_v63  ;;  %v1129_v32 = vsel %vm3185_vm7, %v2571_v5, %v1128_v24  ;;  %v1135_v5 = vrot.slane %v2873_v19, 5 }
  0x7e   : > { %v3359_v54 = vpack.c.b16 %v1204_v1, %v1203_v56  ;;  %v1132_v13 = vsel %vm3185_vm7, %v1130_v7, %v1131_v0  ;;  %v1205_v56 = vunpack.c.l.b16 %v1129_v32  ;;  %v2759_v32 = vld [vmem:[%s2855_s29 + $0x68] sm:$0x1] }
  0x7f   : > { %v3325_v33 = vpack.c.b16 %v1202_v60, %v1201_v23  ;;  %v3369_v60 = vld [vmem:[%s2855_s29 + $0x54] sm:$0xff]  ;;  %v1206_v46 = vunpack.c.l.b16 %v1132_v13  ;;  %v1138_v13 = vrot.slane %v2759_v32, 5 }
  0x80   : > { %4063 = vst [vmem:[#allocation21_spill] sm:$0xff] %v3359_v54 }
  0x81   : > { %4064 = vst [vmem:[#allocation22_spill] sm:$0xff] %v3369_v60 }
  0x82   : > { %2603 = vmatmul.msk.bf16.gmra.mxu3 %vm696_vm4, %v3231_v6 }
  0x87   : > { %2620 = vmatmul.msk.bf16.gmra.mxu0 %vm696_vm4, %v3122_v45 }
  0x88   : > { %2550 = vmatmul.msk.bf16.gmra.mxu1 %vm696_vm4, %v3231_v6 }
  0x8d   : > { %2583 = vmatmul.msk.bf16.gmra.mxu2 %vm696_vm4, %v3245_v52 }
  0x92   : > { %2604 = vmatmul.msk.bf16.gmra.mxu3 %vm696_vm4, %v3251_v41 }
  0x97   : > { %2621 = vmatmul.msk.bf16.gmra.mxu0 %vm696_vm4, %v3212_v20 }
  0x98   : > { %2551 = vmatmul.msk.bf16.gmra.mxu1 %vm696_vm4, %v3251_v41 }
  0x9d   : > { %v3268_v22 = vpop.f32.mrf.mxu1  ;;  %2584 = vmatmul.msk.bf16.gmra.mxu2 %vm696_vm4, %v3265_v40 }
  0xa2   : > { %2605 = vmatmul.msk.bf16.gmra.mxu3 %vm696_vm4, %v3273_v8 }
  0xa5   : > { %v3283_v43 = vpop.f32.mrf.mxu1 }
  0xa7   : > { %v3285_v16 = vpop.f32.mrf.mxu2  ;;  %2622 = vmatmul.msk.bf16.gmra.mxu0 %vm696_vm4, %v2894_v62 }
  0xa8   : > { %2552 = vmatmul.msk.bf16.gmra.mxu1 %vm696_vm4, %v3273_v8 }
  0xaa   : > { %v3291_v10 = vpop.f32.mrf.mxu0 }
  0xab   : > { %v3295_v61 = vpop.f32.mrf.mxu3 }
  0xac   : > { %4058 = vst [vmem:[#allocation16_spill] sm:$0xff] %v3295_v61 }
  0xad   : > { %2585 = vmatmul.msk.bf16.gmra.mxu2 %vm696_vm4, %v3293_v12 }
  0xaf   : > { %v3303_v9 = vpop.f32.mrf.mxu1  ;;  %v3307_v57 = vpop.f32.mrf.mxu2 }
  0xb2   : > { %2606 = vmatmul.msk.bf16.gmra.mxu3 %vm696_vm4, %v3301_v27  ;;  %v3315_v31 = vpop.f32.mrf.mxu0 }
  0xb3   : > { %v3317_v17 = vpop.f32.mrf.mxu3 }
  0xb4   : > { %4059 = vst [vmem:[#allocation17_spill] sm:$0xff] %v3317_v17 }
  0xb7   : > { %2623 = vmatmul.msk.bf16.gmra.mxu0 %vm696_vm4, %v2968_v37  ;;  %v3321_v29 = vpop.f32.mrf.mxu1 }
  0xb8   : > { %2553 = vmatmul.msk.bf16.gmra.mxu1 %vm696_vm4, %v3301_v27 }
  0xba   : > { %v3327_v59 = vpop.f32.mrf.mxu2 }
  0xbd   : > { %2586 = vmatmul.msk.bf16.gmra.mxu2 %vm696_vm4, %v3325_v33 }
  0xbe   : > { %v3330_v39 = vpop.f32.mrf.mxu0 }
  0xbf   : > { %v3337_v2 = vpop.f32.mrf.mxu3 }
  0xc0   : > { %4061 = vst [vmem:[#allocation19_spill] sm:$0xff] %v3337_v2 }
  0xc1   : > { %v3341_v48 = vpop.f32.mrf.mxu1 }
  0xc2   : > { %2607 = vmatmul.msk.bf16.gmra.mxu3 %vm696_vm4, %v3335_v35  ;;  %v3345_v3 = vpop.f32.mrf.mxu2 }
  0xc6   : > { %v3351_v58 = vpop.f32.mrf.mxu0 }
  0xc7   : > { %2624 = vmatmul.msk.bf16.gmra.mxu0 %vm696_vm4, %v3053_v44  ;;  %v3355_v15 = vpop.f32.mrf.mxu3 }
  0xc8   : > { %4062 = vst [vmem:[#allocation20_spill] sm:$0xff] %v3355_v15  ;;  %2554 = vmatmul.msk.bf16.gmra.mxu1 %vm696_vm4, %v3335_v35  ;;  %v3404_v15 = vld [vmem:[%s2855_s29 + $0x60] sm:$0xff] }
  0xc9   : > { %v3362_v63 = vpop.f32.mrf.mxu1  ;;  %4068 = vst [vmem:[#allocation26_spill] sm:$0xff] %v3404_v15 }
  0xcd   : > { %v3364_v23 = vpop.f32.mrf.mxu2  ;;  %2587 = vmatmul.msk.bf16.gmra.mxu2 %vm696_vm4, %v3359_v54 }
  0xd0   : > { %v3373_v11 = vpop.f32.mrf.mxu0 }
  0xd1   : > { %v3375_v21 = vpop.f32.mrf.mxu3 }
  0xd2   : > { %4065 = vst [vmem:[#allocation23_spill] sm:$0xff] %v3375_v21  ;;  %2608 = vmatmul.msk.bf16.gmra.mxu3 %vm696_vm4, %v3369_v60  ;;  %v3391_v21 = vpack.c.b16 %v1206_v46, %v1205_v56 }
  0xd4   : > { %4066 = vst [vmem:[#allocation24_spill] sm:$0xff] %v3391_v21 }
  0xd5   : > { %v3383_v26 = vpop.f32.mrf.mxu1  ;;  %v3385_v1 = vpop.f32.mrf.mxu2 }
  0xd7   : > { %2625 = vmatmul.msk.bf16.gmra.mxu0 %vm696_vm4, %v3144_v42  ;;  %v2760_v42 = vld [vmem:[%s2855_s29 + $0x60] sm:$0xf] }
  0xd8   : > { %2555 = vmatmul.msk.bf16.gmra.mxu1 %vm696_vm4, %v3369_v60  ;;  %v3393_v24 = vpop.f32.mrf.mxu0  ;;  %v2572_v2 = vrot.slane %v2760_v42, 9  ;;  %v1137_v60 = vrot.slane %v1135_v5, 4 }
  0xd9   : > { %v3396_v7 = vpop.f32.mrf.mxu3 }
  0xda   : > { %4067 = vst [vmem:[#allocation25_spill] sm:$0xff] %v3396_v7  ;;  %v1136_v19 = vsel %vm3185_vm7, %v2572_v2, %v1135_v5  ;;  %v1139_v46 = vsel %vm3185_vm7, %v1137_v60, %v1138_v13  ;;  %v1142_v60 = vrot.slane %v2941_v47, 5 }
  0xdb   : > { %v1207_v17 = vunpack.c.l.b16 %v1136_v19  ;;  %v1208_v42 = vunpack.c.l.b16 %v1139_v46  ;;  %v3437_v19 = vld [vmem:[%s2855_s29 + $0x6c] sm:$0xff] }
  0xdd   : > { %2588 = vmatmul.msk.bf16.gmra.mxu2 %vm696_vm4, %v3391_v21  ;;  %v3400_v0 = vpop.f32.mrf.mxu1  ;;  %v3426_v2 = vpack.c.b16 %v1208_v42, %v1207_v17  ;;  %v1144_v17 = vrot.slane %v1142_v60, 4 }
  0xdf   : > { %4070 = vst [vmem:[#allocation28_spill] sm:$0xff] %v3426_v2 }
  0xe0   : > { %v3407_v56 = vpop.f32.mrf.mxu2 }
  0xe2   : > { %2609 = vmatmul.msk.bf16.gmra.mxu3 %vm696_vm4, %v3404_v15 }
  0xe4   : > { %v3415_v7 = vpop.f32.mrf.mxu0 }
  0xe5   : > { %v3417_v32 = vpop.f32.mrf.mxu3  ;;  %v978_v21 = vpop.f32.mrf.mxu1 }
  0xe6   : > { %4069 = vst [vmem:[#allocation27_spill] sm:$0xff] %v3417_v32  ;;  %v979_v54 = vadd.f32 %v978_v21, %v3291_v10  ;;  %v1145_v21 = vrot.slane %v2948_v51, 5  ;;  %v2573_v32 = vrot.slane %v2934_v38, 9 }
  0xe7   : > { %2626 = vmatmul.msk.bf16.gmra.mxu0 %vm696_vm4, %v2913_v18 }
  0xe8   : > { %v3422_v44 = vpop.f32.mrf.mxu2  ;;  %2556 = vmatmul.msk.bf16.gmra.mxu1 %vm696_vm4, %v3404_v15  ;;  %v1143_v47 = vsel %vm3185_vm7, %v2573_v32, %v1142_v60 }
  0xe9   : > { %v1209_v61 = vunpack.c.l.b16 %v1143_v47 }
  0xec   : > { %v3429_v5 = vpop.f32.mrf.mxu0 }
  0xed   : > { %v3431_v13 = vpop.f32.mrf.mxu3  ;;  %2589 = vmatmul.msk.bf16.gmra.mxu2 %vm696_vm4, %v3426_v2  ;;  %v980_v10 = vpop.f32.mrf.mxu1 }
  0xee   : > { %4071 = vst [vmem:[#allocation29_spill] sm:$0xff] %v3431_v13  ;;  %v981_v46 = vadd.f32 %v980_v10, %v3315_v31  ;;  %v1146_v13 = vsel %vm3185_vm7, %v1144_v17, %v1145_v21  ;;  %v1149_v21 = vrot.slane %v3013_v34, 5 }
  0xef   : > { %v1210_v35 = vunpack.c.l.b16 %v1146_v13  ;;  %v1152_v13 = vrot.slane %v3020_v50, 5 }
  0xf0   : > { %v1299_v42 = vpop.f32.mrf.mxu2 }
  0xf1   : > { %v1379_v18 = vadd.f32 %v1299_v42, %v979_v54  ;;  %v3454_v10 = vpack.c.b16 %v1210_v35, %v1209_v61  ;;  %v3461_v42 = vld [vmem:[%s2855_s29 + $0x78] sm:$0xff] }
  0xf2   : > { %2610 = vmatmul.msk.bf16.gmra.mxu3 %vm696_vm4, %v3437_v19 }
  0xf4   : > { %v1589_v2 = vpop.f32.mrf.mxu0 }
  0xf5   : > { %v1433_v51 = vpop.f32.mrf.mxu3  ;;  %v983_v15 = vpop.f32.mrf.mxu1 }
  0xf6   : > { %v1513_v31 = vadd.f32 %v1433_v51, %v1379_v18  ;;  %v984_v38 = vadd.f32 %v983_v15, %v3330_v39 }
  0xf7   : > { %2627 = vmatmul.msk.bf16.gmra.mxu0 %vm696_vm4, %v2993_v4 }
  0xf8   : > { %v1301_v54 = vpop.f32.mrf.mxu2  ;;  %2557 = vmatmul.msk.bf16.gmra.mxu1 %vm696_vm4, %v3437_v19  ;;  %v3452_v32 = vadd.f32 %v1589_v2, %v1513_v31  ;;  %v2574_v2 = vrot.slane %v3009_v28, 9 }
  0xf9   : > { %v1380_v60 = vadd.f32 %v1301_v54, %v981_v46  ;;  %v1151_v46 = vrot.slane %v1149_v21, 4 }
  0xfa   : > { %v1150_v50 = vsel %vm3185_vm7, %v2574_v2, %v1149_v21 }
  0xfb   : > { %v1153_v51 = vsel %vm3185_vm7, %v1151_v46, %v1152_v13  ;;  %v1159_v46 = vrot.slane %v3108_v49, 5 }
  0xfc   : > { %v1591_v17 = vpop.f32.mrf.mxu0 }
  0xfd   : > { %v1435_v18 = vpop.f32.mrf.mxu3  ;;  %2590 = vmatmul.msk.bf16.gmra.mxu2 %vm696_vm4, %v3454_v10  ;;  %v985_v39 = vpop.f32.mrf.mxu1 }
  0xfe   : > { %v1514_v15 = vadd.f32 %v1435_v18, %v1380_v60  ;;  %v986_v47 = vadd.f32 %v985_v39, %v3351_v58  ;;  %v1211_v58 = vunpack.c.l.b16 %v1150_v50  ;;  %v1212_v18 = vunpack.c.l.b16 %v1153_v51  ;;  %v3487_v50 = vld [vmem:[%s2855_s29 + $0x84] sm:$0xff] }
 0x100   : > { %v1304_v61 = vpop.f32.mrf.mxu2  ;;  %v3465_v35 = vadd.f32 %v1591_v17, %v1514_v15  ;;  %v3480_v13 = vpack.c.b16 %v1212_v18, %v1211_v58  ;;  %v1156_v15 = vrot.slane %v3103_v30, 5 }
 0x101   : > { %v1381_v34 = vadd.f32 %v1304_v61, %v984_v38 }
 0x102   : > { %2611 = vmatmul.msk.bf16.gmra.mxu3 %vm696_vm4, %v3461_v42 }
 0x104   : > { %v1594_v31 = vpop.f32.mrf.mxu0 }
 0x105   : > { %v1438_v54 = vpop.f32.mrf.mxu3  ;;  %v988_v60 = vpop.f32.mrf.mxu1 }
 0x106   : > { %v1515_v28 = vadd.f32 %v1438_v54, %v1381_v34  ;;  %v989_v17 = vadd.f32 %v988_v60, %v3373_v11 }
 0x107   : > { %2628 = vmatmul.msk.bf16.gmra.mxu0 %vm696_vm4, %v3078_v25 }
 0x108   : > { %v1306_v38 = vpop.f32.mrf.mxu2  ;;  %2558 = vmatmul.msk.bf16.gmra.mxu1 %vm696_vm4, %v3461_v42  ;;  %v3478_v21 = vadd.f32 %v1594_v31, %v1515_v28  ;;  %v4072_v31 = vld [vmem:[#allocation9_spill] sm:$0xff] }
 0x109   : > { %v1382_v39 = vadd.f32 %v1306_v38, %v986_v47  ;;  %v2575_v54 = vrot.slane %v4072_v31, 9  ;;  %v1158_v47 = vrot.slane %v1156_v15, 4 }
 0x10b   : > { %v1157_v49 = vsel %vm3185_vm7, %v2575_v54, %v1156_v15  ;;  %v1160_v18 = vsel %vm3185_vm7, %v1158_v47, %v1159_v46  ;;  %v2761_v54 = vld [vmem:[%s2855_s29 + $0x94] sm:$0xf] }
 0x10c   : > { %v1596_v2 = vpop.f32.mrf.mxu0  ;;  %v1163_v47 = vrot.slane %v2761_v54, 5 }
 0x10d   : > { %v1440_v61 = vpop.f32.mrf.mxu3  ;;  %2591 = vmatmul.msk.bf16.gmra.mxu2 %vm696_vm4, %v3480_v13  ;;  %v990_v11 = vpop.f32.mrf.mxu1 }
 0x10e   : > { %v1516_v34 = vadd.f32 %v1440_v61, %v1382_v39  ;;  %v991_v51 = vadd.f32 %v990_v11, %v3393_v24  ;;  %v1213_v39 = vunpack.c.l.b16 %v1157_v49  ;;  %v1214_v61 = vunpack.c.l.b16 %v1160_v18 }
 0x110   : > { %v1309_v60 = vpop.f32.mrf.mxu2  ;;  %v3491_v58 = vadd.f32 %v1596_v2, %v1516_v34  ;;  %v3506_v31 = vpack.c.b16 %v1214_v61, %v1213_v39 }
 0x111   : > { %v1383_v30 = vadd.f32 %v1309_v60, %v989_v17  ;;  %v4074_v17 = vld [vmem:[#allocation15_spill] sm:$0xff] }
 0x112   : > { %4073 = vst [vmem:[#allocation9_spill] sm:$0xff] %v3491_v58  ;;  %2612 = vmatmul.msk.bf16.gmra.mxu3 %vm696_vm4, %v3487_v50 }
 0x113   : > { %4076 = vst [vmem:[#allocation31_spill] sm:$0xff] %v3506_v31 }
 0x114   : > { %v1599_v28 = vpop.f32.mrf.mxu0 }
 0x115   : > { %v1443_v24 = vpop.f32.mrf.mxu3  ;;  %v993_v38 = vpop.f32.mrf.mxu1 }
 0x116   : > { %v1517_v11 = vadd.f32 %v1443_v24, %v1383_v30  ;;  %v994_v2 = vadd.f32 %v993_v38, %v3415_v7  ;;  %v2762_v30 = vld [vmem:[%s2855_s29 + $0x98] sm:$0x1]  ;;  %v3513_v38 = vld [vmem:[%s2855_s29 + $0x90] sm:$0xff] }
 0x117   : > { %2629 = vmatmul.msk.bf16.gmra.mxu0 %vm696_vm4, %v4074_v17  ;;  %v1166_v49 = vrot.slane %v2762_v30, 5  ;;  %4077 = vst [vmem:[#allocation32_spill] sm:$0xff] %v3513_v38 }
 0x118   : > { %v1311_v34 = vpop.f32.mrf.mxu2  ;;  %2559 = vmatmul.msk.bf16.gmra.mxu1 %vm696_vm4, %v3487_v50  ;;  %v3504_v15 = vadd.f32 %v1599_v28, %v1517_v11  ;;  %v2763_v28 = vld [vmem:[%s2855_s29 + $0x90] sm:$0xf] }
 0x119   : > { %v1384_v46 = vadd.f32 %v1311_v34, %v991_v51  ;;  %v2576_v11 = vrot.slane %v2763_v28, 9  ;;  %v1165_v51 = vrot.slane %v1163_v47, 4 }
 0x11a   : > { %4075 = vst [vmem:[#allocation30_spill] sm:$0xff] %v3504_v15 }
 0x11b   : > { %v1164_v54 = vsel %vm3185_vm7, %v2576_v11, %v1163_v47  ;;  %v2764_v11 = vld [vmem:[%s2855_s29 + $0xa0] sm:$0xf] }
 0x11c   : > { %v1601_v60 = vpop.f32.mrf.mxu0 }
 0x11d   : > { %v1445_v7 = vpop.f32.mrf.mxu3  ;;  %2592 = vmatmul.msk.bf16.gmra.mxu2 %vm696_vm4, %v3506_v31  ;;  %v995_v18 = vpop.f32.mrf.mxu1  ;;  %v2766_v31 = vld [vmem:[%s2855_s29 + $0x9c] sm:$0xf] }
 0x11e   : > { %v1518_v24 = vadd.f32 %v1445_v7, %v1384_v46  ;;  %v996_v58 = vadd.f32 %v995_v18, %v3429_v5  ;;  %v1167_v46 = vsel %vm3185_vm7, %v1165_v51, %v1166_v49  ;;  %v1215_v18 = vunpack.c.l.b16 %v1164_v54 }
 0x11f   : > { %v1216_v28 = vunpack.c.l.b16 %v1167_v46  ;;  %v1170_v51 = vrot.slane %v2764_v11, 5  ;;  %v2765_v46 = vld [vmem:[%s2855_s29 + $0xa4] sm:$0x1] }
 0x120   : > { %v1314_v39 = vpop.f32.mrf.mxu2  ;;  %v3517_v61 = vadd.f32 %v1601_v60, %v1518_v24  ;;  %v4079_v60 = vld [vmem:[#allocation3_spill] sm:$0xff] }
 0x121   : > { %v1385_v34 = vadd.f32 %v1314_v39, %v994_v2  ;;  %v3531_v49 = vpack.c.b16 %v1216_v28, %v1215_v18 }
 0x122   : > { %4078 = vst [vmem:[#allocation33_spill] sm:$0xff] %v3517_v61  ;;  %2613 = vmatmul.msk.bf16.gmra.mxu3 %vm696_vm4, %v3513_v38 }
 0x123   : > { %4081 = vst [vmem:[#allocation35_spill] sm:$0xff] %v3531_v49 }
 0x124   : > { %v1604_v30 = vpop.f32.mrf.mxu0 }
 0x125   : > { %v1448_v7 = vpop.f32.mrf.mxu3  ;;  %v998_v5 = vpop.f32.mrf.mxu1 }
 0x126   : > { %v1519_v15 = vadd.f32 %v1448_v7, %v1385_v34  ;;  %v1173_v7 = vrot.slane %v2765_v46, 5 }
 0x127   : > { %2630 = vmatmul.msk.bf16.gmra.mxu0 %vm696_vm4, %v4079_v60  ;;  %v3538_v60 = vld [vmem:[%s2855_s29 + $0x9c] sm:$0xff] }
 0x128   : > { %v1316_v2 = vpop.f32.mrf.mxu2  ;;  %2560 = vmatmul.msk.bf16.gmra.mxu1 %vm696_vm4, %v3513_v38  ;;  %v3529_v47 = vadd.f32 %v1604_v30, %v1519_v15  ;;  %4082 = vst [vmem:[#allocation36_spill] sm:$0xff] %v3538_v60  ;;  %v2577_v38 = vrot.slane %v2766_v31, 9  ;;  %v1172_v15 = vrot.slane %v1170_v51, 4 }
 0x129   : > { %v1386_v24 = vadd.f32 %v1316_v2, %v996_v58  ;;  %v999_v58 = vadd.f32 %v998_v5, %v3268_v22  ;;  %v4084_v5 = vld [vmem:[#allocation4_spill] sm:$0xff] }
 0x12a   : > { %4080 = vst [vmem:[#allocation34_spill] sm:$0xff] %v3529_v47  ;;  %v1171_v2 = vsel %vm3185_vm7, %v2577_v38, %v1170_v51 }
 0x12b   : > { %v1217_v31 = vunpack.c.l.b16 %v1171_v2 }
 0x12c   : > { %v1606_v39 = vpop.f32.mrf.mxu0 }
 0x12d   : > { %v1450_v54 = vpop.f32.mrf.mxu3  ;;  %2593 = vmatmul.msk.bf16.gmra.mxu2 %vm696_vm4, %v3531_v49  ;;  %v1000_v34 = vpop.f32.mrf.mxu1 }
 0x12e   : > { %v1520_v61 = vadd.f32 %v1450_v54, %v1386_v24  ;;  %v1174_v24 = vsel %vm3185_vm7, %v1172_v15, %v1173_v7  ;;  %v4087_v15 = vld [vmem:[#allocation6_spill] sm:$0xff] }
 0x12f   : > { %v1218_v47 = vunpack.c.l.b16 %v1174_v24  ;;  %v4088_v24 = vld [vmem:[#allocation7_spill] sm:$0xff] }
 0x130   : > { %v1319_v30 = vpop.f32.mrf.mxu2  ;;  %v3542_v18 = vadd.f32 %v1606_v39, %v1520_v61  ;;  %v1001_v61 = vadd.f32 %v1000_v34, %v3283_v43  ;;  %v3564_v34 = vld [vmem:[%s2855_s29 + $0xa8] sm:$0xff] }
 0x131   : > { %v1387_v28 = vadd.f32 %v1319_v30, %v999_v58  ;;  %v3557_v7 = vpack.c.b16 %v1218_v47, %v1217_v31  ;;  %v1177_v58 = vrot.slane %v4087_v15, 5  ;;  %4089 = vst [vmem:[#allocation6_spill] sm:$0xff] %v3564_v34 }
 0x132   : > { %4083 = vst [vmem:[#allocation37_spill] sm:$0xff] %v3542_v18  ;;  %2614 = vmatmul.msk.bf16.gmra.mxu3 %vm696_vm4, %v3538_v60  ;;  %v4090_v18 = vld [vmem:[#allocation5_spill] sm:$0xff] }
 0x133   : > { %4086 = vst [vmem:[#allocation39_spill] sm:$0xff] %v3557_v7 }
 0x134   : > { %v1609_v11 = vpop.f32.mrf.mxu0 }
 0x135   : > { %v1453_v54 = vpop.f32.mrf.mxu3  ;;  %v1003_v46 = vpop.f32.mrf.mxu1 }
 0x136   : > { %v1521_v22 = vadd.f32 %v1453_v54, %v1387_v28  ;;  %v1180_v54 = vrot.slane %v4088_v24, 5 }
 0x137   : > { %2631 = vmatmul.msk.bf16.gmra.mxu0 %vm696_vm4, %v4084_v5  ;;  %v2578_v5 = vrot.slane %v4090_v18, 9 }
 0x138   : > { %v1321_v39 = vpop.f32.mrf.mxu2  ;;  %2561 = vmatmul.msk.bf16.gmra.mxu1 %vm696_vm4, %v3538_v60  ;;  %v3555_v38 = vadd.f32 %v1609_v11, %v1521_v22  ;;  %v1179_v11 = vrot.slane %v1177_v58, 4  ;;  %v1004_v22 = vadd.f32 %v1003_v46, %v3303_v9 }
 0x139   : > { %v1388_v51 = vadd.f32 %v1321_v39, %v1001_v61  ;;  %v1178_v39 = vsel %vm3185_vm7, %v2578_v5, %v1177_v58  ;;  %v3582_v5 = vld [vmem:[%s2855_s29 + $0xc0] sm:$0xf] }
 0x13a   : > { %4085 = vst [vmem:[#allocation38_spill] sm:$0xff] %v3555_v38  ;;  %v1219_v24 = vunpack.c.l.b16 %v1178_v39  ;;  %v4092_v38 = vld [vmem:[#allocation10_spill] sm:$0xff]  ;;  %v1546_v39 = vshrl.u32 %v3582_v5, 16 }
 0x13b   : > { %4093 = vst [vmem:[#allocation5_spill] sm:$0xff] %v3582_v5 }
 0x13c   : > { %v1611_v30 = vpop.f32.mrf.mxu0 }
 0x13d   : > { %v1455_v2 = vpop.f32.mrf.mxu3  ;;  %2594 = vmatmul.msk.bf16.gmra.mxu2 %vm696_vm4, %v3557_v7  ;;  %v1005_v28 = vpop.f32.mrf.mxu1 }
 0x13e   : > { %v1522_v43 = vadd.f32 %v1455_v2, %v1388_v51  ;;  %v1181_v51 = vsel %vm3185_vm7, %v1179_v11, %v1180_v54 }
 0x13f   : > { %v1220_v9 = vunpack.c.l.b16 %v1181_v51 }
 0x140   : > { %v1324_v47 = vpop.f32.mrf.mxu2  ;;  %v3568_v31 = vadd.f32 %v1611_v30, %v1522_v43  ;;  %v1006_v30 = vadd.f32 %v1005_v28, %v3321_v29  ;;  %v1549_v29 = vshll.u32 %v3582_v5, 16 }
 0x141   : > { %v1389_v61 = vadd.f32 %v1324_v47, %v1004_v22  ;;  %v3586_v11 = vpack.c.b16 %v1220_v9, %v1219_v24  ;;  %v3589_v22 = vld [vmem:[%s2855_s29 + $0xc4] sm:$0xf]  ;;  %v4097_v47 = vld [vmem:[#allocation12_spill] sm:$0xff]  ;;  %v4098_v24 = vld [vmem:[#allocation13_spill] sm:$0xff] }
 0x142   : > { %4091 = vst [vmem:[#allocation7_spill] sm:$0xff] %v3568_v31  ;;  %2615 = vmatmul.msk.bf16.gmra.mxu3 %vm696_vm4, %v3564_v34  ;;  %v1555_v28 = vshll.u32 %v3589_v22, 16  ;;  %v1187_v9 = vrot.slane %v4098_v24, 5  ;;  %v1551_v7 = vrot.slane %v1549_v29, 5 }
 0x143   : > { %4095 = vst [vmem:[#allocation41_spill] sm:$0xff] %v3586_v11 }
 0x144   : > { %v1614_v15 = vpop.f32.mrf.mxu0  ;;  %4096 = vst [vmem:[#allocation42_spill] sm:$0xff] %v3589_v22 }
 0x145   : > { %v1458_v18 = vpop.f32.mrf.mxu3  ;;  %v1008_v2 = vpop.f32.mrf.mxu1 }
 0x146   : > { %v1523_v46 = vadd.f32 %v1458_v18, %v1389_v61  ;;  %v1184_v61 = vrot.slane %v4097_v47, 5  ;;  %v1559_v18 = vshrl.u32 %v3589_v22, 16  ;;  %v1009_v5 = vadd.f32 %v1008_v2, %v3341_v48 }
 0x147   : > { %2632 = vmatmul.msk.bf16.gmra.mxu0 %vm696_vm4, %v4092_v38  ;;  %v1548_v38 = vrot.slane %v1546_v39, 4  ;;  %v1557_v22 = vrot.slane %v1555_v28, 5 }
 0x148   : > { %v1326_v43 = vpop.f32.mrf.mxu2  ;;  %2562 = vmatmul.msk.bf16.gmra.mxu1 %vm696_vm4, %v3564_v34  ;;  %v3584_v58 = vadd.f32 %v1614_v15, %v1523_v46  ;;  %v1561_v60 = vrot.slane %v1559_v18, 4 }
 0x149   : > { %v1390_v54 = vadd.f32 %v1326_v43, %v1006_v30  ;;  %v3600_v30 = vld [vmem:[%s2855_s29 + $0xb4] sm:$0xff]  ;;  %v4099_v43 = vld [vmem:[#allocation11_spill] sm:$0xff]  ;;  %v1552_v2 = vor.u32 %v1551_v7, %v1548_v38 }
 0x14a   : > { %4094 = vst [vmem:[#allocation40_spill] sm:$0xff] %v3584_v58  ;;  %v2579_v47 = vrot.slane %v4099_v43, 9  ;;  %v1186_v58 = vrot.slane %v1184_v61, 4  ;;  %v1562_v39 = vor.u32 %v1561_v60, %v1557_v22 }
 0x14c   : > { %v1616_v51 = vpop.f32.mrf.mxu0  ;;  %v1563_v38 = vrot.slane %v1562_v39, 4 }
 0x14d   : > { %v1460_v31 = vpop.f32.mrf.mxu3  ;;  %2595 = vmatmul.msk.bf16.gmra.mxu2 %vm696_vm4, %v3586_v11  ;;  %v1010_v15 = vpop.f32.mrf.mxu1  ;;  %v3607_v11 = vld [vmem:[%s2855_s29 + $0xc8] sm:$0x1] }
 0x14e   : > { %v1524_v46 = vadd.f32 %v1460_v31, %v1390_v54  ;;  %v1185_v31 = vsel %vm3185_vm7, %v2579_v47, %v1184_v61  ;;  %v1188_v54 = vsel %vm3185_vm7, %v1186_v58, %v1187_v9  ;;  %v1565_v29 = vshll.u32 %v3607_v11, 16 }
 0x14f   : > { %v1221_v18 = vunpack.c.l.b16 %v1185_v31  ;;  %v1011_v24 = vadd.f32 %v1010_v15, %v3362_v63  ;;  %v1553_v58 = vrot.slane %v1552_v2, 4 }
 0x150   : > { %v1329_v34 = vpop.f32.mrf.mxu2  ;;  %v3604_v49 = vadd.f32 %v1616_v51, %v1524_v46  ;;  %v1567_v60 = vrot.slane %v1565_v29, 5 }
 0x151   : > { %v1391_v17 = vadd.f32 %v1329_v34, %v1009_v5  ;;  %v1222_v34 = vunpack.c.l.b16 %v1188_v54  ;;  %v3632_v54 = vld [vmem:[%s2855_s29 + $0xc0] sm:$0xff] }
 0x152   : > { %2616 = vmatmul.msk.bf16.gmra.mxu3 %vm696_vm4, %v3600_v30  ;;  %v1568_v63 = vsel %vm2882_vm3, %v1563_v38, %v1567_v60 }
 0x153   : > { %v3623_v46 = vpack.c.b16 %v1222_v34, %v1221_v18  ;;  %v1572_v39 = vunpack.c.l.b16 %v1568_v63 }
 0x154   : > { %v1619_v48 = vpop.f32.mrf.mxu0 }
 0x155   : > { %v1463_v28 = vpop.f32.mrf.mxu3  ;;  %v1013_v51 = vpop.f32.mrf.mxu1 }
 0x156   : > { %v1525_v5 = vadd.f32 %v1463_v28, %v1391_v17  ;;  %v1558_v17 = vsel %vm2882_vm3, %v1553_v58, %v1557_v22 }
 0x157   : > { %2633 = vmatmul.msk.bf16.gmra.mxu0 %vm696_vm4, %v3194_v53  ;;  %v1571_v2 = vunpack.c.l.b16 %v1558_v17 }
 0x158   : > { %v1331_v61 = vpop.f32.mrf.mxu2  ;;  %2563 = vmatmul.msk.bf16.gmra.mxu1 %vm696_vm4, %v3600_v30  ;;  %v3621_v7 = vadd.f32 %v1619_v48, %v1525_v5  ;;  %v1014_v48 = vadd.f32 %v1013_v51, %v3383_v26 }
 0x159   : > { %v1392_v9 = vadd.f32 %v1331_v61, %v1011_v24  ;;  %v3639_v22 = vpack.c.b16 %v1572_v39, %v1571_v2 }
 0x15c   : > { %v1621_v43 = vpop.f32.mrf.mxu0 }
 0x15d   : > { %v1465_v15 = vpop.f32.mrf.mxu3  ;;  %2596 = vmatmul.msk.bf16.gmra.mxu2 %vm696_vm4, %v3623_v46  ;;  %v1015_v47 = vpop.f32.mrf.mxu1 }
 0x15e   : > { %v1526_v31 = vadd.f32 %v1465_v15, %v1392_v9  ;;  %v1016_v26 = vadd.f32 %v1015_v47, %v3400_v0 }
 0x160   : > { %v1334_v29 = vpop.f32.mrf.mxu2  ;;  %v3635_v28 = vadd.f32 %v1621_v43, %v1526_v31 }
 0x161   : > { %v1393_v18 = vadd.f32 %v1334_v29, %v1014_v48 }
 0x162   : > { %2617 = vmatmul.msk.bf16.gmra.mxu3 %vm696_vm4, %v3632_v54 }
 0x164   : > { %v1624_v34 = vpop.f32.mrf.mxu0 }
 0x165   : > { %v1468_v5 = vpop.f32.mrf.mxu3  ;;  %v1018_v24 = vpop.f32.mrf.mxu1 }
 0x166   : > { %v1527_v61 = vadd.f32 %v1468_v5, %v1393_v18  ;;  %v1019_v63 = vadd.f32 %v1018_v24, %v3285_v16 }
 0x167   : > { %2634 = vmatmul.msk.bf16.gmra.mxu0 %vm696_vm4, %v3639_v22 }
 0x168   : > { %v1336_v51 = vpop.f32.mrf.mxu2  ;;  %2637 = vmatmul.msk.bf16.vlgmr.msra.gmra.mxu1 %vm696_vm4, %v3219_v55  ;;  %v3646_v58 = vadd.f32 %v1624_v34, %v1527_v61 }
 0x169   : > { %v1394_v38 = vadd.f32 %v1336_v51, %v1016_v26 }
 0x16c   : > { %v1626_v60 = vpop.f32.mrf.mxu0 }
 0x16d   : > { %v1470_v9 = vpop.f32.mrf.mxu3  ;;  %2658 = vmatmul.msk.bf16.vlgmr.msra.gmra.mxu2 %vm696_vm4, %v3231_v6  ;;  %v1020_v43 = vpop.f32.mrf.mxu1 }
 0x16e   : > { %v1528_v17 = vadd.f32 %v1470_v9, %v1394_v38  ;;  %v1021_v6 = vadd.f32 %v1020_v43, %v3307_v57 }
 0x170   : > { %v1339_v15 = vpop.f32.mrf.mxu2  ;;  %v3651_v31 = vadd.f32 %v1626_v60, %v1528_v17 }
 0x171   : > { %v1395_v0 = vadd.f32 %v1339_v15, %v1019_v63 }
 0x172   : > { %2675 = vmatmul.msk.bf16.vlgmr.msra.gmra.mxu3 %vm696_vm4, %v3122_v45 }
 0x174   : > { %v1629_v55 = vpop.f32.mrf.mxu0 }
 0x175   : > { %v1473_v47 = vpop.f32.mrf.mxu3  ;;  %v1023_v48 = vpop.f32.mrf.mxu1 }
 0x176   : > { %v1529_v2 = vadd.f32 %v1473_v47, %v1395_v0  ;;  %v1024_v24 = vadd.f32 %v1023_v48, %v3327_v59 }
 0x177   : > { %2693 = vmatmul.msk.bf16.vlgmr.msra.gmra.mxu0 %vm696_vm4, %v3245_v52 }
 0x178   : > { %v1341_v39 = vpop.f32.mrf.mxu2  ;;  %2638 = vmatmul.msk.bf16.gmra.mxu1 %vm696_vm4, %v3245_v52  ;;  %v3660_v16 = vadd.f32 %v1629_v55, %v1529_v2 }
 0x179   : > { %v1396_v29 = vadd.f32 %v1341_v39, %v1021_v6 }
 0x17c   : > { %v1631_v18 = vpop.f32.mrf.mxu0 }
 0x17d   : > { %v1475_v34 = vpop.f32.mrf.mxu3  ;;  %2659 = vmatmul.msk.bf16.gmra.mxu2 %vm696_vm4, %v3251_v41  ;;  %v1025_v45 = vpop.f32.mrf.mxu1 }
 0x17e   : > { %v1530_v5 = vadd.f32 %v1475_v34, %v1396_v29  ;;  %v1026_v41 = vadd.f32 %v1025_v45, %v3345_v3 }
 0x180   : > { %v1344_v61 = vpop.f32.mrf.mxu2  ;;  %v3665_v26 = vadd.f32 %v1631_v18, %v1530_v5 }
 0x181   : > { %v1397_v57 = vadd.f32 %v1344_v61, %v1024_v24 }
 0x182   : > { %2676 = vmatmul.msk.bf16.gmra.mxu3 %vm696_vm4, %v3212_v20 }
 0x184   : > { %v1634_v52 = vpop.f32.mrf.mxu0 }
 0x185   : > { %v1478_v51 = vpop.f32.mrf.mxu3  ;;  %v1028_v38 = vpop.f32.mrf.mxu1 }
 0x186   : > { %v1531_v60 = vadd.f32 %v1478_v51, %v1397_v57  ;;  %v1029_v0 = vadd.f32 %v1028_v38, %v3364_v23 }
 0x187   : > { %2694 = vmatmul.msk.bf16.gmra.mxu0 %vm696_vm4, %v3265_v40 }
 0x188   : > { %v1346_v9 = vpop.f32.mrf.mxu2  ;;  %2639 = vmatmul.msk.bf16.gmra.mxu1 %vm696_vm4, %v3265_v40  ;;  %v3674_v59 = vadd.f32 %v1634_v52, %v1531_v60 }
 0x189   : > { %v1398_v43 = vadd.f32 %v1346_v9, %v1026_v41 }
 0x18c   : > { %v1636_v17 = vpop.f32.mrf.mxu0 }
 0x18d   : > { %v1480_v63 = vpop.f32.mrf.mxu3  ;;  %2660 = vmatmul.msk.bf16.gmra.mxu2 %vm696_vm4, %v3273_v8  ;;  %v1030_v20 = vpop.f32.mrf.mxu1 }
 0x18e   : > { %v1532_v15 = vadd.f32 %v1480_v63, %v1398_v43  ;;  %v1031_v8 = vadd.f32 %v1030_v20, %v3385_v1  ;;  %v4100_v43 = vld [vmem:[#allocation18_spill] sm:$0xff]  ;;  %v4101_v63 = vld [vmem:[#allocation16_spill] sm:$0xff] }
 0x190   : > { %v1349_v55 = vpop.f32.mrf.mxu2  ;;  %v3679_v47 = vadd.f32 %v1636_v17, %v1532_v15 }
 0x191   : > { %v1399_v3 = vadd.f32 %v1349_v55, %v1029_v0  ;;  %v4102_v55 = vld [vmem:[#allocation8_spill] sm:$0xff] }
 0x192   : > { %2677 = vmatmul.msk.bf16.gmra.mxu3 %vm696_vm4, %v2894_v62 }
 0x194   : > { %v1639_v40 = vpop.f32.mrf.mxu0 }
 0x195   : > { %v1483_v48 = vpop.f32.mrf.mxu3  ;;  %v1033_v2 = vpop.f32.mrf.mxu1 }
 0x196   : > { %v1533_v6 = vadd.f32 %v1483_v48, %v1399_v3  ;;  %v1034_v5 = vadd.f32 %v1033_v2, %v3407_v56  ;;  %v4103_v2 = vld [vmem:[#allocation21_spill] sm:$0xff] }
 0x197   : > { %2695 = vmatmul.msk.bf16.gmra.mxu0 %vm696_vm4, %v3293_v12 }
 0x198   : > { %v1351_v39 = vpop.f32.mrf.mxu2  ;;  %2640 = vmatmul.msk.bf16.gmra.mxu1 %vm696_vm4, %v3293_v12  ;;  %v3688_v23 = vadd.f32 %v1639_v40, %v1533_v6  ;;  %v4104_v6 = vld [vmem:[#allocation17_spill] sm:$0xff] }
 0x199   : > { %v1400_v29 = vadd.f32 %v1351_v39, %v1031_v8 }
 0x19c   : > { %v1641_v18 = vpop.f32.mrf.mxu0 }
 0x19d   : > { %v1485_v34 = vpop.f32.mrf.mxu3  ;;  %2661 = vmatmul.msk.bf16.gmra.mxu2 %vm696_vm4, %v3301_v27  ;;  %v1035_v62 = vpop.f32.mrf.mxu1 }
 0x19e   : > { %v1534_v45 = vadd.f32 %v1485_v34, %v1400_v29  ;;  %v1036_v27 = vadd.f32 %v1035_v62, %v3422_v44 }
 0x1a0   : > { %v1354_v24 = vpop.f32.mrf.mxu2  ;;  %v3693_v61 = vadd.f32 %v1641_v18, %v1534_v45  ;;  %v4105_v45 = vld [vmem:[#allocation22_spill] sm:$0xff] }
 0x1a1   : > { %v1401_v1 = vadd.f32 %v1354_v24, %v1034_v5 }
 0x1a2   : > { %2678 = vmatmul.msk.bf16.gmra.mxu3 %vm696_vm4, %v2968_v37 }
 0x1a4   : > { %v1644_v12 = vpop.f32.mrf.mxu0 }
 0x1a5   : > { %v1488_v57 = vpop.f32.mrf.mxu3  ;;  %v1038_v52 = vpop.f32.mrf.mxu1 }
 0x1a6   : > { %v1535_v51 = vadd.f32 %v1488_v57, %v1401_v1  ;;  %v1039_v20 = vadd.f32 %v1038_v52, %v4101_v63  ;;  %v4106_v1 = vld [vmem:[#allocation19_spill] sm:$0xff] }
 0x1a7   : > { %2696 = vmatmul.msk.bf16.gmra.mxu0 %vm696_vm4, %v3325_v33 }
 0x1a8   : > { %v1356_v38 = vpop.f32.mrf.mxu2  ;;  %2641 = vmatmul.msk.bf16.gmra.mxu1 %vm696_vm4, %v3325_v33  ;;  %v3702_v56 = vadd.f32 %v1644_v12, %v1535_v51 }
 0x1a9   : > { %v1402_v60 = vadd.f32 %v1356_v38, %v1036_v27  ;;  %v4107_v27 = vld [vmem:[#allocation14_spill] sm:$0xff] }
 0x1ac   : > { %v1646_v41 = vpop.f32.mrf.mxu0 }
 0x1ad   : > { %v1490_v9 = vpop.f32.mrf.mxu3  ;;  %2662 = vmatmul.msk.bf16.gmra.mxu2 %vm696_vm4, %v4100_v43  ;;  %v1040_v37 = vpop.f32.mrf.mxu1  ;;  %v4108_v43 = vld [vmem:[#allocation24_spill] sm:$0xff] }
 0x1ae   : > { %v1536_v17 = vadd.f32 %v1490_v9, %v1402_v60  ;;  %v1041_v8 = vadd.f32 %v1040_v37, %v4104_v6  ;;  %v4109_v37 = vld [vmem:[#allocation20_spill] sm:$0xff] }
 0x1b0   : > { %v1359_v15 = vpop.f32.mrf.mxu2  ;;  %v3707_v0 = vadd.f32 %v1646_v41, %v1536_v17 }
 0x1b1   : > { %v1403_v44 = vadd.f32 %v1359_v15, %v1039_v20 }
 0x1b2   : > { %2679 = vmatmul.msk.bf16.gmra.mxu3 %vm696_vm4, %v4102_v55 }
 0x1b4   : > { %v1649_v33 = vpop.f32.mrf.mxu0 }
 0x1b5   : > { %v1493_v3 = vpop.f32.mrf.mxu3  ;;  %v1043_v40 = vpop.f32.mrf.mxu1 }
 0x1b6   : > { %v1537_v48 = vadd.f32 %v1493_v3, %v1403_v44  ;;  %v1044_v12 = vadd.f32 %v1043_v40, %v4106_v1  ;;  %v4114_v1 = vld [vmem:[#allocation25_spill] sm:$0xff] }
 0x1b7   : > { %2697 = vmatmul.msk.bf16.gmra.mxu0 %vm696_vm4, %v4103_v2 }
 0x1b8   : > { %v1361_v39 = vpop.f32.mrf.mxu2  ;;  %2642 = vmatmul.msk.bf16.gmra.mxu1 %vm696_vm4, %v4103_v2  ;;  %v3716_v29 = vadd.f32 %v1649_v33, %v1537_v48  ;;  %v4110_v33 = vld [vmem:[#allocation26_spill] sm:$0xff]  ;;  %v4111_v48 = vld [vmem:[#allocation23_spill] sm:$0xff] }
 0x1b9   : > { %v1404_v18 = vadd.f32 %v1361_v39, %v1041_v8 }
 0x1bc   : > { %v1651_v34 = vpop.f32.mrf.mxu0 }
 0x1bd   : > { %v1495_v62 = vpop.f32.mrf.mxu3  ;;  %2663 = vmatmul.msk.bf16.gmra.mxu2 %vm696_vm4, %v4105_v45  ;;  %v1045_v5 = vpop.f32.mrf.mxu1 }
 0x1be   : > { %v1538_v24 = vadd.f32 %v1495_v62, %v1404_v18  ;;  %v1046_v17 = vadd.f32 %v1045_v5, %v4109_v37  ;;  %v4112_v18 = vld [vmem:[#allocation2_spill] sm:$0xff] }
 0x1c0   : > { %v1364_v57 = vpop.f32.mrf.mxu2  ;;  %v3721_v52 = vadd.f32 %v1651_v34, %v1538_v24  ;;  %v4113_v24 = vld [vmem:[#allocation28_spill] sm:$0xff] }
 0x1c1   : > { %v1405_v51 = vadd.f32 %v1364_v57, %v1044_v12 }
 0x1c2   : > { %2680 = vmatmul.msk.bf16.gmra.mxu3 %vm696_vm4, %v4107_v27 }
 0x1c4   : > { %v1654_v38 = vpop.f32.mrf.mxu0 }
 0x1c5   : > { %v1498_v60 = vpop.f32.mrf.mxu3  ;;  %v1048_v41 = vpop.f32.mrf.mxu1 }
 0x1c6   : > { %v1539_v9 = vadd.f32 %v1498_v60, %v1405_v51  ;;  %v1049_v2 = vadd.f32 %v1048_v41, %v4111_v48 }
 0x1c7   : > { %2698 = vmatmul.msk.bf16.gmra.mxu0 %vm696_vm4, %v4108_v43 }
 0x1c8   : > { %v1366_v63 = vpop.f32.mrf.mxu2  ;;  %2643 = vmatmul.msk.bf16.gmra.mxu1 %vm696_vm4, %v4108_v43  ;;  %v3730_v20 = vadd.f32 %v1654_v38, %v1539_v9  ;;  %v4115_v43 = vld [vmem:[#allocation27_spill] sm:$0xff] }
 0x1c9   : > { %v1406_v15 = vadd.f32 %v1366_v63, %v1046_v17 }
 0x1cc   : > { %v1656_v44 = vpop.f32.mrf.mxu0 }
 0x1cd   : > { %v1500_v55 = vpop.f32.mrf.mxu3  ;;  %2664 = vmatmul.msk.bf16.gmra.mxu2 %vm696_vm4, %v4110_v33  ;;  %v1050_v3 = vpop.f32.mrf.mxu1 }
 0x1ce   : > { %v1540_v40 = vadd.f32 %v1500_v55, %v1406_v15  ;;  %v1051_v12 = vadd.f32 %v1050_v3, %v4114_v1 }
 0x1d0   : > { %v1369_v6 = vpop.f32.mrf.mxu2  ;;  %v3735_v8 = vadd.f32 %v1656_v44, %v1540_v40  ;;  %v4116_v40 = vld [vmem:[#allocation29_spill] sm:$0xff] }
 0x1d1   : > { %v1407_v39 = vadd.f32 %v1369_v6, %v1049_v2 }
 0x1d2   : > { %2681 = vmatmul.msk.bf16.gmra.mxu3 %vm696_vm4, %v4112_v18 }
 0x1d4   : > { %v1659_v34 = vpop.f32.mrf.mxu0 }
 0x1d5   : > { %v1503_v62 = vpop.f32.mrf.mxu3  ;;  %v1053_v45 = vpop.f32.mrf.mxu1 }
 0x1d6   : > { %v1541_v5 = vadd.f32 %v1503_v62, %v1407_v39  ;;  %v1054_v37 = vadd.f32 %v1053_v45, %v4115_v43 }
 0x1d7   : > { %2699 = vmatmul.msk.bf16.gmra.mxu0 %vm696_vm4, %v4113_v24 }
 0x1d8   : > { %v1371_v57 = vpop.f32.mrf.mxu2  ;;  %2644 = vmatmul.msk.bf16.gmra.mxu1 %vm696_vm4, %v4113_v24  ;;  %v3744_v51 = vadd.f32 %v1659_v34, %v1541_v5 }
 0x1d9   : > { %v1408_v27 = vadd.f32 %v1371_v57, %v1051_v12 }
 0x1dc   : > { %v1661_v38 = vpop.f32.mrf.mxu0 }
 0x1dd   : > { %v1505_v60 = vpop.f32.mrf.mxu3  ;;  %2665 = vmatmul.msk.bf16.gmra.mxu2 %vm696_vm4, %v3437_v19  ;;  %v1055_v41 = vpop.f32.mrf.mxu1 }
 0x1de   : > { %v1542_v9 = vadd.f32 %v1505_v60, %v1408_v27  ;;  %v1056_v19 = vadd.f32 %v1055_v41, %v4116_v40  ;;  %v3770_v27 = vld [vmem:[%s3998_s2] ss:$0 sm:$0xff] }
 0x1e0   : > { %v1374_v17 = vpop.f32.mrf.mxu2  ;;  %v3749_v63 = vadd.f32 %v1661_v38, %v1542_v9 }
 0x1e1   : > { %v1409_v15 = vadd.f32 %v1374_v17, %v1054_v37 }
 0x1e2   : > { %2682 = vmatmul.msk.bf16.gmra.mxu3 %vm696_vm4, %v2993_v4 }
 0x1e4   : > { %v1664_v44 = vpop.f32.mrf.mxu0 }
 0x1e5   : > { %v1508_v55 = vpop.f32.mrf.mxu3  ;;  %v1729_v33 = vpop.f32.mrf.mxu1 }
 0x1e6   : > { %v1543_v3 = vadd.f32 %v1508_v55, %v1409_v15  ;;  %v1809_v62 = vadd.f32 %v1729_v33, %v3452_v32  ;;  %v4117_v55 = vld [vmem:[#allocation15_spill] sm:$0xff] }
 0x1e7   : > { %2700 = vmatmul.msk.bf16.gmra.mxu0 %vm696_vm4, %v3454_v10 }
 0x1e8   : > { %v1376_v48 = vpop.f32.mrf.mxu2  ;;  %2645 = vmatmul.msk.bf16.gmra.mxu1 %vm696_vm4, %v3454_v10  ;;  %v3758_v2 = vadd.f32 %v1664_v44, %v1543_v3 }
 0x1e9   : > { %v1410_v6 = vadd.f32 %v1376_v48, %v1056_v19 }
 0x1ec   : > { %v1666_v39 = vpop.f32.mrf.mxu0 }
 0x1ed   : > { %v1510_v18 = vpop.f32.mrf.mxu3  ;;  %2666 = vmatmul.msk.bf16.gmra.mxu2 %vm696_vm4, %v3461_v42  ;;  %v1731_v4 = vpop.f32.mrf.mxu1 }
 0x1ee   : > { %v1544_v34 = vadd.f32 %v1510_v18, %v1410_v6  ;;  %v1810_v42 = vadd.f32 %v1731_v4, %v3465_v35  ;;  %v4118_v6 = vld [vmem:[#allocation31_spill] sm:$0xff] }
 0x1f0   : > { %v1863_v45 = vpop.f32.mrf.mxu2  ;;  %v3763_v5 = vadd.f32 %v1666_v39, %v1544_v34 }
 0x1f1   : > { %v1943_v10 = vadd.f32 %v1863_v45, %v1809_v62 }
 0x1f2   : > { %2683 = vmatmul.msk.bf16.gmra.mxu3 %vm696_vm4, %v3078_v25 }
 0x1f4   : > { %v2159_v24 = vpop.f32.mrf.mxu0 }
 0x1f5   : > { %v2019_v1 = vpop.f32.mrf.mxu3  ;;  %v1734_v12 = vpop.f32.mrf.mxu1 }
 0x1f6   : > { %v2099_v57 = vadd.f32 %v2019_v1, %v1943_v10  ;;  %v1811_v17 = vadd.f32 %v1734_v12, %v3478_v21  ;;  %v4119_v21 = vld [vmem:[#allocation9_spill] sm:$0xff]  ;;  %v4120_v1 = vld [vmem:[#allocation32_spill] sm:$0xff] }
 0x1f7   : > { %2701 = vmatmul.msk.bf16.gmra.mxu0 %vm696_vm4, %v3480_v13 }
 0x1f8   : > { %v2239_v32 = vadd.f32 %v2159_v24, %v2099_v57  ;;  %v1865_v38 = vpop.f32.mrf.mxu2  ;;  %2646 = vmatmul.msk.bf16.gmra.mxu1 %vm696_vm4, %v3480_v13 }
 0x1f9   : > { %v1944_v60 = vadd.f32 %v1865_v38, %v1810_v42  ;;  %v4121_v42 = vld [vmem:[#allocation30_spill] sm:$0xff] }
 0x1fa   : > { %v2275_v25 = vadd.f32 %v3770_v27, %v2239_v32 }
 0x1fc   : > { %v2307_v41 = vpack.c.bf16 %v2275_v25, %v2275_v25  ;;  %v2161_v9 = vpop.f32.mrf.mxu0 }
 0x1fd   : > { %v2021_v43 = vpop.f32.mrf.mxu3  ;;  %2667 = vmatmul.msk.bf16.gmra.mxu2 %vm696_vm4, %v3487_v50  ;;  %v1736_v35 = vpop.f32.mrf.mxu1 }
 0x1fe   : > { %2340 = vst.msk [vmem:[%s3782_s20] sm:$0xf] %vm2339_vm8, %v2307_v41  ;;  %v2100_v13 = vadd.f32 %v2021_v43, %v1944_v60  ;;  %v1812_v18 = vadd.f32 %v1736_v35, %v4119_v21  ;;  %v4122_v41 = vld [vmem:[#allocation3_spill] sm:$0xff] }
 0x200   : > { %v2240_v37 = vadd.f32 %v2161_v9, %v2100_v13  ;;  %v1868_v15 = vpop.f32.mrf.mxu2 }
 0x201   : > { %v1945_v33 = vadd.f32 %v1868_v15, %v1811_v17  ;;  %v4123_v15 = vld [vmem:[#allocation35_spill] sm:$0xff] }
 0x202   : > { %v2276_v44 = vadd.f32 %v3770_v27, %v2240_v37  ;;  %2684 = vmatmul.msk.bf16.gmra.mxu3 %vm696_vm4, %v4117_v55  ;;  %v4124_v55 = vld [vmem:[#allocation33_spill] sm:$0xff] }
 0x204   : > { %v2308_v3 = vpack.c.bf16 %v2276_v44, %v2276_v44  ;;  %v2164_v40 = vpop.f32.mrf.mxu0 }
 0x205   : > { %v2024_v19 = vpop.f32.mrf.mxu3  ;;  %v1739_v48 = vpop.f32.mrf.mxu1 }
 0x206   : > { %2341 = vst.msk [vmem:[%s3782_s20 + $0x4] sm:$0xf] %vm2339_vm8, %v2308_v3  ;;  %v2101_v50 = vadd.f32 %v2024_v19, %v1945_v33  ;;  %v1813_v38 = vadd.f32 %v1739_v48, %v4121_v42 }
 0x207   : > { %2702 = vmatmul.msk.bf16.gmra.mxu0 %vm696_vm4, %v4118_v6 }
 0x208   : > { %v2241_v39 = vadd.f32 %v2164_v40, %v2101_v50  ;;  %v1870_v4 = vpop.f32.mrf.mxu2  ;;  %2647 = vmatmul.msk.bf16.gmra.mxu1 %vm696_vm4, %v4118_v6 }
 0x209   : > { %v1946_v62 = vadd.f32 %v1870_v4, %v1812_v18 }
 0x20a   : > { %v2277_v34 = vadd.f32 %v3770_v27, %v2241_v39  ;;  %v4125_v39 = vld [vmem:[#allocation36_spill] sm:$0xff] }
 0x20c   : > { %v2309_v45 = vpack.c.bf16 %v2277_v34, %v2277_v34  ;;  %v2166_v10 = vpop.f32.mrf.mxu0  ;;  %v4126_v34 = vld [vmem:[#allocation34_spill] sm:$0xff] }
 0x20d   : > { %v2026_v24 = vpop.f32.mrf.mxu3  ;;  %2668 = vmatmul.msk.bf16.gmra.mxu2 %vm696_vm4, %v4120_v1  ;;  %v1741_v12 = vpop.f32.mrf.mxu1 }
 0x20e   : > { %2342 = vst.msk [vmem:[%s3782_s20 + $0x8] sm:$0xf] %vm2339_vm8, %v2309_v45  ;;  %v2102_v57 = vadd.f32 %v2026_v24, %v1946_v62  ;;  %v1814_v33 = vadd.f32 %v1741_v12, %v4124_v55  ;;  %v4127_v24 = vld [vmem:[#allocation4_spill] sm:$0xff] }
 0x210   : > { %v2242_v32 = vadd.f32 %v2166_v10, %v2102_v57  ;;  %v1873_v25 = vpop.f32.mrf.mxu2 }
 0x211   : > { %v1947_v9 = vadd.f32 %v1873_v25, %v1813_v38  ;;  %v4128_v25 = vld [vmem:[#allocation39_spill] sm:$0xff] }
 0x212   : > { %v2278_v60 = vadd.f32 %v3770_v27, %v2242_v32  ;;  %2685 = vmatmul.msk.bf16.gmra.mxu3 %vm696_vm4, %v4122_v41  ;;  %v4129_v41 = vld [vmem:[#allocation37_spill] sm:$0xff] }
 0x214   : > { %v2310_v43 = vpack.c.bf16 %v2278_v60, %v2278_v60  ;;  %v2169_v35 = vpop.f32.mrf.mxu0 }
 0x215   : > { %v2029_v13 = vpop.f32.mrf.mxu3  ;;  %v1744_v37 = vpop.f32.mrf.mxu1 }
 0x216   : > { %2343 = vst.msk [vmem:[%s3782_s20 + $0xc] sm:$0xf] %vm2339_vm8, %v2310_v43  ;;  %v2103_v17 = vadd.f32 %v2029_v13, %v1947_v9  ;;  %v1815_v62 = vadd.f32 %v1744_v37, %v4126_v34 }
 0x217   : > { %2703 = vmatmul.msk.bf16.gmra.mxu0 %vm696_vm4, %v4123_v15 }
 0x218   : > { %v2243_v44 = vadd.f32 %v2169_v35, %v2103_v17  ;;  %v1875_v3 = vpop.f32.mrf.mxu2  ;;  %2648 = vmatmul.msk.bf16.gmra.mxu1 %vm696_vm4, %v4123_v15 }
 0x219   : > { %v1948_v19 = vadd.f32 %v1875_v3, %v1814_v33 }
 0x21a   : > { %v2279_v40 = vadd.f32 %v3770_v27, %v2243_v44  ;;  %v4130_v44 = vld [vmem:[#allocation6_spill] sm:$0xff] }
 0x21c   : > { %v2311_v48 = vpack.c.bf16 %v2279_v40, %v2279_v40  ;;  %v2171_v50 = vpop.f32.mrf.mxu0  ;;  %v4131_v40 = vld [vmem:[#allocation38_spill] sm:$0xff] }
 0x21d   : > { %v2031_v6 = vpop.f32.mrf.mxu3  ;;  %2669 = vmatmul.msk.bf16.gmra.mxu2 %vm696_vm4, %v4125_v39  ;;  %v1746_v21 = vpop.f32.mrf.mxu1 }
 0x21e   : > { %2344 = vst.msk [vmem:[%s3782_s20 + $0x10] sm:$0xf] %vm2339_vm8, %v2311_v48  ;;  %v2104_v18 = vadd.f32 %v2031_v6, %v1948_v19  ;;  %v1816_v9 = vadd.f32 %v1746_v21, %v4129_v41  ;;  %v4132_v6 = vld [vmem:[#allocation10_spill] sm:$0xff] }
 0x220   : > { %v2244_v4 = vadd.f32 %v2171_v50, %v2104_v18  ;;  %v1878_v45 = vpop.f32.mrf.mxu2 }
 0x221   : > { %v1949_v1 = vadd.f32 %v1878_v45, %v1815_v62  ;;  %v4133_v45 = vld [vmem:[#allocation41_spill] sm:$0xff] }
 0x222   : > { %v2280_v10 = vadd.f32 %v3770_v27, %v2244_v4  ;;  %2686 = vmatmul.msk.bf16.gmra.mxu3 %vm696_vm4, %v4127_v24  ;;  %v4134_v24 = vld [vmem:[#allocation7_spill] sm:$0xff] }
 0x224   : > { %v2312_v12 = vpack.c.bf16 %v2280_v10, %v2280_v10  ;;  %v2174_v57 = vpop.f32.mrf.mxu0 }
 0x225   : > { %v2034_v32 = vpop.f32.mrf.mxu3  ;;  %v1749_v42 = vpop.f32.mrf.mxu1 }
 0x226   : > { %2345 = vst.msk [vmem:[%s3782_s20 + $0x14] sm:$0xf] %vm2339_vm8, %v2312_v12  ;;  %v2105_v38 = vadd.f32 %v2034_v32, %v1949_v1  ;;  %v1817_v19 = vadd.f32 %v1749_v42, %v4131_v40 }
 0x227   : > { %2704 = vmatmul.msk.bf16.gmra.mxu0 %vm696_vm4, %v4128_v25 }
 0x228   : > { %v2245_v60 = vadd.f32 %v2174_v57, %v2105_v38  ;;  %v1880_v43 = vpop.f32.mrf.mxu2  ;;  %2649 = vmatmul.msk.bf16.gmra.mxu1 %vm696_vm4, %v4128_v25 }
 0x229   : > { %v1950_v13 = vadd.f32 %v1880_v43, %v1816_v9  ;;  %v4135_v43 = vld [vmem:[#allocation40_spill] sm:$0xff] }
 0x22a   : > { %v2281_v35 = vadd.f32 %v3770_v27, %v2245_v60 }
 0x22c   : > { %v2313_v37 = vpack.c.bf16 %v2281_v35, %v2281_v35  ;;  %v2176_v17 = vpop.f32.mrf.mxu0 }
 0x22d   : > { %v2036_v15 = vpop.f32.mrf.mxu3  ;;  %2670 = vmatmul.msk.bf16.gmra.mxu2 %vm696_vm4, %v4130_v44  ;;  %v1751_v55 = vpop.f32.mrf.mxu1 }
 0x22e   : > { %2346 = vst.msk [vmem:[%s3782_s20 + $0x18] sm:$0xf] %vm2339_vm8, %v2313_v37  ;;  %v2106_v33 = vadd.f32 %v2036_v15, %v1950_v13  ;;  %v1818_v1 = vadd.f32 %v1751_v55, %v4134_v24  ;;  %v4136_v55 = vld [vmem:[#allocation42_spill] sm:$0xff] }
 0x230   : > { %v2246_v3 = vadd.f32 %v2176_v17, %v2106_v33  ;;  %v1883_v48 = vpop.f32.mrf.mxu2  ;;  %v1704_v33 = vrot.slane %v4136_v55, 5 }
 0x231   : > { %v1951_v39 = vadd.f32 %v1883_v48, %v1817_v19 }
 0x232   : > { %v2282_v50 = vadd.f32 %v3770_v27, %v2246_v3  ;;  %2687 = vmatmul.msk.bf16.gmra.mxu3 %vm696_vm4, %v4132_v6  ;;  %v3861_v3 = vld [vmem:[%s2855_s29 + $0xd0] sm:$0xf] }
 0x234   : > { %v2314_v21 = vpack.c.bf16 %v2282_v50, %v2282_v50  ;;  %v2179_v18 = vpop.f32.mrf.mxu0  ;;  %v4137_v50 = vld [vmem:[#allocation5_spill] sm:$0xff] }
 0x235   : > { %v2039_v4 = vpop.f32.mrf.mxu3  ;;  %v1754_v34 = vpop.f32.mrf.mxu1  ;;  %v2635_v6 = vrot.slane %v4137_v50, 9 }
 0x236   : > { %2347 = vst.msk [vmem:[%s3782_s20 + $0x1c] sm:$0xf] %vm2339_vm8, %v2314_v21  ;;  %v2107_v62 = vadd.f32 %v2039_v4, %v1951_v39  ;;  %v1819_v35 = vadd.f32 %v1754_v34, %v4135_v43  ;;  %v1985_v21 = vshll.u32 %v3861_v3, 16 }
 0x237   : > { %2705 = vmatmul.msk.bf16.gmra.mxu0 %vm696_vm4, %v4133_v45 }
 0x238   : > { %v2247_v10 = vadd.f32 %v2179_v18, %v2107_v62  ;;  %v1885_v12 = vpop.f32.mrf.mxu2  ;;  %2650 = vmatmul.msk.bf16.gmra.mxu1 %vm696_vm4, %v4133_v45  ;;  %v1989_v18 = vshrl.u32 %v3861_v3, 16  ;;  %v1706_v45 = vrot.slane %v1704_v33, 4 }
 0x239   : > { %v1952_v32 = vadd.f32 %v1885_v12, %v1818_v1  ;;  %v1705_v12 = vsel %vm3185_vm7, %v2635_v6, %v1704_v33 }
 0x23a   : > { %v2283_v57 = vadd.f32 %v3770_v27, %v2247_v10  ;;  %v1707_v10 = vrot.slane %v3607_v11, 5  ;;  %v1711_v43 = vunpack.c.l.b16 %v1705_v12 }
 0x23c   : > { %v2315_v42 = vpack.c.bf16 %v2283_v57, %v2283_v57  ;;  %v2181_v38 = vpop.f32.mrf.mxu0 }
 0x23d   : > { %v2041_v25 = vpop.f32.mrf.mxu3  ;;  %2671 = vmatmul.msk.bf16.gmra.mxu2 %vm696_vm4, %v3600_v30  ;;  %v1756_v60 = vpop.f32.mrf.mxu1  ;;  %v3858_v30 = vld [vmem:[%s2855_s29 + $0xcc] sm:$0xf] }
 0x23e   : > { %2348 = vst.msk [vmem:[%s3782_s20 + $0x20] sm:$0xf] %vm2339_vm8, %v2315_v42  ;;  %v2108_v41 = vadd.f32 %v2041_v25, %v1952_v32  ;;  %v1979_v39 = vshll.u32 %v3858_v30, 16  ;;  %v1820_v34 = vadd.f32 %v1756_v60, %v3604_v49  ;;  %v1987_v42 = vrot.slane %v1985_v21, 5 }
 0x23f   : > { %v1708_v60 = vsel %vm3185_vm7, %v1706_v45, %v1707_v10  ;;  %v2134_v21 = vrot.slane %v3861_v3, 5 }
 0x240   : > { %v2248_v9 = vadd.f32 %v2181_v38, %v2108_v41  ;;  %v1888_v13 = vpop.f32.mrf.mxu2  ;;  %v1981_v32 = vrot.slane %v1979_v39, 5  ;;  %v1991_v38 = vrot.slane %v1989_v18, 4 }
 0x241   : > { %v1953_v17 = vadd.f32 %v1888_v13, %v1819_v35  ;;  %v1712_v35 = vunpack.c.l.b16 %v1708_v60  ;;  %v2136_v3 = vrot.slane %v2134_v21, 4 }
 0x242   : > { %v2284_v37 = vadd.f32 %v3770_v27, %v2248_v9  ;;  %2688 = vmatmul.msk.bf16.gmra.mxu3 %vm696_vm4, %v3194_v53  ;;  %v1976_v53 = vshrl.u32 %v3858_v30, 16 }
 0x244   : > { %v2316_v15 = vpack.c.bf16 %v2284_v37, %v2284_v37  ;;  %v2184_v44 = vpop.f32.mrf.mxu0  ;;  %v1978_v57 = vrot.slane %v1976_v53, 4  ;;  %v1992_v37 = vor.u32 %v1991_v38, %v1987_v42 }
 0x245   : > { %v2044_v40 = vpop.f32.mrf.mxu3  ;;  %v1759_v19 = vpop.f32.mrf.mxu1 }
 0x246   : > { %2349 = vst.msk [vmem:[%s3782_s20 + $0x24] sm:$0xf] %vm2339_vm8, %v2316_v15  ;;  %v2109_v48 = vadd.f32 %v2044_v40, %v1953_v17  ;;  %v1982_v13 = vor.u32 %v1981_v32, %v1978_v57  ;;  %v1713_v40 = vpack.c.b16 %v1712_v35, %v1711_v43  ;;  %v1993_v50 = vrot.slane %v1992_v37, 4 }
 0x247   : > { %2706 = vmatmul.msk.bf16.gmra.mxu0 %vm696_vm4, %v3623_v46 }
 0x248   : > { %v2249_v4 = vadd.f32 %v2184_v44, %v2109_v48  ;;  %v1890_v62 = vpop.f32.mrf.mxu2  ;;  %2651 = vmatmul.msk.bf16.gmra.mxu1 %vm696_vm4, %v3623_v46  ;;  %v257_v46 = vld [vmem:[%s2855_s29 + $0xd4] sm:$0x1]  ;;  %v1821_v44 = vadd.f32 %v1759_v19, %v3621_v7  ;;  %v1983_v48 = vrot.slane %v1982_v13, 4 }
 0x249   : > { %v1954_v1 = vadd.f32 %v1890_v62, %v1820_v34  ;;  %v1995_v17 = vshll.u32 %v257_v46, 16  ;;  %v2691_v34 = vrot.slane %v3858_v30, 9 }
 0x24a   : > { %v2285_v24 = vadd.f32 %v3770_v27, %v2249_v4 }
 0x24b   : > { %v1997_v6 = vrot.slane %v1995_v17, 5  ;;  %v2135_v30 = vsel %vm3185_vm7, %v2691_v34, %v2134_v21 }
 0x24c   : > { %v2317_v25 = vpack.c.bf16 %v2285_v24, %v2285_v24  ;;  %v2186_v49 = vpop.f32.mrf.mxu0  ;;  %v2137_v24 = vrot.slane %v257_v46, 5 }
 0x24d   : > { %v2046_v41 = vpop.f32.mrf.mxu3  ;;  %2672 = vmatmul.msk.bf16.gmra.mxu2 %vm696_vm4, %v3632_v54  ;;  %v1761_v11 = vpop.f32.mrf.mxu1  ;;  %v1998_v19 = vsel %vm2882_vm3, %v1993_v50, %v1997_v6 }
 0x24e   : > { %2350 = vst.msk [vmem:[%s3782_s20 + $0x28] sm:$0xf] %vm2339_vm8, %v2317_v25  ;;  %v2110_v9 = vadd.f32 %v2046_v41, %v1954_v1  ;;  %v1822_v45 = vadd.f32 %v1761_v11, %v3635_v28  ;;  %v2729_v1 = vld [vmem:[%s2855_s29 + $0xcc] sm:$0xff]  ;;  %v2138_v28 = vsel %vm3185_vm7, %v2136_v3, %v2137_v24  ;;  %v2141_v41 = vunpack.c.l.b16 %v2135_v30 }
 0x24f   : > { %v2142_v11 = vunpack.c.l.b16 %v2138_v28 }
 0x250   : > { %v2250_v15 = vadd.f32 %v2186_v49, %v2110_v9  ;;  %v1893_v55 = vpop.f32.mrf.mxu2 }
 0x251   : > { %v1955_v54 = vadd.f32 %v1893_v55, %v1821_v44  ;;  %v2143_v37 = vpack.c.b16 %v2142_v11, %v2141_v41 }
 0x252   : > { %v2286_v33 = vadd.f32 %v3770_v27, %v2250_v15  ;;  %2689 = vmatmul.msk.bf16.gmra.mxu3 %vm696_vm4, %v3639_v22  ;;  %v1988_v22 = vsel %vm2882_vm3, %v1983_v48, %v1987_v42  ;;  %v2002_v42 = vunpack.c.l.b16 %v1998_v19 }
 0x253   : > { %v2001_v32 = vunpack.c.l.b16 %v1988_v22 }
 0x254   : > { %v2318_v53 = vpack.c.bf16 %v2286_v33, %v2286_v33  ;;  %v2189_v39 = vpop.f32.mrf.mxu0 }
 0x255   : > { %v2049_v18 = vpop.f32.mrf.mxu3  ;;  %v1764_v4 = vpop.f32.mrf.mxu1  ;;  %v2003_v46 = vpack.c.b16 %v2002_v42, %v2001_v32 }
 0x256   : > { %2351 = vst.msk [vmem:[%s3782_s20 + $0x2c] sm:$0xf] %vm2339_vm8, %v2318_v53  ;;  %v2111_v7 = vadd.f32 %v2049_v18, %v1955_v54  ;;  %v1823_v43 = vadd.f32 %v1764_v4, %v3646_v58 }
 0x257   : > { %2707 = vmatmul.msk.bf16.gmra.mxu0 %vm696_vm4, %v1713_v40 }
 0x258   : > { %v2251_v62 = vadd.f32 %v2189_v39, %v2111_v7  ;;  %v1895_v10 = vpop.f32.mrf.mxu2  ;;  %2652 = vmatmul.msk.bf16.gmra.mxu1 %vm696_vm4, %v1713_v40 }
 0x259   : > { %v1956_v57 = vadd.f32 %v1895_v10, %v1822_v45 }
 0x25a   : > { %v2287_v12 = vadd.f32 %v3770_v27, %v2251_v62 }
 0x25c   : > { %v2319_v38 = vpack.c.bf16 %v2287_v12, %v2287_v12  ;;  %v2191_v36 = vpop.f32.mrf.mxu0 }
 0x25d   : > { %v2051_v25 = vpop.f32.mrf.mxu3  ;;  %2673 = vmatmul.msk.bf16.gmra.mxu2 %vm696_vm4, %v2729_v1  ;;  %v1766_v49 = vpop.f32.mrf.mxu1 }
 0x25e   : > { %2352 = vst.msk [vmem:[%s3782_s20 + $0x30] sm:$0xf] %vm2339_vm8, %v2319_v38  ;;  %v2112_v60 = vadd.f32 %v2051_v25, %v1956_v57  ;;  %v1824_v58 = vadd.f32 %v1766_v49, %v3651_v31 }
 0x260   : > { %v2252_v9 = vadd.f32 %v2191_v36, %v2112_v60  ;;  %v1898_v35 = vpop.f32.mrf.mxu2 }
 0x261   : > { %v1957_v14 = vadd.f32 %v1898_v35, %v1823_v43 }
 0x262   : > { %v2288_v13 = vadd.f32 %v3770_v27, %v2252_v9  ;;  %2690 = vmatmul.msk.bf16.gmra.mxu3 %vm696_vm4, %v2003_v46 }
 0x264   : > { %v2320_v17 = vpack.c.bf16 %v2288_v13, %v2288_v13  ;;  %v2194_v15 = vpop.f32.mrf.mxu0 }
 0x265   : > { %v2054_v44 = vpop.f32.mrf.mxu3  ;;  %v1769_v55 = vpop.f32.mrf.mxu1 }
 0x266   : > { %2353 = vst.msk [vmem:[%s3782_s20 + $0x34] sm:$0xf] %vm2339_vm8, %v2320_v17  ;;  %v2113_v33 = vadd.f32 %v2054_v44, %v1957_v14  ;;  %v1825_v7 = vadd.f32 %v1769_v55, %v3660_v16 }
 0x267   : > { %2708 = vmatmul.msk.bf16.gmra.mxu0 %vm696_vm4, %v2143_v37 }
 0x268   : > { %v2253_v54 = vadd.f32 %v2194_v15, %v2113_v33  ;;  %v1900_v40 = vpop.f32.mrf.mxu2 }
 0x269   : > { %v1958_v50 = vadd.f32 %v1900_v40, %v1824_v58 }
 0x26a   : > { %v2289_v48 = vadd.f32 %v3770_v27, %v2253_v54 }
 0x26c   : > { %v2321_v6 = vpack.c.bf16 %v2289_v48, %v2289_v48  ;;  %v2196_v53 = vpop.f32.mrf.mxu0 }
 0x26d   : > { %v2056_v39 = vpop.f32.mrf.mxu3  ;;  %v1771_v21 = vpop.f32.mrf.mxu1 }
 0x26e   : > { %2354 = vst.msk [vmem:[%s3782_s20 + $0x38] sm:$0xf] %vm2339_vm8, %v2321_v6  ;;  %v2114_v18 = vadd.f32 %v2056_v39, %v1958_v50  ;;  %v1826_v1 = vadd.f32 %v1771_v21, %v3665_v26 }
 0x270   : > { %v2254_v4 = vadd.f32 %v2196_v53, %v2114_v18  ;;  %v1903_v22 = vpop.f32.mrf.mxu2 }
 0x271   : > { %v1959_v34 = vadd.f32 %v1903_v22, %v1825_v7 }
 0x272   : > { %v2290_v19 = vadd.f32 %v3770_v27, %v2254_v4 }
 0x274   : > { %v2322_v31 = vpack.c.bf16 %v2290_v19, %v2290_v19  ;;  %v2199_v62 = vpop.f32.mrf.mxu0 }
 0x275   : > { %v2059_v45 = vpop.f32.mrf.mxu3  ;;  %v1774_v10 = vpop.f32.mrf.mxu1 }
 0x276   : > { %2355 = vst.msk [vmem:[%s3782_s20 + $0x3c] sm:$0xf] %vm2339_vm8, %v2322_v31  ;;  %v2115_v3 = vadd.f32 %v2059_v45, %v1959_v34  ;;  %v1827_v25 = vadd.f32 %v1774_v10, %v3674_v59 }
 0x278   : > { %v2255_v24 = vadd.f32 %v2199_v62, %v2115_v3  ;;  %v1905_v12 = vpop.f32.mrf.mxu2 }
 0x279   : > { %v1960_v32 = vadd.f32 %v1905_v12, %v1826_v1 }
 0x27a   : > { %v2291_v57 = vadd.f32 %v3770_v27, %v2255_v24 }
 0x27c   : > { %v2323_v16 = vpack.c.bf16 %v2291_v57, %v2291_v57  ;;  %v2201_v42 = vpop.f32.mrf.mxu0 }
 0x27d   : > { %v2061_v38 = vpop.f32.mrf.mxu3  ;;  %v1776_v36 = vpop.f32.mrf.mxu1 }
 0x27e   : > { %2356 = vst.msk [vmem:[%s3782_s20 + $0x40] sm:$0xf] %vm2339_vm8, %v2323_v16  ;;  %v2116_v30 = vadd.f32 %v2061_v38, %v1960_v32  ;;  %v1828_v13 = vadd.f32 %v1776_v36, %v3679_v47 }
 0x280   : > { %v2256_v28 = vadd.f32 %v2201_v42, %v2116_v30  ;;  %v1908_v49 = vpop.f32.mrf.mxu2 }
 0x281   : > { %v1961_v46 = vadd.f32 %v1908_v49, %v1827_v25 }
 0x282   : > { %v2292_v60 = vadd.f32 %v3770_v27, %v2256_v28 }
 0x284   : > { %v2324_v26 = vpack.c.bf16 %v2292_v60, %v2292_v60  ;;  %v2204_v41 = vpop.f32.mrf.mxu0 }
 0x285   : > { %v2064_v11 = vpop.f32.mrf.mxu3  ;;  %v1779_v9 = vpop.f32.mrf.mxu1 }
 0x286   : > { %2357 = vst.msk [vmem:[%s3782_s20 + $0x44] sm:$0xf] %vm2339_vm8, %v2324_v26  ;;  %v2117_v43 = vadd.f32 %v2064_v11, %v1961_v46  ;;  %v1829_v58 = vadd.f32 %v1779_v9, %v3688_v23 }
 0x288   : > { %v2257_v35 = vadd.f32 %v2204_v41, %v2117_v43  ;;  %v1910_v14 = vpop.f32.mrf.mxu2 }
 0x289   : > { %v1962_v17 = vadd.f32 %v1910_v14, %v1828_v13 }
 0x28a   : > { %v2293_v37 = vadd.f32 %v3770_v27, %v2257_v35 }
 0x28c   : > { %v2325_v59 = vpack.c.bf16 %v2293_v37, %v2293_v37  ;;  %v2206_v15 = vpop.f32.mrf.mxu0 }
 0x28d   : > { %v2066_v44 = vpop.f32.mrf.mxu3  ;;  %v1781_v55 = vpop.f32.mrf.mxu1 }
 0x28e   : > { %2358 = vst.msk [vmem:[%s3782_s20 + $0x48] sm:$0xf] %vm2339_vm8, %v2325_v59  ;;  %v2118_v33 = vadd.f32 %v2066_v44, %v1962_v17  ;;  %v1830_v4 = vadd.f32 %v1781_v55, %v3693_v61 }
 0x290   : > { %v2258_v54 = vadd.f32 %v2206_v15, %v2118_v33  ;;  %v1913_v40 = vpop.f32.mrf.mxu2 }
 0x291   : > { %v1963_v50 = vadd.f32 %v1913_v40, %v1829_v58 }
 0x292   : > { %v2294_v48 = vadd.f32 %v3770_v27, %v2258_v54 }
 0x294   : > { %v2326_v47 = vpack.c.bf16 %v2294_v48, %v2294_v48  ;;  %v2209_v6 = vpop.f32.mrf.mxu0 }
 0x295   : > { %v2069_v53 = vpop.f32.mrf.mxu3  ;;  %v1784_v39 = vpop.f32.mrf.mxu1 }
 0x296   : > { %2359 = vst.msk [vmem:[%s3782_s20 + $0x4c] sm:$0xf] %vm2339_vm8, %v2326_v47  ;;  %v2119_v21 = vadd.f32 %v2069_v53, %v1963_v50  ;;  %v1831_v3 = vadd.f32 %v1784_v39, %v3702_v56 }
 0x298   : > { %v2259_v18 = vadd.f32 %v2209_v6, %v2119_v21  ;;  %v1915_v7 = vpop.f32.mrf.mxu2 }
 0x299   : > { %v1964_v19 = vadd.f32 %v1915_v7, %v1830_v4 }
 0x29a   : > { %v2295_v22 = vadd.f32 %v3770_v27, %v2259_v18 }
 0x29c   : > { %v2327_v23 = vpack.c.bf16 %v2295_v22, %v2295_v22  ;;  %v2211_v34 = vpop.f32.mrf.mxu0 }
 0x29d   : > { %v2071_v31 = vpop.f32.mrf.mxu3  ;;  %v1786_v62 = vpop.f32.mrf.mxu1 }
 0x29e   : > { %2360 = vst.msk [vmem:[%s3782_s20 + $0x50] sm:$0xf] %vm2339_vm8, %v2327_v23  ;;  %v2120_v45 = vadd.f32 %v2071_v31, %v1964_v19  ;;  %v1832_v36 = vadd.f32 %v1786_v62, %v3707_v0 }
 0x2a0   : > { %v2260_v10 = vadd.f32 %v2211_v34, %v2120_v45  ;;  %v1918_v24 = vpop.f32.mrf.mxu2 }
 0x2a1   : > { %v1965_v12 = vadd.f32 %v1918_v24, %v1831_v3 }
 0x2a2   : > { %v2296_v1 = vadd.f32 %v3770_v27, %v2260_v10 }
 0x2a4   : > { %v2328_v61 = vpack.c.bf16 %v2296_v1, %v2296_v1  ;;  %v2214_v57 = vpop.f32.mrf.mxu0 }
 0x2a5   : > { %v2074_v32 = vpop.f32.mrf.mxu3  ;;  %v1789_v16 = vpop.f32.mrf.mxu1 }
 0x2a6   : > { %2361 = vst.msk [vmem:[%s3782_s20 + $0x54] sm:$0xf] %vm2339_vm8, %v2328_v61  ;;  %v2121_v42 = vadd.f32 %v2074_v32, %v1965_v12  ;;  %v1833_v11 = vadd.f32 %v1789_v16, %v3716_v29 }
 0x2a8   : > { %v2261_v38 = vadd.f32 %v2214_v57, %v2121_v42  ;;  %v1920_v30 = vpop.f32.mrf.mxu2 }
 0x2a9   : > { %v1966_v25 = vadd.f32 %v1920_v30, %v1832_v36 }
 0x2aa   : > { %v2297_v28 = vadd.f32 %v3770_v27, %v2261_v38 }
 0x2ac   : > { %v2329_v56 = vpack.c.bf16 %v2297_v28, %v2297_v28  ;;  %v2216_v49 = vpop.f32.mrf.mxu0 }
 0x2ad   : > { %v2076_v60 = vpop.f32.mrf.mxu3  ;;  %v1791_v46 = vpop.f32.mrf.mxu1 }
 0x2ae   : > { %2362 = vst.msk [vmem:[%s3782_s20 + $0x58] sm:$0xf] %vm2339_vm8, %v2329_v56  ;;  %v2122_v26 = vadd.f32 %v2076_v60, %v1966_v25  ;;  %v1834_v15 = vadd.f32 %v1791_v46, %v3721_v52 }
 0x2b0   : > { %v2262_v41 = vadd.f32 %v2216_v49, %v2122_v26  ;;  %v1923_v9 = vpop.f32.mrf.mxu2 }
 0x2b1   : > { %v1967_v35 = vadd.f32 %v1923_v9, %v1833_v11 }
 0x2b2   : > { %v2298_v43 = vadd.f32 %v3770_v27, %v2262_v41 }
 0x2b4   : > { %v2330_v0 = vpack.c.bf16 %v2298_v43, %v2298_v43  ;;  %v2219_v13 = vpop.f32.mrf.mxu0 }
 0x2b5   : > { %v2079_v14 = vpop.f32.mrf.mxu3  ;;  %v1794_v37 = vpop.f32.mrf.mxu1 }
 0x2b6   : > { %2363 = vst.msk [vmem:[%s3782_s20 + $0x5c] sm:$0xf] %vm2339_vm8, %v2330_v0  ;;  %v2123_v17 = vadd.f32 %v2079_v14, %v1967_v35  ;;  %v1835_v47 = vadd.f32 %v1794_v37, %v3730_v20 }
 0x2b8   : > { %v2263_v59 = vadd.f32 %v2219_v13, %v2123_v17  ;;  %v1925_v44 = vpop.f32.mrf.mxu2 }
 0x2b9   : > { %v1968_v29 = vadd.f32 %v1925_v44, %v1834_v15 }
 0x2ba   : > { %v2299_v55 = vadd.f32 %v3770_v27, %v2263_v59 }
 0x2bc   : > { %v2331_v33 = vpack.c.bf16 %v2299_v55, %v2299_v55  ;;  %v2221_v54 = vpop.f32.mrf.mxu0 }
 0x2bd   : > { %v2081_v58 = vpop.f32.mrf.mxu3  ;;  %v1796_v40 = vpop.f32.mrf.mxu1 }
 0x2be   : > { %2364 = vst.msk [vmem:[%s3782_s20 + $0x60] sm:$0xf] %vm2339_vm8, %v2331_v33  ;;  %v2124_v48 = vadd.f32 %v2081_v58, %v1968_v29  ;;  %v1836_v19 = vadd.f32 %v1796_v40, %v3735_v8 }
 0x2c0   : > { %v2264_v50 = vadd.f32 %v2221_v54, %v2124_v48  ;;  %v1928_v6 = vpop.f32.mrf.mxu2 }
 0x2c1   : > { %v1969_v52 = vadd.f32 %v1928_v6, %v1835_v47 }
 0x2c2   : > { %v2300_v53 = vadd.f32 %v3770_v27, %v2264_v50 }
 0x2c4   : > { %v2332_v39 = vpack.c.bf16 %v2300_v53, %v2300_v53  ;;  %v2224_v21 = vpop.f32.mrf.mxu0 }
 0x2c5   : > { %v2084_v18 = vpop.f32.mrf.mxu3  ;;  %v1799_v7 = vpop.f32.mrf.mxu1 }
 0x2c6   : > { %2365 = vst.msk [vmem:[%s3782_s20 + $0x64] sm:$0xf] %vm2339_vm8, %v2332_v39  ;;  %v2125_v4 = vadd.f32 %v2084_v18, %v1969_v52  ;;  %v1837_v24 = vadd.f32 %v1799_v7, %v3744_v51 }
 0x2c8   : > { %v2265_v22 = vadd.f32 %v2224_v21, %v2125_v4  ;;  %v1930_v23 = vpop.f32.mrf.mxu2 }
 0x2c9   : > { %v1970_v20 = vadd.f32 %v1930_v23, %v1836_v19 }
 0x2ca   : > { %v2301_v34 = vadd.f32 %v3770_v27, %v2265_v22 }
 0x2cc   : > { %v2333_v31 = vpack.c.bf16 %v2301_v34, %v2301_v34  ;;  %v2226_v62 = vpop.f32.mrf.mxu0 }
 0x2cd   : > { %v2086_v45 = vpop.f32.mrf.mxu3  ;;  %v1801_v12 = vpop.f32.mrf.mxu1 }
 0x2ce   : > { %2366 = vst.msk [vmem:[%s3782_s20 + $0x68] sm:$0xf] %vm2339_vm8, %v2333_v31  ;;  %v2126_v10 = vadd.f32 %v2086_v45, %v1970_v20  ;;  %v1838_v36 = vadd.f32 %v1801_v12, %v3749_v63 }
 0x2d0   : > { %v2266_v3 = vadd.f32 %v2226_v62, %v2126_v10  ;;  %v1933_v1 = vpop.f32.mrf.mxu2 }
 0x2d1   : > { %v1971_v8 = vadd.f32 %v1933_v1, %v1837_v24 }
 0x2d2   : > { %v2302_v61 = vadd.f32 %v3770_v27, %v2266_v3 }
 0x2d4   : > { %v2334_v57 = vpack.c.bf16 %v2302_v61, %v2302_v61  ;;  %v2229_v32 = vpop.f32.mrf.mxu0 }
 0x2d5   : > { %v2089_v16 = vpop.f32.mrf.mxu3  ;;  %v1804_v51 = vpop.f32.mrf.mxu1 }
 0x2d6   : > { %2367 = vst.msk [vmem:[%s3782_s20 + $0x6c] sm:$0xf] %vm2339_vm8, %v2334_v57  ;;  %v2127_v42 = vadd.f32 %v2089_v16, %v1971_v8  ;;  %v1839_v41 = vadd.f32 %v1804_v51, %v3758_v2 }
 0x2d8   : > { %v2267_v38 = vadd.f32 %v2229_v32, %v2127_v42  ;;  %v1935_v30 = vpop.f32.mrf.mxu2 }
 0x2d9   : > { %v1972_v25 = vadd.f32 %v1935_v30, %v1838_v36 }
 0x2da   : > { %v2303_v28 = vadd.f32 %v3770_v27, %v2267_v38 }
 0x2dc   : > { %v2335_v56 = vpack.c.bf16 %v2303_v28, %v2303_v28  ;;  %v2231_v49 = vpop.f32.mrf.mxu0 }
 0x2dd   : > { %v2091_v60 = vpop.f32.mrf.mxu3  ;;  %v1806_v35 = vpop.f32.mrf.mxu1 }
 0x2de   : > { %2368 = vst.msk [vmem:[%s3782_s20 + $0x70] sm:$0xf] %vm2339_vm8, %v2335_v56  ;;  %v2128_v46 = vadd.f32 %v2091_v60, %v1972_v25  ;;  %v1840_v17 = vadd.f32 %v1806_v35, %v3763_v5 }
 0x2e0   : > { %v2268_v26 = vadd.f32 %v2231_v49, %v2128_v46  ;;  %v1938_v11 = vpop.f32.mrf.mxu2 }
 0x2e1   : > { %v1973_v63 = vadd.f32 %v1938_v11, %v1839_v41 }
 0x2e2   : > { %v2304_v9 = vadd.f32 %v3770_v27, %v2268_v26 }
 0x2e4   : > { %v2336_v43 = vpack.c.bf16 %v2304_v9, %v2304_v9  ;;  %v2234_v0 = vpop.f32.mrf.mxu0 }
 0x2e5   : > { %v2094_v13 = vpop.f32.mrf.mxu3 }
 0x2e6   : > { %2369 = vst.msk [vmem:[%s3782_s20 + $0x74] sm:$0xf] %vm2339_vm8, %v2336_v43  ;;  %v2129_v14 = vadd.f32 %v2094_v13, %v1973_v63 }
 0x2e8   : > { %v2269_v37 = vadd.f32 %v2234_v0, %v2129_v14  ;;  %v1940_v59 = vpop.f32.mrf.mxu2 }
 0x2e9   : > { %v1974_v2 = vadd.f32 %v1940_v59, %v1840_v17 }
 0x2ea   : > { %v2305_v15 = vadd.f32 %v3770_v27, %v2269_v37 }
 0x2ec   : > { %v2337_v44 = vpack.c.bf16 %v2305_v15, %v2305_v15  ;;  %v2236_v33 = vpop.f32.mrf.mxu0 }
 0x2ed   : > { %v2096_v55 = vpop.f32.mrf.mxu3 }
 0x2ee   : > { %2370 = vst.msk [vmem:[%s3782_s20 + $0x78] sm:$0xf] %vm2339_vm8, %v2337_v44  ;;  %v2130_v29 = vadd.f32 %v2096_v55, %v1974_v2 }
 0x2f0   : > { %v2270_v54 = vadd.f32 %v2236_v33, %v2130_v29 }
 0x2f2   : > { %v2306_v58 = vadd.f32 %v3770_v27, %v2270_v54 }
 0x2f4   : > { %v2338_v40 = vpack.c.bf16 %v2306_v58, %v2306_v58 }
 0x2f6   : > { %2371 = vst.msk [vmem:[%s3782_s20 + $0x7c] sm:$0xf] %vm2339_vm8, %v2338_v40 }
 0x2f7 PF: > { %s13_s14 = sadd.s32 1, %s2789_s14   ;;  %s4138_s12 = smov %s2785_s13 }
 0x2f8   : > { %p10_p5 = scmp.ge.s32.totalorder %s13_s14, 4   ;;  %s4139_s13 = smov %s4141_s15 }
 0x2fa   :  { %12 = sbr.rel (!%p10_p5) target bundleno = 2 (0x2), region = 70 }

// kernel: estimate_forward.5
= control target key start
LH: loop header
LB: loop body
LE: loop exit
PB: predicated region body
PF: predicated region fallthrough
CT: control target
= control target key end

     0   :  { %s3506_s12 = smov 0   ;;  %s3508_s13 = smov 0   ;;  %s4790_s0 = inlined_call_operand.vmem [shape: bf16[2,18,18,64], index: 0, kind: input, shape index: {}]   ;;  %s4791_s1 = inlined_call_operand.vmem [shape: bf16[3,3,64,64], index: 1, kind: input, shape index: {}]   ;;  %s4792_s2 = inlined_call_operand.vmem [shape: bf16[2,16,16,64], index: 2, kind: output, shape index: {0}]   ;;  %s4793_s3 = inlined_call_operand.vmem [shape: f32[2,1,2,64], index: 3, kind: output, shape index: {1}]  }
   0x1   :  { %s3510_s14 = smov 0  }
   0x2 LB: > { %s26_s15 = sadd.s32 1, %s3480_s13  ;;  %p2912_p0 = scmp.ge.s32.totalorder %s3484_s14, 1  ;;  %s3484_s14 = sphi %s3510_s14, %s14_s14   ;;  %s3480_s13 = sphi %s3508_s13, %s4936_s13   ;;  %s3476_s12 = sphi %s3506_s12, %s4935_s12  }
   0x3   : > { %p28_p1 = scmp.ge.s32.totalorder %s26_s15, 2  ;;  %p160_p2 = scmp.lt.s32.totalorder %s3484_s14, 3 }
   0x5   : > { %s4938_s15 = smov (%p28_p1, %s26_s15), 0  ;;  %p161_p3 = pnand %p2912_p0, %p160_p2 }
   0x7   : > { %164 = sbr.rel (%p161_p3) target bundleno = 773 (0x305), region = 28 }
   0xc   : > { %v3387_v0 = vld [vmem:[%s4791_s1 + $0x38] sm:$0xff]  ;;  %p198_p4 = scmp.lt.s32.totalorder %s3476_s12, 1  ;;  %v3386_v1 = vld [vmem:[%s4791_s1 + $0x30] sm:$0xff]  ;;  %v3385_v2 = vld [vmem:[%s4791_s1 + $0x28] sm:$0xff]  ;;  %vm285_vm0 = vsmask.f32 3328 }
   0xd   : > { %3416 = vmatpush.bf16.msra.mxu1 %v3387_v0  ;;  %3417 = vmatpush.bf16.msra.mxu2 %v3387_v0  ;;  %vm286_vm1 = vsmask.f32 7440  ;;  %v3384_v6 = vld [vmem:[%s4791_s1 + $0x20] sm:$0xff]  ;;  %v3391_v30 = vld [vmem:[%s4791_s1 + $0x58] sm:$0xff]  ;;  %vm753_vm3 = vcmask 523264   ;;  %vm1148_vm4 = vcmask 1042432  }
   0xe   : > { %s4940_s12 = smov (!%p198_p4, %s3476_s12), 1  ;;  %3418 = vmatpush.bf16.msra.mxu3 %v3387_v0  ;;  %806 = vmatpush.bf16.msra.mxu0 %v3387_v0  ;;  %v3395_v31 = vld [vmem:[%s4791_s1 + $0x78] sm:$0xff]  ;;  %vm3571_vm2 = vmor %vm285_vm0, %vm286_vm1  ;;  %vm1149_vm5 = vcmask 1046532   ;;  %vm2573_vm7 = vcmask 519168   ;;  %vm2776_vm8 = vcmask 1040384   ;;  %vm2778_vm9 = vcmask 517120  }
   0xf   : > { %s3428_s20 = smul.u32 216, %s4940_s12  ;;  %v3383_v36 = vld [vmem:[%s4791_s1 + $0x18] sm:$0xff]  ;;  %vm3915_vm6 = vmor %vm1148_vm4, %vm1149_vm5  ;;  %s3361_s26 = sshll.u32 %s4940_s12, 7 }
  0x10   : > { %v3399_v37 = vld [vmem:[%s4791_s1 + $0x98] sm:$0xff]  ;;  %s4539_s29 = scalar_lea.vmem %s4792_s2, %s3361_s26 }
  0x11   : > { %3419 = vmatpush.bf16.msra.mxu1 %v3386_v1  ;;  %3420 = vmatpush.bf16.msra.mxu2 %v3386_v1  ;;  %s3539_s25 = scalar_lea.vmem %s4790_s0, %s3428_s20 }
  0x12   : > { %3421 = vmatpush.bf16.msra.mxu3 %v3386_v1  ;;  %807 = vmatpush.bf16.msra.mxu0 %v3386_v1  ;;  %v3542_v3 = vld [vmem:[%s3539_s25 + $0x30] sm:$0xf]  ;;  %v3545_v4 = vld [vmem:[%s3539_s25 + $0x34] sm:$0xf]  ;;  %v3548_v5 = vld [vmem:[%s3539_s25 + $0x38] sm:$0x1] }
  0x13   : > { %v385_v7 = vshrl.u32 %v3542_v3, 16  ;;  %v388_v8 = vshll.u32 %v3542_v3, 16  ;;  %v394_v9 = vshll.u32 %v3545_v4, 16  ;;  %v398_v10 = vshrl.u32 %v3545_v4, 16  ;;  %v247_v11 = vld [vmem:[%s3539_s25 + $0x60] sm:$0xf] }
  0x14   : > { %v404_v12 = vshll.u32 %v3548_v5, 16  ;;  %v248_v13 = vld [vmem:[%s3539_s25 + $0x64] sm:$0xf]  ;;  %v249_v14 = vld [vmem:[%s3539_s25 + $0x68] sm:$0x1]  ;;  %v481_v15 = vshrl.u32 %v247_v11, 16 }
  0x15   : > { %3422 = vmatpush.bf16.msra.mxu1 %v3385_v2  ;;  %3423 = vmatpush.bf16.msra.mxu2 %v3385_v2  ;;  %v387_v16 = vrot.slane %v385_v7, 4  ;;  %v390_v17 = vrot.slane %v388_v8, 5  ;;  %v396_v18 = vrot.slane %v394_v9, 5  ;;  %v400_v19 = vrot.slane %v398_v10, 4  ;;  %v259_v20 = vld [vmem:[%s3539_s25 + $0x90] sm:$0xf] }
  0x16   : > { %3424 = vmatpush.bf16.msra.mxu3 %v3385_v2  ;;  %808 = vmatpush.bf16.msra.mxu0 %v3385_v2  ;;  %v406_v21 = vrot.slane %v404_v12, 5  ;;  %v483_v22 = vrot.slane %v481_v15, 4  ;;  %v484_v23 = vshll.u32 %v247_v11, 16  ;;  %v490_v24 = vshll.u32 %v248_v13, 16  ;;  %v260_v29 = vld [vmem:[%s3539_s25 + $0x94] sm:$0xf] }
  0x17   : > { %v391_v25 = vor.u32 %v390_v17, %v387_v16  ;;  %v401_v26 = vor.u32 %v400_v19, %v396_v18  ;;  %v494_v27 = vshrl.u32 %v248_v13, 16  ;;  %v500_v28 = vshll.u32 %v249_v14, 16  ;;  %v261_v43 = vld [vmem:[%s3539_s25 + $0x98] sm:$0x1]  ;;  %v3587_v59 = vld [vmem:[%s3539_s25] sm:$0xf] }
  0x18   : > { %v486_v33 = vrot.slane %v484_v23, 5  ;;  %v492_v34 = vrot.slane %v490_v24, 5  ;;  %v577_v35 = vshrl.u32 %v259_v20, 16  ;;  %v580_v45 = vshll.u32 %v259_v20, 16  ;;  %v3594_v63 = vld [vmem:[%s3539_s25 + $0x4] sm:$0xf] }
  0x19   : > { %3425 = vmatpush.bf16.msra.mxu1 %v3384_v6  ;;  %3426 = vmatpush.bf16.msra.mxu2 %v3384_v6  ;;  %v392_v38 = vrot.slane %v391_v25, 4  ;;  %v402_v39 = vrot.slane %v401_v26, 4  ;;  %v496_v40 = vrot.slane %v494_v27, 4  ;;  %v502_v41 = vrot.slane %v500_v28, 5  ;;  %v3597_v0 = vld [vmem:[%s3539_s25 + $0x8] sm:$0x1] }
  0x1a   : > { %3427 = vmatpush.bf16.msra.mxu3 %v3384_v6  ;;  %809 = vmatpush.bf16.msra.mxu0 %v3384_v6  ;;  %v487_v42 = vor.u32 %v486_v33, %v483_v22  ;;  %v579_v44 = vrot.slane %v577_v35, 4  ;;  %v586_v46 = vshll.u32 %v260_v29, 16  ;;  %v590_v50 = vshrl.u32 %v260_v29, 16  ;;  %v3390_v1 = vld [vmem:[%s4791_s1 + $0x50] sm:$0xff]  ;;  %v3609_v13 = vld [vmem:[%s3539_s25 + $0x3c] sm:$0xf] }
  0x1b   : > { %v397_v47 = vsel %vm3571_vm2, %v392_v38, %v396_v18  ;;  %v407_v48 = vsel %vm3571_vm2, %v402_v39, %v406_v21  ;;  %v497_v49 = vor.u32 %v496_v40, %v492_v34  ;;  %v582_v54 = vrot.slane %v580_v45, 5  ;;  %v3615_v18 = vld [vmem:[%s3539_s25 + $0x40] sm:$0xf]  ;;  %v3394_v23 = vld [vmem:[%s4791_s1 + $0x70] sm:$0xff]  ;;  %v3641_v39 = vld [vmem:[%s3539_s25 + $0x6c] sm:$0xf] }
  0x1c   : > { %v689_v51 = vunpack.c.l.b16 %v397_v47  ;;  %v690_v52 = vunpack.c.l.b16 %v407_v48  ;;  %v488_v53 = vrot.slane %v487_v42, 4  ;;  %v588_v56 = vrot.slane %v586_v46, 5  ;;  %v3382_v24 = vld [vmem:[%s4791_s1 + $0x10] sm:$0xff] }
  0x1d   : > { %1396 = vmatpush.bf16.msrb.mxu2 %v3391_v30  ;;  %1047 = vmatpush.bf16.msrb.mxu1 %v3383_v36  ;;  %v498_v55 = vrot.slane %v497_v49, 4  ;;  %v592_v57 = vrot.slane %v590_v50, 4  ;;  %v596_v58 = vshll.u32 %v261_v43, 16  ;;  %v583_v62 = vor.u32 %v582_v54, %v579_v44  ;;  %v3398_v25 = vld [vmem:[%s4791_s1 + $0x90] sm:$0xff]  ;;  %v3633_v30 = vld [vmem:[%s3539_s25 + $0x44] sm:$0x1] }
  0x1e   : > { %1558 = vmatpush.bf16.msrb.mxu3 %v3395_v31  ;;  %1742 = vmatpush.bf16.msrb.mxu0 %v3399_v37  ;;  %v3589_v60 = vpack.c.b16 %v690_v52, %v689_v51  ;;  %v493_v61 = vsel %vm3571_vm2, %v488_v53, %v492_v34  ;;  %v289_v11 = vshrl.u32 %v3587_v59, 16  ;;  %v292_v12 = vshll.u32 %v3587_v59, 16  ;;  %v3648_v48 = vld [vmem:[%s3539_s25 + $0x70] sm:$0xf]  ;;  %v3655_v52 = vld [vmem:[%s3539_s25 + $0x74] sm:$0x1] }
  0x1f   : > { %v503_v2 = vsel %vm3571_vm2, %v498_v55, %v502_v41  ;;  %v697_v6 = vunpack.c.l.b16 %v493_v61  ;;  %v593_v7 = vor.u32 %v592_v57, %v588_v56  ;;  %v598_v8 = vrot.slane %v596_v58, 5 }
  0x20   : > { %2945 = vmatmul.msk.bf16.vlgmr.msra.gmra.mxu1 %vm753_vm3, %v3589_v60  ;;  %v698_v9 = vunpack.c.l.b16 %v503_v2  ;;  %v584_v10 = vrot.slane %v583_v62, 4  ;;  %v298_v15 = vshll.u32 %v3594_v63, 16  ;;  %v302_v16 = vshrl.u32 %v3594_v63, 16 }
  0x21   : > { %1397 = vmatpush.bf16.msrb.mxu2 %v3390_v1  ;;  %v594_v14 = vrot.slane %v593_v7, 4  ;;  %v308_v17 = vshll.u32 %v3597_v0, 16  ;;  %v291_v21 = vrot.slane %v289_v11, 4  ;;  %v294_v22 = vrot.slane %v292_v12, 5  ;;  %1048 = vmatpush.bf16.msrb.mxu1 %v3382_v24 }
  0x22   : > { %v3617_v19 = vpack.c.b16 %v698_v9, %v697_v6  ;;  %v589_v20 = vsel %vm3571_vm2, %v584_v10, %v588_v56  ;;  %v300_v28 = vrot.slane %v298_v15, 5  ;;  %v304_v29 = vrot.slane %v302_v16, 4  ;;  %1559 = vmatpush.bf16.msrb.mxu3 %v3394_v23  ;;  %1743 = vmatpush.bf16.msrb.mxu0 %v3398_v25  ;;  %v262_v9 = vld [vmem:[%s3539_s25 + $0x9c] sm:$0xf] }
  0x23   : > { %v599_v26 = vsel %vm3571_vm2, %v594_v14, %v598_v8  ;;  %v705_v27 = vunpack.c.l.b16 %v589_v20  ;;  %v295_v33 = vor.u32 %v294_v22, %v291_v21  ;;  %v310_v34 = vrot.slane %v308_v17, 5  ;;  %v263_v14 = vld [vmem:[%s3539_s25 + $0xa0] sm:$0xf]  ;;  %v264_v21 = vld [vmem:[%s3539_s25 + $0xa4] sm:$0x1] }
  0x24   : > { %4836 = vst [vmem:[#allocation2_spill] sm:$0xff] %v3617_v19  ;;  %2949 = vmatmul.msk.bf16.vlgmr.msra.gmra.mxu2 %vm753_vm3, %v3617_v19  ;;  %v706_v31 = vunpack.c.l.b16 %v599_v26  ;;  %v305_v35 = vor.u32 %v304_v29, %v300_v28  ;;  %v409_v36 = vshrl.u32 %v3609_v13, 16  ;;  %v412_v37 = vshll.u32 %v3609_v13, 16 }
  0x25   : > { %v418_v38 = vshll.u32 %v3615_v18, 16  ;;  %v296_v41 = vrot.slane %v295_v33, 4  ;;  %v422_v42 = vshrl.u32 %v3615_v18, 16  ;;  %v428_v43 = vshll.u32 %v3633_v30, 16 }
  0x26   : > { %v3643_v40 = vpack.c.b16 %v706_v31, %v705_v27  ;;  %v306_v44 = vrot.slane %v305_v35, 4  ;;  %v411_v45 = vrot.slane %v409_v36, 4  ;;  %v414_v46 = vrot.slane %v412_v37, 5  ;;  %v3673_v31 = vld [vmem:[%s3539_s25 + $0xc] sm:$0xf] }
  0x27   : > { %v420_v47 = vrot.slane %v418_v38, 5  ;;  %v301_v49 = vsel %vm3571_vm2, %v296_v41, %v300_v28  ;;  %v424_v50 = vrot.slane %v422_v42, 4  ;;  %v430_v51 = vrot.slane %v428_v43, 5  ;;  %v3389_v37 = vld [vmem:[%s4791_s1 + $0x48] sm:$0xff] }
  0x28   : > { %4837 = vst [vmem:[#allocation3_spill] sm:$0xff] %v3643_v40  ;;  %2953 = vmatmul.msk.bf16.vlgmr.msra.gmra.mxu3 %vm753_vm3, %v3643_v40  ;;  %v505_v53 = vshrl.u32 %v3641_v39, 16  ;;  %v311_v54 = vsel %vm3571_vm2, %v306_v44, %v310_v34  ;;  %v681_v55 = vunpack.c.l.b16 %v301_v49  ;;  %v415_v56 = vor.u32 %v414_v46, %v411_v45  ;;  %v3683_v44 = vld [vmem:[%s3539_s25 + $0x10] sm:$0xf]  ;;  %v3686_v49 = vld [vmem:[%s3539_s25 + $0x14] sm:$0x1]  ;;  %1398 = vmatpush.bf16.msrb.mxu2 %v3389_v37 }
  0x29   : > { %v508_v57 = vshll.u32 %v3641_v39, 16  ;;  %v682_v58 = vunpack.c.l.b16 %v311_v54  ;;  %v425_v61 = vor.u32 %v424_v50, %v420_v47  ;;  %v514_v1 = vshll.u32 %v3648_v48, 16 }
  0x2a   : > { %v507_v62 = vrot.slane %v505_v53, 4  ;;  %v416_v2 = vrot.slane %v415_v56, 4  ;;  %v518_v7 = vshrl.u32 %v3648_v48, 16  ;;  %v524_v8 = vshll.u32 %v3655_v52, 16 }
  0x2b   : > { %v510_v6 = vrot.slane %v508_v57, 5  ;;  %v713_v10 = vpack.c.b16 %v682_v58, %v681_v55  ;;  %v426_v11 = vrot.slane %v425_v61, 4  ;;  %v516_v12 = vrot.slane %v514_v1, 5  ;;  %v3696_v61 = vld [vmem:[%s3539_s25 + $0x48] sm:$0xf] }
  0x2c   : > { %v421_v15 = vsel %vm3571_vm2, %v416_v2, %v420_v47  ;;  %v520_v17 = vrot.slane %v518_v7, 4  ;;  %v526_v20 = vrot.slane %v524_v8, 5  ;;  %v601_v24 = vshrl.u32 %v262_v9, 16  ;;  %v3393_v8 = vld [vmem:[%s4791_s1 + $0x68] sm:$0xff] }
  0x2d   : > { %v511_v16 = vor.u32 %v510_v6, %v507_v62  ;;  %2941 = vmatmul.msk.bf16.vlgmr.msra.gmra.mxu0 %vm753_vm3, %v713_v10  ;;  %v431_v22 = vsel %vm3571_vm2, %v426_v11, %v430_v51  ;;  %v691_v23 = vunpack.c.l.b16 %v421_v15  ;;  %v604_v25 = vshll.u32 %v262_v9, 16  ;;  %v3699_v62 = vld [vmem:[%s3539_s25 + $0x4c] sm:$0xf]  ;;  %1560 = vmatpush.bf16.msrb.mxu3 %v3393_v8 }
  0x2e   : > { %v692_v26 = vunpack.c.l.b16 %v431_v22  ;;  %v521_v28 = vor.u32 %v520_v17, %v516_v12  ;;  %v610_v29 = vshll.u32 %v263_v14, 16  ;;  %v603_v33 = vrot.slane %v601_v24, 4  ;;  %v3381_v9 = vld [vmem:[%s4791_s1 + $0x8] sm:$0xff]  ;;  %v3717_v22 = vld [vmem:[%s3539_s25 + $0x50] sm:$0x1] }
  0x2f   : > { %v512_v27 = vrot.slane %v511_v16, 4  ;;  %v606_v34 = vrot.slane %v604_v25, 5  ;;  %v614_v35 = vshrl.u32 %v263_v14, 16  ;;  %v620_v36 = vshll.u32 %v264_v21, 16  ;;  %v3397_v15 = vld [vmem:[%s4791_s1 + $0x88] sm:$0xff]  ;;  %1049 = vmatpush.bf16.msrb.mxu1 %v3381_v9 }
  0x30   : > { %v3678_v38 = vpack.c.b16 %v692_v26, %v691_v23  ;;  %v522_v42 = vrot.slane %v521_v28, 4  ;;  %v612_v43 = vrot.slane %v610_v29, 5  ;;  %v313_v53 = vshrl.u32 %v3673_v31, 16  ;;  %1744 = vmatpush.bf16.msrb.mxu0 %v3397_v15  ;;  %v3751_v15 = vld [vmem:[%s3539_s25 + $0xa8] sm:$0xf] }
  0x31   : > { %v517_v41 = vsel %vm3571_vm2, %v512_v27, %v516_v12  ;;  %v607_v46 = vor.u32 %v606_v34, %v603_v33  ;;  %v616_v47 = vrot.slane %v614_v35, 4  ;;  %v622_v51 = vrot.slane %v620_v36, 5  ;;  %v3728_v34 = vld [vmem:[%s3539_s25 + $0x78] sm:$0xf]  ;;  %4839 = vst [vmem:[#allocation5_spill] sm:$0xff] %v3751_v15 }
  0x32   : > { %v699_v45 = vunpack.c.l.b16 %v517_v41  ;;  %2946 = vmatmul.msk.bf16.gmra.mxu1 %vm753_vm3, %v3678_v38  ;;  %v527_v50 = vsel %vm3571_vm2, %v522_v42, %v526_v20  ;;  %v316_v54 = vshll.u32 %v3673_v31, 16  ;;  %v322_v58 = vshll.u32 %v3683_v44, 16  ;;  %v3732_v42 = vld [vmem:[%s3539_s25 + $0x7c] sm:$0xf] }
  0x33   : > { %v700_v55 = vunpack.c.l.b16 %v527_v50  ;;  %v608_v56 = vrot.slane %v607_v46, 4  ;;  %v617_v57 = vor.u32 %v616_v47, %v612_v43  ;;  %v315_v1 = vrot.slane %v313_v53, 4 }
  0x34   : > { %v318_v2 = vrot.slane %v316_v54, 5  ;;  %v326_v6 = vshrl.u32 %v3683_v44, 16  ;;  %v332_v7 = vshll.u32 %v3686_v49, 16  ;;  %v324_v14 = vrot.slane %v322_v58, 5  ;;  %v3739_v54 = vld [vmem:[%s3539_s25 + $0x80] sm:$0x1] }
  0x35   : > { %v3709_v10 = vpack.c.b16 %v700_v55, %v699_v45  ;;  %v613_v11 = vsel %vm3571_vm2, %v608_v56, %v612_v43  ;;  %v618_v12 = vrot.slane %v617_v57, 4  ;;  %v433_v24 = vshrl.u32 %v3696_v61, 16 }
  0x36   : > { %v707_v16 = vunpack.c.l.b16 %v613_v11  ;;  %v319_v17 = vor.u32 %v318_v2, %v315_v1  ;;  %v328_v20 = vrot.slane %v326_v6, 4  ;;  %v334_v21 = vrot.slane %v332_v7, 5 }
  0x37   : > { %2950 = vmatmul.msk.bf16.gmra.mxu2 %vm753_vm3, %v3709_v10  ;;  %v623_v23 = vsel %vm3571_vm2, %v618_v12, %v622_v51  ;;  %v436_v25 = vshll.u32 %v3696_v61, 16  ;;  %v442_v26 = vshll.u32 %v3699_v62, 16  ;;  %v446_v33 = vshrl.u32 %v3699_v62, 16 }
  0x38   : > { %v708_v27 = vunpack.c.l.b16 %v623_v23  ;;  %v320_v28 = vrot.slane %v319_v17, 4  ;;  %v329_v29 = vor.u32 %v328_v20, %v324_v14  ;;  %v435_v35 = vrot.slane %v433_v24, 4  ;;  %v3761_v23 = vld [vmem:[%s3539_s25 + $0xb0] sm:$0x1] }
  0x39   : > { %v438_v36 = vrot.slane %v436_v25, 5  ;;  %v444_v37 = vrot.slane %v442_v26, 5  ;;  %v452_v41 = vshll.u32 %v3717_v22, 16  ;;  %v448_v47 = vrot.slane %v446_v33, 4  ;;  %4841 = vst [vmem:[#allocation7_spill] sm:$0xff] %v3761_v23 }
  0x3a   : > { %v3734_v43 = vpack.c.b16 %v708_v27, %v707_v16  ;;  %v325_v45 = vsel %vm3571_vm2, %v320_v28, %v324_v14  ;;  %v330_v46 = vrot.slane %v329_v29, 4  ;;  %v529_v55 = vshrl.u32 %v3728_v34, 16 }
  0x3b   : > { %v683_v50 = vunpack.c.l.b16 %v325_v45  ;;  %v439_v51 = vor.u32 %v438_v36, %v435_v35  ;;  %v454_v53 = vrot.slane %v452_v41, 5  ;;  %v449_v57 = vor.u32 %v448_v47, %v444_v37 }
  0x3c   : > { %4838 = vst [vmem:[#allocation4_spill] sm:$0xff] %v3734_v43  ;;  %2954 = vmatmul.msk.bf16.gmra.mxu3 %vm753_vm3, %v3734_v43  ;;  %v335_v56 = vsel %vm3571_vm2, %v330_v46, %v334_v21  ;;  %v532_v58 = vshll.u32 %v3728_v34, 16  ;;  %v538_v1 = vshll.u32 %v3732_v42, 16  ;;  %v531_v7 = vrot.slane %v529_v55, 4  ;;  %v3758_v21 = vld [vmem:[%s3539_s25 + $0xac] sm:$0xf] }
  0x3d   : > { %v684_v2 = vunpack.c.l.b16 %v335_v56  ;;  %v440_v6 = vrot.slane %v439_v51, 4  ;;  %v542_v8 = vshrl.u32 %v3732_v42, 16  ;;  %v450_v9 = vrot.slane %v449_v57, 4  ;;  %4840 = vst [vmem:[#allocation6_spill] sm:$0xff] %v3758_v21  ;;  %v3388_v55 = vld [vmem:[%s4791_s1 + $0x40] sm:$0xff] }
  0x3e   : > { %v534_v11 = vrot.slane %v532_v58, 5  ;;  %v540_v12 = vrot.slane %v538_v1, 5  ;;  %v548_v14 = vshll.u32 %v3739_v54, 16  ;;  %v625_v33 = vshrl.u32 %v3751_v15, 16  ;;  %v3783_v1 = vld [vmem:[%s3539_s25 + $0x1c] sm:$0xf]  ;;  %1399 = vmatpush.bf16.msrb.mxu2 %v3388_v55 }
  0x3f   : > { %v3753_v16 = vpack.c.b16 %v684_v2, %v683_v50  ;;  %v445_v17 = vsel %vm3571_vm2, %v440_v6, %v444_v37  ;;  %v544_v20 = vrot.slane %v542_v8, 4  ;;  %v455_v24 = vsel %vm3571_vm2, %v450_v9, %v454_v53  ;;  %v3775_v53 = vld [vmem:[%s3539_s25 + $0x18] sm:$0xf]  ;;  %v3786_v2 = vld [vmem:[%s3539_s25 + $0x20] sm:$0x1] }
  0x40   : > { %v693_v25 = vunpack.c.l.b16 %v445_v17  ;;  %v535_v26 = vor.u32 %v534_v11, %v531_v7  ;;  %v550_v27 = vrot.slane %v548_v14, 5  ;;  %v694_v28 = vunpack.c.l.b16 %v455_v24 }
  0x41   : > { %2942 = vmatmul.msk.bf16.gmra.mxu0 %vm753_vm3, %v3753_v16  ;;  %v545_v29 = vor.u32 %v544_v20, %v540_v12  ;;  %v628_v35 = vshll.u32 %v3751_v15, 16  ;;  %v634_v37 = vshll.u32 %v3758_v21, 16  ;;  %v638_v41 = vshrl.u32 %v3758_v21, 16  ;;  %v3795_v20 = vld [vmem:[%s3539_s25 + $0x54] sm:$0xf] }
  0x42   : > { %v536_v36 = vrot.slane %v535_v26, 4  ;;  %v644_v45 = vshll.u32 %v3761_v23, 16  ;;  %v3772_v46 = vpack.c.b16 %v694_v28, %v693_v25  ;;  %v627_v50 = vrot.slane %v625_v33, 4  ;;  %v3801_v28 = vld [vmem:[%s3539_s25 + $0x58] sm:$0xf] }
  0x43   : > { %v546_v47 = vrot.slane %v545_v29, 4  ;;  %v630_v51 = vrot.slane %v628_v35, 5  ;;  %v636_v57 = vrot.slane %v634_v37, 5  ;;  %v640_v58 = vrot.slane %v638_v41, 4  ;;  %v3392_v37 = vld [vmem:[%s4791_s1 + $0x60] sm:$0xff] }
  0x44   : > { %4842 = vst [vmem:[#allocation8_spill] sm:$0xff] %v3772_v46  ;;  %v541_v56 = vsel %vm3571_vm2, %v536_v36, %v540_v12  ;;  %2947 = vmatmul.msk.bf16.gmra.mxu1 %vm753_vm3, %v3772_v46  ;;  %v646_v9 = vrot.slane %v644_v45, 5  ;;  %v337_v12 = vshrl.u32 %v3775_v53, 16  ;;  %v340_v17 = vshll.u32 %v3775_v53, 16  ;;  %v3380_v41 = vld [vmem:[%s4791_s1] sm:$0xff]  ;;  %1561 = vmatpush.bf16.msrb.mxu3 %v3392_v37 }
  0x45   : > { %v551_v6 = vsel %vm3571_vm2, %v546_v47, %v550_v27  ;;  %v701_v7 = vunpack.c.l.b16 %v541_v56  ;;  %v631_v8 = vor.u32 %v630_v51, %v627_v50  ;;  %v641_v14 = vor.u32 %v640_v58, %v636_v57  ;;  %v3396_v45 = vld [vmem:[%s4791_s1 + $0x80] sm:$0xff]  ;;  %v3817_v56 = vld [vmem:[%s3539_s25 + $0x5c] sm:$0x1]  ;;  %1050 = vmatpush.bf16.msrb.mxu1 %v3380_v41  ;;  %v3834_v37 = vld [vmem:[%s3539_s25 + $0x88] sm:$0xf] }
  0x46   : > { %v702_v11 = vunpack.c.l.b16 %v551_v6  ;;  %v346_v25 = vshll.u32 %v3783_v1, 16  ;;  %v350_v26 = vshrl.u32 %v3783_v1, 16  ;;  %v356_v27 = vshll.u32 %v3786_v2, 16  ;;  %1745 = vmatpush.bf16.msrb.mxu0 %v3396_v45  ;;  %4845 = vst [vmem:[#allocation11_spill] sm:$0xff] %v3834_v37  ;;  %v3839_v41 = vld [vmem:[%s3539_s25 + $0x8c] sm:$0x1] }
  0x47   : > { %v632_v24 = vrot.slane %v631_v8, 4  ;;  %v642_v33 = vrot.slane %v641_v14, 4  ;;  %v339_v35 = vrot.slane %v337_v12, 4  ;;  %v342_v36 = vrot.slane %v340_v17, 5  ;;  %v3827_v17 = vld [vmem:[%s3539_s25 + $0x84] sm:$0xf] }
  0x48   : > { %v3803_v29 = vpack.c.b16 %v702_v11, %v701_v7  ;;  %v348_v50 = vrot.slane %v346_v25, 5  ;;  %v352_v51 = vrot.slane %v350_v26, 4  ;;  %v358_v55 = vrot.slane %v356_v27, 5  ;;  %4843 = vst [vmem:[#allocation9_spill] sm:$0xff] %v3827_v17  ;;  %v3851_v15 = vld [vmem:[%s3539_s25 + $0xb4] sm:$0xf] }
  0x49   : > { %v637_v47 = vsel %vm3571_vm2, %v632_v24, %v636_v57  ;;  %v647_v58 = vsel %vm3571_vm2, %v642_v33, %v646_v9  ;;  %v343_v7 = vor.u32 %v342_v36, %v339_v35  ;;  %v457_v8 = vshrl.u32 %v3795_v20, 16  ;;  %4846 = vst [vmem:[#allocation12_spill] sm:$0xff] %v3839_v41 }
  0x4a   : > { %2951 = vmatmul.msk.bf16.gmra.mxu2 %vm753_vm3, %v3803_v29  ;;  %v709_v6 = vunpack.c.l.b16 %v637_v47  ;;  %v710_v11 = vunpack.c.l.b16 %v647_v58  ;;  %v353_v14 = vor.u32 %v352_v51, %v348_v50  ;;  %v460_v57 = vshll.u32 %v3795_v20, 16  ;;  %4847 = vst [vmem:[#allocation13_spill] sm:$0xff] %v3851_v15 }
  0x4b   : > { %v466_v12 = vshll.u32 %v3801_v28, 16  ;;  %v344_v24 = vrot.slane %v343_v7, 4  ;;  %v459_v25 = vrot.slane %v457_v8, 4  ;;  %v470_v9 = vshrl.u32 %v3801_v28, 16 }
  0x4c   : > { %v476_v26 = vshll.u32 %v3817_v56, 16  ;;  %v3831_v27 = vpack.c.b16 %v710_v11, %v709_v6  ;;  %v354_v33 = vrot.slane %v353_v14, 4  ;;  %v462_v35 = vrot.slane %v460_v57, 5 }
  0x4d   : > { %v468_v36 = vrot.slane %v466_v12, 5  ;;  %v349_v47 = vsel %vm3571_vm2, %v344_v24, %v348_v50  ;;  %v472_v51 = vrot.slane %v470_v9, 4  ;;  %v553_v45 = vshrl.u32 %v3827_v17, 16 }
  0x4e   : > { %4844 = vst [vmem:[#allocation10_spill] sm:$0xff] %v3831_v27  ;;  %v478_v58 = vrot.slane %v476_v26, 5  ;;  %2955 = vmatmul.msk.bf16.gmra.mxu3 %vm753_vm3, %v3831_v27  ;;  %v359_v6 = vsel %vm3571_vm2, %v354_v33, %v358_v55  ;;  %v685_v7 = vunpack.c.l.b16 %v349_v47  ;;  %v463_v8 = vor.u32 %v462_v35, %v459_v25  ;;  %v3856_v35 = vld [vmem:[%s3539_s25 + $0xb8] sm:$0xf] }
  0x4f   : > { %v556_v11 = vshll.u32 %v3827_v17, 16  ;;  %v686_v14 = vunpack.c.l.b16 %v359_v6  ;;  %v473_v50 = vor.u32 %v472_v51, %v468_v36  ;;  %v555_v57 = vrot.slane %v553_v45, 4  ;;  %4848 = vst [vmem:[#allocation14_spill] sm:$0xff] %v3856_v35 }
  0x50   : > { %v562_v12 = vshll.u32 %v3834_v37, 16  ;;  %v464_v24 = vrot.slane %v463_v8, 4  ;;  %v566_v26 = vshrl.u32 %v3834_v37, 16  ;;  %v572_v27 = vshll.u32 %v3839_v41, 16  ;;  %v3861_v8 = vld [vmem:[%s3539_s25 + $0xbc] sm:$0x1] }
  0x51   : > { %v558_v9 = vrot.slane %v556_v11, 5  ;;  %v3853_v55 = vpack.c.b16 %v686_v14, %v685_v7  ;;  %v474_v33 = vrot.slane %v473_v50, 4  ;;  %4849 = vst [vmem:[#allocation15_spill] sm:$0xff] %v3861_v8  ;;  %v3407_v11 = vld [vmem:[%s4791_s1 + $0xd8] sm:$0xff]  ;;  %v649_v50 = vshrl.u32 %v3851_v15, 16 }
  0x52   : > { %v564_v25 = vrot.slane %v562_v12, 5  ;;  %v469_v47 = vsel %vm3571_vm2, %v464_v24, %v468_v36  ;;  %v568_v45 = vrot.slane %v566_v26, 4  ;;  %v574_v6 = vrot.slane %v572_v27, 5  ;;  %2072 = vmatpush.bf16.msra.mxu2 %v3407_v11 }
  0x53   : > { %v559_v51 = vor.u32 %v558_v9, %v555_v57  ;;  %2943 = vmatmul.msk.bf16.gmra.mxu0 %vm753_vm3, %v3853_v55  ;;  %v479_v7 = vsel %vm3571_vm2, %v474_v33, %v478_v58  ;;  %v695_v14 = vunpack.c.l.b16 %v469_v47  ;;  %v652_v36 = vshll.u32 %v3851_v15, 16  ;;  %v3876_v58 = vld [vmem:[%s3539_s25 + $0x24] sm:$0xf] }
  0x54   : > { %v696_v27 = vunpack.c.l.b16 %v479_v7  ;;  %v569_v12 = vor.u32 %v568_v45, %v564_v25  ;;  %v658_v24 = vshll.u32 %v3856_v35, 16  ;;  %v651_v9 = vrot.slane %v649_v50, 4  ;;  %v3886_v45 = vld [vmem:[%s3539_s25 + $0x2c] sm:$0x1] }
  0x55   : > { %v560_v57 = vrot.slane %v559_v51, 4  ;;  %v654_v26 = vrot.slane %v652_v36, 5  ;;  %v662_v23 = vshrl.u32 %v3856_v35, 16  ;;  %v668_v21 = vshll.u32 %v3861_v8, 16  ;;  %v3883_v51 = vld [vmem:[%s3539_s25 + $0x28] sm:$0xf] }
  0x56   : > { %v3878_v33 = vpack.c.b16 %v696_v27, %v695_v14  ;;  %v570_v15 = vrot.slane %v569_v12, 4  ;;  %v660_v7 = vrot.slane %v658_v24, 5  ;;  %v3411_v8 = vld [vmem:[%s4791_s1 + $0xf8] sm:$0xff]  ;;  %v364_v12 = vshll.u32 %v3876_v58, 16 }
  0x57   : > { %v565_v47 = vsel %vm3571_vm2, %v560_v57, %v564_v25  ;;  %v655_v50 = vor.u32 %v654_v26, %v651_v9  ;;  %v664_v36 = vrot.slane %v662_v23, 4  ;;  %v3403_v14 = vld [vmem:[%s4791_s1 + $0xb8] sm:$0xff]  ;;  %v670_v57 = vrot.slane %v668_v21, 5  ;;  %2256 = vmatpush.bf16.msra.mxu3 %v3411_v8 }
  0x58   : > { %4850 = vst [vmem:[#allocation16_spill] sm:$0xff] %v3878_v33  ;;  %v703_v11 = vunpack.c.l.b16 %v565_v47  ;;  %v3415_v25 = vld [vmem:[%s4791_s1 + $0x118] sm:$0xff]  ;;  %2948 = vmatmul.msk.bf16.gmra.mxu1 %vm753_vm3, %v3878_v33  ;;  %v575_v27 = vsel %vm3571_vm2, %v570_v15, %v574_v6  ;;  %v361_v23 = vshrl.u32 %v3876_v58, 16  ;;  %v370_v47 = vshll.u32 %v3883_v51, 16 }
  0x59   : > { %v704_v24 = vunpack.c.l.b16 %v575_v27  ;;  %v656_v9 = vrot.slane %v655_v50, 4  ;;  %v665_v26 = vor.u32 %v664_v36, %v660_v7  ;;  %1910 = vmatpush.bf16.msra.mxu1 %v3403_v14  ;;  %v366_v43 = vrot.slane %v364_v12, 5  ;;  %2424 = vmatpush.bf16.msra.mxu0 %v3415_v25 }
  0x5a   : > { %v363_v35 = vrot.slane %v361_v23, 4  ;;  %v374_v40 = vshrl.u32 %v3883_v51, 16  ;;  %v380_v17 = vshll.u32 %v3886_v45, 16  ;;  %v372_v27 = vrot.slane %v370_v47, 5 }
  0x5b   : > { %v3906_v15 = vpack.c.b16 %v704_v24, %v703_v11  ;;  %v661_v21 = vsel %vm3571_vm2, %v656_v9, %v660_v7  ;;  %v666_v6 = vrot.slane %v665_v26, 4  ;;  %v3053_v11 = vrot.slane %v3587_v59, 9 }
  0x5c   : > { %v711_v50 = vunpack.c.l.b16 %v661_v21  ;;  %v367_v36 = vor.u32 %v366_v43, %v363_v35  ;;  %v376_v41 = vrot.slane %v374_v40, 4  ;;  %v382_v37 = vrot.slane %v380_v17, 5 }
  0x5d   : > { %4851 = vst [vmem:[#allocation17_spill] sm:$0xff] %v3906_v15  ;;  %2952 = vmatmul.msk.bf16.gmra.mxu2 %vm753_vm3, %v3906_v15  ;;  %v671_v8 = vsel %vm3571_vm2, %v666_v6, %v670_v57  ;;  %v1153_v40 = vrot.slane %v3594_v63, 5  ;;  %v1156_v43 = vrot.slane %v3597_v0, 5  ;;  %v3054_v17 = vrot.slane %v3673_v31, 9  ;;  %v3362_v6 = vld [vmem:[%s3539_s25] sm:$0xff] }
  0x5e   : > { %v712_v14 = vunpack.c.l.b16 %v671_v8  ;;  %v368_v25 = vrot.slane %v367_v36, 4  ;;  %v377_v23 = vor.u32 %v376_v41, %v372_v27  ;;  %v1160_v35 = vrot.slane %v3683_v44, 5 }
  0x5f   : > { %v1163_v57 = vrot.slane %v3686_v49, 5  ;;  %v1154_v24 = vsel %vm3915_vm6, %v3053_v11, %v1153_v40  ;;  %v1155_v63 = vrot.slane %v1153_v40, 4  ;;  %v3055_v40 = vrot.slane %v3775_v53, 9 }
  0x60   : > { %v3924_v12 = vpack.c.b16 %v712_v14, %v711_v50  ;;  %v373_v59 = vsel %vm3571_vm2, %v368_v25, %v372_v27  ;;  %v378_v41 = vrot.slane %v377_v23, 4  ;;  %v1161_v0 = vsel %vm3915_vm6, %v3054_v17, %v1160_v35  ;;  %v3363_v14 = vld [vmem:[%s3539_s25 + $0xc] sm:$0xff]  ;;  %v3958_v23 = vld [vmem:[%s3539_s25 + $0x18] sm:$0xff] }
  0x61   : > { %v687_v9 = vunpack.c.l.b16 %v373_v59  ;;  %v1272_v44 = vunpack.c.l.b16 %v1154_v24  ;;  %v1162_v49 = vrot.slane %v1160_v35, 4  ;;  %v1157_v47 = vsel %vm3915_vm6, %v1155_v63, %v1156_v43  ;;  %v3978_v59 = vld [vmem:[%s3539_s25 + $0x24] sm:$0xff] }
  0x62   : > { %2956 = vmatmul.msk.bf16.gmra.mxu3 %vm753_vm3, %v3924_v12  ;;  %v383_v31 = vsel %vm3571_vm2, %v378_v41, %v382_v37  ;;  %v1274_v21 = vunpack.c.l.b16 %v1161_v0  ;;  %v1273_v27 = vunpack.c.l.b16 %v1157_v47  ;;  %v1167_v25 = vrot.slane %v3783_v1, 5 }
  0x63   : > { %v688_v26 = vunpack.c.l.b16 %v383_v31  ;;  %v1164_v50 = vsel %vm3915_vm6, %v1162_v49, %v1163_v57  ;;  %v1170_v17 = vrot.slane %v3786_v2, 5  ;;  %v1174_v2 = vrot.slane %v3883_v51, 5  ;;  %v3406_v51 = vld [vmem:[%s4791_s1 + $0xd0] sm:$0xff] }
  0x64   : > { %v1275_v8 = vunpack.c.l.b16 %v1164_v50  ;;  %v1304_v11 = vpack.c.b16 %v1273_v27, %v1272_v44  ;;  %v1169_v43 = vrot.slane %v1167_v25, 4  ;;  %v3056_v41 = vrot.slane %v3876_v58, 9  ;;  %2073 = vmatpush.bf16.msra.mxu2 %v3406_v51  ;;  %v3402_v44 = vld [vmem:[%s4791_s1 + $0xb0] sm:$0xff] }
  0x65   : > { %v3941_v36 = vpack.c.b16 %v688_v26, %v687_v9  ;;  %v1176_v24 = vrot.slane %v1174_v2, 4  ;;  %v1177_v9 = vrot.slane %v3886_v45, 5  ;;  %v3410_v45 = vld [vmem:[%s4791_s1 + $0xf0] sm:$0xff]  ;;  %1911 = vmatpush.bf16.msra.mxu1 %v3402_v44  ;;  %v1181_v47 = vrot.slane %v3545_v4, 5 }
  0x66   : > { %v3945_v37 = vpack.c.b16 %v1275_v8, %v1274_v21  ;;  %v1171_v1 = vsel %vm3915_vm6, %v1169_v43, %v1170_v17  ;;  %v1175_v63 = vsel %vm3915_vm6, %v3056_v41, %v1174_v2  ;;  %v3414_v49 = vld [vmem:[%s4791_s1 + $0x110] sm:$0xff]  ;;  %2257 = vmatpush.bf16.msra.mxu3 %v3410_v45  ;;  %v3057_v27 = vrot.slane %v3542_v3, 9 }
  0x67   : > { %2944 = vmatmul.msk.bf16.gmra.mxu0 %vm753_vm3, %v3941_v36  ;;  %v1277_v57 = vunpack.c.l.b16 %v1171_v1  ;;  %v1178_v0 = vsel %vm3915_vm6, %v1176_v24, %v1177_v9  ;;  %v1278_v31 = vunpack.c.l.b16 %v1175_v63  ;;  %v1183_v50 = vrot.slane %v1181_v47, 4  ;;  %v4040_v1 = vld [vmem:[%s3539_s25 + $0x3c] sm:$0xff] }
  0x68   : > { %3037 = vmatmul.msk.bf16.vlgmr.msrb.gmra.mxu1 %vm753_vm3, %v3362_v6  ;;  %v1279_v58 = vunpack.c.l.b16 %v1178_v0  ;;  %2425 = vmatpush.bf16.msra.mxu0 %v3414_v49  ;;  %v4012_v6 = vld [vmem:[%s3539_s25 + $0x30] sm:$0xff]  ;;  %v1184_v8 = vrot.slane %v3548_v5, 5  ;;  %v1182_v4 = vsel %vm3915_vm6, %v3057_v27, %v1181_v47  ;;  %v1191_v41 = vrot.slane %v3633_v30, 5  ;;  %v4074_v49 = vld [vmem:[%s3539_s25 + $0x48] sm:$0xff] }
  0x69   : > { %v1195_v45 = vrot.slane %v3699_v62, 5  ;;  %v3059_v27 = vrot.slane %v3696_v61, 9 }
  0x6a   : > { %v4004_v26 = vpack.c.b16 %v1279_v58, %v1278_v31 }
  0x6d   : > { %3093 = vmatmul.msk.bf16.vlgmr.msrb.gmra.mxu2 %vm753_vm3, %v1304_v11  ;;  %v1185_v11 = vsel %vm3915_vm6, %v1183_v50, %v1184_v8  ;;  %v1197_v50 = vrot.slane %v1195_v45, 4  ;;  %v1198_v8 = vrot.slane %v3717_v22, 5 }
  0x72   : > { %3137 = vmatmul.msk.bf16.vlgmr.msrb.gmra.mxu3 %vm753_vm3, %v3363_v14 }
  0x77   : > { %3177 = vmatmul.msk.bf16.vlgmr.msrb.gmra.mxu0 %vm753_vm3, %v3753_v16  ;;  %v1168_v16 = vsel %vm3915_vm6, %v3055_v40, %v1167_v25  ;;  %v1280_v25 = vunpack.c.l.b16 %v1182_v4  ;;  %v1281_v40 = vunpack.c.l.b16 %v1185_v11  ;;  %v1196_v11 = vsel %vm3915_vm6, %v3059_v27, %v1195_v45 }
  0x78   : > { %3038 = vmatmul.msk.bf16.gmra.mxu1 %vm753_vm3, %v3363_v14  ;;  %v1276_v35 = vunpack.c.l.b16 %v1168_v16  ;;  %v1188_v16 = vrot.slane %v3615_v18, 5  ;;  %v1205_v45 = vrot.slane %v3817_v56, 5 }
  0x79   : > { %v4032_v5 = vpack.c.b16 %v1281_v40, %v1280_v25  ;;  %v1199_v25 = vsel %vm3915_vm6, %v1197_v50, %v1198_v8  ;;  %v1284_v40 = vunpack.c.l.b16 %v1196_v11 }
  0x7a   : > { %v3972_v53 = vpack.c.b16 %v1277_v57, %v1276_v35  ;;  %v3058_v57 = vrot.slane %v3609_v13, 9  ;;  %v1190_v2 = vrot.slane %v1188_v16, 4 }
  0x7c   : > { %v1189_v18 = vsel %vm3915_vm6, %v3058_v57, %v1188_v16  ;;  %v1192_v9 = vsel %vm3915_vm6, %v1190_v2, %v1191_v41  ;;  %v1285_v16 = vunpack.c.l.b16 %v1199_v25  ;;  %v1202_v2 = vrot.slane %v3801_v28, 5 }
  0x7d   : > { %3094 = vmatmul.msk.bf16.gmra.mxu2 %vm753_vm3, %v3945_v37  ;;  %v1282_v13 = vunpack.c.l.b16 %v1189_v18  ;;  %v1283_v51 = vunpack.c.l.b16 %v1192_v9  ;;  %v4108_v9 = vld [vmem:[%s3539_s25 + $0x54] sm:$0xff] }
  0x7e   : > { %v4098_v57 = vpack.c.b16 %v1285_v16, %v1284_v40  ;;  %4859 = vst [vmem:[#allocation23_spill] sm:$0xff] %v4108_v9  ;;  %v3409_v16 = vld [vmem:[%s4791_s1 + $0xe8] sm:$0xff] }
  0x7f   : > { %v4064_v31 = vpack.c.b16 %v1283_v51, %v1282_v13  ;;  %v3060_v13 = vrot.slane %v3795_v20, 9  ;;  %v1204_v51 = vrot.slane %v1202_v2, 4  ;;  %v3405_v20 = vld [vmem:[%s4791_s1 + $0xc8] sm:$0xff]  ;;  %2258 = vmatpush.bf16.msra.mxu3 %v3409_v16  ;;  %v3455_v16 = vld [vmem:[%s3539_s25 + $0x60] sm:$0xf] }
  0x80   : > { %4858 = vst [vmem:[#allocation22_spill] sm:$0xff] %v4098_v57  ;;  %2074 = vmatpush.bf16.msra.mxu2 %v3405_v20  ;;  %v3413_v20 = vld [vmem:[%s4791_s1 + $0x108] sm:$0xff] }
  0x81   : > { %v1203_v28 = vsel %vm3915_vm6, %v3060_v13, %v1202_v2  ;;  %v1206_v8 = vsel %vm3915_vm6, %v1204_v51, %v1205_v45  ;;  %v3401_v2 = vld [vmem:[%s4791_s1 + $0xa8] sm:$0xff]  ;;  %v3453_v45 = vld [vmem:[%s3539_s25 + $0x64] sm:$0xf]  ;;  %2426 = vmatpush.bf16.msra.mxu0 %v3413_v20 }
  0x82   : > { %3138 = vmatmul.msk.bf16.gmra.mxu3 %vm753_vm3, %v3958_v23  ;;  %v1286_v56 = vunpack.c.l.b16 %v1203_v28  ;;  %v1287_v25 = vunpack.c.l.b16 %v1206_v8  ;;  %1912 = vmatpush.bf16.msra.mxu1 %v3401_v2  ;;  %v1209_v28 = vrot.slane %v3453_v45, 5  ;;  %v3061_v2 = vrot.slane %v3455_v16, 9 }
  0x84   : > { %v4139_v13 = vpack.c.b16 %v1287_v25, %v1286_v56  ;;  %v4155_v25 = vld [vmem:[%s3539_s25 + $0x60] sm:$0xff] }
  0x85   : > { %4863 = vst [vmem:[#allocation27_spill] sm:$0xff] %v4155_v25 }
  0x86   : > { %4861 = vst [vmem:[#allocation25_spill] sm:$0xff] %v4139_v13 }
  0x87   : > { %3178 = vmatmul.msk.bf16.gmra.mxu0 %vm753_vm3, %v3853_v55 }
  0x88   : > { %3039 = vmatmul.msk.bf16.gmra.mxu1 %vm753_vm3, %v3958_v23 }
  0x8d   : > { %3095 = vmatmul.msk.bf16.gmra.mxu2 %vm753_vm3, %v3972_v53 }
  0x92   : > { %3139 = vmatmul.msk.bf16.gmra.mxu3 %vm753_vm3, %v3978_v59 }
  0x97   : > { %3179 = vmatmul.msk.bf16.gmra.mxu0 %vm753_vm3, %v3941_v36 }
  0x98   : > { %3040 = vmatmul.msk.bf16.gmra.mxu1 %vm753_vm3, %v3978_v59 }
  0x9d   : > { %v4007_v21 = vpop.f32.mrf.mxu1  ;;  %3096 = vmatmul.msk.bf16.gmra.mxu2 %vm753_vm3, %v4004_v26 }
  0xa2   : > { %3140 = vmatmul.msk.bf16.gmra.mxu3 %vm753_vm3, %v4012_v6 }
  0xa5   : > { %v4022_v14 = vpop.f32.mrf.mxu1 }
  0xa7   : > { %v4024_v43 = vpop.f32.mrf.mxu2  ;;  %3180 = vmatmul.msk.bf16.gmra.mxu0 %vm753_vm3, %v3589_v60 }
  0xa8   : > { %3041 = vmatmul.msk.bf16.gmra.mxu1 %vm753_vm3, %v4012_v6 }
  0xaa   : > { %v4030_v3 = vpop.f32.mrf.mxu0 }
  0xab   : > { %v4034_v17 = vpop.f32.mrf.mxu3 }
  0xac   : > { %4854 = vst [vmem:[#allocation18_spill] sm:$0xff] %v4034_v17 }
  0xad   : > { %3097 = vmatmul.msk.bf16.gmra.mxu2 %vm753_vm3, %v4032_v5 }
  0xaf   : > { %v4042_v35 = vpop.f32.mrf.mxu1  ;;  %v4046_v24 = vpop.f32.mrf.mxu2 }
  0xb2   : > { %3141 = vmatmul.msk.bf16.gmra.mxu3 %vm753_vm3, %v4040_v1  ;;  %v4054_v63 = vpop.f32.mrf.mxu0 }
  0xb3   : > { %v4056_v0 = vpop.f32.mrf.mxu3 }
  0xb4   : > { %4855 = vst [vmem:[#allocation19_spill] sm:$0xff] %v4056_v0 }
  0xb7   : > { %3181 = vmatmul.msk.bf16.gmra.mxu0 %vm753_vm3, %v3678_v38  ;;  %v4060_v30 = vpop.f32.mrf.mxu1 }
  0xb8   : > { %3042 = vmatmul.msk.bf16.gmra.mxu1 %vm753_vm3, %v4040_v1 }
  0xba   : > { %v4066_v58 = vpop.f32.mrf.mxu2 }
  0xbd   : > { %3098 = vmatmul.msk.bf16.gmra.mxu2 %vm753_vm3, %v4064_v31 }
  0xbe   : > { %v4069_v44 = vpop.f32.mrf.mxu0 }
  0xbf   : > { %v4076_v47 = vpop.f32.mrf.mxu3 }
  0xc0   : > { %4856 = vst [vmem:[#allocation20_spill] sm:$0xff] %v4076_v47 }
  0xc1   : > { %v4080_v4 = vpop.f32.mrf.mxu1 }
  0xc2   : > { %3142 = vmatmul.msk.bf16.gmra.mxu3 %vm753_vm3, %v4074_v49  ;;  %v4084_v62 = vpop.f32.mrf.mxu2 }
  0xc6   : > { %v4090_v61 = vpop.f32.mrf.mxu0 }
  0xc7   : > { %3182 = vmatmul.msk.bf16.gmra.mxu0 %vm753_vm3, %v3772_v46  ;;  %v4094_v22 = vpop.f32.mrf.mxu3 }
  0xc8   : > { %4857 = vst [vmem:[#allocation21_spill] sm:$0xff] %v4094_v22  ;;  %3043 = vmatmul.msk.bf16.gmra.mxu1 %vm753_vm3, %v4074_v49  ;;  %v3454_v22 = vld [vmem:[%s3539_s25 + $0x68] sm:$0x1] }
  0xc9   : > { %v4101_v41 = vpop.f32.mrf.mxu1  ;;  %v1212_v56 = vrot.slane %v3454_v22, 5 }
  0xcd   : > { %v4103_v18 = vpop.f32.mrf.mxu2  ;;  %3099 = vmatmul.msk.bf16.gmra.mxu2 %vm753_vm3, %v4098_v57 }
  0xd0   : > { %v4112_v27 = vpop.f32.mrf.mxu0 }
  0xd1   : > { %v4114_v50 = vpop.f32.mrf.mxu3 }
  0xd2   : > { %4860 = vst [vmem:[#allocation24_spill] sm:$0xff] %v4114_v50  ;;  %3143 = vmatmul.msk.bf16.gmra.mxu3 %vm753_vm3, %v4108_v9 }
  0xd5   : > { %v4125_v11 = vpop.f32.mrf.mxu1  ;;  %v4127_v40 = vpop.f32.mrf.mxu2 }
  0xd7   : > { %3183 = vmatmul.msk.bf16.gmra.mxu0 %vm753_vm3, %v3878_v33  ;;  %v1211_v33 = vrot.slane %v1209_v28, 4 }
  0xd8   : > { %3044 = vmatmul.msk.bf16.gmra.mxu1 %vm753_vm3, %v4108_v9  ;;  %v4141_v51 = vpop.f32.mrf.mxu0 }
  0xd9   : > { %v4144_v8 = vpop.f32.mrf.mxu3 }
  0xda   : > { %4862 = vst [vmem:[#allocation26_spill] sm:$0xff] %v4144_v8  ;;  %v1210_v8 = vsel %vm3915_vm6, %v3061_v2, %v1209_v28 }
  0xdb   : > { %v1288_v16 = vunpack.c.l.b16 %v1210_v8 }
  0xdd   : > { %3100 = vmatmul.msk.bf16.gmra.mxu2 %vm753_vm3, %v4139_v13  ;;  %v4151_v50 = vpop.f32.mrf.mxu1  ;;  %v1213_v13 = vsel %vm3915_vm6, %v1211_v33, %v1212_v56  ;;  %v1216_v33 = vrot.slane %v3648_v48, 5 }
  0xde   : > { %v1289_v0 = vunpack.c.l.b16 %v1213_v13  ;;  %v4188_v13 = vld [vmem:[%s3539_s25 + $0x6c] sm:$0xff] }
  0xe0   : > { %v4158_v45 = vpop.f32.mrf.mxu2  ;;  %v4177_v28 = vpack.c.b16 %v1289_v0, %v1288_v16  ;;  %v1218_v0 = vrot.slane %v1216_v33, 4 }
  0xe2   : > { %3144 = vmatmul.msk.bf16.gmra.mxu3 %vm753_vm3, %v4155_v25  ;;  %4865 = vst [vmem:[#allocation29_spill] sm:$0xff] %v4177_v28 }
  0xe4   : > { %v4166_v47 = vpop.f32.mrf.mxu0 }
  0xe5   : > { %v4168_v22 = vpop.f32.mrf.mxu3  ;;  %v1052_v9 = vpop.f32.mrf.mxu1 }
  0xe6   : > { %4864 = vst [vmem:[#allocation28_spill] sm:$0xff] %v4168_v22  ;;  %v1053_v20 = vadd.f32 %v1052_v9, %v4030_v3  ;;  %v1219_v9 = vrot.slane %v3655_v52, 5  ;;  %v3062_v22 = vrot.slane %v3641_v39, 9 }
  0xe7   : > { %3184 = vmatmul.msk.bf16.gmra.mxu0 %vm753_vm3, %v3617_v19 }
  0xe8   : > { %v4173_v57 = vpop.f32.mrf.mxu2  ;;  %3045 = vmatmul.msk.bf16.gmra.mxu1 %vm753_vm3, %v4155_v25  ;;  %v1217_v48 = vsel %vm3915_vm6, %v3062_v22, %v1216_v33 }
  0xe9   : > { %v1290_v46 = vunpack.c.l.b16 %v1217_v48 }
  0xec   : > { %v4180_v56 = vpop.f32.mrf.mxu0 }
  0xed   : > { %v4182_v2 = vpop.f32.mrf.mxu3  ;;  %3101 = vmatmul.msk.bf16.gmra.mxu2 %vm753_vm3, %v4177_v28  ;;  %v1054_v3 = vpop.f32.mrf.mxu1 }
  0xee   : > { %4866 = vst [vmem:[#allocation30_spill] sm:$0xff] %v4182_v2  ;;  %v1055_v8 = vadd.f32 %v1054_v3, %v4054_v63  ;;  %v1220_v2 = vsel %vm3915_vm6, %v1218_v0, %v1219_v9  ;;  %v1223_v9 = vrot.slane %v3732_v42, 5 }
  0xef   : > { %v1291_v17 = vunpack.c.l.b16 %v1220_v2  ;;  %v1226_v2 = vrot.slane %v3739_v54, 5 }
  0xf0   : > { %v1401_v16 = vpop.f32.mrf.mxu2 }
  0xf1   : > { %v1481_v19 = vadd.f32 %v1401_v16, %v1053_v20  ;;  %v4205_v3 = vpack.c.b16 %v1291_v17, %v1290_v46  ;;  %v4212_v16 = vld [vmem:[%s3539_s25 + $0x78] sm:$0xff] }
  0xf2   : > { %3145 = vmatmul.msk.bf16.gmra.mxu3 %vm753_vm3, %v4188_v13 }
  0xf4   : > { %v1747_v28 = vpop.f32.mrf.mxu0 }
  0xf5   : > { %v1563_v52 = vpop.f32.mrf.mxu3  ;;  %v1057_v25 = vpop.f32.mrf.mxu1 }
  0xf6   : > { %v1643_v63 = vadd.f32 %v1563_v52, %v1481_v19  ;;  %v1058_v39 = vadd.f32 %v1057_v25, %v4069_v44 }
  0xf7   : > { %3185 = vmatmul.msk.bf16.gmra.mxu0 %vm753_vm3, %v3709_v10 }
  0xf8   : > { %v1403_v20 = vpop.f32.mrf.mxu2  ;;  %3046 = vmatmul.msk.bf16.gmra.mxu1 %vm753_vm3, %v4188_v13  ;;  %v4203_v22 = vadd.f32 %v1747_v28, %v1643_v63  ;;  %v3063_v28 = vrot.slane %v3728_v34, 9 }
  0xf9   : > { %v1482_v33 = vadd.f32 %v1403_v20, %v1055_v8  ;;  %v1225_v8 = vrot.slane %v1223_v9, 4 }
  0xfa   : > { %v1224_v54 = vsel %vm3915_vm6, %v3063_v28, %v1223_v9 }
  0xfb   : > { %v1227_v52 = vsel %vm3915_vm6, %v1225_v8, %v1226_v2 }
  0xfc   : > { %v1749_v0 = vpop.f32.mrf.mxu0 }
  0xfd   : > { %v1565_v19 = vpop.f32.mrf.mxu3  ;;  %3102 = vmatmul.msk.bf16.gmra.mxu2 %vm753_vm3, %v4205_v3  ;;  %v1059_v44 = vpop.f32.mrf.mxu1 }
  0xfe   : > { %v1644_v25 = vadd.f32 %v1565_v19, %v1482_v33  ;;  %v1060_v48 = vadd.f32 %v1059_v44, %v4090_v61  ;;  %v1292_v61 = vunpack.c.l.b16 %v1224_v54  ;;  %v1293_v19 = vunpack.c.l.b16 %v1227_v52 }
 0x100   : > { %v1406_v46 = vpop.f32.mrf.mxu2  ;;  %v4216_v17 = vadd.f32 %v1749_v0, %v1644_v25  ;;  %v4231_v2 = vpack.c.b16 %v1293_v19, %v1292_v61  ;;  %v4868_v25 = vld [vmem:[#allocation11_spill] sm:$0xff] }
 0x101   : > { %v1483_v42 = vadd.f32 %v1406_v46, %v1058_v39  ;;  %v1230_v28 = vrot.slane %v4868_v25, 5  ;;  %v4869_v46 = vld [vmem:[#allocation12_spill] sm:$0xff] }
 0x102   : > { %3146 = vmatmul.msk.bf16.gmra.mxu3 %vm753_vm3, %v4212_v16  ;;  %v1233_v54 = vrot.slane %v4869_v46, 5 }
 0x104   : > { %v1752_v63 = vpop.f32.mrf.mxu0 }
 0x105   : > { %v1568_v20 = vpop.f32.mrf.mxu3  ;;  %v1062_v33 = vpop.f32.mrf.mxu1 }
 0x106   : > { %v1645_v34 = vadd.f32 %v1568_v20, %v1483_v42  ;;  %v1063_v0 = vadd.f32 %v1062_v33, %v4112_v27  ;;  %v4238_v20 = vld [vmem:[%s3539_s25 + $0x84] sm:$0xff] }
 0x107   : > { %3186 = vmatmul.msk.bf16.gmra.mxu0 %vm753_vm3, %v3803_v29 }
 0x108   : > { %v1408_v39 = vpop.f32.mrf.mxu2  ;;  %3047 = vmatmul.msk.bf16.gmra.mxu1 %vm753_vm3, %v4212_v16  ;;  %v4229_v9 = vadd.f32 %v1752_v63, %v1645_v34  ;;  %v4870_v63 = vld [vmem:[#allocation9_spill] sm:$0xff] }
 0x109   : > { %v1484_v44 = vadd.f32 %v1408_v39, %v1060_v48  ;;  %v3064_v34 = vrot.slane %v4870_v63, 9  ;;  %v1232_v48 = vrot.slane %v1230_v28, 4 }
 0x10a   : > { %4867 = vst [vmem:[#allocation31_spill] sm:$0xff] %v4229_v9 }
 0x10b   : > { %v1231_v25 = vsel %vm3915_vm6, %v3064_v34, %v1230_v28  ;;  %v3408_v28 = vld [vmem:[%s4791_s1 + $0xe0] sm:$0xff] }
 0x10c   : > { %v1754_v8 = vpop.f32.mrf.mxu0  ;;  %2259 = vmatpush.bf16.msra.mxu3 %v3408_v28 }
 0x10d   : > { %v1570_v42 = vpop.f32.mrf.mxu3  ;;  %3103 = vmatmul.msk.bf16.gmra.mxu2 %vm753_vm3, %v4231_v2  ;;  %v1064_v27 = vpop.f32.mrf.mxu1 }
 0x10e   : > { %v1646_v52 = vadd.f32 %v1570_v42, %v1484_v44  ;;  %v1065_v33 = vadd.f32 %v1064_v27, %v4141_v51  ;;  %v1234_v44 = vsel %vm3915_vm6, %v1232_v48, %v1233_v54  ;;  %v3404_v51 = vld [vmem:[%s4791_s1 + $0xc0] sm:$0xff] }
 0x10f   : > { %2075 = vmatpush.bf16.msra.mxu2 %v3404_v51  ;;  %v3400_v54 = vld [vmem:[%s4791_s1 + $0xa0] sm:$0xff] }
 0x110   : > { %v1411_v61 = vpop.f32.mrf.mxu2  ;;  %v4242_v19 = vadd.f32 %v1754_v8, %v1646_v52  ;;  %v1294_v8 = vunpack.c.l.b16 %v1231_v25  ;;  %v1295_v52 = vunpack.c.l.b16 %v1234_v44  ;;  %1913 = vmatpush.bf16.msra.mxu1 %v3400_v54  ;;  %v3412_v51 = vld [vmem:[%s4791_s1 + $0x100] sm:$0xff] }
 0x111   : > { %v1485_v39 = vadd.f32 %v1411_v61, %v1063_v0  ;;  %2427 = vmatpush.bf16.msra.mxu0 %v3412_v51 }
 0x112   : > { %4871 = vst [vmem:[#allocation11_spill] sm:$0xff] %v4242_v19  ;;  %3147 = vmatmul.msk.bf16.gmra.mxu3 %vm753_vm3, %v4238_v20  ;;  %v4266_v61 = vpack.c.b16 %v1295_v52, %v1294_v8  ;;  %v3458_v52 = vld [vmem:[%s3539_s25 + $0x90] sm:$0xf] }
 0x113   : > { %v3065_v28 = vrot.slane %v3458_v52, 9 }
 0x114   : > { %v1757_v46 = vpop.f32.mrf.mxu0  ;;  %4873 = vst [vmem:[#allocation9_spill] sm:$0xff] %v4266_v61 }
 0x115   : > { %v1573_v42 = vpop.f32.mrf.mxu3  ;;  %v1067_v27 = vpop.f32.mrf.mxu1 }
 0x116   : > { %v1647_v0 = vadd.f32 %v1573_v42, %v1485_v39  ;;  %v1068_v63 = vadd.f32 %v1067_v27, %v4166_v47  ;;  %v3456_v39 = vld [vmem:[%s3539_s25 + $0x94] sm:$0xf]  ;;  %v3457_v42 = vld [vmem:[%s3539_s25 + $0x98] sm:$0x1] }
 0x117   : > { %3187 = vmatmul.msk.bf16.gmra.mxu0 %vm753_vm3, %v3906_v15  ;;  %v1237_v25 = vrot.slane %v3456_v39, 5  ;;  %v1240_v27 = vrot.slane %v3457_v42, 5  ;;  %v3461_v15 = vld [vmem:[%s3539_s25 + $0x9c] sm:$0xf] }
 0x118   : > { %v1413_v34 = vpop.f32.mrf.mxu2  ;;  %3048 = vmatmul.msk.bf16.gmra.mxu1 %vm753_vm3, %v4238_v20  ;;  %v4264_v48 = vadd.f32 %v1757_v46, %v1647_v0  ;;  %v4276_v0 = vld [vmem:[%s3539_s25 + $0x90] sm:$0xff] }
 0x119   : > { %v1486_v47 = vadd.f32 %v1413_v34, %v1065_v33  ;;  %4874 = vst [vmem:[#allocation32_spill] sm:$0xff] %v4276_v0  ;;  %v1239_v54 = vrot.slane %v1237_v25, 4  ;;  %v1238_v42 = vsel %vm3915_vm6, %v3065_v28, %v1237_v25  ;;  %v3459_v28 = vld [vmem:[%s3539_s25 + $0xa0] sm:$0xf] }
 0x11a   : > { %4872 = vst [vmem:[#allocation12_spill] sm:$0xff] %v4264_v48  ;;  %v1296_v52 = vunpack.c.l.b16 %v1238_v42 }
 0x11c   : > { %v1759_v44 = vpop.f32.mrf.mxu0 }
 0x11d   : > { %v1575_v19 = vpop.f32.mrf.mxu3  ;;  %3104 = vmatmul.msk.bf16.gmra.mxu2 %vm753_vm3, %v4266_v61  ;;  %v1069_v46 = vpop.f32.mrf.mxu1 }
 0x11e   : > { %v1648_v33 = vadd.f32 %v1575_v19, %v1486_v47  ;;  %v1070_v8 = vadd.f32 %v1069_v46, %v4180_v56  ;;  %v1241_v19 = vsel %vm3915_vm6, %v1239_v54, %v1240_v27  ;;  %v1244_v54 = vrot.slane %v3459_v28, 5 }
 0x11f   : > { %v1297_v51 = vunpack.c.l.b16 %v1241_v19  ;;  %v3460_v19 = vld [vmem:[%s3539_s25 + $0xa4] sm:$0x1] }
 0x120   : > { %v1416_v34 = vpop.f32.mrf.mxu2  ;;  %v4280_v39 = vadd.f32 %v1759_v44, %v1648_v33  ;;  %v4876_v44 = vld [vmem:[#allocation3_spill] sm:$0xff] }
 0x121   : > { %v1487_v48 = vadd.f32 %v1416_v34, %v1068_v63  ;;  %v4294_v27 = vpack.c.b16 %v1297_v51, %v1296_v52 }
 0x122   : > { %4875 = vst [vmem:[#allocation33_spill] sm:$0xff] %v4280_v39  ;;  %3148 = vmatmul.msk.bf16.gmra.mxu3 %vm753_vm3, %v4276_v0 }
 0x123   : > { %4878 = vst [vmem:[#allocation35_spill] sm:$0xff] %v4294_v27 }
 0x124   : > { %v1762_v47 = vpop.f32.mrf.mxu0 }
 0x125   : > { %v1578_v56 = vpop.f32.mrf.mxu3  ;;  %v1072_v46 = vpop.f32.mrf.mxu1 }
 0x126   : > { %v1649_v61 = vadd.f32 %v1578_v56, %v1487_v48  ;;  %v1247_v56 = vrot.slane %v3460_v19, 5 }
 0x127   : > { %3188 = vmatmul.msk.bf16.gmra.mxu0 %vm753_vm3, %v4876_v44  ;;  %v4301_v44 = vld [vmem:[%s3539_s25 + $0x9c] sm:$0xff] }
 0x128   : > { %v1418_v63 = vpop.f32.mrf.mxu2  ;;  %3049 = vmatmul.msk.bf16.gmra.mxu1 %vm753_vm3, %v4276_v0  ;;  %v4292_v25 = vadd.f32 %v1762_v47, %v1649_v61  ;;  %4879 = vst [vmem:[#allocation36_spill] sm:$0xff] %v4301_v44  ;;  %v3066_v0 = vrot.slane %v3461_v15, 9  ;;  %v1246_v61 = vrot.slane %v1244_v54, 4 }
 0x129   : > { %v1488_v33 = vadd.f32 %v1418_v63, %v1070_v8  ;;  %v1073_v8 = vadd.f32 %v1072_v46, %v4007_v21  ;;  %v4881_v46 = vld [vmem:[#allocation4_spill] sm:$0xff] }
 0x12a   : > { %4877 = vst [vmem:[#allocation34_spill] sm:$0xff] %v4292_v25  ;;  %v1245_v63 = vsel %vm3915_vm6, %v3066_v0, %v1244_v54 }
 0x12b   : > { %v1298_v15 = vunpack.c.l.b16 %v1245_v63 }
 0x12c   : > { %v1764_v34 = vpop.f32.mrf.mxu0 }
 0x12d   : > { %v1580_v42 = vpop.f32.mrf.mxu3  ;;  %3105 = vmatmul.msk.bf16.gmra.mxu2 %vm753_vm3, %v4294_v27  ;;  %v1074_v48 = vpop.f32.mrf.mxu1 }
 0x12e   : > { %v1650_v39 = vadd.f32 %v1580_v42, %v1488_v33  ;;  %v1248_v33 = vsel %vm3915_vm6, %v1246_v61, %v1247_v56  ;;  %v4884_v61 = vld [vmem:[#allocation6_spill] sm:$0xff] }
 0x12f   : > { %v1299_v25 = vunpack.c.l.b16 %v1248_v33  ;;  %v4885_v33 = vld [vmem:[#allocation7_spill] sm:$0xff] }
 0x130   : > { %v1421_v47 = vpop.f32.mrf.mxu2  ;;  %v4305_v52 = vadd.f32 %v1764_v34, %v1650_v39  ;;  %v1075_v39 = vadd.f32 %v1074_v48, %v4022_v14  ;;  %v4327_v48 = vld [vmem:[%s3539_s25 + $0xa8] sm:$0xff] }
 0x131   : > { %v1489_v51 = vadd.f32 %v1421_v47, %v1073_v8  ;;  %v4320_v56 = vpack.c.b16 %v1299_v25, %v1298_v15  ;;  %v1251_v8 = vrot.slane %v4884_v61, 5  ;;  %4886 = vst [vmem:[#allocation6_spill] sm:$0xff] %v4327_v48 }
 0x132   : > { %4880 = vst [vmem:[#allocation37_spill] sm:$0xff] %v4305_v52  ;;  %3149 = vmatmul.msk.bf16.gmra.mxu3 %vm753_vm3, %v4301_v44  ;;  %v4887_v52 = vld [vmem:[#allocation5_spill] sm:$0xff] }
 0x133   : > { %4883 = vst [vmem:[#allocation39_spill] sm:$0xff] %v4320_v56 }
 0x134   : > { %v1767_v28 = vpop.f32.mrf.mxu0 }
 0x135   : > { %v1583_v42 = vpop.f32.mrf.mxu3  ;;  %v1077_v19 = vpop.f32.mrf.mxu1 }
 0x136   : > { %v1651_v21 = vadd.f32 %v1583_v42, %v1489_v51  ;;  %v1254_v42 = vrot.slane %v4885_v33, 5 }
 0x137   : > { %3189 = vmatmul.msk.bf16.gmra.mxu0 %vm753_vm3, %v4881_v46  ;;  %v3067_v46 = vrot.slane %v4887_v52, 9 }
 0x138   : > { %v1423_v34 = vpop.f32.mrf.mxu2  ;;  %3050 = vmatmul.msk.bf16.gmra.mxu1 %vm753_vm3, %v4301_v44  ;;  %v4318_v0 = vadd.f32 %v1767_v28, %v1651_v21  ;;  %v1253_v28 = vrot.slane %v1251_v8, 4  ;;  %v1078_v21 = vadd.f32 %v1077_v19, %v4042_v35 }
 0x139   : > { %v1490_v54 = vadd.f32 %v1423_v34, %v1075_v39  ;;  %v1252_v34 = vsel %vm3915_vm6, %v3067_v46, %v1251_v8  ;;  %v4345_v46 = vld [vmem:[%s3539_s25 + $0xc0] sm:$0xf] }
 0x13a   : > { %4882 = vst [vmem:[#allocation38_spill] sm:$0xff] %v4318_v0  ;;  %v1300_v33 = vunpack.c.l.b16 %v1252_v34  ;;  %v4889_v0 = vld [vmem:[#allocation10_spill] sm:$0xff]  ;;  %v1676_v34 = vshrl.u32 %v4345_v46, 16 }
 0x13b   : > { %4890 = vst [vmem:[#allocation5_spill] sm:$0xff] %v4345_v46 }
 0x13c   : > { %v1769_v47 = vpop.f32.mrf.mxu0 }
 0x13d   : > { %v1585_v63 = vpop.f32.mrf.mxu3  ;;  %3106 = vmatmul.msk.bf16.gmra.mxu2 %vm753_vm3, %v4320_v56  ;;  %v1079_v51 = vpop.f32.mrf.mxu1 }
 0x13e   : > { %v1652_v14 = vadd.f32 %v1585_v63, %v1490_v54  ;;  %v1255_v54 = vsel %vm3915_vm6, %v1253_v28, %v1254_v42 }
 0x13f   : > { %v1301_v35 = vunpack.c.l.b16 %v1255_v54 }
 0x140   : > { %v1426_v25 = vpop.f32.mrf.mxu2  ;;  %v4331_v15 = vadd.f32 %v1769_v47, %v1652_v14  ;;  %v1080_v47 = vadd.f32 %v1079_v51, %v4060_v30  ;;  %v1679_v30 = vshll.u32 %v4345_v46, 16 }
 0x141   : > { %v1491_v39 = vadd.f32 %v1426_v25, %v1078_v21  ;;  %v4349_v28 = vpack.c.b16 %v1301_v35, %v1300_v33  ;;  %v4352_v21 = vld [vmem:[%s3539_s25 + $0xc4] sm:$0xf]  ;;  %v4895_v33 = vld [vmem:[#allocation15_spill] sm:$0xff] }
 0x142   : > { %4888 = vst [vmem:[#allocation7_spill] sm:$0xff] %v4331_v15  ;;  %3150 = vmatmul.msk.bf16.gmra.mxu3 %vm753_vm3, %v4327_v48  ;;  %v4894_v25 = vld [vmem:[#allocation14_spill] sm:$0xff]  ;;  %v1685_v51 = vshll.u32 %v4352_v21, 16  ;;  %v1261_v35 = vrot.slane %v4895_v33, 5  ;;  %v1681_v56 = vrot.slane %v1679_v30, 5 }
 0x143   : > { %4892 = vst [vmem:[#allocation41_spill] sm:$0xff] %v4349_v28 }
 0x144   : > { %v1772_v61 = vpop.f32.mrf.mxu0  ;;  %4893 = vst [vmem:[#allocation42_spill] sm:$0xff] %v4352_v21 }
 0x145   : > { %v1588_v52 = vpop.f32.mrf.mxu3  ;;  %v1082_v63 = vpop.f32.mrf.mxu1 }
 0x146   : > { %v1653_v19 = vadd.f32 %v1588_v52, %v1491_v39  ;;  %v1258_v39 = vrot.slane %v4894_v25, 5  ;;  %v1689_v52 = vshrl.u32 %v4352_v21, 16  ;;  %v1083_v46 = vadd.f32 %v1082_v63, %v4080_v4 }
 0x147   : > { %3190 = vmatmul.msk.bf16.gmra.mxu0 %vm753_vm3, %v4889_v0  ;;  %v1678_v0 = vrot.slane %v1676_v34, 4  ;;  %v1687_v21 = vrot.slane %v1685_v51, 5 }
 0x148   : > { %v1428_v14 = vpop.f32.mrf.mxu2  ;;  %3051 = vmatmul.msk.bf16.gmra.mxu1 %vm753_vm3, %v4327_v48  ;;  %v4347_v8 = vadd.f32 %v1772_v61, %v1653_v19  ;;  %v1691_v44 = vrot.slane %v1689_v52, 4 }
 0x149   : > { %v1492_v42 = vadd.f32 %v1428_v14, %v1080_v47  ;;  %v4363_v47 = vld [vmem:[%s3539_s25 + $0xb4] sm:$0xff]  ;;  %v1682_v63 = vor.u32 %v1681_v56, %v1678_v0 }
 0x14a   : > { %4891 = vst [vmem:[#allocation40_spill] sm:$0xff] %v4347_v8  ;;  %v4896_v14 = vld [vmem:[#allocation13_spill] sm:$0xff]  ;;  %v1260_v8 = vrot.slane %v1258_v39, 4  ;;  %v1692_v34 = vor.u32 %v1691_v44, %v1687_v21 }
 0x14b   : > { %v3068_v25 = vrot.slane %v4896_v14, 9 }
 0x14c   : > { %v1774_v54 = vpop.f32.mrf.mxu0  ;;  %v1693_v0 = vrot.slane %v1692_v34, 4 }
 0x14d   : > { %v1590_v15 = vpop.f32.mrf.mxu3  ;;  %3107 = vmatmul.msk.bf16.gmra.mxu2 %vm753_vm3, %v4349_v28  ;;  %v1084_v61 = vpop.f32.mrf.mxu1  ;;  %v4370_v28 = vld [vmem:[%s3539_s25 + $0xc8] sm:$0x1] }
 0x14e   : > { %v1654_v19 = vadd.f32 %v1590_v15, %v1492_v42  ;;  %v1259_v15 = vsel %vm3915_vm6, %v3068_v25, %v1258_v39  ;;  %v1262_v42 = vsel %vm3915_vm6, %v1260_v8, %v1261_v35  ;;  %v1695_v30 = vshll.u32 %v4370_v28, 16 }
 0x14f   : > { %v1302_v52 = vunpack.c.l.b16 %v1259_v15  ;;  %v1085_v33 = vadd.f32 %v1084_v61, %v4101_v41  ;;  %v1683_v8 = vrot.slane %v1682_v63, 4 }
 0x150   : > { %v1431_v48 = vpop.f32.mrf.mxu2  ;;  %v4367_v27 = vadd.f32 %v1774_v54, %v1654_v19  ;;  %v1697_v44 = vrot.slane %v1695_v30, 5 }
 0x151   : > { %v1493_v9 = vadd.f32 %v1431_v48, %v1083_v46  ;;  %v1303_v48 = vunpack.c.l.b16 %v1262_v42  ;;  %v4395_v42 = vld [vmem:[%s3539_s25 + $0xc0] sm:$0xff] }
 0x152   : > { %3151 = vmatmul.msk.bf16.gmra.mxu3 %vm753_vm3, %v4363_v47  ;;  %v1698_v41 = vsel %vm3571_vm2, %v1693_v0, %v1697_v44 }
 0x153   : > { %v4386_v19 = vpack.c.b16 %v1303_v48, %v1302_v52  ;;  %v1709_v34 = vunpack.c.l.b16 %v1698_v41 }
 0x154   : > { %v1777_v4 = vpop.f32.mrf.mxu0 }
 0x155   : > { %v1593_v51 = vpop.f32.mrf.mxu3  ;;  %v1087_v54 = vpop.f32.mrf.mxu1 }
 0x156   : > { %v1655_v46 = vadd.f32 %v1593_v51, %v1493_v9  ;;  %v1688_v9 = vsel %vm3571_vm2, %v1683_v8, %v1687_v21 }
 0x157   : > { %3191 = vmatmul.msk.bf16.gmra.mxu0 %vm753_vm3, %v3924_v12  ;;  %v1708_v63 = vunpack.c.l.b16 %v1688_v9 }
 0x158   : > { %v1433_v39 = vpop.f32.mrf.mxu2  ;;  %3052 = vmatmul.msk.bf16.gmra.mxu1 %vm753_vm3, %v4363_v47  ;;  %v4384_v56 = vadd.f32 %v1777_v4, %v1655_v46  ;;  %v1088_v4 = vadd.f32 %v1087_v54, %v4125_v11 }
 0x159   : > { %v1494_v35 = vadd.f32 %v1433_v39, %v1085_v33  ;;  %v4402_v21 = vpack.c.b16 %v1709_v34, %v1708_v63 }
 0x15c   : > { %v1779_v14 = vpop.f32.mrf.mxu0 }
 0x15d   : > { %v1595_v61 = vpop.f32.mrf.mxu3  ;;  %3108 = vmatmul.msk.bf16.gmra.mxu2 %vm753_vm3, %v4386_v19  ;;  %v1089_v25 = vpop.f32.mrf.mxu1 }
 0x15e   : > { %v1656_v15 = vadd.f32 %v1595_v61, %v1494_v35  ;;  %v1090_v11 = vadd.f32 %v1089_v25, %v4151_v50 }
 0x160   : > { %v1436_v30 = vpop.f32.mrf.mxu2  ;;  %v4398_v51 = vadd.f32 %v1779_v14, %v1656_v15 }
 0x161   : > { %v1495_v52 = vadd.f32 %v1436_v30, %v1088_v4 }
 0x162   : > { %3152 = vmatmul.msk.bf16.gmra.mxu3 %vm753_vm3, %v4395_v42 }
 0x164   : > { %v1782_v48 = vpop.f32.mrf.mxu0 }
 0x165   : > { %v1598_v46 = vpop.f32.mrf.mxu3  ;;  %v1092_v33 = vpop.f32.mrf.mxu1 }
 0x166   : > { %v1657_v39 = vadd.f32 %v1598_v46, %v1495_v52  ;;  %v1093_v41 = vadd.f32 %v1092_v33, %v4024_v43 }
 0x167   : > { %3192 = vmatmul.msk.bf16.gmra.mxu0 %vm753_vm3, %v4402_v21 }
 0x168   : > { %v1438_v54 = vpop.f32.mrf.mxu2  ;;  %3218 = vmatmul.msk.bf16.vlgmr.msra.gmra.mxu1 %vm753_vm3, %v3945_v37  ;;  %v4409_v8 = vadd.f32 %v1782_v48, %v1657_v39 }
 0x169   : > { %v1496_v0 = vadd.f32 %v1438_v54, %v1090_v11 }
 0x16c   : > { %v1784_v44 = vpop.f32.mrf.mxu0 }
 0x16d   : > { %v1600_v35 = vpop.f32.mrf.mxu3  ;;  %3262 = vmatmul.msk.bf16.vlgmr.msra.gmra.mxu2 %vm753_vm3, %v3958_v23  ;;  %v1094_v14 = vpop.f32.mrf.mxu1 }
 0x16e   : > { %v1658_v9 = vadd.f32 %v1600_v35, %v1496_v0  ;;  %v1095_v23 = vadd.f32 %v1094_v14, %v4046_v24 }
 0x170   : > { %v1441_v61 = vpop.f32.mrf.mxu2  ;;  %v4414_v15 = vadd.f32 %v1784_v44, %v1658_v9 }
 0x171   : > { %v1497_v50 = vadd.f32 %v1441_v61, %v1093_v41 }
 0x172   : > { %3302 = vmatmul.msk.bf16.vlgmr.msra.gmra.mxu3 %vm753_vm3, %v3853_v55 }
 0x174   : > { %v1787_v37 = vpop.f32.mrf.mxu0 }
 0x175   : > { %v1603_v25 = vpop.f32.mrf.mxu3  ;;  %v1097_v4 = vpop.f32.mrf.mxu1 }
 0x176   : > { %v1659_v63 = vadd.f32 %v1603_v25, %v1497_v50  ;;  %v1098_v33 = vadd.f32 %v1097_v4, %v4066_v58 }
 0x177   : > { %3343 = vmatmul.msk.bf16.vlgmr.msra.gmra.mxu0 %vm753_vm3, %v3972_v53 }
 0x178   : > { %v1443_v34 = vpop.f32.mrf.mxu2  ;;  %3219 = vmatmul.msk.bf16.gmra.mxu1 %vm753_vm3, %v3972_v53  ;;  %v4423_v43 = vadd.f32 %v1787_v37, %v1659_v63 }
 0x179   : > { %v1498_v30 = vadd.f32 %v1443_v34, %v1095_v23 }
 0x17c   : > { %v1789_v52 = vpop.f32.mrf.mxu0 }
 0x17d   : > { %v1605_v48 = vpop.f32.mrf.mxu3  ;;  %3263 = vmatmul.msk.bf16.gmra.mxu2 %vm753_vm3, %v3978_v59  ;;  %v1099_v55 = vpop.f32.mrf.mxu1 }
 0x17e   : > { %v1660_v46 = vadd.f32 %v1605_v48, %v1498_v30  ;;  %v1100_v59 = vadd.f32 %v1099_v55, %v4084_v62 }
 0x180   : > { %v1446_v39 = vpop.f32.mrf.mxu2  ;;  %v4428_v11 = vadd.f32 %v1789_v52, %v1660_v46 }
 0x181   : > { %v1499_v24 = vadd.f32 %v1446_v39, %v1098_v33 }
 0x182   : > { %3303 = vmatmul.msk.bf16.gmra.mxu3 %vm753_vm3, %v3941_v36 }
 0x184   : > { %v1792_v53 = vpop.f32.mrf.mxu0 }
 0x185   : > { %v1608_v54 = vpop.f32.mrf.mxu3  ;;  %v1102_v0 = vpop.f32.mrf.mxu1 }
 0x186   : > { %v1661_v44 = vadd.f32 %v1608_v54, %v1499_v24  ;;  %v1103_v50 = vadd.f32 %v1102_v0, %v4103_v18 }
 0x187   : > { %3344 = vmatmul.msk.bf16.gmra.mxu0 %vm753_vm3, %v4004_v26 }
 0x188   : > { %v1448_v35 = vpop.f32.mrf.mxu2  ;;  %3220 = vmatmul.msk.bf16.gmra.mxu1 %vm753_vm3, %v4004_v26  ;;  %v4437_v58 = vadd.f32 %v1792_v53, %v1661_v44 }
 0x189   : > { %v1500_v14 = vadd.f32 %v1448_v35, %v1100_v59 }
 0x18c   : > { %v1794_v9 = vpop.f32.mrf.mxu0 }
 0x18d   : > { %v1610_v41 = vpop.f32.mrf.mxu3  ;;  %3264 = vmatmul.msk.bf16.gmra.mxu2 %vm753_vm3, %v4012_v6  ;;  %v1104_v36 = vpop.f32.mrf.mxu1 }
 0x18e   : > { %v1662_v61 = vadd.f32 %v1610_v41, %v1500_v14  ;;  %v1105_v6 = vadd.f32 %v1104_v36, %v4127_v40 }
 0x190   : > { %v1451_v37 = vpop.f32.mrf.mxu2  ;;  %v4442_v25 = vadd.f32 %v1794_v9, %v1662_v61  ;;  %v4897_v9 = vld [vmem:[#allocation18_spill] sm:$0xff] }
 0x191   : > { %v1501_v62 = vadd.f32 %v1451_v37, %v1103_v50  ;;  %v4898_v50 = vld [vmem:[#allocation8_spill] sm:$0xff] }
 0x192   : > { %3304 = vmatmul.msk.bf16.gmra.mxu3 %vm753_vm3, %v3589_v60 }
 0x194   : > { %v1797_v26 = vpop.f32.mrf.mxu0 }
 0x195   : > { %v1613_v4 = vpop.f32.mrf.mxu3  ;;  %v1107_v63 = vpop.f32.mrf.mxu1 }
 0x196   : > { %v1663_v23 = vadd.f32 %v1613_v4, %v1501_v62  ;;  %v1108_v46 = vadd.f32 %v1107_v63, %v4158_v45  ;;  %v4899_v4 = vld [vmem:[#allocation22_spill] sm:$0xff]  ;;  %v4900_v63 = vld [vmem:[#allocation19_spill] sm:$0xff] }
 0x197   : > { %3345 = vmatmul.msk.bf16.gmra.mxu0 %vm753_vm3, %v4032_v5 }
 0x198   : > { %v1453_v34 = vpop.f32.mrf.mxu2  ;;  %3221 = vmatmul.msk.bf16.gmra.mxu1 %vm753_vm3, %v4032_v5  ;;  %v4451_v18 = vadd.f32 %v1797_v26, %v1663_v23 }
 0x199   : > { %v1502_v30 = vadd.f32 %v1453_v34, %v1105_v6 }
 0x19c   : > { %v1799_v52 = vpop.f32.mrf.mxu0 }
 0x19d   : > { %v1615_v48 = vpop.f32.mrf.mxu3  ;;  %3265 = vmatmul.msk.bf16.gmra.mxu2 %vm753_vm3, %v4040_v1  ;;  %v1109_v60 = vpop.f32.mrf.mxu1 }
 0x19e   : > { %v1664_v55 = vadd.f32 %v1615_v48, %v1502_v30  ;;  %v1110_v1 = vadd.f32 %v1109_v60, %v4173_v57  ;;  %v4901_v48 = vld [vmem:[#allocation23_spill] sm:$0xff] }
 0x1a0   : > { %v1456_v33 = vpop.f32.mrf.mxu2  ;;  %v4456_v39 = vadd.f32 %v1799_v52, %v1664_v55 }
 0x1a1   : > { %v1503_v40 = vadd.f32 %v1456_v33, %v1108_v46  ;;  %v4902_v46 = vld [vmem:[#allocation20_spill] sm:$0xff] }
 0x1a2   : > { %3305 = vmatmul.msk.bf16.gmra.mxu3 %vm753_vm3, %v3678_v38 }
 0x1a4   : > { %v1802_v5 = vpop.f32.mrf.mxu0 }
 0x1a5   : > { %v1618_v24 = vpop.f32.mrf.mxu3  ;;  %v1112_v53 = vpop.f32.mrf.mxu1 }
 0x1a6   : > { %v1665_v54 = vadd.f32 %v1618_v24, %v1503_v40  ;;  %v1113_v41 = vadd.f32 %v1112_v53, %v4897_v9  ;;  %v4903_v53 = vld [vmem:[#allocation16_spill] sm:$0xff] }
 0x1a7   : > { %3346 = vmatmul.msk.bf16.gmra.mxu0 %vm753_vm3, %v4064_v31 }
 0x1a8   : > { %v1458_v0 = vpop.f32.mrf.mxu2  ;;  %3222 = vmatmul.msk.bf16.gmra.mxu1 %vm753_vm3, %v4064_v31  ;;  %v4465_v45 = vadd.f32 %v1802_v5, %v1665_v54 }
 0x1a9   : > { %v1504_v44 = vadd.f32 %v1458_v0, %v1110_v1 }
 0x1ac   : > { %v1804_v59 = vpop.f32.mrf.mxu0 }
 0x1ad   : > { %v1620_v35 = vpop.f32.mrf.mxu3  ;;  %3266 = vmatmul.msk.bf16.gmra.mxu2 %vm753_vm3, %v4074_v49  ;;  %v1114_v38 = vpop.f32.mrf.mxu1 }
 0x1ae   : > { %v1666_v14 = vadd.f32 %v1620_v35, %v1504_v44  ;;  %v1115_v49 = vadd.f32 %v1114_v38, %v4900_v63  ;;  %v4905_v35 = vld [vmem:[#allocation21_spill] sm:$0xff] }
 0x1b0   : > { %v1461_v36 = vpop.f32.mrf.mxu2  ;;  %v4470_v61 = vadd.f32 %v1804_v59, %v1666_v14  ;;  %v4904_v59 = vld [vmem:[#allocation25_spill] sm:$0xff] }
 0x1b1   : > { %v1505_v57 = vadd.f32 %v1461_v36, %v1113_v41 }
 0x1b2   : > { %3306 = vmatmul.msk.bf16.gmra.mxu3 %vm753_vm3, %v4898_v50  ;;  %v4906_v50 = vld [vmem:[#allocation27_spill] sm:$0xff] }
 0x1b4   : > { %v1807_v31 = vpop.f32.mrf.mxu0 }
 0x1b5   : > { %v1623_v37 = vpop.f32.mrf.mxu3  ;;  %v1117_v62 = vpop.f32.mrf.mxu1 }
 0x1b6   : > { %v1667_v26 = vadd.f32 %v1623_v37, %v1505_v57  ;;  %v1118_v33 = vadd.f32 %v1117_v62, %v4902_v46  ;;  %v4907_v62 = vld [vmem:[#allocation24_spill] sm:$0xff] }
 0x1b7   : > { %3347 = vmatmul.msk.bf16.gmra.mxu0 %vm753_vm3, %v4899_v4 }
 0x1b8   : > { %v1463_v23 = vpop.f32.mrf.mxu2  ;;  %3223 = vmatmul.msk.bf16.gmra.mxu1 %vm753_vm3, %v4899_v4  ;;  %v4479_v6 = vadd.f32 %v1807_v31, %v1667_v26 }
 0x1b9   : > { %v1506_v34 = vadd.f32 %v1463_v23, %v1115_v49  ;;  %v4908_v23 = vld [vmem:[#allocation2_spill] sm:$0xff] }
 0x1bc   : > { %v1809_v30 = vpop.f32.mrf.mxu0 }
 0x1bd   : > { %v1625_v52 = vpop.f32.mrf.mxu3  ;;  %3267 = vmatmul.msk.bf16.gmra.mxu2 %vm753_vm3, %v4901_v48  ;;  %v1119_v60 = vpop.f32.mrf.mxu1 }
 0x1be   : > { %v1668_v55 = vadd.f32 %v1625_v52, %v1506_v34  ;;  %v1120_v38 = vadd.f32 %v1119_v60, %v4905_v35  ;;  %v4909_v60 = vld [vmem:[#allocation29_spill] sm:$0xff] }
 0x1c0   : > { %v1466_v40 = vpop.f32.mrf.mxu2  ;;  %v4484_v5 = vadd.f32 %v1809_v30, %v1668_v55  ;;  %v4910_v55 = vld [vmem:[#allocation26_spill] sm:$0xff] }
 0x1c1   : > { %v1507_v24 = vadd.f32 %v1466_v40, %v1118_v33 }
 0x1c2   : > { %3307 = vmatmul.msk.bf16.gmra.mxu3 %vm753_vm3, %v4903_v53 }
 0x1c4   : > { %v1812_v54 = vpop.f32.mrf.mxu0 }
 0x1c5   : > { %v1628_v1 = vpop.f32.mrf.mxu3  ;;  %v1122_v0 = vpop.f32.mrf.mxu1 }
 0x1c6   : > { %v1669_v44 = vadd.f32 %v1628_v1, %v1507_v24  ;;  %v1123_v26 = vadd.f32 %v1122_v0, %v4907_v62 }
 0x1c7   : > { %3348 = vmatmul.msk.bf16.gmra.mxu0 %vm753_vm3, %v4904_v59 }
 0x1c8   : > { %v1468_v14 = vpop.f32.mrf.mxu2  ;;  %3224 = vmatmul.msk.bf16.gmra.mxu1 %vm753_vm3, %v4904_v59  ;;  %v4493_v9 = vadd.f32 %v1812_v54, %v1669_v44  ;;  %v4911_v44 = vld [vmem:[#allocation28_spill] sm:$0xff] }
 0x1c9   : > { %v1508_v41 = vadd.f32 %v1468_v14, %v1120_v38 }
 0x1cc   : > { %v1814_v36 = vpop.f32.mrf.mxu0 }
 0x1cd   : > { %v1630_v57 = vpop.f32.mrf.mxu3  ;;  %3268 = vmatmul.msk.bf16.gmra.mxu2 %vm753_vm3, %v4906_v50  ;;  %v1124_v31 = vpop.f32.mrf.mxu1 }
 0x1ce   : > { %v1670_v37 = vadd.f32 %v1630_v57, %v1508_v41  ;;  %v1125_v46 = vadd.f32 %v1124_v31, %v4910_v55  ;;  %v4912_v31 = vld [vmem:[#allocation30_spill] sm:$0xff] }
 0x1d0   : > { %v1471_v4 = vpop.f32.mrf.mxu2  ;;  %v4498_v63 = vadd.f32 %v1814_v36, %v1670_v37 }
 0x1d1   : > { %v1509_v49 = vadd.f32 %v1471_v4, %v1123_v26 }
 0x1d2   : > { %3308 = vmatmul.msk.bf16.gmra.mxu3 %vm753_vm3, %v4908_v23 }
 0x1d4   : > { %v1817_v34 = vpop.f32.mrf.mxu0 }
 0x1d5   : > { %v1633_v30 = vpop.f32.mrf.mxu3  ;;  %v1127_v52 = vpop.f32.mrf.mxu1 }
 0x1d6   : > { %v1671_v48 = vadd.f32 %v1633_v30, %v1509_v49  ;;  %v1128_v59 = vadd.f32 %v1127_v52, %v4911_v44  ;;  %v4913_v44 = vld [vmem:[#allocation31_spill] sm:$0xff] }
 0x1d7   : > { %3349 = vmatmul.msk.bf16.gmra.mxu0 %vm753_vm3, %v4909_v60 }
 0x1d8   : > { %v1473_v33 = vpop.f32.mrf.mxu2  ;;  %3225 = vmatmul.msk.bf16.gmra.mxu1 %vm753_vm3, %v4909_v60  ;;  %v4507_v40 = vadd.f32 %v1817_v34, %v1671_v48 }
 0x1d9   : > { %v1510_v24 = vadd.f32 %v1473_v33, %v1125_v46 }
 0x1dc   : > { %v1819_v53 = vpop.f32.mrf.mxu0 }
 0x1dd   : > { %v1635_v54 = vpop.f32.mrf.mxu3  ;;  %3269 = vmatmul.msk.bf16.gmra.mxu2 %vm753_vm3, %v4188_v13  ;;  %v1129_v1 = vpop.f32.mrf.mxu1 }
 0x1de   : > { %v1672_v0 = vadd.f32 %v1635_v54, %v1510_v24  ;;  %v1130_v13 = vadd.f32 %v1129_v1, %v4912_v31 }
 0x1e0   : > { %v1476_v35 = vpop.f32.mrf.mxu2  ;;  %v4512_v38 = vadd.f32 %v1819_v53, %v1672_v0 }
 0x1e1   : > { %v1511_v14 = vadd.f32 %v1476_v35, %v1128_v59 }
 0x1e2   : > { %3309 = vmatmul.msk.bf16.gmra.mxu3 %vm753_vm3, %v3709_v10 }
 0x1e4   : > { %v1822_v41 = vpop.f32.mrf.mxu0 }
 0x1e5   : > { %v1638_v36 = vpop.f32.mrf.mxu3  ;;  %v1915_v57 = vpop.f32.mrf.mxu1 }
 0x1e6   : > { %v1673_v50 = vadd.f32 %v1638_v36, %v1511_v14  ;;  %v1995_v34 = vadd.f32 %v1915_v57, %v4203_v22 }
 0x1e7   : > { %3350 = vmatmul.msk.bf16.gmra.mxu0 %vm753_vm3, %v4205_v3 }
 0x1e8   : > { %v1478_v37 = vpop.f32.mrf.mxu2  ;;  %3226 = vmatmul.msk.bf16.gmra.mxu1 %vm753_vm3, %v4205_v3  ;;  %v4521_v62 = vadd.f32 %v1822_v41, %v1673_v50  ;;  %v4914_v50 = vld [vmem:[#allocation17_spill] sm:$0xff] }
 0x1e9   : > { %v1512_v26 = vadd.f32 %v1478_v37, %v1130_v13 }
 0x1ec   : > { %v1824_v4 = vpop.f32.mrf.mxu0 }
 0x1ed   : > { %v1640_v49 = vpop.f32.mrf.mxu3  ;;  %3270 = vmatmul.msk.bf16.gmra.mxu2 %vm753_vm3, %v4212_v16  ;;  %v1917_v10 = vpop.f32.mrf.mxu1 }
 0x1ee   : > { %v1674_v23 = vadd.f32 %v1640_v49, %v1512_v26  ;;  %v1996_v33 = vadd.f32 %v1917_v10, %v4216_v17 }
 0x1f0   : > { %v2077_v30 = vpop.f32.mrf.mxu2  ;;  %v4526_v52 = vadd.f32 %v1824_v4, %v1674_v23 }
 0x1f1   : > { %v2157_v3 = vadd.f32 %v2077_v30, %v1995_v34  ;;  %v4915_v34 = vld [vmem:[#allocation9_spill] sm:$0xff] }
 0x1f2   : > { %3310 = vmatmul.msk.bf16.gmra.mxu3 %vm753_vm3, %v3803_v29 }
 0x1f4   : > { %v2429_v48 = vpop.f32.mrf.mxu0 }
 0x1f5   : > { %v2261_v60 = vpop.f32.mrf.mxu3  ;;  %v1920_v55 = vpop.f32.mrf.mxu1 }
 0x1f6   : > { %v2341_v46 = vadd.f32 %v2261_v60, %v2157_v3  ;;  %v1997_v59 = vadd.f32 %v1920_v55, %v4913_v44  ;;  %v4916_v3 = vld [vmem:[#allocation11_spill] sm:$0xff]  ;;  %v4918_v44 = vld [vmem:[#allocation12_spill] sm:$0xff] }
 0x1f7   : > { %3351 = vmatmul.msk.bf16.gmra.mxu0 %vm753_vm3, %v4231_v2 }
 0x1f8   : > { %v2509_v16 = vadd.f32 %v2429_v48, %v2341_v46  ;;  %v2079_v24 = vpop.f32.mrf.mxu2  ;;  %3227 = vmatmul.msk.bf16.gmra.mxu1 %vm753_vm3, %v4231_v2 }
 0x1f9   : > { %v2158_v22 = vadd.f32 %v2079_v24, %v1996_v33 }
 0x1fa   : > { %v2541_v29 = vpack.c.bf16 %v2509_v16, %v2509_v16  ;;  %v2675_v2 = vmul.f32 %v2509_v16, %v2509_v16  ;;  %v2606_v14 = vsel %vm753_vm3, %v2509_v16, 0.0 }
 0x1fc   : > { %2574 = vst.msk [vmem:[%s4539_s29] sm:$0xf] %vm2573_vm7, %v2541_v29  ;;  %v2431_v53 = vpop.f32.mrf.mxu0 }
 0x1fd   : > { %v2263_v54 = vpop.f32.mrf.mxu3  ;;  %3271 = vmatmul.msk.bf16.gmra.mxu2 %vm753_vm3, %v4238_v20  ;;  %v1922_v17 = vpop.f32.mrf.mxu1  ;;  %v2707_v20 = vsel %vm753_vm3, %v2675_v2, 0.0 }
 0x1fe   : > { %v2342_v1 = vadd.f32 %v2263_v54, %v2158_v22  ;;  %v1998_v48 = vadd.f32 %v1922_v17, %v4916_v3 }
 0x200   : > { %v2510_v0 = vadd.f32 %v2431_v53, %v2342_v1  ;;  %v2082_v35 = vpop.f32.mrf.mxu2  ;;  %v4917_v1 = vld [vmem:[#allocation32_spill] sm:$0xff] }
 0x201   : > { %v2159_v31 = vadd.f32 %v2082_v35, %v1997_v59 }
 0x202   : > { %v2542_v41 = vpack.c.bf16 %v2510_v0, %v2510_v0  ;;  %v2607_v36 = vsel %vm753_vm3, %v2510_v0, 0.0  ;;  %v2676_v57 = vmul.f32 %v2510_v0, %v2510_v0  ;;  %3311 = vmatmul.msk.bf16.gmra.mxu3 %vm753_vm3, %v4914_v50 }
 0x203   : > { %v2608_v13 = vadd.f32 %v2607_v36, %v2606_v14 }
 0x204   : > { %2575 = vst.msk [vmem:[%s4539_s29 + $0x4] sm:$0xf] %vm2573_vm7, %v2542_v41  ;;  %v2708_v37 = vsel %vm753_vm3, %v2676_v57, 0.0  ;;  %v2434_v26 = vpop.f32.mrf.mxu0  ;;  %v4919_v57 = vld [vmem:[#allocation3_spill] sm:$0xff] }
 0x205   : > { %v2709_v4 = vadd.f32 %v2708_v37, %v2707_v20  ;;  %v2266_v49 = vpop.f32.mrf.mxu3  ;;  %v1925_v10 = vpop.f32.mrf.mxu1 }
 0x206   : > { %v2343_v23 = vadd.f32 %v2266_v49, %v2159_v31  ;;  %v1999_v59 = vadd.f32 %v1925_v10, %v4918_v44  ;;  %v4920_v10 = vld [vmem:[#allocation35_spill] sm:$0xff] }
 0x207   : > { %3352 = vmatmul.msk.bf16.gmra.mxu0 %vm753_vm3, %v4915_v34 }
 0x208   : > { %v2511_v30 = vadd.f32 %v2434_v26, %v2343_v23  ;;  %v2084_v60 = vpop.f32.mrf.mxu2  ;;  %3228 = vmatmul.msk.bf16.gmra.mxu1 %vm753_vm3, %v4915_v34  ;;  %v4921_v34 = vld [vmem:[#allocation33_spill] sm:$0xff] }
 0x209   : > { %v2160_v33 = vadd.f32 %v2084_v60, %v1998_v48 }
 0x20a   : > { %v2543_v55 = vpack.c.bf16 %v2511_v30, %v2511_v30  ;;  %v2609_v46 = vsel %vm753_vm3, %v2511_v30, 0.0  ;;  %v2677_v16 = vmul.f32 %v2511_v30, %v2511_v30 }
 0x20b   : > { %v2610_v24 = vadd.f32 %v2609_v46, %v2608_v13 }
 0x20c   : > { %2576 = vst.msk [vmem:[%s4539_s29 + $0x8] sm:$0xf] %vm2573_vm7, %v2543_v55  ;;  %v2710_v29 = vsel %vm753_vm3, %v2677_v16, 0.0  ;;  %v2436_v22 = vpop.f32.mrf.mxu0 }
 0x20d   : > { %v2711_v53 = vadd.f32 %v2710_v29, %v2709_v4  ;;  %v2268_v54 = vpop.f32.mrf.mxu3  ;;  %3272 = vmatmul.msk.bf16.gmra.mxu2 %vm753_vm3, %v4917_v1  ;;  %v1927_v17 = vpop.f32.mrf.mxu1 }
 0x20e   : > { %v2344_v2 = vadd.f32 %v2268_v54, %v2160_v33  ;;  %v2000_v30 = vadd.f32 %v1927_v17, %v4921_v34 }
 0x210   : > { %v2512_v0 = vadd.f32 %v2436_v22, %v2344_v2  ;;  %v2087_v35 = vpop.f32.mrf.mxu2  ;;  %v4923_v2 = vld [vmem:[#allocation34_spill] sm:$0xff] }
 0x211   : > { %v2161_v50 = vadd.f32 %v2087_v35, %v1999_v59 }
 0x212   : > { %v2544_v14 = vpack.c.bf16 %v2512_v0, %v2512_v0  ;;  %v2611_v41 = vsel %vm753_vm3, %v2512_v0, 0.0  ;;  %v2678_v36 = vmul.f32 %v2512_v0, %v2512_v0  ;;  %3312 = vmatmul.msk.bf16.gmra.mxu3 %vm753_vm3, %v4919_v57 }
 0x213   : > { %v2612_v31 = vadd.f32 %v2611_v41, %v2610_v24  ;;  %v4924_v41 = vld [vmem:[#allocation4_spill] sm:$0xff] }
 0x214   : > { %2577 = vst.msk [vmem:[%s4539_s29 + $0xc] sm:$0xf] %vm2573_vm7, %v2544_v14  ;;  %v2712_v13 = vsel %vm753_vm3, %v2678_v36, 0.0  ;;  %v2439_v20 = vpop.f32.mrf.mxu0 }
 0x215   : > { %v2713_v37 = vadd.f32 %v2712_v13, %v2711_v53  ;;  %v2271_v26 = vpop.f32.mrf.mxu3  ;;  %v1930_v4 = vpop.f32.mrf.mxu1  ;;  %v4922_v53 = vld [vmem:[#allocation36_spill] sm:$0xff] }
 0x216   : > { %v2345_v49 = vadd.f32 %v2271_v26, %v2161_v50  ;;  %v2001_v0 = vadd.f32 %v1930_v4, %v4923_v2  ;;  %v4925_v4 = vld [vmem:[#allocation39_spill] sm:$0xff] }
 0x217   : > { %3353 = vmatmul.msk.bf16.gmra.mxu0 %vm753_vm3, %v4920_v10 }
 0x218   : > { %v2513_v23 = vadd.f32 %v2439_v20, %v2345_v49  ;;  %v2089_v3 = vpop.f32.mrf.mxu2  ;;  %3229 = vmatmul.msk.bf16.gmra.mxu1 %vm753_vm3, %v4920_v10  ;;  %v4926_v10 = vld [vmem:[#allocation37_spill] sm:$0xff] }
 0x219   : > { %v2162_v46 = vadd.f32 %v2089_v3, %v2000_v30 }
 0x21a   : > { %v2545_v48 = vpack.c.bf16 %v2513_v23, %v2513_v23  ;;  %v2613_v60 = vsel %vm753_vm3, %v2513_v23, 0.0  ;;  %v2679_v55 = vmul.f32 %v2513_v23, %v2513_v23 }
 0x21b   : > { %v2614_v16 = vadd.f32 %v2613_v60, %v2612_v31 }
 0x21c   : > { %2578 = vst.msk [vmem:[%s4539_s29 + $0x10] sm:$0xf] %vm2573_vm7, %v2545_v48  ;;  %v2714_v33 = vsel %vm753_vm3, %v2679_v55, 0.0  ;;  %v2441_v24 = vpop.f32.mrf.mxu0 }
 0x21d   : > { %v2715_v29 = vadd.f32 %v2714_v33, %v2713_v37  ;;  %v2273_v22 = vpop.f32.mrf.mxu3  ;;  %3273 = vmatmul.msk.bf16.gmra.mxu2 %vm753_vm3, %v4922_v53  ;;  %v1932_v54 = vpop.f32.mrf.mxu1 }
 0x21e   : > { %v2346_v1 = vadd.f32 %v2273_v22, %v2162_v46  ;;  %v2002_v23 = vadd.f32 %v1932_v54, %v4926_v10 }
 0x220   : > { %v2514_v17 = vadd.f32 %v2441_v24, %v2346_v1  ;;  %v2092_v44 = vpop.f32.mrf.mxu2  ;;  %v4928_v1 = vld [vmem:[#allocation38_spill] sm:$0xff] }
 0x221   : > { %v2163_v36 = vadd.f32 %v2092_v44, %v2001_v0 }
 0x222   : > { %v2546_v59 = vpack.c.bf16 %v2514_v17, %v2514_v17  ;;  %v2615_v35 = vsel %vm753_vm3, %v2514_v17, 0.0  ;;  %v2680_v14 = vmul.f32 %v2514_v17, %v2514_v17  ;;  %3313 = vmatmul.msk.bf16.gmra.mxu3 %vm753_vm3, %v4924_v41 }
 0x223   : > { %v2616_v57 = vadd.f32 %v2615_v35, %v2614_v16  ;;  %v4929_v35 = vld [vmem:[#allocation10_spill] sm:$0xff] }
 0x224   : > { %2579 = vst.msk [vmem:[%s4539_s29 + $0x14] sm:$0xf] %vm2573_vm7, %v2546_v59  ;;  %v2716_v50 = vsel %vm753_vm3, %v2680_v14, 0.0  ;;  %v2444_v31 = vpop.f32.mrf.mxu0 }
 0x225   : > { %v2717_v13 = vadd.f32 %v2716_v50, %v2715_v29  ;;  %v2276_v20 = vpop.f32.mrf.mxu3  ;;  %v1935_v37 = vpop.f32.mrf.mxu1  ;;  %v4927_v29 = vld [vmem:[#allocation6_spill] sm:$0xff] }
 0x226   : > { %v2347_v26 = vadd.f32 %v2276_v20, %v2163_v36  ;;  %v2003_v17 = vadd.f32 %v1935_v37, %v4928_v1  ;;  %v4930_v37 = vld [vmem:[#allocation41_spill] sm:$0xff]  ;;  %v4621_v1 = vld [vmem:[%s3539_s25 + $0xcc] sm:$0xf] }
 0x227   : > { %3354 = vmatmul.msk.bf16.gmra.mxu0 %vm753_vm3, %v4925_v4 }
 0x228   : > { %v2515_v49 = vadd.f32 %v2444_v31, %v2347_v26  ;;  %v2094_v34 = vpop.f32.mrf.mxu2  ;;  %3230 = vmatmul.msk.bf16.gmra.mxu1 %vm753_vm3, %v4925_v4  ;;  %v4931_v4 = vld [vmem:[#allocation7_spill] sm:$0xff] }
 0x229   : > { %v2164_v60 = vadd.f32 %v2094_v34, %v2002_v23 }
 0x22a   : > { %v2547_v30 = vpack.c.bf16 %v2515_v49, %v2515_v49  ;;  %v2617_v3 = vsel %vm753_vm3, %v2515_v49, 0.0  ;;  %v2681_v48 = vmul.f32 %v2515_v49, %v2515_v49 }
 0x22b   : > { %v2618_v55 = vadd.f32 %v2617_v3, %v2616_v57 }
 0x22c   : > { %2580 = vst.msk [vmem:[%s4539_s29 + $0x18] sm:$0xf] %vm2573_vm7, %v2547_v30  ;;  %v2718_v46 = vsel %vm753_vm3, %v2681_v48, 0.0  ;;  %v2446_v16 = vpop.f32.mrf.mxu0 }
 0x22d   : > { %v2719_v33 = vadd.f32 %v2718_v46, %v2717_v13  ;;  %v2278_v24 = vpop.f32.mrf.mxu3  ;;  %3274 = vmatmul.msk.bf16.gmra.mxu2 %vm753_vm3, %v4927_v29  ;;  %v1937_v22 = vpop.f32.mrf.mxu1 }
 0x22e   : > { %v2348_v53 = vadd.f32 %v2278_v24, %v2164_v60  ;;  %v2004_v49 = vadd.f32 %v1937_v22, %v4931_v4  ;;  %v4932_v22 = vld [vmem:[#allocation40_spill] sm:$0xff]  ;;  %v4934_v4 = vld [vmem:[#allocation5_spill] sm:$0xff] }
 0x230   : > { %v2516_v54 = vadd.f32 %v2446_v16, %v2348_v53  ;;  %v2097_v2 = vpop.f32.mrf.mxu2 }
 0x231   : > { %v2165_v14 = vadd.f32 %v2097_v2, %v2003_v17 }
 0x232   : > { %v2548_v0 = vpack.c.bf16 %v2516_v54, %v2516_v54  ;;  %v2619_v44 = vsel %vm753_vm3, %v2516_v54, 0.0  ;;  %v2682_v59 = vmul.f32 %v2516_v54, %v2516_v54  ;;  %3314 = vmatmul.msk.bf16.gmra.mxu3 %vm753_vm3, %v4929_v35 }
 0x233   : > { %v2620_v41 = vadd.f32 %v2619_v44, %v2618_v55 }
 0x234   : > { %2581 = vst.msk [vmem:[%s4539_s29 + $0x1c] sm:$0xf] %vm2573_vm7, %v2548_v0  ;;  %v2720_v36 = vsel %vm753_vm3, %v2682_v59, 0.0  ;;  %v2449_v57 = vpop.f32.mrf.mxu0  ;;  %v4627_v59 = vld [vmem:[%s3539_s25 + $0xd0] sm:$0xf] }
 0x235   : > { %v2721_v50 = vadd.f32 %v2720_v36, %v2719_v33  ;;  %v2281_v31 = vpop.f32.mrf.mxu3  ;;  %v1940_v13 = vpop.f32.mrf.mxu1 }
 0x236   : > { %v2349_v20 = vadd.f32 %v2281_v31, %v2165_v14  ;;  %v2005_v53 = vadd.f32 %v1940_v13, %v4932_v22 }
 0x237   : > { %3355 = vmatmul.msk.bf16.gmra.mxu0 %vm753_vm3, %v4930_v37 }
 0x238   : > { %v2517_v26 = vadd.f32 %v2449_v57, %v2349_v20  ;;  %v2099_v10 = vpop.f32.mrf.mxu2  ;;  %3231 = vmatmul.msk.bf16.gmra.mxu1 %vm753_vm3, %v4930_v37  ;;  %v2190_v57 = vshrl.u32 %v4621_v1, 16  ;;  %v2193_v20 = vshll.u32 %v4621_v1, 16  ;;  %v2203_v37 = vshrl.u32 %v4627_v59, 16 }
 0x239   : > { %v2166_v3 = vadd.f32 %v2099_v10, %v2004_v49  ;;  %v3193_v49 = vrot.slane %v4934_v4, 9 }
 0x23a   : > { %v2549_v23 = vpack.c.bf16 %v2517_v26, %v2517_v26  ;;  %v2621_v34 = vsel %vm753_vm3, %v2517_v26, 0.0  ;;  %v2683_v30 = vmul.f32 %v2517_v26, %v2517_v26 }
 0x23b   : > { %v2622_v48 = vadd.f32 %v2621_v34, %v2620_v41  ;;  %v4933_v41 = vld [vmem:[#allocation42_spill] sm:$0xff] }
 0x23c   : > { %2582 = vst.msk [vmem:[%s4539_s29 + $0x20] sm:$0xf] %vm2573_vm7, %v2549_v23  ;;  %v2722_v60 = vsel %vm753_vm3, %v2683_v30, 0.0  ;;  %v2451_v55 = vpop.f32.mrf.mxu0  ;;  %v1862_v36 = vrot.slane %v4933_v41, 5 }
 0x23d   : > { %v2723_v46 = vadd.f32 %v2722_v60, %v2721_v50  ;;  %v2283_v16 = vpop.f32.mrf.mxu3  ;;  %3275 = vmatmul.msk.bf16.gmra.mxu2 %vm753_vm3, %v4363_v47  ;;  %v1942_v33 = vpop.f32.mrf.mxu1  ;;  %v2195_v60 = vrot.slane %v2193_v20, 5 }
 0x23e   : > { %v2350_v24 = vadd.f32 %v2283_v16, %v2166_v3  ;;  %v2006_v23 = vadd.f32 %v1942_v33, %v4367_v27  ;;  %v1864_v30 = vrot.slane %v1862_v36, 4  ;;  %v1865_v3 = vrot.slane %v4370_v28, 5 }
 0x240   : > { %v2518_v29 = vadd.f32 %v2451_v55, %v2350_v24  ;;  %v2102_v54 = vpop.f32.mrf.mxu2  ;;  %v1866_v28 = vsel %vm3915_vm6, %v1864_v30, %v1865_v3 }
 0x241   : > { %v2167_v44 = vadd.f32 %v2102_v54, %v2005_v53  ;;  %v276_v53 = vld [vmem:[%s3539_s25 + $0xd4] sm:$0x1] }
 0x242   : > { %v2550_v17 = vpack.c.bf16 %v2518_v29, %v2518_v29  ;;  %v2623_v2 = vsel %vm753_vm3, %v2518_v29, 0.0  ;;  %v2684_v0 = vmul.f32 %v2518_v29, %v2518_v29  ;;  %3315 = vmatmul.msk.bf16.gmra.mxu3 %vm753_vm3, %v3924_v12  ;;  %v2199_v12 = vshll.u32 %v4627_v59, 16 }
 0x243   : > { %v2624_v35 = vadd.f32 %v2623_v2, %v2622_v48  ;;  %v2192_v48 = vrot.slane %v2190_v57, 4  ;;  %v1877_v57 = vunpack.c.l.b16 %v1866_v28 }
 0x244   : > { %2583 = vst.msk [vmem:[%s4539_s29 + $0x24] sm:$0xf] %vm2573_vm7, %v2550_v17  ;;  %v2724_v47 = vsel %vm753_vm3, %v2684_v0, 0.0  ;;  %v2454_v14 = vpop.f32.mrf.mxu0  ;;  %v2201_v55 = vrot.slane %v2199_v12, 5 }
 0x245   : > { %v2725_v50 = vadd.f32 %v2724_v47, %v2723_v46  ;;  %v2286_v31 = vpop.f32.mrf.mxu3  ;;  %v1945_v13 = vpop.f32.mrf.mxu1  ;;  %v2205_v46 = vrot.slane %v2203_v37, 4 }
 0x246   : > { %v2351_v26 = vadd.f32 %v2286_v31, %v2167_v44  ;;  %v2196_v44 = vor.u32 %v2195_v60, %v2192_v48  ;;  %v2007_v20 = vadd.f32 %v1945_v13, %v4384_v56  ;;  %v2376_v56 = vrot.slane %v4627_v59, 5 }
 0x247   : > { %3356 = vmatmul.msk.bf16.gmra.mxu0 %vm753_vm3, %v4386_v19  ;;  %v2206_v47 = vor.u32 %v2205_v46, %v2201_v55 }
 0x248   : > { %v2519_v10 = vadd.f32 %v2454_v14, %v2351_v26  ;;  %v2104_v34 = vpop.f32.mrf.mxu2  ;;  %3232 = vmatmul.msk.bf16.gmra.mxu1 %vm753_vm3, %v4386_v19  ;;  %v1863_v19 = vsel %vm3915_vm6, %v3193_v49, %v1862_v36  ;;  %v2197_v12 = vrot.slane %v2196_v44, 4  ;;  %v2378_v59 = vrot.slane %v2376_v56, 4 }
 0x249   : > { %v2168_v22 = vadd.f32 %v2104_v34, %v2006_v23  ;;  %v1876_v41 = vunpack.c.l.b16 %v1863_v19  ;;  %v2207_v37 = vrot.slane %v2206_v47, 4 }
 0x24a   : > { %v2551_v16 = vpack.c.bf16 %v2519_v10, %v2519_v10  ;;  %v2625_v24 = vsel %vm753_vm3, %v2519_v10, 0.0  ;;  %v2685_v29 = vmul.f32 %v2519_v10, %v2519_v10  ;;  %v2202_v46 = vsel %vm3571_vm2, %v2197_v12, %v2201_v55 }
 0x24b   : > { %v2626_v54 = vadd.f32 %v2625_v24, %v2624_v35  ;;  %v2209_v35 = vshll.u32 %v276_v53, 16  ;;  %v1878_v23 = vpack.c.b16 %v1877_v57, %v1876_v41 }
 0x24c   : > { %2584 = vst.msk [vmem:[%s4539_s29 + $0x28] sm:$0xf] %vm2573_vm7, %v2551_v16  ;;  %v2726_v27 = vsel %vm753_vm3, %v2685_v29, 0.0  ;;  %v2456_v33 = vpop.f32.mrf.mxu0  ;;  %v3318_v16 = vrot.slane %v4621_v1, 9 }
 0x24d   : > { %v2727_v17 = vadd.f32 %v2726_v27, %v2725_v50  ;;  %v2288_v2 = vpop.f32.mrf.mxu3  ;;  %3276 = vmatmul.msk.bf16.gmra.mxu2 %vm753_vm3, %v4395_v42  ;;  %v1947_v0 = vpop.f32.mrf.mxu1  ;;  %v2211_v26 = vrot.slane %v2209_v35, 5  ;;  %v3379_v27 = vld [vmem:[%s3539_s25 + $0xcc] sm:$0xff]  ;;  %s2916_s25 = sshll.u32 %s4940_s12, 1 }
 0x24e   : > { %v2352_v14 = vadd.f32 %v2288_v2, %v2168_v22  ;;  %v2008_v29 = vadd.f32 %v1947_v0, %v4398_v51  ;;  %v2377_v51 = vsel %vm3915_vm6, %v3318_v16, %v2376_v56  ;;  %s221_s5 = scalar_lea.vmem %s4793_s3, %s2916_s25 }
 0x24f   : > { %v2390_v57 = vunpack.c.l.b16 %v2377_v51 }
 0x250   : > { %v2520_v31 = vadd.f32 %v2456_v33, %v2352_v14  ;;  %v2107_v36 = vpop.f32.mrf.mxu2  ;;  %v2222_v33 = vunpack.c.l.b16 %v2202_v46 }
 0x251   : > { %v2169_v42 = vadd.f32 %v2107_v36, %v2007_v20 }
 0x252   : > { %v2552_v50 = vpack.c.bf16 %v2520_v31, %v2520_v31  ;;  %v2627_v4 = vsel %vm753_vm3, %v2520_v31, 0.0  ;;  %v2686_v49 = vmul.f32 %v2520_v31, %v2520_v31  ;;  %3316 = vmatmul.msk.bf16.gmra.mxu3 %vm753_vm3, %v4402_v21  ;;  %v2212_v21 = vsel %vm3571_vm2, %v2207_v37, %v2211_v26 }
 0x253   : > { %v2628_v10 = vadd.f32 %v2627_v4, %v2626_v54  ;;  %v2379_v54 = vrot.slane %v276_v53, 5  ;;  %v2223_v19 = vunpack.c.l.b16 %v2212_v21 }
 0x254   : > { %2585 = vst.msk [vmem:[%s4539_s29 + $0x2c] sm:$0xf] %vm2573_vm7, %v2552_v50  ;;  %v2728_v34 = vsel %vm753_vm3, %v2686_v49, 0.0  ;;  %v2459_v30 = vpop.f32.mrf.mxu0 }
 0x255   : > { %v2729_v13 = vadd.f32 %v2728_v34, %v2727_v17  ;;  %v2291_v3 = vpop.f32.mrf.mxu3  ;;  %v1950_v48 = vpop.f32.mrf.mxu1  ;;  %v2380_v53 = vsel %vm3915_vm6, %v2378_v59, %v2379_v54  ;;  %v2224_v41 = vpack.c.b16 %v2223_v19, %v2222_v33 }
 0x256   : > { %v2353_v60 = vadd.f32 %v2291_v3, %v2169_v42  ;;  %v2391_v31 = vunpack.c.l.b16 %v2380_v53  ;;  %v2009_v36 = vadd.f32 %v1950_v48, %v4409_v8 }
 0x257   : > { %3357 = vmatmul.msk.bf16.gmra.mxu0 %vm753_vm3, %v1878_v23 }
 0x258   : > { %v2521_v24 = vadd.f32 %v2459_v30, %v2353_v60  ;;  %v2109_v22 = vpop.f32.mrf.mxu2  ;;  %3233 = vmatmul.msk.bf16.gmra.mxu1 %vm753_vm3, %v1878_v23  ;;  %v2392_v49 = vpack.c.b16 %v2391_v31, %v2390_v57 }
 0x259   : > { %v2170_v17 = vadd.f32 %v2109_v22, %v2008_v29 }
 0x25a   : > { %v2553_v55 = vpack.c.bf16 %v2521_v24, %v2521_v24  ;;  %v2629_v32 = vsel %vm753_vm3, %v2521_v24, 0.0  ;;  %v2687_v28 = vmul.f32 %v2521_v24, %v2521_v24 }
 0x25b   : > { %v2630_v2 = vadd.f32 %v2629_v32, %v2628_v10 }
 0x25c   : > { %2586 = vst.msk [vmem:[%s4539_s29 + $0x30] sm:$0xf] %vm2573_vm7, %v2553_v55  ;;  %v2730_v1 = vsel %vm753_vm3, %v2687_v28, 0.0  ;;  %v2461_v44 = vpop.f32.mrf.mxu0 }
 0x25d   : > { %v2731_v0 = vadd.f32 %v2730_v1, %v2729_v13  ;;  %v2293_v47 = vpop.f32.mrf.mxu3  ;;  %3277 = vmatmul.msk.bf16.gmra.mxu2 %vm753_vm3, %v3379_v27  ;;  %v1952_v35 = vpop.f32.mrf.mxu1 }
 0x25e   : > { %v2354_v14 = vadd.f32 %v2293_v47, %v2170_v17  ;;  %v2010_v13 = vadd.f32 %v1952_v35, %v4414_v15 }
 0x260   : > { %v2522_v20 = vadd.f32 %v2461_v44, %v2354_v14  ;;  %v2112_v12 = vpop.f32.mrf.mxu2 }
 0x261   : > { %v2171_v7 = vadd.f32 %v2112_v12, %v2009_v36 }
 0x262   : > { %v2554_v37 = vpack.c.bf16 %v2522_v20, %v2522_v20  ;;  %v2631_v26 = vsel %vm753_vm3, %v2522_v20, 0.0  ;;  %v2688_v50 = vmul.f32 %v2522_v20, %v2522_v20  ;;  %3317 = vmatmul.msk.bf16.gmra.mxu3 %vm753_vm3, %v2224_v41 }
 0x263   : > { %v2632_v4 = vadd.f32 %v2631_v26, %v2630_v2 }
 0x264   : > { %2587 = vst.msk [vmem:[%s4539_s29 + $0x34] sm:$0xf] %vm2573_vm7, %v2554_v37  ;;  %v2732_v42 = vsel %vm753_vm3, %v2688_v50, 0.0  ;;  %v2464_v10 = vpop.f32.mrf.mxu0 }
 0x265   : > { %v2733_v23 = vadd.f32 %v2732_v42, %v2731_v0  ;;  %v2296_v34 = vpop.f32.mrf.mxu3  ;;  %v1955_v30 = vpop.f32.mrf.mxu1 }
 0x266   : > { %v2355_v8 = vadd.f32 %v2296_v34, %v2171_v7  ;;  %v2011_v15 = vadd.f32 %v1955_v30, %v4423_v43 }
 0x267   : > { %3358 = vmatmul.msk.bf16.gmra.mxu0 %vm753_vm3, %v2392_v49 }
 0x268   : > { %v2523_v56 = vadd.f32 %v2464_v10, %v2355_v8  ;;  %v2114_v3 = vpop.f32.mrf.mxu2 }
 0x269   : > { %v2172_v21 = vadd.f32 %v2114_v3, %v2010_v13 }
 0x26a   : > { %v2555_v48 = vpack.c.bf16 %v2523_v56, %v2523_v56  ;;  %v2633_v60 = vsel %vm753_vm3, %v2523_v56, 0.0  ;;  %v2689_v46 = vmul.f32 %v2523_v56, %v2523_v56 }
 0x26b   : > { %v2634_v16 = vadd.f32 %v2633_v60, %v2632_v4 }
 0x26c   : > { %2588 = vst.msk [vmem:[%s4539_s29 + $0x38] sm:$0xf] %vm2573_vm7, %v2555_v48  ;;  %v2734_v24 = vsel %vm753_vm3, %v2689_v46, 0.0  ;;  %v2466_v29 = vpop.f32.mrf.mxu0 }
 0x26d   : > { %v2735_v22 = vadd.f32 %v2734_v24, %v2733_v23  ;;  %v2298_v59 = vpop.f32.mrf.mxu3  ;;  %v1957_v54 = vpop.f32.mrf.mxu1 }
 0x26e   : > { %v2356_v27 = vadd.f32 %v2298_v59, %v2172_v21  ;;  %v2012_v43 = vadd.f32 %v1957_v54, %v4428_v11 }
 0x270   : > { %v2524_v33 = vadd.f32 %v2466_v29, %v2356_v27  ;;  %v2117_v19 = vpop.f32.mrf.mxu2 }
 0x271   : > { %v2173_v17 = vadd.f32 %v2117_v19, %v2011_v15 }
 0x272   : > { %v2556_v55 = vpack.c.bf16 %v2524_v33, %v2524_v33  ;;  %v2635_v32 = vsel %vm753_vm3, %v2524_v33, 0.0  ;;  %v2690_v28 = vmul.f32 %v2524_v33, %v2524_v33 }
 0x273   : > { %v2636_v2 = vadd.f32 %v2635_v32, %v2634_v16 }
 0x274   : > { %2589 = vst.msk [vmem:[%s4539_s29 + $0x3c] sm:$0xf] %vm2573_vm7, %v2556_v55  ;;  %v2736_v1 = vsel %vm753_vm3, %v2690_v28, 0.0  ;;  %v2469_v44 = vpop.f32.mrf.mxu0 }
 0x275   : > { %v2737_v51 = vadd.f32 %v2736_v1, %v2735_v22  ;;  %v2301_v53 = vpop.f32.mrf.mxu3  ;;  %v1960_v0 = vpop.f32.mrf.mxu1 }
 0x276   : > { %v2357_v47 = vadd.f32 %v2301_v53, %v2173_v17  ;;  %v2013_v11 = vadd.f32 %v1960_v0, %v4437_v58 }
 0x278   : > { %v2525_v35 = vadd.f32 %v2469_v44, %v2357_v47  ;;  %v2119_v14 = vpop.f32.mrf.mxu2 }
 0x279   : > { %v2174_v20 = vadd.f32 %v2119_v14, %v2012_v43 }
 0x27a   : > { %v2557_v41 = vpack.c.bf16 %v2525_v35, %v2525_v35  ;;  %v2637_v57 = vsel %vm753_vm3, %v2525_v35, 0.0  ;;  %v2691_v31 = vmul.f32 %v2525_v35, %v2525_v35 }
 0x27b   : > { %v2638_v36 = vadd.f32 %v2637_v57, %v2636_v2 }
 0x27c   : > { %2590 = vst.msk [vmem:[%s4539_s29 + $0x40] sm:$0xf] %vm2573_vm7, %v2557_v41  ;;  %v2738_v12 = vsel %vm753_vm3, %v2691_v31, 0.0  ;;  %v2471_v37 = vpop.f32.mrf.mxu0 }
 0x27d   : > { %v2739_v26 = vadd.f32 %v2738_v12, %v2737_v51  ;;  %v2303_v50 = vpop.f32.mrf.mxu3  ;;  %v1962_v7 = vpop.f32.mrf.mxu1 }
 0x27e   : > { %v2358_v4 = vadd.f32 %v2303_v50, %v2174_v20  ;;  %v2014_v58 = vadd.f32 %v1962_v7, %v4442_v25 }
 0x280   : > { %v2526_v49 = vadd.f32 %v2471_v37, %v2358_v4  ;;  %v2122_v42 = vpop.f32.mrf.mxu2 }
 0x281   : > { %v2175_v30 = vadd.f32 %v2122_v42, %v2013_v11 }
 0x282   : > { %v2558_v10 = vpack.c.bf16 %v2526_v49, %v2526_v49  ;;  %v2639_v23 = vsel %vm753_vm3, %v2526_v49, 0.0  ;;  %v2692_v34 = vmul.f32 %v2526_v49, %v2526_v49 }
 0x283   : > { %v2640_v8 = vadd.f32 %v2639_v23, %v2638_v36 }
 0x284   : > { %2591 = vst.msk [vmem:[%s4539_s29 + $0x44] sm:$0xf] %vm2573_vm7, %v2558_v10  ;;  %v2740_v56 = vsel %vm753_vm3, %v2692_v34, 0.0  ;;  %v2474_v13 = vpop.f32.mrf.mxu0 }
 0x285   : > { %v2741_v3 = vadd.f32 %v2740_v56, %v2739_v26  ;;  %v2306_v48 = vpop.f32.mrf.mxu3  ;;  %v1965_v60 = vpop.f32.mrf.mxu1 }
 0x286   : > { %v2359_v46 = vadd.f32 %v2306_v48, %v2175_v30  ;;  %v2015_v25 = vadd.f32 %v1965_v60, %v4451_v18 }
 0x288   : > { %v2527_v21 = vadd.f32 %v2474_v13, %v2359_v46  ;;  %v2124_v16 = vpop.f32.mrf.mxu2 }
 0x289   : > { %v2176_v59 = vadd.f32 %v2124_v16, %v2014_v58 }
 0x28a   : > { %v2559_v24 = vpack.c.bf16 %v2527_v21, %v2527_v21  ;;  %v2641_v29 = vsel %vm753_vm3, %v2527_v21, 0.0  ;;  %v2693_v22 = vmul.f32 %v2527_v21, %v2527_v21 }
 0x28b   : > { %v2642_v54 = vadd.f32 %v2641_v29, %v2640_v8 }
 0x28c   : > { %2592 = vst.msk [vmem:[%s4539_s29 + $0x48] sm:$0xf] %vm2573_vm7, %v2559_v24  ;;  %v2742_v27 = vsel %vm753_vm3, %v2693_v22, 0.0  ;;  %v2476_v33 = vpop.f32.mrf.mxu0 }
 0x28d   : > { %v2743_v15 = vadd.f32 %v2742_v27, %v2741_v3  ;;  %v2308_v19 = vpop.f32.mrf.mxu3  ;;  %v1967_v55 = vpop.f32.mrf.mxu1 }
 0x28e   : > { %v2360_v32 = vadd.f32 %v2308_v19, %v2176_v59  ;;  %v2016_v18 = vadd.f32 %v1967_v55, %v4456_v39 }
 0x290   : > { %v2528_v28 = vadd.f32 %v2476_v33, %v2360_v32  ;;  %v2127_v17 = vpop.f32.mrf.mxu2 }
 0x291   : > { %v2177_v51 = vadd.f32 %v2127_v17, %v2015_v25 }
 0x292   : > { %v2560_v2 = vpack.c.bf16 %v2528_v28, %v2528_v28  ;;  %v2643_v1 = vsel %vm753_vm3, %v2528_v28, 0.0  ;;  %v2694_v44 = vmul.f32 %v2528_v28, %v2528_v28 }
 0x293   : > { %v2644_v53 = vadd.f32 %v2643_v1, %v2642_v54 }
 0x294   : > { %2593 = vst.msk [vmem:[%s4539_s29 + $0x4c] sm:$0xf] %vm2573_vm7, %v2560_v2  ;;  %v2744_v0 = vsel %vm753_vm3, %v2694_v44, 0.0  ;;  %v2479_v47 = vpop.f32.mrf.mxu0 }
 0x295   : > { %v2745_v35 = vadd.f32 %v2744_v0, %v2743_v15  ;;  %v2311_v43 = vpop.f32.mrf.mxu3  ;;  %v1970_v14 = vpop.f32.mrf.mxu1 }
 0x296   : > { %v2361_v41 = vadd.f32 %v2311_v43, %v2177_v51  ;;  %v2017_v39 = vadd.f32 %v1970_v14, %v4465_v45 }
 0x298   : > { %v2529_v57 = vadd.f32 %v2479_v47, %v2361_v41  ;;  %v2129_v31 = vpop.f32.mrf.mxu2 }
 0x299   : > { %v2178_v37 = vadd.f32 %v2129_v31, %v2016_v18 }
 0x29a   : > { %v2561_v20 = vpack.c.bf16 %v2529_v57, %v2529_v57  ;;  %v2645_v36 = vsel %vm753_vm3, %v2529_v57, 0.0  ;;  %v2695_v12 = vmul.f32 %v2529_v57, %v2529_v57 }
 0x29b   : > { %v2646_v26 = vadd.f32 %v2645_v36, %v2644_v53 }
 0x29c   : > { %2594 = vst.msk [vmem:[%s4539_s29 + $0x50] sm:$0xf] %vm2573_vm7, %v2561_v20  ;;  %v2746_v50 = vsel %vm753_vm3, %v2695_v12, 0.0  ;;  %v2481_v7 = vpop.f32.mrf.mxu0 }
 0x29d   : > { %v2747_v4 = vadd.f32 %v2746_v50, %v2745_v35  ;;  %v2313_v49 = vpop.f32.mrf.mxu3  ;;  %v1972_v11 = vpop.f32.mrf.mxu1 }
 0x29e   : > { %v2362_v42 = vadd.f32 %v2313_v49, %v2178_v37  ;;  %v2018_v45 = vadd.f32 %v1972_v11, %v4470_v61 }
 0x2a0   : > { %v2530_v10 = vadd.f32 %v2481_v7, %v2362_v42  ;;  %v2132_v23 = vpop.f32.mrf.mxu2 }
 0x2a1   : > { %v2179_v56 = vadd.f32 %v2132_v23, %v2017_v39 }
 0x2a2   : > { %v2562_v34 = vpack.c.bf16 %v2530_v10, %v2530_v10  ;;  %v2647_v30 = vsel %vm753_vm3, %v2530_v10, 0.0  ;;  %v2696_v8 = vmul.f32 %v2530_v10, %v2530_v10 }
 0x2a3   : > { %v2648_v13 = vadd.f32 %v2647_v30, %v2646_v26 }
 0x2a4   : > { %2595 = vst.msk [vmem:[%s4539_s29 + $0x54] sm:$0xf] %vm2573_vm7, %v2562_v34  ;;  %v2748_v3 = vsel %vm753_vm3, %v2696_v8, 0.0  ;;  %v2484_v48 = vpop.f32.mrf.mxu0 }
 0x2a5   : > { %v2749_v60 = vadd.f32 %v2748_v3, %v2747_v4  ;;  %v2316_v46 = vpop.f32.mrf.mxu3  ;;  %v1975_v21 = vpop.f32.mrf.mxu1 }
 0x2a6   : > { %v2363_v58 = vadd.f32 %v2316_v46, %v2179_v56  ;;  %v2019_v61 = vadd.f32 %v1975_v21, %v4479_v6 }
 0x2a8   : > { %v2531_v16 = vadd.f32 %v2484_v48, %v2363_v58  ;;  %v2134_v24 = vpop.f32.mrf.mxu2 }
 0x2a9   : > { %v2180_v54 = vadd.f32 %v2134_v24, %v2018_v45 }
 0x2aa   : > { %v2563_v29 = vpack.c.bf16 %v2531_v16, %v2531_v16  ;;  %v2649_v22 = vsel %vm753_vm3, %v2531_v16, 0.0  ;;  %v2697_v59 = vmul.f32 %v2531_v16, %v2531_v16 }
 0x2ab   : > { %v2650_v27 = vadd.f32 %v2649_v22, %v2648_v13 }
 0x2ac   : > { %2596 = vst.msk [vmem:[%s4539_s29 + $0x58] sm:$0xf] %vm2573_vm7, %v2563_v29  ;;  %v2750_v33 = vsel %vm753_vm3, %v2697_v59, 0.0  ;;  %v2486_v15 = vpop.f32.mrf.mxu0 }
 0x2ad   : > { %v2751_v19 = vadd.f32 %v2750_v33, %v2749_v60  ;;  %v2318_v55 = vpop.f32.mrf.mxu3  ;;  %v1977_v32 = vpop.f32.mrf.mxu1 }
 0x2ae   : > { %v2364_v28 = vadd.f32 %v2318_v55, %v2180_v54  ;;  %v2020_v6 = vadd.f32 %v1977_v32, %v4484_v5 }
 0x2b0   : > { %v2532_v25 = vadd.f32 %v2486_v15, %v2364_v28  ;;  %v2137_v17 = vpop.f32.mrf.mxu2 }
 0x2b1   : > { %v2181_v51 = vadd.f32 %v2137_v17, %v2019_v61 }
 0x2b2   : > { %v2564_v2 = vpack.c.bf16 %v2532_v25, %v2532_v25  ;;  %v2651_v1 = vsel %vm753_vm3, %v2532_v25, 0.0  ;;  %v2698_v44 = vmul.f32 %v2532_v25, %v2532_v25 }
 0x2b3   : > { %v2652_v53 = vadd.f32 %v2651_v1, %v2650_v27 }
 0x2b4   : > { %2597 = vst.msk [vmem:[%s4539_s29 + $0x5c] sm:$0xf] %vm2573_vm7, %v2564_v2  ;;  %v2752_v0 = vsel %vm753_vm3, %v2698_v44, 0.0  ;;  %v2489_v47 = vpop.f32.mrf.mxu0 }
 0x2b5   : > { %v2753_v35 = vadd.f32 %v2752_v0, %v2751_v19  ;;  %v2321_v43 = vpop.f32.mrf.mxu3  ;;  %v1980_v14 = vpop.f32.mrf.mxu1 }
 0x2b6   : > { %v2365_v41 = vadd.f32 %v2321_v43, %v2181_v51  ;;  %v2021_v5 = vadd.f32 %v1980_v14, %v4493_v9 }
 0x2b8   : > { %v2533_v57 = vadd.f32 %v2489_v47, %v2365_v41  ;;  %v2139_v18 = vpop.f32.mrf.mxu2 }
 0x2b9   : > { %v2182_v12 = vadd.f32 %v2139_v18, %v2020_v6 }
 0x2ba   : > { %v2565_v31 = vpack.c.bf16 %v2533_v57, %v2533_v57  ;;  %v2653_v20 = vsel %vm753_vm3, %v2533_v57, 0.0  ;;  %v2699_v36 = vmul.f32 %v2533_v57, %v2533_v57 }
 0x2bb   : > { %v2654_v37 = vadd.f32 %v2653_v20, %v2652_v53 }
 0x2bc   : > { %2598 = vst.msk [vmem:[%s4539_s29 + $0x60] sm:$0xf] %vm2573_vm7, %v2565_v31  ;;  %v2754_v26 = vsel %vm753_vm3, %v2699_v36, 0.0  ;;  %v2491_v50 = vpop.f32.mrf.mxu0 }
 0x2bd   : > { %v2755_v7 = vadd.f32 %v2754_v26, %v2753_v35  ;;  %v2323_v4 = vpop.f32.mrf.mxu3  ;;  %v1982_v49 = vpop.f32.mrf.mxu1 }
 0x2be   : > { %v2366_v11 = vadd.f32 %v2323_v4, %v2182_v12  ;;  %v2022_v9 = vadd.f32 %v1982_v49, %v4498_v63 }
 0x2c0   : > { %v2534_v42 = vadd.f32 %v2491_v50, %v2366_v11  ;;  %v2142_v10 = vpop.f32.mrf.mxu2 }
 0x2c1   : > { %v2183_v30 = vadd.f32 %v2142_v10, %v2021_v5 }
 0x2c2   : > { %v2566_v39 = vpack.c.bf16 %v2534_v42, %v2534_v42  ;;  %v2655_v23 = vsel %vm753_vm3, %v2534_v42, 0.0  ;;  %v2700_v34 = vmul.f32 %v2534_v42, %v2534_v42 }
 0x2c3   : > { %v2656_v8 = vadd.f32 %v2655_v23, %v2654_v37 }
 0x2c4   : > { %2599 = vst.msk [vmem:[%s4539_s29 + $0x64] sm:$0xf] %vm2573_vm7, %v2566_v39  ;;  %v2756_v56 = vsel %vm753_vm3, %v2700_v34, 0.0  ;;  %v2494_v13 = vpop.f32.mrf.mxu0 }
 0x2c5   : > { %v2757_v3 = vadd.f32 %v2756_v56, %v2755_v7  ;;  %v2326_v48 = vpop.f32.mrf.mxu3  ;;  %v1985_v46 = vpop.f32.mrf.mxu1 }
 0x2c6   : > { %v2367_v60 = vadd.f32 %v2326_v48, %v2183_v30  ;;  %v2023_v55 = vadd.f32 %v1985_v46, %v4507_v40 }
 0x2c8   : > { %v2535_v21 = vadd.f32 %v2494_v13, %v2367_v60  ;;  %v2144_v58 = vpop.f32.mrf.mxu2 }
 0x2c9   : > { %v2184_v29 = vadd.f32 %v2144_v58, %v2022_v9 }
 0x2ca   : > { %v2567_v16 = vpack.c.bf16 %v2535_v21, %v2535_v21  ;;  %v2657_v45 = vsel %vm753_vm3, %v2535_v21, 0.0  ;;  %v2701_v24 = vmul.f32 %v2535_v21, %v2535_v21 }
 0x2cb   : > { %v2658_v22 = vadd.f32 %v2657_v45, %v2656_v8 }
 0x2cc   : > { %2600 = vst.msk [vmem:[%s4539_s29 + $0x68] sm:$0xf] %vm2573_vm7, %v2567_v16  ;;  %v2758_v59 = vsel %vm753_vm3, %v2701_v24, 0.0  ;;  %v2496_v54 = vpop.f32.mrf.mxu0 }
 0x2cd   : > { %v2759_v27 = vadd.f32 %v2758_v59, %v2757_v3  ;;  %v2328_v33 = vpop.f32.mrf.mxu3  ;;  %v1987_v32 = vpop.f32.mrf.mxu1 }
 0x2ce   : > { %v2368_v15 = vadd.f32 %v2328_v33, %v2184_v29  ;;  %v2024_v40 = vadd.f32 %v1987_v32, %v4512_v38 }
 0x2d0   : > { %v2536_v19 = vadd.f32 %v2496_v54, %v2368_v15  ;;  %v2147_v63 = vpop.f32.mrf.mxu2 }
 0x2d1   : > { %v2185_v17 = vadd.f32 %v2147_v63, %v2023_v55 }
 0x2d2   : > { %v2568_v28 = vpack.c.bf16 %v2536_v19, %v2536_v19  ;;  %v2659_v25 = vsel %vm753_vm3, %v2536_v19, 0.0  ;;  %v2702_v61 = vmul.f32 %v2536_v19, %v2536_v19 }
 0x2d3   : > { %v2660_v2 = vadd.f32 %v2659_v25, %v2658_v22 }
 0x2d4   : > { %2601 = vst.msk [vmem:[%s4539_s29 + $0x6c] sm:$0xf] %vm2573_vm7, %v2568_v28  ;;  %v2760_v1 = vsel %vm753_vm3, %v2702_v61, 0.0  ;;  %v2499_v44 = vpop.f32.mrf.mxu0 }
 0x2d5   : > { %v2761_v51 = vadd.f32 %v2760_v1, %v2759_v27  ;;  %v2331_v53 = vpop.f32.mrf.mxu3  ;;  %v1990_v6 = vpop.f32.mrf.mxu1 }
 0x2d6   : > { %v2369_v0 = vadd.f32 %v2331_v53, %v2185_v17  ;;  %v2025_v38 = vadd.f32 %v1990_v6, %v4521_v62 }
 0x2d8   : > { %v2537_v47 = vadd.f32 %v2499_v44, %v2369_v0  ;;  %v2149_v35 = vpop.f32.mrf.mxu2 }
 0x2d9   : > { %v2186_v57 = vadd.f32 %v2149_v35, %v2024_v40 }
 0x2da   : > { %v2569_v43 = vpack.c.bf16 %v2537_v47, %v2537_v47  ;;  %v2661_v14 = vsel %vm753_vm3, %v2537_v47, 0.0  ;;  %v2703_v41 = vmul.f32 %v2537_v47, %v2537_v47 }
 0x2db   : > { %v2662_v18 = vadd.f32 %v2661_v14, %v2660_v2 }
 0x2dc   : > { %2602 = vst.msk [vmem:[%s4539_s29 + $0x70] sm:$0xf] %vm2573_vm7, %v2569_v43  ;;  %v2762_v31 = vsel %vm753_vm3, %v2703_v41, 0.0  ;;  %v2501_v20 = vpop.f32.mrf.mxu0 }
 0x2dd   : > { %v2763_v36 = vadd.f32 %v2762_v31, %v2761_v51  ;;  %v2333_v12 = vpop.f32.mrf.mxu3  ;;  %v1992_v10 = vpop.f32.mrf.mxu1 }
 0x2de   : > { %v2370_v37 = vadd.f32 %v2333_v12, %v2186_v57  ;;  %v2026_v62 = vadd.f32 %v1992_v10, %v4526_v52 }
 0x2e0   : > { %v2538_v26 = vadd.f32 %v2501_v20, %v2370_v37  ;;  %v2152_v50 = vpop.f32.mrf.mxu2 }
 0x2e1   : > { %v2187_v11 = vadd.f32 %v2152_v50, %v2025_v38 }
 0x2e2   : > { %v2570_v7 = vpack.c.bf16 %v2538_v26, %v2538_v26  ;;  %v2663_v4 = vsel %vm753_vm3, %v2538_v26, 0.0  ;;  %v2704_v49 = vmul.f32 %v2538_v26, %v2538_v26 }
 0x2e3   : > { %v2664_v42 = vadd.f32 %v2663_v4, %v2662_v18 }
 0x2e4   : > { %2603 = vst.msk [vmem:[%s4539_s29 + $0x74] sm:$0xf] %vm2573_vm7, %v2570_v7  ;;  %v2764_v5 = vsel %vm753_vm3, %v2704_v49, 0.0  ;;  %v2504_v23 = vpop.f32.mrf.mxu0 }
 0x2e5   : > { %v2765_v39 = vadd.f32 %v2764_v5, %v2763_v36  ;;  %v2336_v34 = vpop.f32.mrf.mxu3 }
 0x2e6   : > { %v2371_v30 = vadd.f32 %v2336_v34, %v2187_v11 }
 0x2e8   : > { %v2539_v8 = vadd.f32 %v2504_v23, %v2371_v30  ;;  %v2154_v56 = vpop.f32.mrf.mxu2 }
 0x2e9   : > { %v2188_v60 = vadd.f32 %v2154_v56, %v2026_v62 }
 0x2ea   : > { %v2571_v13 = vpack.c.bf16 %v2539_v8, %v2539_v8  ;;  %v2665_v3 = vsel %vm753_vm3, %v2539_v8, 0.0  ;;  %v2705_v48 = vmul.f32 %v2539_v8, %v2539_v8 }
 0x2eb   : > { %v2666_v46 = vadd.f32 %v2665_v3, %v2664_v42 }
 0x2ec   : > { %2604 = vst.msk [vmem:[%s4539_s29 + $0x78] sm:$0xf] %vm2573_vm7, %v2571_v13  ;;  %v2766_v21 = vsel %vm753_vm3, %v2705_v48, 0.0  ;;  %v2506_v45 = vpop.f32.mrf.mxu0 }
 0x2ed   : > { %v2767_v9 = vadd.f32 %v2766_v21, %v2765_v39  ;;  %v2338_v58 = vpop.f32.mrf.mxu3 }
 0x2ee   : > { %v2372_v16 = vadd.f32 %v2338_v58, %v2188_v60 }
 0x2f0   : > { %v2540_v24 = vadd.f32 %v2506_v45, %v2372_v16 }
 0x2f2   : > { %v2572_v29 = vpack.c.bf16 %v2540_v24, %v2540_v24  ;;  %v2667_v52 = vsel %vm753_vm3, %v2540_v24, 0.0  ;;  %v2706_v22 = vmul.f32 %v2540_v24, %v2540_v24 }
 0x2f3   : > { %v2668_v59 = vadd.f32 %v2667_v52, %v2666_v46 }
 0x2f4   : > { %2605 = vst.msk [vmem:[%s4539_s29 + $0x7c] sm:$0xf] %vm2573_vm7, %v2572_v29  ;;  %v2768_v54 = vsel %vm753_vm3, %v2706_v22, 0.0 }
 0x2f5   : > { %v2669_v27 = vrot.slane %v2668_v59, 4  ;;  %v2769_v33 = vadd.f32 %v2768_v54, %v2767_v9 }
 0x2f7   : > { %v2670_v15 = vadd.f32 %v2669_v27, %v2668_v59  ;;  %v2770_v19 = vrot.slane %v2769_v33, 4 }
 0x2f9   : > { %v2671_v55 = vrot.slane %v2670_v15, 2  ;;  %v2771_v63 = vadd.f32 %v2770_v19, %v2769_v33 }
 0x2fb   : > { %v2672_v32 = vadd.f32 %v2671_v55, %v2670_v15  ;;  %v2772_v28 = vrot.slane %v2771_v63, 2 }
 0x2fd   : > { %v2673_v25 = vrot.slane %v2672_v32, 1  ;;  %v2773_v61 = vadd.f32 %v2772_v28, %v2771_v63 }
 0x2ff   : > { %v2774_v17 = vrot.slane %v2773_v61, 1  ;;  %v2674_v2 = vadd.f32 %v2673_v25, %v2672_v32 }
 0x301   : > { %v2775_v1 = vadd.f32 %v2774_v17, %v2773_v61 }
 0x303   : > { %v2777_v44 = vsel %vm2776_vm8, %v2674_v2, %v2775_v1 }
 0x304   : > { %2779 = vst.msk [vmem:[%s221_s5] sm:$0x3] %vm2778_vm9, %v2777_v44 }
 0x305 PF: > { %s14_s14 = sadd.s32 1, %s3484_s14   ;;  %s4935_s12 = smov %s3480_s13 }
 0x306   : > { %p11_p5 = scmp.ge.s32.totalorder %s14_s14, 4   ;;  %s4936_s13 = smov %s4938_s15 }
 0x308   :  { %13 = sbr.rel (!%p11_p5) target bundleno = 2 (0x2), region = 78 }

// kernel: estimate_forward.6
= control target key start
LH: loop header
LB: loop body
LE: loop exit
PB: predicated region body
PF: predicated region fallthrough
CT: control target
= control target key end

     0   :  { %s3828_s18 = smov 0   ;;  %s3830_s19 = smov 0   ;;  %s5183_s0 = inlined_call_operand.vmem [shape: bf16[2,18,18,64], index: 0, kind: input, shape index: {}]   ;;  %s5184_s1 = inlined_call_operand.vmem [shape: bf16[3,3,64,128], index: 1, kind: input, shape index: {}]   ;;  %s5185_s2 = inlined_call_operand.vmem [shape: f32[1,1,64], index: 2, kind: input, shape index: {}]   ;;  %s5186_s3 = inlined_call_operand.vmem [shape: f32[1,1,64], index: 3, kind: input, shape index: {}]   ;;  %s5187_s4 = inlined_call_operand.vmem [shape: bf16[2,16,16,128], index: 4, kind: output, shape index: {0}]   ;;  %s5188_s5 = inlined_call_operand.vmem [shape: f32[2,1,2,128], index: 5, kind: output, shape index: {1}]  }
   0x1   :  { %s3832_s20 = smov 0  }
   0x2 LB: > { %s28_s21 = sadd.s32 1, %s3792_s19  ;;  %p3178_p0 = scmp.ge.s32.totalorder %s3796_s20, 1  ;;  %s3796_s20 = sphi %s3832_s20, %s16_s20   ;;  %s3792_s19 = sphi %s3830_s19, %s5382_s19   ;;  %s3788_s18 = sphi %s3828_s18, %s5381_s18  }
   0x3   : > { %p30_p1 = scmp.ge.s32.totalorder %s28_s21, 2  ;;  %p210_p2 = scmp.lt.s32.totalorder %s3796_s20, 3 }
   0x5   : > { %s5384_s21 = smov (%p30_p1, %s28_s21), 0  ;;  %p211_p3 = pnand %p3178_p0, %p210_p2 }
   0x7   : > { %214 = sbr.rel (%p211_p3) target bundleno = 831 (0x33f), region = 36 }
   0xc   : > { %v3563_v0 = vld [vmem:[%s5184_s1 + $0x38] sm:$0xff]  ;;  %p252_p4 = scmp.lt.s32.totalorder %s3788_s18, 1  ;;  %v3562_v1 = vld [vmem:[%s5184_s1 + $0x30] sm:$0xff]  ;;  %v3561_v2 = vld [vmem:[%s5184_s1 + $0x28] sm:$0xff]  ;;  %vm617_vm0 = vsmask.f32 3328 }
   0xd   : > { %3731 = vmatpush.bf16.msra.mxu1 %v3563_v0  ;;  %3732 = vmatpush.bf16.msra.mxu2 %v3563_v0  ;;  %v3866_v3 = vld [vmem:[%s5185_s2] ss:$0 sm:$0xff]  ;;  %vm618_vm1 = vsmask.f32 7440  ;;  %v3567_v33 = vld [vmem:[%s5184_s1 + $0x58] sm:$0xff]  ;;  %vm1085_vm2 = vcmask 523264  }
   0xe   : > { %s5386_s18 = smov (!%p252_p4, %s3788_s18), 1  ;;  %3733 = vmatpush.bf16.msra.mxu3 %v3563_v0  ;;  %1138 = vmatpush.bf16.msra.mxu0 %v3563_v0  ;;  %v3871_v4 = vld [vmem:[%s5186_s3] ss:$0 sm:$0xff]  ;;  %vm3940_vm3 = vmor %vm617_vm0, %vm618_vm1  ;;  %vm1480_vm4 = vcmask 1042432   ;;  %vm1481_vm5 = vcmask 1046532   ;;  %vm3043_vm7 = vcmask 1040384  }
   0xf   : > { %s3743_s26 = smul.u32 216, %s5386_s18  ;;  %v3560_v20 = vld [vmem:[%s5184_s1 + $0x20] sm:$0xff]  ;;  %vm4377_vm6 = vmor %vm1480_vm4, %vm1481_vm5  ;;  %s3555_s29 = sshll.u32 %s5386_s18, 7 }
  0x10   : > { %s5041_s8 = scalar_lea.vmem %s5187_s4, %s3555_s29 }
  0x11   : > { %3734 = vmatpush.bf16.msra.mxu1 %v3562_v1  ;;  %3735 = vmatpush.bf16.msra.mxu2 %v3562_v1  ;;  %s3861_s6 = scalar_lea.vmem %s5183_s0, %s3743_s26 }
  0x12   : > { %3736 = vmatpush.bf16.msra.mxu3 %v3562_v1  ;;  %1139 = vmatpush.bf16.msra.mxu0 %v3562_v1  ;;  %v3709_v5 = vld [vmem:[%s3861_s6 + $0x30] sm:$0xff]   ;;  %v291_v6 = vld [vmem:[%s3861_s6 + $0x38] sm:$0x1]  ;;  %v3711_v7 = vld [vmem:[%s3861_s6 + $0x60] sm:$0xff]  }
  0x13   : > { %v3602_v8 = vunpack.c.l.bf16 %v3709_v5  ;;  %v3603_v9 = vunpack.c.h.bf16 %v3709_v5  ;;  %v345_v10 = vunpack.c.l.bf16 %v291_v6  ;;  %v3610_v11 = vunpack.c.l.bf16 %v3711_v7  ;;  %v303_v12 = vld [vmem:[%s3861_s6 + $0x68] sm:$0x1]  ;;  %v3713_v13 = vld [vmem:[%s3861_s6 + $0x90] sm:$0xff]   ;;  %v315_v14 = vld [vmem:[%s3861_s6 + $0x98] sm:$0x1] }
  0x14   : > { %v3611_v15 = vunpack.c.h.bf16 %v3711_v7  ;;  %v357_v16 = vunpack.c.l.bf16 %v303_v12  ;;  %v3618_v17 = vunpack.c.l.bf16 %v3713_v13  ;;  %v3619_v18 = vunpack.c.h.bf16 %v3713_v13  ;;  %v3880_v19 = vld [vmem:[%s3861_s6] sm:$0xff]  }
  0x15   : > { %3737 = vmatpush.bf16.msra.mxu1 %v3561_v2  ;;  %3738 = vmatpush.bf16.msra.mxu2 %v3561_v2  ;;  %v401_v21 = vmul.f32 %v3866_v3, %v3602_v8  ;;  %v402_v22 = vmul.f32 %v3866_v3, %v3603_v9  ;;  %v403_v23 = vmul.f32 %v3866_v3, %v345_v10  ;;  %v369_v24 = vunpack.c.l.bf16 %v315_v14  ;;  %v3571_v8 = vld [vmem:[%s5184_s1 + $0x78] sm:$0xff] }
  0x16   : > { %3739 = vmatpush.bf16.msra.mxu3 %v3561_v2  ;;  %1140 = vmatpush.bf16.msra.mxu0 %v3561_v2  ;;  %v413_v25 = vmul.f32 %v3866_v3, %v3610_v11  ;;  %v414_v26 = vmul.f32 %v3866_v3, %v3611_v15  ;;  %v415_v27 = vmul.f32 %v3866_v3, %v357_v16  ;;  %v3594_v28 = vunpack.c.l.bf16 %v3880_v19  ;;  %v3559_v9 = vld [vmem:[%s5184_s1 + $0x18] sm:$0xff] }
  0x17   : > { %v459_v29 = vadd.f32 %v3871_v4, %v401_v21  ;;  %v460_v30 = vadd.f32 %v3871_v4, %v402_v22  ;;  %v461_v31 = vadd.f32 %v3871_v4, %v403_v23  ;;  %v425_v32 = vmul.f32 %v3866_v3, %v3618_v17  ;;  %v3575_v14 = vld [vmem:[%s5184_s1 + $0x98] sm:$0xff] }
  0x18   : > { %v471_v34 = vadd.f32 %v3871_v4, %v413_v25  ;;  %v472_v35 = vadd.f32 %v3871_v4, %v414_v26  ;;  %v473_v36 = vadd.f32 %v3871_v4, %v415_v27  ;;  %v426_v37 = vmul.f32 %v3866_v3, %v3619_v18 }
  0x19   : > { %3740 = vmatpush.bf16.msra.mxu1 %v3560_v20  ;;  %3741 = vmatpush.bf16.msra.mxu2 %v3560_v20  ;;  %v513_v38 = vmax.f32 %v459_v29, 0.0  ;;  %v514_v39 = vmax.f32 %v460_v30, 0.0  ;;  %v515_v40 = vmax.f32 %v461_v31, 0.0  ;;  %v427_v41 = vmul.f32 %v3866_v3, %v369_v24 }
  0x1a   : > { %3742 = vmatpush.bf16.msra.mxu3 %v3560_v20  ;;  %1141 = vmatpush.bf16.msra.mxu0 %v3560_v20  ;;  %v525_v42 = vmax.f32 %v471_v34, 0.0  ;;  %v526_v43 = vmax.f32 %v472_v35, 0.0  ;;  %v527_v44 = vmax.f32 %v473_v36, 0.0  ;;  %v483_v45 = vadd.f32 %v3871_v4, %v425_v32 }
  0x1b   : > { %v3905_v46 = vpack.c.bf16 %v513_v38, %v513_v38  ;;  %v3907_v47 = vpack.c.bf16 %v514_v39, %v514_v39  ;;  %v3909_v48 = vpack.c.bf16 %v515_v40, %v515_v40  ;;  %v484_v49 = vadd.f32 %v3871_v4, %v426_v37  ;;  %v279_v38 = vld [vmem:[%s3861_s6 + $0x8] sm:$0x1] }
  0x1c   : > { %v3912_v50 = vpack.c.bf16 %v525_v42, %v525_v42  ;;  %v3914_v51 = vpack.c.bf16 %v526_v43, %v526_v43  ;;  %v3916_v52 = vpack.c.bf16 %v527_v44, %v527_v44  ;;  %v485_v53 = vadd.f32 %v3871_v4, %v427_v41 }
  0x1d   : > { %1728 = vmatpush.bf16.msrb.mxu2 %v3567_v33  ;;  %v717_v54 = vshrl.u32 %v3905_v46, 16  ;;  %v720_v55 = vshll.u32 %v3905_v46, 16  ;;  %v726_v56 = vshll.u32 %v3907_v47, 16  ;;  %v730_v57 = vshrl.u32 %v3907_v47, 16  ;;  %1379 = vmatpush.bf16.msrb.mxu1 %v3559_v9 }
  0x1e   : > { %v736_v58 = vshll.u32 %v3909_v48, 16  ;;  %v813_v59 = vshrl.u32 %v3912_v50, 16  ;;  %v816_v60 = vshll.u32 %v3912_v50, 16  ;;  %v822_v61 = vshll.u32 %v3914_v51, 16  ;;  %1890 = vmatpush.bf16.msrb.mxu3 %v3571_v8  ;;  %2074 = vmatpush.bf16.msrb.mxu0 %v3575_v14 }
  0x1f   : > { %v719_v62 = vrot.slane %v717_v54, 4  ;;  %v722_v63 = vrot.slane %v720_v55, 5  ;;  %v728_v0 = vrot.slane %v726_v56, 5  ;;  %v732_v1 = vrot.slane %v730_v57, 4 }
  0x20   : > { %v738_v2 = vrot.slane %v736_v58, 5  ;;  %v815_v5 = vrot.slane %v813_v59, 4  ;;  %v818_v6 = vrot.slane %v816_v60, 5  ;;  %v824_v7 = vrot.slane %v822_v61, 5 }
  0x21   : > { %v723_v10 = vor.u32 %v722_v63, %v719_v62  ;;  %v733_v11 = vor.u32 %v732_v1, %v728_v0  ;;  %v826_v12 = vshrl.u32 %v3914_v51, 16  ;;  %v832_v13 = vshll.u32 %v3916_v52, 16  ;;  %v294_v62 = vld [vmem:[%s3861_s6 + $0x44] sm:$0x1] }
  0x22   : > { %v819_v16 = vor.u32 %v818_v6, %v815_v5  ;;  %v537_v17 = vmax.f32 %v483_v45, 0.0  ;;  %v538_v18 = vmax.f32 %v484_v49, 0.0  ;;  %v539_v20 = vmax.f32 %v485_v53, 0.0  ;;  %v292_v53 = vld [vmem:[%s3861_s6 + $0x3c] sm:$0xff]  }
  0x23   : > { %v724_v21 = vrot.slane %v723_v10, 4  ;;  %v734_v22 = vrot.slane %v733_v11, 4  ;;  %v828_v23 = vrot.slane %v826_v12, 4  ;;  %v834_v24 = vrot.slane %v832_v13, 5 }
  0x24   : > { %v820_v25 = vrot.slane %v819_v16, 4  ;;  %v3944_v26 = vpack.c.bf16 %v537_v17, %v537_v17  ;;  %v3946_v27 = vpack.c.bf16 %v538_v18, %v538_v18  ;;  %v3948_v29 = vpack.c.bf16 %v539_v20, %v539_v20 }
  0x25   : > { %v729_v30 = vsel %vm3940_vm3, %v724_v21, %v728_v0  ;;  %v739_v31 = vsel %vm3940_vm3, %v734_v22, %v738_v2  ;;  %v829_v32 = vor.u32 %v828_v23, %v824_v7  ;;  %v3595_v33 = vunpack.c.h.bf16 %v3880_v19 }
  0x26   : > { %5257 = vst [vmem:[#allocation2_spill] sm:$0xff] %v3944_v26  ;;  %v1021_v34 = vunpack.c.l.b16 %v729_v30  ;;  %v1022_v35 = vunpack.c.l.b16 %v739_v31  ;;  %v825_v36 = vsel %vm3940_vm3, %v820_v25, %v824_v7  ;;  %v909_v37 = vshrl.u32 %v3944_v26, 16 }
  0x27   : > { %5258 = vst [vmem:[#allocation3_spill] sm:$0xff] %v3946_v27  ;;  %v830_v39 = vrot.slane %v829_v32, 4  ;;  %v1029_v40 = vunpack.c.l.b16 %v825_v36  ;;  %v912_v41 = vshll.u32 %v3944_v26, 16  ;;  %v918_v42 = vshll.u32 %v3946_v27, 16 }
  0x28   : > { %5259 = vst [vmem:[#allocation4_spill] sm:$0xff] %v3948_v29  ;;  %v3961_v43 = vpack.c.b16 %v1022_v35, %v1021_v34  ;;  %v911_v44 = vrot.slane %v909_v37, 4  ;;  %v922_v45 = vshrl.u32 %v3946_v27, 16  ;;  %v928_v49 = vshll.u32 %v3948_v29, 16 }
  0x29   : > { %v835_v54 = vsel %vm3940_vm3, %v830_v39, %v834_v24  ;;  %v914_v55 = vrot.slane %v912_v41, 5  ;;  %v920_v56 = vrot.slane %v918_v42, 5  ;;  %v333_v57 = vunpack.c.l.bf16 %v279_v38  ;;  %v304_v41 = vld [vmem:[%s3861_s6 + $0x6c] sm:$0xff]  }
  0x2a   : > { %3211 = vmatmul.msk.bf16.vlgmr.msra.gmra.mxu1 %vm1085_vm2, %v3961_v43  ;;  %v1030_v58 = vunpack.c.l.b16 %v835_v54  ;;  %v924_v59 = vrot.slane %v922_v45, 4  ;;  %v930_v60 = vrot.slane %v928_v49, 5  ;;  %v389_v61 = vmul.f32 %v3866_v3, %v3594_v28 }
  0x2b   : > { %v915_v63 = vor.u32 %v914_v55, %v911_v44  ;;  %v390_v0 = vmul.f32 %v3866_v3, %v3595_v33  ;;  %v391_v1 = vmul.f32 %v3866_v3, %v333_v57  ;;  %v346_v2 = vunpack.c.l.bf16 %v292_v53 }
  0x2c   : > { %v3976_v5 = vpack.c.b16 %v1030_v58, %v1029_v40  ;;  %v925_v6 = vor.u32 %v924_v59, %v920_v56  ;;  %v447_v7 = vadd.f32 %v3871_v4, %v389_v61  ;;  %v347_v8 = vunpack.c.h.bf16 %v292_v53 }
  0x2d   : > { %v916_v9 = vrot.slane %v915_v63, 4  ;;  %v448_v10 = vadd.f32 %v3871_v4, %v390_v0  ;;  %v449_v19 = vadd.f32 %v3871_v4, %v391_v1  ;;  %v348_v11 = vunpack.c.l.bf16 %v294_v62 }
  0x2e   : > { %5260 = vst [vmem:[#allocation5_spill] sm:$0xff] %v3976_v5  ;;  %3215 = vmatmul.msk.bf16.vlgmr.msra.gmra.mxu2 %vm1085_vm2, %v3976_v5  ;;  %v926_v28 = vrot.slane %v925_v6, 4  ;;  %v501_v12 = vmax.f32 %v447_v7, 0.0  ;;  %v404_v13 = vmul.f32 %v3866_v3, %v346_v2  ;;  %v405_v14 = vmul.f32 %v3866_v3, %v347_v8  ;;  %v3566_v2 = vld [vmem:[%s5184_s1 + $0x50] sm:$0xff] }
  0x2f   : > { %v921_v16 = vsel %vm3940_vm3, %v916_v9, %v920_v56  ;;  %v502_v17 = vmax.f32 %v448_v10, 0.0  ;;  %v503_v18 = vmax.f32 %v449_v19, 0.0  ;;  %v406_v20 = vmul.f32 %v3866_v3, %v348_v11  ;;  %1729 = vmatpush.bf16.msrb.mxu2 %v3566_v2 }
  0x30   : > { %v931_v21 = vsel %vm3940_vm3, %v926_v28, %v930_v60  ;;  %v1037_v22 = vunpack.c.l.b16 %v921_v16  ;;  %v3990_v23 = vpack.c.bf16 %v501_v12, %v501_v12  ;;  %v462_v24 = vadd.f32 %v3871_v4, %v404_v13  ;;  %v306_v60 = vld [vmem:[%s3861_s6 + $0x74] sm:$0x1] }
  0x31   : > { %v1038_v25 = vunpack.c.l.b16 %v931_v21  ;;  %v3993_v30 = vpack.c.bf16 %v502_v17, %v502_v17  ;;  %v3995_v31 = vpack.c.bf16 %v503_v18, %v503_v18  ;;  %v463_v32 = vadd.f32 %v3871_v4, %v405_v14  ;;  %v316_v17 = vld [vmem:[%s3861_s6 + $0x9c] sm:$0xff]  }
  0x32   : > { %v621_v33 = vshrl.u32 %v3990_v23, 16  ;;  %v624_v34 = vshll.u32 %v3990_v23, 16  ;;  %v464_v35 = vadd.f32 %v3871_v4, %v406_v20  ;;  %v516_v36 = vmax.f32 %v462_v24, 0.0 }
  0x33   : > { %v4001_v37 = vpack.c.b16 %v1038_v25, %v1037_v22  ;;  %v630_v38 = vshll.u32 %v3993_v30, 16  ;;  %v634_v39 = vshrl.u32 %v3993_v30, 16  ;;  %v640_v40 = vshll.u32 %v3995_v31, 16 }
  0x34   : > { %v623_v42 = vrot.slane %v621_v33, 4  ;;  %v626_v44 = vrot.slane %v624_v34, 5  ;;  %v517_v45 = vmax.f32 %v463_v32, 0.0  ;;  %v518_v49 = vmax.f32 %v464_v35, 0.0  ;;  %v318_v34 = vld [vmem:[%s3861_s6 + $0xa4] sm:$0x1] }
  0x35   : > { %5261 = vst [vmem:[#allocation6_spill] sm:$0xff] %v4001_v37  ;;  %3219 = vmatmul.msk.bf16.vlgmr.msra.gmra.mxu3 %vm1085_vm2, %v4001_v37  ;;  %v632_v53 = vrot.slane %v630_v38, 5  ;;  %v636_v54 = vrot.slane %v634_v39, 4  ;;  %v642_v55 = vrot.slane %v640_v40, 5  ;;  %v4009_v56 = vpack.c.bf16 %v516_v36, %v516_v36 }
  0x36   : > { %v627_v57 = vor.u32 %v626_v44, %v623_v42  ;;  %v4011_v58 = vpack.c.bf16 %v517_v45, %v517_v45  ;;  %v4013_v59 = vpack.c.bf16 %v518_v49, %v518_v49  ;;  %v358_v61 = vunpack.c.l.bf16 %v304_v41 }
  0x37   : > { %v637_v62 = vor.u32 %v636_v54, %v632_v53  ;;  %v741_v63 = vshrl.u32 %v4009_v56, 16  ;;  %v744_v0 = vshll.u32 %v4009_v56, 16  ;;  %v359_v1 = vunpack.c.h.bf16 %v304_v41 }
  0x38   : > { %v628_v6 = vrot.slane %v627_v57, 4  ;;  %v750_v7 = vshll.u32 %v4011_v58, 16  ;;  %v754_v8 = vshrl.u32 %v4011_v58, 16  ;;  %v760_v9 = vshll.u32 %v4013_v59, 16 }
  0x39   : > { %v638_v10 = vrot.slane %v637_v62, 4  ;;  %v743_v19 = vrot.slane %v741_v63, 4  ;;  %v746_v11 = vrot.slane %v744_v0, 5  ;;  %v360_v28 = vunpack.c.l.bf16 %v306_v60 }
  0x3a   : > { %v633_v12 = vsel %vm3940_vm3, %v628_v6, %v632_v53  ;;  %v752_v13 = vrot.slane %v750_v7, 5  ;;  %v756_v14 = vrot.slane %v754_v8, 4  ;;  %v762_v16 = vrot.slane %v760_v9, 5  ;;  %v3570_v6 = vld [vmem:[%s5184_s1 + $0x70] sm:$0xff] }
  0x3b   : > { %v643_v18 = vsel %vm3940_vm3, %v638_v10, %v642_v55  ;;  %v1013_v20 = vunpack.c.l.b16 %v633_v12  ;;  %v747_v21 = vor.u32 %v746_v11, %v743_v19  ;;  %v416_v22 = vmul.f32 %v3866_v3, %v358_v61  ;;  %v280_v55 = vld [vmem:[%s3861_s6 + $0xc] sm:$0xff]   ;;  %1891 = vmatpush.bf16.msrb.mxu3 %v3570_v6 }
  0x3c   : > { %v1014_v24 = vunpack.c.l.b16 %v643_v18  ;;  %v757_v25 = vor.u32 %v756_v14, %v752_v13  ;;  %v417_v32 = vmul.f32 %v3866_v3, %v359_v1  ;;  %v418_v33 = vmul.f32 %v3866_v3, %v360_v28  ;;  %v3558_v7 = vld [vmem:[%s5184_s1 + $0x10] sm:$0xff] }
  0x3d   : > { %v748_v35 = vrot.slane %v747_v21, 4  ;;  %v474_v36 = vadd.f32 %v3871_v4, %v416_v22  ;;  %v370_v38 = vunpack.c.l.bf16 %v316_v17  ;;  %v371_v39 = vunpack.c.h.bf16 %v316_v17  ;;  %v3574_v8 = vld [vmem:[%s5184_s1 + $0x90] sm:$0xff]  ;;  %1380 = vmatpush.bf16.msrb.mxu1 %v3558_v7 }
  0x3e   : > { %v1045_v40 = vpack.c.b16 %v1014_v24, %v1013_v20  ;;  %v758_v41 = vrot.slane %v757_v25, 4  ;;  %v475_v42 = vadd.f32 %v3871_v4, %v417_v32  ;;  %v476_v44 = vadd.f32 %v3871_v4, %v418_v33  ;;  %2075 = vmatpush.bf16.msrb.mxu0 %v3574_v8  ;;  %v282_v32 = vld [vmem:[%s3861_s6 + $0x14] sm:$0x1]  ;;  %v3710_v8 = vld [vmem:[%s3861_s6 + $0x48] sm:$0xff]  }
  0x3f   : > { %v753_v45 = vsel %vm3940_vm3, %v748_v35, %v752_v13  ;;  %v528_v49 = vmax.f32 %v474_v36, 0.0  ;;  %v372_v53 = vunpack.c.l.bf16 %v318_v34  ;;  %v428_v54 = vmul.f32 %v3866_v3, %v370_v38 }
  0x40   : > { %3207 = vmatmul.msk.bf16.vlgmr.msra.gmra.mxu0 %vm1085_vm2, %v1045_v40  ;;  %v763_v57 = vsel %vm3940_vm3, %v758_v41, %v762_v16  ;;  %v1023_v60 = vunpack.c.l.b16 %v753_v45  ;;  %v529_v61 = vmax.f32 %v475_v42, 0.0  ;;  %v530_v62 = vmax.f32 %v476_v44, 0.0 }
  0x41   : > { %v1024_v63 = vunpack.c.l.b16 %v763_v57  ;;  %v4043_v0 = vpack.c.bf16 %v528_v49, %v528_v49  ;;  %v429_v1 = vmul.f32 %v3866_v3, %v371_v39  ;;  %v430_v2 = vmul.f32 %v3866_v3, %v372_v53 }
  0x42   : > { %v4056_v9 = vpack.c.bf16 %v529_v61, %v529_v61  ;;  %v4058_v10 = vpack.c.bf16 %v530_v62, %v530_v62  ;;  %v486_v19 = vadd.f32 %v3871_v4, %v428_v54  ;;  %v334_v11 = vunpack.c.l.bf16 %v280_v55 }
  0x43   : > { %v4061_v28 = vpack.c.b16 %v1024_v63, %v1023_v60  ;;  %v837_v12 = vshrl.u32 %v4043_v0, 16  ;;  %v840_v13 = vshll.u32 %v4043_v0, 16  ;;  %v487_v14 = vadd.f32 %v3871_v4, %v429_v1 }
  0x44   : > { %v846_v16 = vshll.u32 %v4056_v9, 16  ;;  %v850_v17 = vshrl.u32 %v4056_v9, 16  ;;  %v856_v18 = vshll.u32 %v4058_v10, 16  ;;  %v488_v20 = vadd.f32 %v3871_v4, %v430_v2 }
  0x45   : > { %3212 = vmatmul.msk.bf16.gmra.mxu1 %vm1085_vm2, %v4061_v28  ;;  %v839_v21 = vrot.slane %v837_v12, 4  ;;  %v842_v22 = vrot.slane %v840_v13, 5  ;;  %v540_v24 = vmax.f32 %v486_v19, 0.0  ;;  %v541_v25 = vmax.f32 %v487_v14, 0.0 }
  0x46   : > { %v848_v33 = vrot.slane %v846_v16, 5  ;;  %v852_v34 = vrot.slane %v850_v17, 4  ;;  %v858_v35 = vrot.slane %v856_v18, 5  ;;  %v542_v36 = vmax.f32 %v488_v20, 0.0  ;;  %v297_v20 = vld [vmem:[%s3861_s6 + $0x50] sm:$0x1] }
  0x47   : > { %v843_v38 = vor.u32 %v842_v22, %v839_v21  ;;  %v4073_v39 = vpack.c.bf16 %v540_v24, %v540_v24  ;;  %v4075_v40 = vpack.c.bf16 %v541_v25, %v541_v25  ;;  %v335_v41 = vunpack.c.h.bf16 %v280_v55 }
  0x48   : > { %v853_v42 = vor.u32 %v852_v34, %v848_v33  ;;  %v4077_v44 = vpack.c.bf16 %v542_v36, %v542_v36  ;;  %v336_v45 = vunpack.c.l.bf16 %v282_v32  ;;  %v392_v49 = vmul.f32 %v3866_v3, %v334_v11 }
  0x49   : > { %5262 = vst [vmem:[#allocation7_spill] sm:$0xff] %v4073_v39  ;;  %v844_v53 = vrot.slane %v843_v38, 4  ;;  %v933_v54 = vshrl.u32 %v4073_v39, 16  ;;  %v936_v57 = vshll.u32 %v4073_v39, 16  ;;  %v942_v60 = vshll.u32 %v4075_v40, 16 }
  0x4a   : > { %5263 = vst [vmem:[#allocation8_spill] sm:$0xff] %v4075_v40  ;;  %v854_v61 = vrot.slane %v853_v42, 4  ;;  %v946_v62 = vshrl.u32 %v4075_v40, 16  ;;  %v952_v55 = vshll.u32 %v4077_v44, 16  ;;  %v393_v63 = vmul.f32 %v3866_v3, %v335_v41 }
  0x4b   : > { %5264 = vst [vmem:[#allocation9_spill] sm:$0xff] %v4077_v44  ;;  %v849_v1 = vsel %vm3940_vm3, %v844_v53, %v848_v33  ;;  %v935_v2 = vrot.slane %v933_v54, 4  ;;  %v938_v6 = vrot.slane %v936_v57, 5  ;;  %v944_v7 = vrot.slane %v942_v60, 5 }
  0x4c   : > { %v859_v19 = vsel %vm3940_vm3, %v854_v61, %v858_v35  ;;  %v1031_v11 = vunpack.c.l.b16 %v849_v1  ;;  %v948_v12 = vrot.slane %v946_v62, 4  ;;  %v954_v13 = vrot.slane %v952_v55, 5 }
  0x4d   : > { %v1032_v14 = vunpack.c.l.b16 %v859_v19  ;;  %v939_v16 = vor.u32 %v938_v6, %v935_v2  ;;  %v394_v17 = vmul.f32 %v3866_v3, %v336_v45  ;;  %v450_v18 = vadd.f32 %v3871_v4, %v392_v49 }
  0x4e   : > { %v949_v21 = vor.u32 %v948_v12, %v944_v7  ;;  %v451_v22 = vadd.f32 %v3871_v4, %v393_v63  ;;  %v3606_v24 = vunpack.c.l.bf16 %v3710_v8  ;;  %v3607_v25 = vunpack.c.h.bf16 %v3710_v8 }
  0x4f   : > { %v4095_v32 = vpack.c.b16 %v1032_v14, %v1031_v11  ;;  %v940_v33 = vrot.slane %v939_v16, 4  ;;  %v452_v34 = vadd.f32 %v3871_v4, %v394_v17  ;;  %v504_v35 = vmax.f32 %v450_v18, 0.0  ;;  %v3712_v11 = vld [vmem:[%s3861_s6 + $0x78] sm:$0xff]  }
  0x50   : > { %v950_v36 = vrot.slane %v949_v21, 4  ;;  %v505_v38 = vmax.f32 %v451_v22, 0.0  ;;  %v351_v41 = vunpack.c.l.bf16 %v297_v20  ;;  %v407_v42 = vmul.f32 %v3866_v3, %v3606_v24  ;;  %v309_v22 = vld [vmem:[%s3861_s6 + $0x80] sm:$0x1] }
  0x51   : > { %5265 = vst [vmem:[#allocation10_spill] sm:$0xff] %v4095_v32  ;;  %3216 = vmatmul.msk.bf16.gmra.mxu2 %vm1085_vm2, %v4095_v32  ;;  %v945_v45 = vsel %vm3940_vm3, %v940_v33, %v944_v7  ;;  %v506_v49 = vmax.f32 %v452_v34, 0.0  ;;  %v4103_v53 = vpack.c.bf16 %v504_v35, %v504_v35  ;;  %v408_v54 = vmul.f32 %v3866_v3, %v3607_v25 }
  0x52   : > { %v955_v57 = vsel %vm3940_vm3, %v950_v36, %v954_v13  ;;  %v1039_v60 = vunpack.c.l.b16 %v945_v45  ;;  %v4108_v61 = vpack.c.bf16 %v505_v38, %v505_v38  ;;  %v409_v62 = vmul.f32 %v3866_v3, %v351_v41 }
  0x53   : > { %v1040_v55 = vunpack.c.l.b16 %v955_v57  ;;  %v4111_v63 = vpack.c.bf16 %v506_v49, %v506_v49  ;;  %v645_v1 = vshrl.u32 %v4103_v53, 16  ;;  %v648_v2 = vshll.u32 %v4103_v53, 16  ;;  %v3565_v57 = vld [vmem:[%s5184_s1 + $0x48] sm:$0xff] }
  0x54   : > { %v654_v6 = vshll.u32 %v4108_v61, 16  ;;  %v658_v7 = vshrl.u32 %v4108_v61, 16  ;;  %v465_v8 = vadd.f32 %v3871_v4, %v407_v42  ;;  %v466_v19 = vadd.f32 %v3871_v4, %v408_v54  ;;  %1730 = vmatpush.bf16.msrb.mxu2 %v3565_v57 }
  0x55   : > { %v4120_v12 = vpack.c.b16 %v1040_v55, %v1039_v60  ;;  %v647_v13 = vrot.slane %v645_v1, 4  ;;  %v650_v14 = vrot.slane %v648_v2, 5  ;;  %v664_v16 = vshll.u32 %v4111_v63, 16 }
  0x56   : > { %v656_v17 = vrot.slane %v654_v6, 5  ;;  %v660_v18 = vrot.slane %v658_v7, 4  ;;  %v467_v20 = vadd.f32 %v3871_v4, %v409_v62  ;;  %v519_v21 = vmax.f32 %v465_v8, 0.0 }
  0x57   : > { %5266 = vst [vmem:[#allocation11_spill] sm:$0xff] %v4120_v12  ;;  %3220 = vmatmul.msk.bf16.gmra.mxu3 %vm1085_vm2, %v4120_v12  ;;  %v651_v24 = vor.u32 %v650_v14, %v647_v13  ;;  %v666_v25 = vrot.slane %v664_v16, 5  ;;  %v520_v33 = vmax.f32 %v466_v19, 0.0  ;;  %v3614_v34 = vunpack.c.l.bf16 %v3712_v11  ;;  %v3714_v16 = vld [vmem:[%s3861_s6 + $0xa8] sm:$0xff]  }
  0x58   : > { %v661_v35 = vor.u32 %v660_v18, %v656_v17  ;;  %v521_v36 = vmax.f32 %v467_v20, 0.0  ;;  %v4127_v38 = vpack.c.bf16 %v519_v21, %v519_v21  ;;  %v3615_v41 = vunpack.c.h.bf16 %v3712_v11 }
  0x59   : > { %v652_v42 = vrot.slane %v651_v24, 4  ;;  %v4129_v45 = vpack.c.bf16 %v520_v33, %v520_v33  ;;  %v363_v49 = vunpack.c.l.bf16 %v309_v22  ;;  %v419_v54 = vmul.f32 %v3866_v3, %v3614_v34 }
  0x5a   : > { %v662_v60 = vrot.slane %v661_v35, 4  ;;  %v4135_v62 = vpack.c.bf16 %v521_v36, %v521_v36  ;;  %v765_v55 = vshrl.u32 %v4127_v38, 16  ;;  %v768_v1 = vshll.u32 %v4127_v38, 16  ;;  %v321_v35 = vld [vmem:[%s3861_s6 + $0xb0] sm:$0x1] }
  0x5b   : > { %v657_v2 = vsel %vm3940_vm3, %v652_v42, %v656_v17  ;;  %v774_v6 = vshll.u32 %v4129_v45, 16  ;;  %v778_v7 = vshrl.u32 %v4129_v45, 16  ;;  %v420_v8 = vmul.f32 %v3866_v3, %v3615_v41 }
  0x5c   : > { %v667_v19 = vsel %vm3940_vm3, %v662_v60, %v666_v25  ;;  %v1015_v11 = vunpack.c.l.b16 %v657_v2  ;;  %v767_v13 = vrot.slane %v765_v55, 4  ;;  %v770_v14 = vrot.slane %v768_v1, 5 }
  0x5d   : > { %v1016_v18 = vunpack.c.l.b16 %v667_v19  ;;  %v776_v20 = vrot.slane %v774_v6, 5  ;;  %v780_v21 = vrot.slane %v778_v7, 4  ;;  %v784_v17 = vshll.u32 %v4135_v62, 16 }
  0x5e   : > { %v771_v22 = vor.u32 %v770_v14, %v767_v13  ;;  %v421_v24 = vmul.f32 %v3866_v3, %v363_v49  ;;  %v477_v33 = vadd.f32 %v3871_v4, %v419_v54  ;;  %v478_v34 = vadd.f32 %v3871_v4, %v420_v8 }
  0x5f   : > { %v4152_v36 = vpack.c.b16 %v1016_v18, %v1015_v11  ;;  %v781_v25 = vor.u32 %v780_v21, %v776_v20  ;;  %v786_v41 = vrot.slane %v784_v17, 5  ;;  %v3622_v42 = vunpack.c.l.bf16 %v3714_v16  ;;  %v3569_v21 = vld [vmem:[%s5184_s1 + $0x68] sm:$0xff] }
  0x60   : > { %v772_v57 = vrot.slane %v771_v22, 4  ;;  %v479_v60 = vadd.f32 %v3871_v4, %v421_v24  ;;  %v531_v55 = vmax.f32 %v477_v33, 0.0  ;;  %v532_v1 = vmax.f32 %v478_v34, 0.0  ;;  %v3573_v17 = vld [vmem:[%s5184_s1 + $0x88] sm:$0xff]  ;;  %1892 = vmatpush.bf16.msrb.mxu3 %v3569_v21 }
  0x61   : > { %3208 = vmatmul.msk.bf16.gmra.mxu0 %vm1085_vm2, %v4152_v36  ;;  %v782_v2 = vrot.slane %v781_v25, 4  ;;  %v3623_v49 = vunpack.c.h.bf16 %v3714_v16  ;;  %v375_v6 = vunpack.c.l.bf16 %v321_v35  ;;  %v431_v54 = vmul.f32 %v3866_v3, %v3622_v42 }
  0x62   : > { %v777_v7 = vsel %vm3940_vm3, %v772_v57, %v776_v20  ;;  %v533_v8 = vmax.f32 %v479_v60, 0.0  ;;  %v4160_v19 = vpack.c.bf16 %v531_v55, %v531_v55  ;;  %v4162_v11 = vpack.c.bf16 %v532_v1, %v532_v1  ;;  %v3557_v20 = vld [vmem:[%s5184_s1 + $0x8] sm:$0xff]  ;;  %v3708_v57 = vld [vmem:[%s3861_s6 + $0x18] sm:$0xff]   ;;  %2076 = vmatpush.bf16.msrb.mxu0 %v3573_v17 }
  0x63   : > { %v787_v13 = vsel %vm3940_vm3, %v782_v2, %v786_v41  ;;  %v1025_v14 = vunpack.c.l.b16 %v777_v7  ;;  %v432_v18 = vmul.f32 %v3866_v3, %v3623_v49  ;;  %v433_v16 = vmul.f32 %v3866_v3, %v375_v6  ;;  %1381 = vmatpush.bf16.msrb.mxu1 %v3557_v20 }
  0x64   : > { %5267 = vst [vmem:[#allocation12_spill] sm:$0xff] %v4160_v19  ;;  %v1026_v22 = vunpack.c.l.b16 %v787_v13  ;;  %v4177_v24 = vpack.c.bf16 %v533_v8, %v533_v8  ;;  %v861_v33 = vshrl.u32 %v4160_v19, 16  ;;  %v864_v34 = vshll.u32 %v4160_v19, 16  ;;  %v285_v13 = vld [vmem:[%s3861_s6 + $0x20] sm:$0x1] }
  0x65   : > { %v870_v35 = vshll.u32 %v4162_v11, 16  ;;  %v874_v25 = vshrl.u32 %v4162_v11, 16  ;;  %v489_v41 = vadd.f32 %v3871_v4, %v431_v54  ;;  %v490_v42 = vadd.f32 %v3871_v4, %v432_v18 }
  0x66   : > { %5268 = vst [vmem:[#allocation13_spill] sm:$0xff] %v4177_v24  ;;  %v4186_v60 = vpack.c.b16 %v1026_v22, %v1025_v14  ;;  %v863_v55 = vrot.slane %v861_v33, 4  ;;  %v866_v1 = vrot.slane %v864_v34, 5  ;;  %v880_v2 = vshll.u32 %v4177_v24, 16 }
  0x67   : > { %v872_v49 = vrot.slane %v870_v35, 5  ;;  %v876_v6 = vrot.slane %v874_v25, 4  ;;  %v491_v7 = vadd.f32 %v3871_v4, %v433_v16  ;;  %v543_v8 = vmax.f32 %v489_v41, 0.0 }
  0x68   : > { %5269 = vst [vmem:[#allocation14_spill] sm:$0xff] %v4186_v60  ;;  %3213 = vmatmul.msk.bf16.gmra.mxu1 %vm1085_vm2, %v4186_v60  ;;  %v867_v54 = vor.u32 %v866_v1, %v863_v55  ;;  %v882_v18 = vrot.slane %v880_v2, 5  ;;  %v544_v21 = vmax.f32 %v490_v42, 0.0  ;;  %v3598_v20 = vunpack.c.l.bf16 %v3708_v57 }
  0x69   : > { %v877_v14 = vor.u32 %v876_v6, %v872_v49  ;;  %v545_v22 = vmax.f32 %v491_v7, 0.0  ;;  %v4193_v33 = vpack.c.bf16 %v543_v8, %v543_v8  ;;  %v3599_v34 = vunpack.c.h.bf16 %v3708_v57 }
  0x6a   : > { %v868_v12 = vrot.slane %v867_v54, 4  ;;  %v4195_v17 = vpack.c.bf16 %v544_v21, %v544_v21  ;;  %v339_v35 = vunpack.c.l.bf16 %v285_v13  ;;  %v395_v16 = vmul.f32 %v3866_v3, %v3598_v20  ;;  %v298_v21 = vld [vmem:[%s3861_s6 + $0x54] sm:$0xff]  }
  0x6b   : > { %5270 = vst [vmem:[#allocation15_spill] sm:$0xff] %v4193_v33  ;;  %v878_v25 = vrot.slane %v877_v14, 4  ;;  %v4198_v41 = vpack.c.bf16 %v545_v22, %v545_v22  ;;  %v957_v55 = vshrl.u32 %v4193_v33, 16  ;;  %v960_v42 = vshll.u32 %v4193_v33, 16 }
  0x6c   : > { %5271 = vst [vmem:[#allocation16_spill] sm:$0xff] %v4195_v17  ;;  %v873_v1 = vsel %vm3940_vm3, %v868_v12, %v872_v49  ;;  %v966_v2 = vshll.u32 %v4195_v17, 16  ;;  %v970_v57 = vshrl.u32 %v4195_v17, 16  ;;  %v396_v6 = vmul.f32 %v3866_v3, %v3599_v34  ;;  %v300_v34 = vld [vmem:[%s3861_s6 + $0x5c] sm:$0x1] }
  0x6d   : > { %5272 = vst [vmem:[#allocation17_spill] sm:$0xff] %v4198_v41  ;;  %v883_v7 = vsel %vm3940_vm3, %v878_v25, %v882_v18  ;;  %v1033_v8 = vunpack.c.l.b16 %v873_v1  ;;  %v959_v13 = vrot.slane %v957_v55, 4  ;;  %v962_v54 = vrot.slane %v960_v42, 5 }
  0x6e   : > { %v1034_v20 = vunpack.c.l.b16 %v883_v7  ;;  %v968_v14 = vrot.slane %v966_v2, 5  ;;  %v972_v22 = vrot.slane %v970_v57, 4  ;;  %v976_v33 = vshll.u32 %v4198_v41, 16 }
  0x6f   : > { %v963_v12 = vor.u32 %v962_v54, %v959_v13  ;;  %v397_v49 = vmul.f32 %v3866_v3, %v339_v35  ;;  %v453_v44 = vadd.f32 %v3871_v4, %v395_v16  ;;  %v454_v17 = vadd.f32 %v3871_v4, %v396_v6 }
  0x70   : > { %v4215_v37 = vpack.c.b16 %v1034_v20, %v1033_v8  ;;  %v973_v18 = vor.u32 %v972_v22, %v968_v14  ;;  %v978_v25 = vrot.slane %v976_v33, 5  ;;  %v352_v55 = vunpack.c.l.bf16 %v298_v21 }
  0x71   : > { %v964_v42 = vrot.slane %v963_v12, 4  ;;  %v455_v1 = vadd.f32 %v3871_v4, %v397_v49  ;;  %v507_v2 = vmax.f32 %v453_v44, 0.0  ;;  %v508_v57 = vmax.f32 %v454_v17, 0.0 }
  0x72   : > { %5273 = vst [vmem:[#allocation18_spill] sm:$0xff] %v4215_v37  ;;  %3217 = vmatmul.msk.bf16.gmra.mxu2 %vm1085_vm2, %v4215_v37  ;;  %v974_v7 = vrot.slane %v973_v18, 4  ;;  %v353_v35 = vunpack.c.h.bf16 %v298_v21  ;;  %v354_v13 = vunpack.c.l.bf16 %v300_v34  ;;  %v410_v16 = vmul.f32 %v3866_v3, %v352_v55 }
  0x73   : > { %v969_v6 = vsel %vm3940_vm3, %v964_v42, %v968_v14  ;;  %v509_v8 = vmax.f32 %v455_v1, 0.0  ;;  %v4223_v33 = vpack.c.bf16 %v507_v2, %v507_v2  ;;  %v4225_v54 = vpack.c.bf16 %v508_v57, %v508_v57  ;;  %v310_v42 = vld [vmem:[%s3861_s6 + $0x84] sm:$0xff]  }
  0x74   : > { %v979_v44 = vsel %vm3940_vm3, %v974_v7, %v978_v25  ;;  %v1041_v17 = vunpack.c.l.b16 %v969_v6  ;;  %v411_v20 = vmul.f32 %v3866_v3, %v353_v35  ;;  %v412_v21 = vmul.f32 %v3866_v3, %v354_v13 }
  0x75   : > { %v1042_v22 = vunpack.c.l.b16 %v979_v44  ;;  %v4231_v12 = vpack.c.bf16 %v509_v8, %v509_v8  ;;  %v669_v14 = vshrl.u32 %v4223_v33, 16  ;;  %v672_v49 = vshll.u32 %v4223_v33, 16  ;;  %v312_v44 = vld [vmem:[%s3861_s6 + $0x8c] sm:$0x1] }
  0x76   : > { %v678_v34 = vshll.u32 %v4225_v54, 16  ;;  %v682_v18 = vshrl.u32 %v4225_v54, 16  ;;  %v468_v55 = vadd.f32 %v3871_v4, %v410_v16  ;;  %v469_v25 = vadd.f32 %v3871_v4, %v411_v20 }
  0x77   : > { %v4240_v1 = vpack.c.b16 %v1042_v22, %v1041_v17  ;;  %v671_v2 = vrot.slane %v669_v14, 4  ;;  %v674_v57 = vrot.slane %v672_v49, 5  ;;  %v688_v7 = vshll.u32 %v4231_v12, 16 }
  0x78   : > { %v680_v35 = vrot.slane %v678_v34, 5  ;;  %v684_v13 = vrot.slane %v682_v18, 4  ;;  %v470_v6 = vadd.f32 %v3871_v4, %v412_v21  ;;  %v522_v8 = vmax.f32 %v468_v55, 0.0  ;;  %v3564_v21 = vld [vmem:[%s5184_s1 + $0x40] sm:$0xff] }
  0x79   : > { %5274 = vst [vmem:[#allocation19_spill] sm:$0xff] %v4240_v1  ;;  %3221 = vmatmul.msk.bf16.gmra.mxu3 %vm1085_vm2, %v4240_v1  ;;  %v675_v41 = vor.u32 %v674_v57, %v671_v2  ;;  %v690_v16 = vrot.slane %v688_v7, 5  ;;  %v523_v39 = vmax.f32 %v469_v25, 0.0  ;;  %v364_v20 = vunpack.c.l.bf16 %v310_v42  ;;  %1731 = vmatpush.bf16.msrb.mxu2 %v3564_v21  ;;  %v4271_v1 = vld [vmem:[%s5185_s2] ss:$0 sm:$0xff] }
  0x7a   : > { %v685_v40 = vor.u32 %v684_v13, %v680_v35  ;;  %v524_v17 = vmax.f32 %v470_v6, 0.0  ;;  %v4247_v22 = vpack.c.bf16 %v522_v8, %v522_v8  ;;  %v365_v14 = vunpack.c.h.bf16 %v310_v42  ;;  %v322_v8 = vld [vmem:[%s3861_s6 + $0xb4] sm:$0xff]  }
  0x7b   : > { %v676_v49 = vrot.slane %v675_v41, 4  ;;  %v4249_v29 = vpack.c.bf16 %v523_v39, %v523_v39  ;;  %v366_v34 = vunpack.c.l.bf16 %v312_v44  ;;  %v422_v4 = vmul.f32 %v3866_v3, %v364_v20 }
  0x7c   : > { %v686_v18 = vrot.slane %v685_v40, 4  ;;  %v4255_v55 = vpack.c.bf16 %v524_v17, %v524_v17  ;;  %v789_v25 = vshrl.u32 %v4247_v22, 16  ;;  %v792_v2 = vshll.u32 %v4247_v22, 16 }
  0x7d   : > { %v681_v41 = vsel %vm3940_vm3, %v676_v49, %v680_v35  ;;  %v798_v39 = vshll.u32 %v4249_v29, 16  ;;  %v802_v42 = vshrl.u32 %v4249_v29, 16  ;;  %v423_v57 = vmul.f32 %v3866_v3, %v365_v14 }
  0x7e   : > { %v691_v40 = vsel %vm3940_vm3, %v686_v18, %v690_v16  ;;  %v1017_v7 = vunpack.c.l.b16 %v681_v41  ;;  %v791_v13 = vrot.slane %v789_v25, 4  ;;  %v794_v6 = vrot.slane %v792_v2, 5  ;;  %v4277_v16 = vld [vmem:[%s5186_s3] ss:$0 sm:$0xff]  ;;  %v324_v18 = vld [vmem:[%s3861_s6 + $0xbc] sm:$0x1] }
  0x7f   : > { %v1018_v44 = vunpack.c.l.b16 %v691_v40  ;;  %v800_v20 = vrot.slane %v798_v39, 5  ;;  %v804_v17 = vrot.slane %v802_v42, 4  ;;  %v808_v35 = vshll.u32 %v4255_v55, 16 }
  0x80   : > { %v795_v49 = vor.u32 %v794_v6, %v791_v13  ;;  %v424_v3 = vmul.f32 %v4271_v1, %v366_v34  ;;  %v480_v14 = vadd.f32 %v4277_v16, %v422_v4  ;;  %v481_v21 = vadd.f32 %v4277_v16, %v423_v57 }
  0x81   : > { %v4282_v25 = vpack.c.b16 %v1018_v44, %v1017_v7  ;;  %v805_v2 = vor.u32 %v804_v17, %v800_v20  ;;  %v810_v41 = vrot.slane %v808_v35, 5  ;;  %v376_v39 = vunpack.c.l.bf16 %v322_v8 }
  0x82   : > { %v796_v42 = vrot.slane %v795_v49, 4  ;;  %v482_v40 = vadd.f32 %v4277_v16, %v424_v3  ;;  %v534_v13 = vmax.f32 %v480_v14, 0.0  ;;  %v535_v34 = vmax.f32 %v481_v21, 0.0  ;;  %v3568_v14 = vld [vmem:[%s5184_s1 + $0x60] sm:$0xff] }
  0x83   : > { %3209 = vmatmul.msk.bf16.gmra.mxu0 %vm1085_vm2, %v4282_v25  ;;  %v806_v6 = vrot.slane %v805_v2, 4  ;;  %v377_v26 = vunpack.c.h.bf16 %v322_v8  ;;  %v378_v27 = vunpack.c.l.bf16 %v324_v18  ;;  %v434_v4 = vmul.f32 %v4271_v1, %v376_v39  ;;  %v3572_v21 = vld [vmem:[%s5184_s1 + $0x80] sm:$0xff]  ;;  %1893 = vmatpush.bf16.msrb.mxu3 %v3568_v14 }
  0x84   : > { %v801_v57 = vsel %vm3940_vm3, %v796_v42, %v800_v20  ;;  %v536_v7 = vmax.f32 %v482_v40, 0.0  ;;  %v4290_v44 = vpack.c.bf16 %v534_v13, %v534_v13  ;;  %v4292_v17 = vpack.c.bf16 %v535_v34, %v535_v34  ;;  %v3556_v20 = vld [vmem:[%s5184_s1] sm:$0xff]  ;;  %2077 = vmatpush.bf16.msrb.mxu0 %v3572_v21  ;;  %v3583_v21 = vld [vmem:[%s5184_s1 + $0xd8] sm:$0xff] }
  0x85   : > { %v811_v35 = vsel %vm3940_vm3, %v806_v6, %v810_v41  ;;  %v1027_v49 = vunpack.c.l.b16 %v801_v57  ;;  %v435_v3 = vmul.f32 %v4271_v1, %v377_v26  ;;  %v436_v8 = vmul.f32 %v4271_v1, %v378_v27  ;;  %v286_v13 = vld [vmem:[%s3861_s6 + $0x24] sm:$0xff]   ;;  %1382 = vmatpush.bf16.msrb.mxu1 %v3556_v20  ;;  %2404 = vmatpush.bf16.msra.mxu2 %v3583_v21 }
  0x86   : > { %5275 = vst [vmem:[#allocation20_spill] sm:$0xff] %v4290_v44  ;;  %v1028_v18 = vunpack.c.l.b16 %v811_v35  ;;  %v4307_v2 = vpack.c.bf16 %v536_v7, %v536_v7  ;;  %v885_v41 = vshrl.u32 %v4290_v44, 16  ;;  %v888_v26 = vshll.u32 %v4290_v44, 16 }
  0x87   : > { %5276 = vst [vmem:[#allocation21_spill] sm:$0xff] %v4292_v17  ;;  %v894_v27 = vshll.u32 %v4292_v17, 16  ;;  %v898_v39 = vshrl.u32 %v4292_v17, 16  ;;  %v492_v42 = vadd.f32 %v4277_v16, %v434_v4  ;;  %v493_v40 = vadd.f32 %v4277_v16, %v435_v3  ;;  %v288_v17 = vld [vmem:[%s3861_s6 + $0x2c] sm:$0x1] }
  0x88   : > { %5277 = vst [vmem:[#allocation22_spill] sm:$0xff] %v4307_v2  ;;  %v4316_v34 = vpack.c.b16 %v1028_v18, %v1027_v49  ;;  %v887_v6 = vrot.slane %v885_v41, 4  ;;  %v890_v57 = vrot.slane %v888_v26, 5  ;;  %v904_v7 = vshll.u32 %v4307_v2, 16 }
  0x89   : > { %v896_v35 = vrot.slane %v894_v27, 5  ;;  %v900_v37 = vrot.slane %v898_v39, 4  ;;  %v494_v44 = vadd.f32 %v4277_v16, %v436_v8  ;;  %v546_v24 = vmax.f32 %v492_v42, 0.0 }
  0x8a   : > { %5278 = vst [vmem:[#allocation23_spill] sm:$0xff] %v4316_v34  ;;  %3214 = vmatmul.msk.bf16.gmra.mxu1 %vm1085_vm2, %v4316_v34  ;;  %v891_v4 = vor.u32 %v890_v57, %v887_v6  ;;  %v906_v3 = vrot.slane %v904_v7, 5  ;;  %v547_v14 = vmax.f32 %v493_v40, 0.0  ;;  %v340_v20 = vunpack.c.l.bf16 %v286_v13 }
  0x8b   : > { %v901_v49 = vor.u32 %v900_v37, %v896_v35  ;;  %v548_v18 = vmax.f32 %v494_v44, 0.0  ;;  %v4323_v41 = vpack.c.bf16 %v546_v24, %v546_v24  ;;  %v341_v26 = vunpack.c.h.bf16 %v286_v13 }
  0x8c   : > { %v892_v27 = vrot.slane %v891_v4, 4  ;;  %v4328_v8 = vpack.c.bf16 %v547_v14, %v547_v14  ;;  %v342_v39 = vunpack.c.l.bf16 %v288_v17  ;;  %v398_v42 = vmul.f32 %v4271_v1, %v340_v20 }
  0x8d   : > { %5279 = vst [vmem:[#allocation24_spill] sm:$0xff] %v4323_v41  ;;  %v902_v2 = vrot.slane %v901_v49, 4  ;;  %v4331_v6 = vpack.c.bf16 %v548_v18, %v548_v18  ;;  %v981_v40 = vshrl.u32 %v4323_v41, 16  ;;  %v984_v37 = vshll.u32 %v4323_v41, 16 }
  0x8e   : > { %5280 = vst [vmem:[#allocation25_spill] sm:$0xff] %v4328_v8  ;;  %v897_v24 = vsel %vm3940_vm3, %v892_v27, %v896_v35  ;;  %v990_v44 = vshll.u32 %v4328_v8, 16  ;;  %v994_v13 = vshrl.u32 %v4328_v8, 16  ;;  %v399_v57 = vmul.f32 %v4271_v1, %v341_v26 }
  0x8f   : > { %v907_v17 = vsel %vm3940_vm3, %v902_v2, %v906_v3  ;;  %v1035_v7 = vunpack.c.l.b16 %v897_v24  ;;  %v983_v4 = vrot.slane %v981_v40, 4  ;;  %v986_v14 = vrot.slane %v984_v37, 5 }
  0x90   : > { %v1036_v20 = vunpack.c.l.b16 %v907_v17  ;;  %v992_v49 = vrot.slane %v990_v44, 5  ;;  %v996_v18 = vrot.slane %v994_v13, 4  ;;  %v1000_v21 = vshll.u32 %v4331_v6, 16 }
  0x91   : > { %v987_v41 = vor.u32 %v986_v14, %v983_v4  ;;  %v400_v35 = vmul.f32 %v4271_v1, %v342_v39  ;;  %v456_v27 = vadd.f32 %v4277_v16, %v398_v42  ;;  %v457_v8 = vadd.f32 %v4277_v16, %v399_v57 }
  0x92   : > { %v4346_v32 = vpack.c.b16 %v1036_v20, %v1035_v7  ;;  %v997_v26 = vor.u32 %v996_v18, %v992_v49  ;;  %v1002_v19 = vrot.slane %v1000_v21, 5  ;;  %v1255_v2 = vunpack.c.l.b16 %v3990_v23  ;;  %v3591_v20 = vld [vmem:[%s5184_s1 + $0x118] sm:$0xff] }
  0x93   : > { %v988_v3 = vrot.slane %v987_v41, 4  ;;  %v458_v40 = vadd.f32 %v4277_v16, %v400_v35  ;;  %v510_v37 = vmax.f32 %v456_v27, 0.0  ;;  %v511_v24 = vmax.f32 %v457_v8, 0.0  ;;  %v3587_v16 = vld [vmem:[%s5184_s1 + $0xf8] sm:$0xff]  ;;  %2756 = vmatpush.bf16.msra.mxu0 %v3591_v20 }
  0x94   : > { %5281 = vst [vmem:[#allocation26_spill] sm:$0xff] %v4346_v32  ;;  %3218 = vmatmul.msk.bf16.gmra.mxu2 %vm1085_vm2, %v4346_v32  ;;  %v998_v44 = vrot.slane %v997_v26, 4  ;;  %v1256_v39 = vunpack.c.l.b16 %v3993_v30  ;;  %v3579_v41 = vld [vmem:[%s5184_s1 + $0xb8] sm:$0xff]  ;;  %v3255_v14 = vrot.slane %v3990_v23, 9  ;;  %v5282_v27 = vmov 0  ;;  %2588 = vmatpush.bf16.msra.mxu3 %v3587_v16 }
  0x95   : > { %v993_v42 = vsel %vm3940_vm3, %v988_v3, %v992_v49  ;;  %v512_v13 = vmax.f32 %v458_v40, 0.0  ;;  %v4355_v57 = vpack.c.bf16 %v510_v37, %v510_v37  ;;  %v4357_v17 = vpack.c.bf16 %v511_v24, %v511_v24  ;;  %2242 = vmatpush.bf16.msra.mxu1 %v3579_v41 }
  0x96   : > { %v1003_v8 = vsel %vm3940_vm3, %v998_v44, %v1002_v19  ;;  %v1043_v7 = vunpack.c.l.b16 %v993_v42  ;;  %v1287_v4 = vpack.c.b16 %v1256_v39, %v1255_v2  ;;  %v5283_v27 = vsel %vm4377_vm6, 4294967295, %v5282_v27 }
  0x97   : > { %v1044_v49 = vunpack.c.l.b16 %v1003_v8  ;;  %v4371_v18 = vpack.c.bf16 %v512_v13, %v512_v13  ;;  %v693_v21 = vshrl.u32 %v4355_v57, 16  ;;  %v696_v35 = vshll.u32 %v4355_v57, 16  ;;  %5284 = vst [vmem:[#allocation27_spill] sm:$0xff] %v5283_v27 }
  0x98   : > { %v702_v23 = vshll.u32 %v4357_v17, 16  ;;  %v706_v19 = vshrl.u32 %v4357_v17, 16  ;;  %v1485_v26 = vrot.slane %v3993_v30, 5  ;;  %v1488_v2 = vrot.slane %v3995_v31, 5 }
  0x99   : > { %v4385_v3 = vpack.c.b16 %v1044_v49, %v1043_v7  ;;  %v695_v40 = vrot.slane %v693_v21, 4  ;;  %v698_v37 = vrot.slane %v696_v35, 5  ;;  %v712_v24 = vshll.u32 %v4371_v18, 16 }
  0x9a   : > { %v704_v44 = vrot.slane %v702_v23, 5  ;;  %v708_v39 = vrot.slane %v706_v19, 4  ;;  %3239 = vmatmul.msk.bf16.vlgmr.msrb.gmra.mxu1 %vm1085_vm2, %v1287_v4  ;;  %v1486_v42 = vsel %vm4377_vm6, %v3255_v14, %v1485_v26  ;;  %v1487_v13 = vrot.slane %v1485_v26, 4 }
  0x9b   : > { %3222 = vmatmul.msk.bf16.gmra.mxu3 %vm1085_vm2, %v4385_v3  ;;  %v699_v30 = vor.u32 %v698_v37, %v695_v40  ;;  %v714_v16 = vrot.slane %v712_v24, 5  ;;  %v1604_v8 = vunpack.c.l.b16 %v1486_v42  ;;  %v1259_v21 = vunpack.c.l.b16 %v4223_v33 }
  0x9c   : > { %v709_v31 = vor.u32 %v708_v39, %v704_v44  ;;  %v1489_v41 = vsel %vm4377_vm6, %v1487_v13, %v1488_v2  ;;  %v1260_v4 = vunpack.c.l.b16 %v4225_v54  ;;  %v1492_v2 = vrot.slane %v4108_v61, 5 }
  0x9d   : > { %v700_v7 = vrot.slane %v699_v30, 4  ;;  %v1605_v20 = vunpack.c.l.b16 %v1489_v41  ;;  %v1257_v24 = vunpack.c.l.b16 %v4103_v53  ;;  %v1258_v39 = vunpack.c.l.b16 %v4108_v61 }
  0x9e   : > { %v710_v49 = vrot.slane %v709_v31, 4  ;;  %v4401_v26 = vpack.c.b16 %v1260_v4, %v1259_v21  ;;  %v1495_v42 = vrot.slane %v4111_v63, 5  ;;  %v1494_v13 = vrot.slane %v1492_v2, 4 }
  0x9f   : > { %v705_v14 = vsel %vm3940_vm3, %v700_v7, %v704_v44  ;;  %v1636_v19 = vpack.c.b16 %v1605_v20, %v1604_v8  ;;  %v3256_v44 = vrot.slane %v4103_v53, 9  ;;  %v3257_v30 = vrot.slane %v4223_v33, 9 }
  0xa0   : > { %v715_v35 = vsel %vm3940_vm3, %v710_v49, %v714_v16  ;;  %v1019_v23 = vunpack.c.l.b16 %v705_v14  ;;  %v1499_v31 = vrot.slane %v4225_v54, 5  ;;  %v1502_v16 = vrot.slane %v4231_v12, 5 }
  0xa1   : > { %v1020_v40 = vunpack.c.l.b16 %v715_v35  ;;  %v1288_v41 = vpack.c.b16 %v1258_v39, %v1257_v24  ;;  %v1493_v53 = vsel %vm4377_vm6, %v3256_v44, %v1492_v2  ;;  %v1496_v63 = vsel %vm4377_vm6, %v1494_v13, %v1495_v42 }
  0xa2   : > { %v1500_v61 = vsel %vm4377_vm6, %v3257_v30, %v1499_v31  ;;  %v1501_v8 = vrot.slane %v1499_v31, 4  ;;  %v1606_v54 = vunpack.c.l.b16 %v1493_v53  ;;  %v1607_v12 = vunpack.c.l.b16 %v1496_v63 }
  0xa3   : > { %v4404_v37 = vpack.c.b16 %v1020_v40, %v1019_v23  ;;  %v1608_v7 = vunpack.c.l.b16 %v1500_v61  ;;  %v1506_v4 = vrot.slane %v4357_v17, 5  ;;  %v1261_v14 = vunpack.c.l.b16 %v4355_v57  ;;  %v3586_v61 = vld [vmem:[%s5184_s1 + $0xf0] sm:$0xff] }
  0xa4   : > { %3295 = vmatmul.msk.bf16.vlgmr.msrb.gmra.mxu2 %vm1085_vm2, %v1636_v19  ;;  %v1503_v20 = vsel %vm4377_vm6, %v1501_v8, %v1502_v16  ;;  %v4428_v21 = vpack.c.b16 %v1607_v12, %v1606_v54  ;;  %v1262_v35 = vunpack.c.l.b16 %v4357_v17  ;;  %v1509_v19 = vrot.slane %v4371_v18, 5  ;;  %v3578_v8 = vld [vmem:[%s5184_s1 + $0xb0] sm:$0xff]  ;;  %2589 = vmatpush.bf16.msra.mxu3 %v3586_v61 }
  0xa5   : > { %3210 = vmatmul.msk.bf16.gmra.mxu0 %vm1085_vm2, %v4404_v37  ;;  %v1609_v33 = vunpack.c.l.b16 %v1503_v20  ;;  %v1508_v23 = vrot.slane %v1506_v4, 4  ;;  %v1513_v42 = vrot.slane %v3907_v47, 5  ;;  %v1263_v13 = vunpack.c.l.b16 %v3905_v46  ;;  %2243 = vmatpush.bf16.msra.mxu1 %v3578_v8 }
  0xa6   : > { %v4447_v40 = vpack.c.b16 %v1262_v35, %v1261_v14  ;;  %v1264_v30 = vunpack.c.l.b16 %v3907_v47  ;;  %v3259_v31 = vrot.slane %v3905_v46, 9  ;;  %v3590_v47 = vld [vmem:[%s5184_s1 + $0x110] sm:$0xff]  ;;  %v1265_v35 = vunpack.c.l.b16 %v4009_v56 }
  0xa7   : > { %v4426_v49 = vpack.c.b16 %v1609_v33, %v1608_v7  ;;  %v1510_v24 = vsel %vm4377_vm6, %v1508_v23, %v1509_v19  ;;  %v4460_v39 = vpop.f32.mrf.mxu1  ;;  %v1515_v16 = vrot.slane %v1513_v42, 4  ;;  %2757 = vmatpush.bf16.msra.mxu0 %v3590_v47  ;;  %v3260_v19 = vrot.slane %v4009_v56, 9 }
  0xa8   : > { %v1611_v18 = vunpack.c.l.b16 %v1510_v24  ;;  %v4484_v53 = vpack.c.b16 %v1264_v30, %v1263_v13  ;;  %v1514_v46 = vsel %vm4377_vm6, %v3259_v31, %v1513_v42  ;;  %v1523_v24 = vrot.slane %v4013_v59, 5 }
  0xa9   : > { %v1612_v20 = vunpack.c.l.b16 %v1514_v46  ;;  %v1267_v61 = vunpack.c.l.b16 %v4127_v38  ;;  %v1268_v8 = vunpack.c.l.b16 %v4129_v45  ;;  %v3261_v46 = vrot.slane %v4127_v38, 9 }
  0xaa   : > { %3240 = vmatmul.msk.bf16.gmra.mxu1 %vm1085_vm2, %v1288_v41 }
  0xab   : > { %3335 = vmatmul.msk.bf16.vlgmr.msrb.gmra.mxu3 %vm1085_vm2, %v1288_v41  ;;  %v1516_v41 = vrot.slane %v3909_v48, 5 }
  0xad   : > { %v1517_v48 = vsel %vm4377_vm6, %v1515_v16, %v1516_v41  ;;  %v1527_v41 = vrot.slane %v4129_v45, 5 }
  0xae   : > { %v1613_v33 = vunpack.c.l.b16 %v1517_v48 }
  0xaf   : > { %v4482_v7 = vpop.f32.mrf.mxu1  ;;  %v1529_v48 = vrot.slane %v1527_v41, 4  ;;  %v1528_v45 = vsel %vm4377_vm6, %v3261_v46, %v1527_v41 }
  0xb0   : > { %v4498_v12 = vpack.c.b16 %v1613_v33, %v1612_v20  ;;  %v1530_v20 = vrot.slane %v4135_v62, 5  ;;  %v1616_v38 = vunpack.c.l.b16 %v1528_v45 }
  0xb1   : > { %v4494_v63 = vpop.f32.mrf.mxu2 }
  0xb4   : > { %3296 = vmatmul.msk.bf16.gmra.mxu2 %vm1085_vm2, %v4428_v21 }
  0xb5   : > { %3375 = vmatmul.msk.bf16.vlgmr.msrb.gmra.mxu0 %vm1085_vm2, %v4152_v36  ;;  %v3258_v36 = vrot.slane %v4355_v57, 9  ;;  %v3582_v57 = vld [vmem:[%s5184_s1 + $0xd0] sm:$0xff] }
  0xb6   : > { %2405 = vmatpush.bf16.msra.mxu2 %v3582_v57 }
  0xb7   : > { %v1507_v2 = vsel %vm4377_vm6, %v3258_v36, %v1506_v4  ;;  %v1520_v4 = vrot.slane %v4011_v58, 5  ;;  %v1266_v36 = vunpack.c.l.b16 %v4011_v58 }
  0xb8   : > { %v1610_v17 = vunpack.c.l.b16 %v1507_v2  ;;  %v4501_v14 = vpop.f32.mrf.mxu3 }
  0xb9   : > { %5285 = vst [vmem:[#allocation28_spill] sm:$0xff] %v4501_v14  ;;  %v4509_v23 = vpop.f32.mrf.mxu2  ;;  %v1522_v2 = vrot.slane %v1520_v4, 4  ;;  %v1521_v58 = vsel %vm4377_vm6, %v3260_v19, %v1520_v4  ;;  %v4548_v4 = vpack.c.b16 %v1268_v8, %v1267_v61  ;;  %v3262_v8 = vrot.slane %v4247_v22, 9 }
  0xba   : > { %3241 = vmatmul.msk.bf16.gmra.mxu1 %vm1085_vm2, %v4401_v26  ;;  %v4462_v44 = vpack.c.b16 %v1611_v18, %v1610_v17  ;;  %v4515_v17 = vpack.c.b16 %v1266_v36, %v1265_v35  ;;  %v1614_v59 = vunpack.c.l.b16 %v1521_v58  ;;  %v1531_v36 = vsel %vm4377_vm6, %v1529_v48, %v1530_v20 }
  0xbb   : > { %3336 = vmatmul.msk.bf16.gmra.mxu3 %vm1085_vm2, %v4401_v26  ;;  %v1524_v18 = vsel %vm4377_vm6, %v1522_v2, %v1523_v24  ;;  %5288 = vst [vmem:[#allocation31_spill] sm:$0xff] %v4548_v4  ;;  %v1617_v62 = vunpack.c.l.b16 %v1531_v36  ;;  %v1537_v48 = vrot.slane %v4255_v55, 5  ;;  %v1276_v14 = vunpack.c.l.b16 %v4162_v11 }
  0xbc   : > { %v1615_v13 = vunpack.c.l.b16 %v1524_v18  ;;  %v1534_v18 = vrot.slane %v4249_v29, 5 }
  0xbd   : > { %v4513_v57 = vpop.f32.mrf.mxu0  ;;  %v4566_v58 = vpack.c.b16 %v1617_v62, %v1616_v38 }
  0xbe   : > { %v4533_v16 = vpack.c.b16 %v1615_v13, %v1614_v59  ;;  %v1269_v59 = vunpack.c.l.b16 %v4247_v22  ;;  %v1270_v13 = vunpack.c.l.b16 %v4249_v29  ;;  %v1536_v46 = vrot.slane %v1534_v18, 4 }
  0xbf   : > { %5290 = vst [vmem:[#allocation33_spill] sm:$0xff] %v4566_v58  ;;  %v1535_v29 = vsel %vm4377_vm6, %v3262_v8, %v1534_v18  ;;  %v1541_v8 = vrot.slane %v3914_v51, 5 }
  0xc0   : > { %v4527_v56 = vpop.f32.mrf.mxu3  ;;  %v4581_v20 = vpack.c.b16 %v1270_v13, %v1269_v59  ;;  %v1538_v36 = vsel %vm4377_vm6, %v1536_v46, %v1537_v48  ;;  %v1618_v22 = vunpack.c.l.b16 %v1535_v29  ;;  %v3581_v46 = vld [vmem:[%s5184_s1 + $0xc8] sm:$0xff]  ;;  %v1271_v48 = vunpack.c.l.b16 %v3912_v50 }
  0xc1   : > { %5286 = vst [vmem:[#allocation29_spill] sm:$0xff] %v4527_v56  ;;  %v1619_v55 = vunpack.c.l.b16 %v1538_v36  ;;  %v3263_v36 = vrot.slane %v3912_v50, 9  ;;  %2406 = vmatpush.bf16.msra.mxu2 %v3581_v46  ;;  %v1274_v56 = vunpack.c.l.b16 %v4056_v9 }
  0xc2   : > { %v4496_v54 = vpop.f32.mrf.mxu1  ;;  %5291 = vst [vmem:[#allocation34_spill] sm:$0xff] %v4581_v20 }
  0xc3   : > { %v4601_v18 = vpack.c.b16 %v1619_v55, %v1618_v22  ;;  %v1543_v22 = vrot.slane %v1541_v8, 4  ;;  %v1544_v55 = vrot.slane %v3916_v52, 5  ;;  %v1542_v52 = vsel %vm4377_vm6, %v3263_v36, %v1541_v8 }
  0xc4   : > { %3297 = vmatmul.msk.bf16.gmra.mxu2 %vm1085_vm2, %v4426_v49 }
  0xc5   : > { %3376 = vmatmul.msk.bf16.gmra.mxu0 %vm1085_vm2, %v4282_v25  ;;  %v4531_v31 = vpop.f32.mrf.mxu0  ;;  %5293 = vst [vmem:[#allocation36_spill] sm:$0xff] %v4601_v18  ;;  %v1545_v46 = vsel %vm4377_vm6, %v1543_v22, %v1544_v55  ;;  %v1548_v22 = vrot.slane %v4056_v9, 5 }
  0xca   : > { %3242 = vmatmul.msk.bf16.gmra.mxu1 %vm1085_vm2, %v4447_v40  ;;  %v4521_v42 = vpop.f32.mrf.mxu1 }
  0xcb   : > { %3337 = vmatmul.msk.bf16.gmra.mxu3 %vm1085_vm2, %v4447_v40 }
  0xd4   : > { %3298 = vmatmul.msk.bf16.gmra.mxu2 %vm1085_vm2, %v4462_v44  ;;  %v4529_v30 = vpop.f32.mrf.mxu2 }
  0xd5   : > { %3377 = vmatmul.msk.bf16.gmra.mxu0 %vm1085_vm2, %v4404_v37 }
  0xda   : > { %3243 = vmatmul.msk.bf16.gmra.mxu1 %vm1085_vm2, %v4484_v53  ;;  %v4546_v33 = vpop.f32.mrf.mxu3 }
  0xdb   : > { %3338 = vmatmul.msk.bf16.gmra.mxu3 %vm1085_vm2, %v4484_v53  ;;  %5287 = vst [vmem:[#allocation30_spill] sm:$0xff] %v4546_v33 }
  0xdc   : > { %v4550_v35 = vpop.f32.mrf.mxu2 }
  0xde   : > { %v4556_v19 = vpop.f32.mrf.mxu0 }
  0xe2   : > { %v4564_v24 = vpop.f32.mrf.mxu3 }
  0xe3   : > { %5289 = vst [vmem:[#allocation32_spill] sm:$0xff] %v4564_v24  ;;  %v3585_v24 = vld [vmem:[%s5184_s1 + $0xe8] sm:$0xff] }
  0xe4   : > { %3299 = vmatmul.msk.bf16.gmra.mxu2 %vm1085_vm2, %v4498_v12  ;;  %2590 = vmatpush.bf16.msra.mxu3 %v3585_v24  ;;  %v1620_v24 = vunpack.c.l.b16 %v1542_v52  ;;  %v3264_v52 = vrot.slane %v4043_v0, 9 }
  0xe5   : > { %3378 = vmatmul.msk.bf16.gmra.mxu0 %vm1085_vm2, %v3961_v43  ;;  %v4538_v47 = vpop.f32.mrf.mxu1 }
  0xe6   : > { %v4573_v61 = vpop.f32.mrf.mxu0 }
  0xea   : > { %3244 = vmatmul.msk.bf16.gmra.mxu1 %vm1085_vm2, %v4515_v17 }
  0xeb   : > { %3339 = vmatmul.msk.bf16.gmra.mxu3 %vm1085_vm2, %v4515_v17 }
  0xed   : > { %v4562_v2 = vpop.f32.mrf.mxu1 }
  0xf4   : > { %3300 = vmatmul.msk.bf16.gmra.mxu2 %vm1085_vm2, %v4533_v16 }
  0xf5   : > { %3379 = vmatmul.msk.bf16.gmra.mxu0 %vm1085_vm2, %v4061_v28  ;;  %v4571_v41 = vpop.f32.mrf.mxu2 }
  0xfa   : > { %3245 = vmatmul.msk.bf16.gmra.mxu1 %vm1085_vm2, %v4548_v4 }
  0xfb   : > { %3340 = vmatmul.msk.bf16.gmra.mxu3 %vm1085_vm2, %v4548_v4 }
  0xfc   : > { %v4589_v38 = vpop.f32.mrf.mxu3 }
  0xfd   : > { %5292 = vst [vmem:[#allocation35_spill] sm:$0xff] %v4589_v38  ;;  %v4595_v62 = vpop.f32.mrf.mxu2  ;;  %v1272_v38 = vunpack.c.l.b16 %v3914_v51  ;;  %v3577_v51 = vld [vmem:[%s5184_s1 + $0xa8] sm:$0xff] }
  0xfe   : > { %2244 = vmatpush.bf16.msra.mxu1 %v3577_v51 }
 0x100   : > { %v4597_v59 = vpop.f32.mrf.mxu0 }
 0x104   : > { %3301 = vmatmul.msk.bf16.gmra.mxu2 %vm1085_vm2, %v4566_v58  ;;  %v4609_v29 = vpop.f32.mrf.mxu3 }
 0x105   : > { %3380 = vmatmul.msk.bf16.gmra.mxu0 %vm1085_vm2, %v4186_v60  ;;  %5294 = vst [vmem:[#allocation37_spill] sm:$0xff] %v4609_v29  ;;  %v4623_v29 = vpack.c.b16 %v1272_v38, %v1271_v48  ;;  %v3589_v38 = vld [vmem:[%s5184_s1 + $0x108] sm:$0xff]  ;;  %v1621_v48 = vunpack.c.l.b16 %v1545_v46  ;;  %v1550_v46 = vrot.slane %v1548_v22, 4 }
 0x106   : > { %2758 = vmatpush.bf16.msra.mxu0 %v3589_v38  ;;  %v1551_v38 = vrot.slane %v4058_v10, 5 }
 0x107   : > { %v4583_v45 = vpop.f32.mrf.mxu1  ;;  %5295 = vst [vmem:[#allocation38_spill] sm:$0xff] %v4623_v29  ;;  %v4644_v36 = vpack.c.b16 %v1621_v48, %v1620_v24 }
 0x108   : > { %v4627_v50 = vpop.f32.mrf.mxu0 }
 0x109   : > { %5297 = vst [vmem:[#allocation40_spill] sm:$0xff] %v4644_v36 }
 0x10a   : > { %3246 = vmatmul.msk.bf16.gmra.mxu1 %vm1085_vm2, %v4581_v20 }
 0x10b   : > { %3341 = vmatmul.msk.bf16.gmra.mxu3 %vm1085_vm2, %v4581_v20  ;;  %v1273_v20 = vunpack.c.l.b16 %v4043_v0 }
 0x10f   : > { %v4599_v13 = vpop.f32.mrf.mxu1 }
 0x114   : > { %3302 = vmatmul.msk.bf16.gmra.mxu2 %vm1085_vm2, %v4601_v18 }
 0x115   : > { %3381 = vmatmul.msk.bf16.gmra.mxu0 %vm1085_vm2, %v4316_v34 }
 0x117   : > { %v4625_v18 = vpop.f32.mrf.mxu2  ;;  %v1384_v33 = vpop.f32.mrf.mxu1 }
 0x118   : > { %v1385_v48 = vadd.f32 %v1384_v33, %v4513_v57 }
 0x11a   : > { %3247 = vmatmul.msk.bf16.gmra.mxu1 %vm1085_vm2, %v4623_v29 }
 0x11b   : > { %3342 = vmatmul.msk.bf16.gmra.mxu3 %vm1085_vm2, %v4623_v29 }
 0x11e   : > { %v4640_v51 = vpop.f32.mrf.mxu3 }
 0x11f   : > { %5296 = vst [vmem:[#allocation39_spill] sm:$0xff] %v4640_v51  ;;  %v4642_v34 = vpop.f32.mrf.mxu2  ;;  %v1386_v8 = vpop.f32.mrf.mxu1  ;;  %v4660_v51 = vpack.c.b16 %v1274_v56, %v1273_v20 }
 0x120   : > { %v1387_v56 = vadd.f32 %v1386_v8, %v4531_v31 }
 0x122   : > { %v4647_v55 = vpop.f32.mrf.mxu0 }
 0x124   : > { %3303 = vmatmul.msk.bf16.gmra.mxu2 %vm1085_vm2, %v4644_v36  ;;  %v1549_v36 = vsel %vm4377_vm6, %v3264_v52, %v1548_v22 }
 0x125   : > { %3382 = vmatmul.msk.bf16.gmra.mxu0 %vm1085_vm2, %v3976_v5  ;;  %v1552_v5 = vsel %vm4377_vm6, %v1550_v46, %v1551_v38  ;;  %v1622_v0 = vunpack.c.l.b16 %v1549_v36  ;;  %v1555_v46 = vrot.slane %v4162_v11, 5  ;;  %v5302_v36 = vld [vmem:[#allocation13_spill] sm:$0xff] }
 0x126   : > { %v4657_v24 = vpop.f32.mrf.mxu3  ;;  %v1623_v10 = vunpack.c.l.b16 %v1552_v5  ;;  %v5301_v5 = vld [vmem:[#allocation10_spill] sm:$0xff] }
 0x127   : > { %5298 = vst [vmem:[#allocation41_spill] sm:$0xff] %v4657_v24  ;;  %v1733_v29 = vpop.f32.mrf.mxu2  ;;  %v1389_v60 = vpop.f32.mrf.mxu1  ;;  %v1557_v8 = vrot.slane %v1555_v46, 4 }
 0x128   : > { %v1813_v9 = vadd.f32 %v1733_v29, %v1385_v48  ;;  %v4673_v52 = vpack.c.b16 %v1623_v10, %v1622_v0  ;;  %v5299_v48 = vld [vmem:[#allocation12_spill] sm:$0xff]  ;;  %v1390_v10 = vadd.f32 %v1389_v60, %v4556_v19 }
 0x129   : > { %v1275_v24 = vunpack.c.l.b16 %v5299_v48  ;;  %v3265_v31 = vrot.slane %v5299_v48, 9 }
 0x12a   : > { %v4666_v58 = vpop.f32.mrf.mxu0  ;;  %3248 = vmatmul.msk.bf16.gmra.mxu1 %vm1085_vm2, %v4660_v51 }
 0x12b   : > { %3343 = vmatmul.msk.bf16.gmra.mxu3 %vm1085_vm2, %v4660_v51 }
 0x12e   : > { %v1895_v57 = vpop.f32.mrf.mxu3 }
 0x12f   : > { %v1975_v33 = vadd.f32 %v1895_v57, %v1813_v9  ;;  %v1735_v20 = vpop.f32.mrf.mxu2  ;;  %v1391_v29 = vpop.f32.mrf.mxu1  ;;  %v1558_v9 = vrot.slane %v5302_v36, 5 }
 0x130   : > { %v1814_v22 = vadd.f32 %v1735_v20, %v1387_v56  ;;  %v4687_v56 = vpack.c.b16 %v1276_v14, %v1275_v24 }
 0x131   : > { %v1559_v48 = vsel %vm4377_vm6, %v1557_v8, %v1558_v9  ;;  %v5304_v9 = vld [vmem:[#allocation21_spill] sm:$0xff] }
 0x132   : > { %v2079_v38 = vpop.f32.mrf.mxu0  ;;  %5303 = vst [vmem:[#allocation13_spill] sm:$0xff] %v4687_v56  ;;  %v1625_v19 = vunpack.c.l.b16 %v1559_v48 }
 0x133   : > { %v4678_v4 = vadd.f32 %v2079_v38, %v1975_v33 }
 0x134   : > { %3304 = vmatmul.msk.bf16.gmra.mxu2 %vm1085_vm2, %v4673_v52 }
 0x135   : > { %5300 = vst [vmem:[#allocation12_spill] sm:$0xff] %v4678_v4  ;;  %3383 = vmatmul.msk.bf16.gmra.mxu0 %vm1085_vm2, %v5301_v5  ;;  %v1556_v4 = vsel %vm4377_vm6, %v3265_v31, %v1555_v46 }
 0x136   : > { %v1897_v0 = vpop.f32.mrf.mxu3  ;;  %v1624_v14 = vunpack.c.l.b16 %v1556_v4 }
 0x137   : > { %v1976_v57 = vadd.f32 %v1897_v0, %v1814_v22  ;;  %v1738_v11 = vpop.f32.mrf.mxu2  ;;  %v1394_v33 = vpop.f32.mrf.mxu1 }
 0x138   : > { %v1815_v20 = vadd.f32 %v1738_v11, %v1390_v10  ;;  %v1395_v38 = vadd.f32 %v1394_v33, %v4597_v59  ;;  %v1392_v59 = vadd.f32 %v1391_v29, %v4573_v61  ;;  %v4701_v0 = vpack.c.b16 %v1625_v19, %v1624_v14  ;;  %v5305_v33 = vld [vmem:[#allocation20_spill] sm:$0xff]  ;;  %v5307_v61 = vld [vmem:[#allocation18_spill] sm:$0xff] }
 0x139   : > { %v1562_v10 = vrot.slane %v5304_v9, 5  ;;  %v3266_v29 = vrot.slane %v5305_v33, 9 }
 0x13a   : > { %v2081_v5 = vpop.f32.mrf.mxu0  ;;  %3249 = vmatmul.msk.bf16.gmra.mxu1 %vm1085_vm2, %v4687_v56 }
 0x13b   : > { %3344 = vmatmul.msk.bf16.gmra.mxu3 %vm1085_vm2, %v4687_v56  ;;  %v4698_v60 = vadd.f32 %v2081_v5, %v1976_v57  ;;  %v1277_v56 = vunpack.c.l.b16 %v5305_v33  ;;  %v1278_v5 = vunpack.c.l.b16 %v5304_v9  ;;  %v1564_v57 = vrot.slane %v1562_v10, 4 }
 0x13d   : > { %v4715_v19 = vpack.c.b16 %v1278_v5, %v1277_v56 }
 0x13e   : > { %v1900_v24 = vpop.f32.mrf.mxu3 }
 0x13f   : > { %v1977_v22 = vadd.f32 %v1900_v24, %v1815_v20  ;;  %v1740_v36 = vpop.f32.mrf.mxu2  ;;  %v1396_v46 = vpop.f32.mrf.mxu1  ;;  %v5308_v20 = vld [vmem:[#allocation22_spill] sm:$0xff] }
 0x140   : > { %v1816_v31 = vadd.f32 %v1740_v36, %v1392_v59  ;;  %v1397_v8 = vadd.f32 %v1396_v46, %v4627_v50  ;;  %v1565_v50 = vrot.slane %v5308_v20, 5  ;;  %v1563_v46 = vsel %vm4377_vm6, %v3266_v29, %v1562_v10 }
 0x142   : > { %v2084_v11 = vpop.f32.mrf.mxu0  ;;  %v1566_v9 = vsel %vm4377_vm6, %v1564_v57, %v1565_v50  ;;  %v5311_v57 = vld [vmem:[#allocation3_spill] sm:$0xff] }
 0x143   : > { %v4707_v4 = vadd.f32 %v2084_v11, %v1977_v22  ;;  %v1627_v33 = vunpack.c.l.b16 %v1566_v9  ;;  %v1569_v50 = vrot.slane %v5311_v57, 5 }
 0x144   : > { %3305 = vmatmul.msk.bf16.gmra.mxu2 %vm1085_vm2, %v4701_v0 }
 0x145   : > { %5306 = vst [vmem:[#allocation21_spill] sm:$0xff] %v4707_v4  ;;  %3384 = vmatmul.msk.bf16.gmra.mxu0 %vm1085_vm2, %v5307_v61 }
 0x146   : > { %v1902_v48 = vpop.f32.mrf.mxu3 }
 0x147   : > { %v1978_v14 = vadd.f32 %v1902_v48, %v1816_v31  ;;  %v1743_v24 = vpop.f32.mrf.mxu2  ;;  %v1399_v59 = vpop.f32.mrf.mxu1  ;;  %v1626_v31 = vunpack.c.l.b16 %v1563_v46  ;;  %v1280_v46 = vunpack.c.l.b16 %v5311_v57 }
 0x148   : > { %v1817_v36 = vadd.f32 %v1743_v24, %v1395_v38  ;;  %v1400_v22 = vadd.f32 %v1399_v59, %v4647_v55  ;;  %v3580_v59 = vld [vmem:[%s5184_s1 + $0xc0] sm:$0xff] }
 0x149   : > { %v4728_v10 = vpack.c.b16 %v1627_v33, %v1626_v31  ;;  %2407 = vmatpush.bf16.msra.mxu2 %v3580_v59  ;;  %v3584_v33 = vld [vmem:[%s5184_s1 + $0xe0] sm:$0xff] }
 0x14a   : > { %v2086_v11 = vpop.f32.mrf.mxu0  ;;  %3250 = vmatmul.msk.bf16.gmra.mxu1 %vm1085_vm2, %v4715_v19  ;;  %2591 = vmatpush.bf16.msra.mxu3 %v3584_v33 }
 0x14b   : > { %3345 = vmatmul.msk.bf16.gmra.mxu3 %vm1085_vm2, %v4715_v19  ;;  %v4726_v56 = vadd.f32 %v2086_v11, %v1978_v14  ;;  %5310 = vst [vmem:[#allocation18_spill] sm:$0xff] %v4728_v10  ;;  %v5312_v14 = vld [vmem:[#allocation2_spill] sm:$0xff] }
 0x14c   : > { %v1279_v11 = vunpack.c.l.b16 %v5312_v14 }
 0x14d   : > { %5309 = vst [vmem:[#allocation20_spill] sm:$0xff] %v4726_v56 }
 0x14e   : > { %v1905_v38 = vpop.f32.mrf.mxu3 }
 0x14f   : > { %v1979_v5 = vadd.f32 %v1905_v38, %v1817_v36  ;;  %v1745_v55 = vpop.f32.mrf.mxu2  ;;  %v1401_v20 = vpop.f32.mrf.mxu1  ;;  %v5314_v36 = vld [vmem:[#allocation4_spill] sm:$0xff]  ;;  %v3576_v38 = vld [vmem:[%s5184_s1 + $0xa0] sm:$0xff] }
 0x150   : > { %v1818_v48 = vadd.f32 %v1745_v55, %v1397_v8  ;;  %v1402_v29 = vadd.f32 %v1401_v20, %v4666_v58  ;;  %v3267_v58 = vrot.slane %v5312_v14, 9  ;;  %v1571_v8 = vrot.slane %v1569_v50, 4  ;;  %2245 = vmatpush.bf16.msra.mxu1 %v3576_v38 }
 0x151   : > { %v1572_v31 = vrot.slane %v5314_v36, 5  ;;  %v4751_v20 = vpack.c.b16 %v1280_v46, %v1279_v11 }
 0x152   : > { %v2089_v24 = vpop.f32.mrf.mxu0  ;;  %v1570_v59 = vsel %vm4377_vm6, %v3267_v58, %v1569_v50 }
 0x153   : > { %v4737_v9 = vadd.f32 %v2089_v24, %v1979_v5  ;;  %5315 = vst [vmem:[#allocation3_spill] sm:$0xff] %v4751_v20  ;;  %v1573_v36 = vsel %vm4377_vm6, %v1571_v8, %v1572_v31 }
 0x154   : > { %3306 = vmatmul.msk.bf16.gmra.mxu2 %vm1085_vm2, %v4728_v10  ;;  %v1629_v46 = vunpack.c.l.b16 %v1573_v36 }
 0x155   : > { %5313 = vst [vmem:[#allocation22_spill] sm:$0xff] %v4737_v9  ;;  %3385 = vmatmul.msk.bf16.gmra.mxu0 %vm1085_vm2, %v4346_v32  ;;  %v5318_v32 = vld [vmem:[#allocation7_spill] sm:$0xff] }
 0x156   : > { %v1907_v5 = vpop.f32.mrf.mxu3  ;;  %v1281_v10 = vunpack.c.l.b16 %v5318_v32 }
 0x157   : > { %v1980_v55 = vadd.f32 %v1907_v5, %v1818_v48  ;;  %v1748_v57 = vpop.f32.mrf.mxu2  ;;  %v1404_v24 = vpop.f32.mrf.mxu1  ;;  %v3588_v48 = vld [vmem:[%s5184_s1 + $0x100] sm:$0xff]  ;;  %v5317_v5 = vld [vmem:[#allocation8_spill] sm:$0xff] }
 0x158   : > { %v1819_v14 = vadd.f32 %v1748_v57, %v1400_v22  ;;  %v1628_v22 = vunpack.c.l.b16 %v1570_v59  ;;  %2759 = vmatpush.bf16.msra.mxu0 %v3588_v48  ;;  %v1576_v57 = vrot.slane %v5317_v5, 5  ;;  %v1282_v4 = vunpack.c.l.b16 %v5317_v5 }
 0x159   : > { %v1405_v48 = vadd.f32 %v1404_v24, %v4460_v39 }
 0x15a   : > { %v2091_v9 = vpop.f32.mrf.mxu0  ;;  %3251 = vmatmul.msk.bf16.gmra.mxu1 %vm1085_vm2, %v4751_v20  ;;  %v4766_v38 = vpack.c.b16 %v1629_v46, %v1628_v22  ;;  %v4780_v46 = vpack.c.b16 %v1282_v4, %v1281_v10 }
 0x15b   : > { %3346 = vmatmul.msk.bf16.gmra.mxu3 %vm1085_vm2, %v4751_v20  ;;  %v4764_v11 = vadd.f32 %v2091_v9, %v1980_v55  ;;  %v5320_v9 = vld [vmem:[#allocation6_spill] sm:$0xff]  ;;  %v3268_v55 = vrot.slane %v5318_v32, 9 }
 0x15d   : > { %5316 = vst [vmem:[#allocation2_spill] sm:$0xff] %v4764_v11  ;;  %v5325_v11 = vld [vmem:[#allocation15_spill] sm:$0xff] }
 0x15e   : > { %v1910_v50 = vpop.f32.mrf.mxu3 }
 0x15f   : > { %v1981_v58 = vadd.f32 %v1910_v50, %v1819_v14  ;;  %v1750_v33 = vpop.f32.mrf.mxu2  ;;  %v1406_v8 = vpop.f32.mrf.mxu1  ;;  %v5321_v14 = vld [vmem:[#allocation9_spill] sm:$0xff] }
 0x160   : > { %v1820_v31 = vadd.f32 %v1750_v33, %v1402_v29  ;;  %v1578_v29 = vrot.slane %v1576_v57, 4  ;;  %v1579_v59 = vrot.slane %v5321_v14, 5  ;;  %v1577_v33 = vsel %vm4377_vm6, %v3268_v55, %v1576_v57 }
 0x161   : > { %v1630_v4 = vunpack.c.l.b16 %v1577_v33 }
 0x162   : > { %v2094_v56 = vpop.f32.mrf.mxu0  ;;  %v1580_v5 = vsel %vm4377_vm6, %v1578_v29, %v1579_v59  ;;  %v5324_v29 = vld [vmem:[#allocation16_spill] sm:$0xff] }
 0x163   : > { %v4771_v20 = vadd.f32 %v2094_v56, %v1981_v58  ;;  %v1631_v10 = vunpack.c.l.b16 %v1580_v5  ;;  %v1583_v59 = vrot.slane %v5324_v29, 5  ;;  %v5328_v5 = vld [vmem:[#allocation17_spill] sm:$0xff] }
 0x164   : > { %3307 = vmatmul.msk.bf16.gmra.mxu2 %vm1085_vm2, %v4766_v38 }
 0x165   : > { %5319 = vst [vmem:[#allocation4_spill] sm:$0xff] %v4771_v20  ;;  %3386 = vmatmul.msk.bf16.gmra.mxu0 %vm1085_vm2, %v5320_v9  ;;  %v1283_v9 = vunpack.c.l.b16 %v5325_v11  ;;  %v1585_v33 = vrot.slane %v1583_v59, 4 }
 0x166   : > { %v1912_v36 = vpop.f32.mrf.mxu3 }
 0x167   : > { %v1982_v22 = vadd.f32 %v1912_v36, %v1820_v31  ;;  %v1753_v50 = vpop.f32.mrf.mxu2  ;;  %v1409_v56 = vpop.f32.mrf.mxu1  ;;  %v1407_v31 = vadd.f32 %v1406_v8, %v4482_v7  ;;  %v5327_v8 = vld [vmem:[#allocation11_spill] sm:$0xff] }
 0x168   : > { %v1821_v58 = vadd.f32 %v1753_v50, %v1405_v48  ;;  %v4793_v48 = vpack.c.b16 %v1631_v10, %v1630_v4  ;;  %v3715_v50 = vld [vmem:[%s3861_s6 + $0xc0] sm:$0xff]   ;;  %v1586_v4 = vrot.slane %v5328_v5, 5 }
 0x169   : > { %v3626_v7 = vunpack.c.l.bf16 %v3715_v50 }
 0x16a   : > { %v2096_v32 = vpop.f32.mrf.mxu0  ;;  %3252 = vmatmul.msk.bf16.gmra.mxu1 %vm1085_vm2, %v4780_v46  ;;  %5323 = vst [vmem:[#allocation7_spill] sm:$0xff] %v4793_v48 }
 0x16b   : > { %3347 = vmatmul.msk.bf16.gmra.mxu3 %vm1085_vm2, %v4780_v46  ;;  %v4790_v39 = vadd.f32 %v2096_v32, %v1982_v22  ;;  %v1284_v22 = vunpack.c.l.b16 %v5324_v29 }
 0x16d   : > { %5322 = vst [vmem:[#allocation8_spill] sm:$0xff] %v4790_v39  ;;  %v437_v39 = vmul.f32 %v4271_v1, %v3626_v7 }
 0x16e   : > { %v1915_v24 = vpop.f32.mrf.mxu3 }
 0x16f   : > { %v1983_v14 = vadd.f32 %v1915_v24, %v1821_v58  ;;  %v1755_v57 = vpop.f32.mrf.mxu2  ;;  %v1411_v55 = vpop.f32.mrf.mxu1  ;;  %v3269_v58 = vrot.slane %v5325_v11, 9  ;;  %v1410_v24 = vadd.f32 %v1409_v56, %v4496_v54  ;;  %v1587_v11 = vsel %vm4377_vm6, %v1585_v33, %v1586_v4  ;;  %v327_v56 = vld [vmem:[%s3861_s6 + $0xc8] sm:$0x1] }
 0x170   : > { %v1822_v36 = vadd.f32 %v1755_v57, %v1407_v31  ;;  %v3627_v31 = vunpack.c.h.bf16 %v3715_v50  ;;  %v1633_v50 = vunpack.c.l.b16 %v1587_v11  ;;  %v381_v7 = vunpack.c.l.bf16 %v327_v56 }
 0x171   : > { %v1412_v33 = vadd.f32 %v1411_v55, %v4521_v42  ;;  %v5335_v55 = vld [vmem:[#allocation24_spill] sm:$0xff] }
 0x172   : > { %v2099_v20 = vpop.f32.mrf.mxu0  ;;  %v438_v54 = vmul.f32 %v4271_v1, %v3627_v31  ;;  %v5333_v31 = vld [vmem:[#allocation25_spill] sm:$0xff] }
 0x173   : > { %v4799_v32 = vadd.f32 %v2099_v20, %v1983_v14  ;;  %v4808_v20 = vpack.c.b16 %v1284_v22, %v1283_v9 }
 0x174   : > { %3308 = vmatmul.msk.bf16.gmra.mxu2 %vm1085_vm2, %v4793_v48 }
 0x175   : > { %5326 = vst [vmem:[#allocation9_spill] sm:$0xff] %v4799_v32  ;;  %3387 = vmatmul.msk.bf16.gmra.mxu0 %vm1085_vm2, %v5327_v8  ;;  %v1584_v8 = vsel %vm4377_vm6, %v3269_v58, %v1583_v59  ;;  %v4826_v59 = vld [vmem:[%s5186_s3] ss:$0 sm:$0xff] }
 0x176   : > { %v1917_v10 = vpop.f32.mrf.mxu3  ;;  %5329 = vst [vmem:[#allocation16_spill] sm:$0xff] %v4808_v20  ;;  %v495_v22 = vadd.f32 %v4826_v59, %v437_v39  ;;  %v496_v1 = vadd.f32 %v4826_v59, %v438_v54  ;;  %v1285_v54 = vunpack.c.l.b16 %v5335_v55 }
 0x177   : > { %v1984_v57 = vadd.f32 %v1917_v10, %v1822_v36  ;;  %v1758_v14 = vpop.f32.mrf.mxu2  ;;  %v1414_v29 = vpop.f32.mrf.mxu1  ;;  %v1632_v36 = vunpack.c.l.b16 %v1584_v8  ;;  %5331 = vst [vmem:[#allocation17_spill] sm:$0xff] %v4826_v59 }
 0x178   : > { %v1823_v32 = vadd.f32 %v1758_v14, %v1410_v24  ;;  %v549_v8 = vmax.f32 %v495_v22, 0.0  ;;  %v4837_v14 = vld [vmem:[%s5185_s2] ss:$0 sm:$0xff]  ;;  %v550_v42 = vmax.f32 %v496_v1, 0.0  ;;  %v3270_v22 = vrot.slane %v5335_v55, 9 }
 0x179   : > { %v4831_v24 = vpack.c.b16 %v1633_v50, %v1632_v36  ;;  %5334 = vst [vmem:[#allocation25_spill] sm:$0xff] %v4837_v14  ;;  %v439_v39 = vmul.f32 %v4837_v14, %v381_v7  ;;  %v5337_v50 = vld [vmem:[#allocation19_spill] sm:$0xff]  ;;  %v1593_v7 = vrot.slane %v4331_v6, 5 }
 0x17a   : > { %v2101_v48 = vpop.f32.mrf.mxu0  ;;  %3253 = vmatmul.msk.bf16.gmra.mxu1 %vm1085_vm2, %v4808_v20  ;;  %v4846_v36 = vpack.c.bf16 %v549_v8, %v549_v8 }
 0x17b   : > { %3348 = vmatmul.msk.bf16.gmra.mxu3 %vm1085_vm2, %v4808_v20  ;;  %v4821_v9 = vadd.f32 %v2101_v48, %v1984_v57  ;;  %5332 = vst [vmem:[#allocation42_spill] sm:$0xff] %v4831_v24  ;;  %v1590_v57 = vrot.slane %v5333_v31, 5 }
 0x17d   : > { %5330 = vst [vmem:[#allocation15_spill] sm:$0xff] %v4821_v9  ;;  %v1591_v14 = vsel %vm4377_vm6, %v3270_v22, %v1590_v57 }
 0x17e   : > { %v1920_v58 = vpop.f32.mrf.mxu3 }
 0x17f   : > { %v1985_v5 = vadd.f32 %v1920_v58, %v1823_v32  ;;  %v1760_v4 = vpop.f32.mrf.mxu2  ;;  %v1416_v10 = vpop.f32.mrf.mxu1  ;;  %v1286_v32 = vunpack.c.l.b16 %v5333_v31  ;;  %v1592_v58 = vrot.slane %v1590_v57, 4 }
 0x180   : > { %v1824_v48 = vadd.f32 %v1760_v4, %v1412_v33  ;;  %v497_v33 = vadd.f32 %v4826_v59, %v439_v39  ;;  %v1415_v4 = vadd.f32 %v1414_v29, %v4538_v47  ;;  %v2008_v39 = vshrl.u32 %v4846_v36, 16 }
 0x181   : > { %v1594_v55 = vsel %vm4377_vm6, %v1592_v58, %v1593_v7  ;;  %v2011_v47 = vshll.u32 %v4846_v36, 16  ;;  %v1417_v7 = vadd.f32 %v1416_v10, %v4562_v2 }
 0x182   : > { %v2104_v11 = vpop.f32.mrf.mxu0  ;;  %v551_v6 = vmax.f32 %v497_v33, 0.0  ;;  %v2010_v22 = vrot.slane %v2008_v39, 4 }
 0x183   : > { %v4842_v56 = vadd.f32 %v2104_v11, %v1985_v5  ;;  %v4854_v5 = vpack.c.bf16 %v550_v42, %v550_v42  ;;  %v4856_v11 = vpack.c.b16 %v1286_v32, %v1285_v54  ;;  %v1634_v42 = vunpack.c.l.b16 %v1591_v14 }
 0x184   : > { %3309 = vmatmul.msk.bf16.gmra.mxu2 %vm1085_vm2, %v4831_v24  ;;  %v1635_v54 = vunpack.c.l.b16 %v1594_v55  ;;  %v4872_v32 = vpack.c.bf16 %v551_v6, %v551_v6  ;;  %v2013_v33 = vrot.slane %v2011_v47, 5  ;;  %v1856_v55 = vunpack.c.l.b16 %v4846_v36 }
 0x185   : > { %5336 = vst [vmem:[#allocation24_spill] sm:$0xff] %v4842_v56  ;;  %3388 = vmatmul.msk.bf16.gmra.mxu0 %vm1085_vm2, %v5337_v50  ;;  %v2017_v29 = vshll.u32 %v4854_v5, 16  ;;  %v1857_v6 = vunpack.c.l.b16 %v4854_v5 }
 0x186   : > { %v1922_v1 = vpop.f32.mrf.mxu3  ;;  %5338 = vst [vmem:[#allocation43_spill] sm:$0xff] %v4856_v11  ;;  %v4875_v20 = vpack.c.b16 %v1635_v54, %v1634_v42  ;;  %v2027_v14 = vshll.u32 %v4872_v32, 16 }
 0x187   : > { %v1986_v31 = vadd.f32 %v1922_v1, %v1824_v48  ;;  %v1763_v8 = vpop.f32.mrf.mxu2  ;;  %v1419_v56 = vpop.f32.mrf.mxu1  ;;  %v2021_v48 = vshrl.u32 %v4854_v5, 16  ;;  %v2019_v1 = vrot.slane %v2017_v29, 5 }
 0x188   : > { %v1825_v9 = vadd.f32 %v1763_v8, %v1415_v4  ;;  %v1420_v2 = vadd.f32 %v1419_v56, %v4583_v45  ;;  %v2029_v47 = vrot.slane %v2027_v14, 5 }
 0x189   : > { %v2023_v4 = vrot.slane %v2021_v48, 4  ;;  %v4887_v48 = vpack.c.b16 %v1857_v6, %v1856_v55 }
 0x18a   : > { %v2106_v59 = vpop.f32.mrf.mxu0  ;;  %3254 = vmatmul.msk.bf16.gmra.mxu1 %vm1085_vm2, %v4856_v11 }
 0x18b   : > { %3349 = vmatmul.msk.bf16.gmra.mxu3 %vm1085_vm2, %v4856_v11  ;;  %v4870_v57 = vadd.f32 %v2106_v59, %v1986_v31  ;;  %v2014_v59 = vor.u32 %v2013_v33, %v2010_v22  ;;  %v2024_v31 = vor.u32 %v2023_v4, %v2019_v1 }
 0x18d   : > { %v2025_v10 = vrot.slane %v2024_v31, 4 }
 0x18e   : > { %v1925_v58 = vpop.f32.mrf.mxu3 }
 0x18f   : > { %v1987_v8 = vadd.f32 %v1925_v58, %v1825_v9  ;;  %v1765_v27 = vpop.f32.mrf.mxu2  ;;  %v1421_v50 = vpop.f32.mrf.mxu1  ;;  %v2015_v9 = vrot.slane %v2014_v59, 4 }
 0x190   : > { %v1826_v24 = vadd.f32 %v1765_v27, %v1417_v7  ;;  %v2030_v7 = vsel %vm3940_vm3, %v2025_v10, %v2029_v47  ;;  %v1422_v4 = vadd.f32 %v1421_v50, %v4599_v13 }
 0x191   : > { %v2020_v58 = vsel %vm3940_vm3, %v2015_v9, %v2019_v1  ;;  %v2041_v56 = vunpack.c.l.b16 %v2030_v7 }
 0x192   : > { %v2109_v11 = vpop.f32.mrf.mxu0 }
 0x193   : > { %v4880_v39 = vadd.f32 %v2109_v11, %v1987_v8 }
 0x194   : > { %3310 = vmatmul.msk.bf16.gmra.mxu2 %vm1085_vm2, %v4875_v20 }
 0x195   : > { %3389 = vmatmul.msk.bf16.gmra.mxu0 %vm1085_vm2, %v4385_v3 }
 0x196   : > { %v1927_v27 = vpop.f32.mrf.mxu3 }
 0x197   : > { %v1988_v29 = vadd.f32 %v1927_v27, %v1826_v24  ;;  %v1768_v42 = vpop.f32.mrf.mxu2  ;;  %v1424_v54 = vpop.f32.mrf.mxu1  ;;  %v2040_v24 = vunpack.c.l.b16 %v2020_v58 }
 0x198   : > { %v1827_v22 = vadd.f32 %v1768_v42, %v1420_v2  ;;  %v1425_v27 = vadd.f32 %v1424_v54, %v4494_v63 }
 0x199   : > { %v4900_v14 = vpack.c.b16 %v2041_v56, %v2040_v24 }
 0x19a   : > { %v2111_v11 = vpop.f32.mrf.mxu0  ;;  %3416 = vmatmul.msk.bf16.vlgmr.msra.gmra.mxu1 %vm1085_vm2, %v4428_v21 }
 0x19b   : > { %3350 = vmatmul.msk.bf16.gmra.mxu3 %vm1085_vm2, %v4887_v48  ;;  %v4897_v45 = vadd.f32 %v2111_v11, %v1988_v29 }
 0x19e   : > { %v1930_v33 = vpop.f32.mrf.mxu3 }
 0x19f   : > { %v1989_v8 = vadd.f32 %v1930_v33, %v1827_v22  ;;  %v1770_v59 = vpop.f32.mrf.mxu2  ;;  %v1426_v31 = vpop.f32.mrf.mxu1 }
 0x1a0   : > { %v1828_v1 = vadd.f32 %v1770_v59, %v1422_v4  ;;  %v1427_v29 = vadd.f32 %v1426_v31, %v4509_v23 }
 0x1a2   : > { %v2114_v55 = vpop.f32.mrf.mxu0 }
 0x1a3   : > { %v4902_v6 = vadd.f32 %v2114_v55, %v1989_v8 }
 0x1a4   : > { %3456 = vmatmul.msk.bf16.vlgmr.msra.gmra.mxu2 %vm1085_vm2, %v4401_v26 }
 0x1a5   : > { %3390 = vmatmul.msk.bf16.gmra.mxu0 %vm1085_vm2, %v4900_v14 }
 0x1a6   : > { %v1932_v21 = vpop.f32.mrf.mxu3 }
 0x1a7   : > { %v1990_v2 = vadd.f32 %v1932_v21, %v1828_v1  ;;  %v1773_v13 = vpop.f32.mrf.mxu2  ;;  %v1429_v50 = vpop.f32.mrf.mxu1 }
 0x1a8   : > { %v1829_v9 = vadd.f32 %v1773_v13, %v1425_v27 }
 0x1aa   : > { %v2116_v10 = vpop.f32.mrf.mxu0  ;;  %3417 = vmatmul.msk.bf16.gmra.mxu1 %vm1085_vm2, %v4426_v49 }
 0x1ab   : > { %3496 = vmatmul.msk.bf16.vlgmr.msra.gmra.mxu3 %vm1085_vm2, %v4282_v25  ;;  %v4913_v47 = vadd.f32 %v2116_v10, %v1990_v2  ;;  %v1430_v25 = vadd.f32 %v1429_v50, %v4529_v30 }
 0x1ae   : > { %v1935_v26 = vpop.f32.mrf.mxu3 }
 0x1af   : > { %v1991_v42 = vadd.f32 %v1935_v26, %v1829_v9  ;;  %v1775_v22 = vpop.f32.mrf.mxu2  ;;  %v1431_v11 = vpop.f32.mrf.mxu1 }
 0x1b0   : > { %v1830_v63 = vadd.f32 %v1775_v22, %v1427_v29  ;;  %v1432_v59 = vadd.f32 %v1431_v11, %v4550_v35 }
 0x1b2   : > { %v2119_v54 = vpop.f32.mrf.mxu0 }
 0x1b3   : > { %v4916_v58 = vadd.f32 %v2119_v54, %v1991_v42 }
 0x1b4   : > { %3457 = vmatmul.msk.bf16.gmra.mxu2 %vm1085_vm2, %v4447_v40 }
 0x1b5   : > { %3537 = vmatmul.msk.bf16.vlgmr.msra.gmra.mxu0 %vm1085_vm2, %v4426_v49 }
 0x1b6   : > { %v1937_v7 = vpop.f32.mrf.mxu3 }
 0x1b7   : > { %v1992_v24 = vadd.f32 %v1937_v7, %v1830_v63  ;;  %v1778_v56 = vpop.f32.mrf.mxu2  ;;  %v1434_v33 = vpop.f32.mrf.mxu1 }
 0x1b8   : > { %v1831_v23 = vadd.f32 %v1778_v56, %v1430_v25 }
 0x1ba   : > { %v2121_v4 = vpop.f32.mrf.mxu0  ;;  %3418 = vmatmul.msk.bf16.gmra.mxu1 %vm1085_vm2, %v4462_v44 }
 0x1bb   : > { %3497 = vmatmul.msk.bf16.gmra.mxu3 %vm1085_vm2, %v4404_v37  ;;  %v4927_v8 = vadd.f32 %v2121_v4, %v1992_v24  ;;  %v1435_v37 = vadd.f32 %v1434_v33, %v4571_v41 }
 0x1be   : > { %v1940_v40 = vpop.f32.mrf.mxu3 }
 0x1bf   : > { %v1993_v49 = vadd.f32 %v1940_v40, %v1831_v23  ;;  %v1780_v31 = vpop.f32.mrf.mxu2  ;;  %v1436_v1 = vpop.f32.mrf.mxu1 }
 0x1c0   : > { %v1832_v30 = vadd.f32 %v1780_v31, %v1432_v59  ;;  %v1437_v26 = vadd.f32 %v1436_v1, %v4595_v62 }
 0x1c2   : > { %v2124_v55 = vpop.f32.mrf.mxu0 }
 0x1c3   : > { %v4930_v21 = vadd.f32 %v2124_v55, %v1993_v49  ;;  %v5339_v49 = vld [vmem:[#allocation31_spill] sm:$0xff] }
 0x1c4   : > { %3458 = vmatmul.msk.bf16.gmra.mxu2 %vm1085_vm2, %v4484_v53 }
 0x1c5   : > { %3538 = vmatmul.msk.bf16.gmra.mxu0 %vm1085_vm2, %v4462_v44 }
 0x1c6   : > { %v1942_v27 = vpop.f32.mrf.mxu3 }
 0x1c7   : > { %v1994_v2 = vadd.f32 %v1942_v27, %v1832_v30  ;;  %v1783_v13 = vpop.f32.mrf.mxu2  ;;  %v1439_v50 = vpop.f32.mrf.mxu1 }
 0x1c8   : > { %v1833_v35 = vadd.f32 %v1783_v13, %v1435_v37  ;;  %v5342_v13 = vld [vmem:[#allocation14_spill] sm:$0xff] }
 0x1ca   : > { %v2126_v9 = vpop.f32.mrf.mxu0  ;;  %3419 = vmatmul.msk.bf16.gmra.mxu1 %vm1085_vm2, %v4498_v12 }
 0x1cb   : > { %3498 = vmatmul.msk.bf16.gmra.mxu3 %vm1085_vm2, %v3961_v43  ;;  %v4941_v10 = vadd.f32 %v2126_v9, %v1994_v2  ;;  %v1440_v43 = vadd.f32 %v1439_v50, %v4625_v18  ;;  %v5341_v2 = vld [vmem:[#allocation33_spill] sm:$0xff] }
 0x1cc   : > { %v5343_v9 = vld [vmem:[#allocation29_spill] sm:$0xff] }
 0x1ce   : > { %v1945_v53 = vpop.f32.mrf.mxu3 }
 0x1cf   : > { %v1995_v44 = vadd.f32 %v1945_v53, %v1833_v35  ;;  %v1785_v29 = vpop.f32.mrf.mxu2  ;;  %v1441_v42 = vpop.f32.mrf.mxu1 }
 0x1d0   : > { %v1834_v41 = vadd.f32 %v1785_v29, %v1437_v26  ;;  %v1442_v33 = vadd.f32 %v1441_v42, %v4642_v34 }
 0x1d2   : > { %v2129_v22 = vpop.f32.mrf.mxu0 }
 0x1d3   : > { %v4944_v11 = vadd.f32 %v2129_v22, %v1995_v44  ;;  %v5344_v22 = vld [vmem:[#allocation34_spill] sm:$0xff] }
 0x1d4   : > { %3459 = vmatmul.msk.bf16.gmra.mxu2 %vm1085_vm2, %v4515_v17 }
 0x1d5   : > { %3539 = vmatmul.msk.bf16.gmra.mxu0 %vm1085_vm2, %v4498_v12 }
 0x1d6   : > { %v1947_v63 = vpop.f32.mrf.mxu3 }
 0x1d7   : > { %v1996_v54 = vadd.f32 %v1947_v63, %v1834_v41  ;;  %v1788_v7 = vpop.f32.mrf.mxu2  ;;  %v1444_v25 = vpop.f32.mrf.mxu1 }
 0x1d8   : > { %v1835_v62 = vadd.f32 %v1788_v7, %v1440_v43  ;;  %v5345_v43 = vld [vmem:[#allocation30_spill] sm:$0xff] }
 0x1da   : > { %v2131_v24 = vpop.f32.mrf.mxu0  ;;  %3420 = vmatmul.msk.bf16.gmra.mxu1 %vm1085_vm2, %v4533_v16 }
 0x1db   : > { %3499 = vmatmul.msk.bf16.gmra.mxu3 %vm1085_vm2, %v4061_v28  ;;  %v4955_v56 = vadd.f32 %v2131_v24, %v1996_v54  ;;  %v5340_v28 = vld [vmem:[#allocation28_spill] sm:$0xff] }
 0x1dc   : > { %v1445_v1 = vadd.f32 %v1444_v25, %v5340_v28 }
 0x1de   : > { %v1950_v17 = vpop.f32.mrf.mxu3 }
 0x1df   : > { %v1997_v12 = vadd.f32 %v1950_v17, %v1835_v62  ;;  %v1790_v23 = vpop.f32.mrf.mxu2  ;;  %v1446_v4 = vpop.f32.mrf.mxu1 }
 0x1e0   : > { %v1836_v18 = vadd.f32 %v1790_v23, %v1442_v33  ;;  %v1447_v53 = vadd.f32 %v1446_v4, %v5343_v9  ;;  %v5346_v33 = vld [vmem:[#allocation36_spill] sm:$0xff] }
 0x1e2   : > { %v2134_v40 = vpop.f32.mrf.mxu0 }
 0x1e3   : > { %v4958_v59 = vadd.f32 %v2134_v40, %v1997_v12  ;;  %v5347_v12 = vld [vmem:[#allocation23_spill] sm:$0xff] }
 0x1e4   : > { %3460 = vmatmul.msk.bf16.gmra.mxu2 %vm1085_vm2, %v5339_v49 }
 0x1e5   : > { %3540 = vmatmul.msk.bf16.gmra.mxu0 %vm1085_vm2, %v4533_v16 }
 0x1e6   : > { %v1952_v31 = vpop.f32.mrf.mxu3 }
 0x1e7   : > { %v1998_v30 = vadd.f32 %v1952_v31, %v1836_v18  ;;  %v1793_v55 = vpop.f32.mrf.mxu2  ;;  %v1449_v27 = vpop.f32.mrf.mxu1  ;;  %v5348_v18 = vld [vmem:[#allocation32_spill] sm:$0xff] }
 0x1e8   : > { %v1837_v34 = vadd.f32 %v1793_v55, %v1445_v1  ;;  %v1450_v54 = vadd.f32 %v1449_v27, %v5345_v43  ;;  %v5349_v27 = vld [vmem:[#allocation38_spill] sm:$0xff] }
 0x1ea   : > { %v2136_v37 = vpop.f32.mrf.mxu0  ;;  %3421 = vmatmul.msk.bf16.gmra.mxu1 %vm1085_vm2, %v5341_v2 }
 0x1eb   : > { %3500 = vmatmul.msk.bf16.gmra.mxu3 %vm1085_vm2, %v5342_v13  ;;  %v4969_v50 = vadd.f32 %v2136_v37, %v1998_v30  ;;  %v5350_v37 = vld [vmem:[#allocation35_spill] sm:$0xff] }
 0x1ee   : > { %v1955_v35 = vpop.f32.mrf.mxu3 }
 0x1ef   : > { %v1999_v16 = vadd.f32 %v1955_v35, %v1837_v34  ;;  %v1795_v26 = vpop.f32.mrf.mxu2  ;;  %v1451_v44 = vpop.f32.mrf.mxu1 }
 0x1f0   : > { %v1838_v29 = vadd.f32 %v1795_v26, %v1447_v53  ;;  %v1452_v40 = vadd.f32 %v1451_v44, %v5348_v18  ;;  %v5351_v26 = vld [vmem:[#allocation40_spill] sm:$0xff]  ;;  %v5352_v44 = vld [vmem:[#allocation5_spill] sm:$0xff] }
 0x1f2   : > { %v2139_v42 = vpop.f32.mrf.mxu0 }
 0x1f3   : > { %v4972_v41 = vadd.f32 %v2139_v42, %v1999_v16 }
 0x1f4   : > { %3461 = vmatmul.msk.bf16.gmra.mxu2 %vm1085_vm2, %v5344_v22  ;;  %v5353_v22 = vld [vmem:[#allocation37_spill] sm:$0xff] }
 0x1f5   : > { %3541 = vmatmul.msk.bf16.gmra.mxu0 %vm1085_vm2, %v5341_v2 }
 0x1f6   : > { %v1957_v63 = vpop.f32.mrf.mxu3 }
 0x1f7   : > { %v2000_v7 = vadd.f32 %v1957_v63, %v1838_v29  ;;  %v1798_v25 = vpop.f32.mrf.mxu2  ;;  %v1454_v62 = vpop.f32.mrf.mxu1 }
 0x1f8   : > { %v1839_v24 = vadd.f32 %v1798_v25, %v1450_v54  ;;  %v1455_v2 = vadd.f32 %v1454_v62, %v5350_v37 }
 0x1fa   : > { %v2141_v17 = vpop.f32.mrf.mxu0  ;;  %3422 = vmatmul.msk.bf16.gmra.mxu1 %vm1085_vm2, %v5346_v33 }
 0x1fb   : > { %3501 = vmatmul.msk.bf16.gmra.mxu3 %vm1085_vm2, %v5347_v12  ;;  %v4983_v23 = vadd.f32 %v2141_v17, %v2000_v7 }
 0x1fe   : > { %v1960_v4 = vpop.f32.mrf.mxu3 }
 0x1ff   : > { %v2001_v49 = vadd.f32 %v1960_v4, %v1839_v24  ;;  %v1800_v31 = vpop.f32.mrf.mxu2  ;;  %v1456_v28 = vpop.f32.mrf.mxu1 }
 0x200   : > { %v1840_v1 = vadd.f32 %v1800_v31, %v1452_v40  ;;  %v1457_v63 = vadd.f32 %v1456_v28, %v5353_v22  ;;  %v5355_v28 = vld [vmem:[#allocation10_spill] sm:$0xff] }
 0x202   : > { %v2144_v30 = vpop.f32.mrf.mxu0 }
 0x203   : > { %v4986_v55 = vadd.f32 %v2144_v30, %v2001_v49  ;;  %v5356_v30 = vld [vmem:[#allocation41_spill] sm:$0xff] }
 0x204   : > { %3462 = vmatmul.msk.bf16.gmra.mxu2 %vm1085_vm2, %v5349_v27 }
 0x205   : > { %3542 = vmatmul.msk.bf16.gmra.mxu0 %vm1085_vm2, %v5346_v33  ;;  %v5354_v33 = vld [vmem:[#allocation39_spill] sm:$0xff] }
 0x206   : > { %v1962_v34 = vpop.f32.mrf.mxu3 }
 0x207   : > { %v2002_v13 = vadd.f32 %v1962_v34, %v1840_v1  ;;  %v1803_v35 = vpop.f32.mrf.mxu2  ;;  %v1459_v9 = vpop.f32.mrf.mxu1 }
 0x208   : > { %v1841_v53 = vadd.f32 %v1803_v35, %v1455_v2  ;;  %v1460_v12 = vadd.f32 %v1459_v9, %v5354_v33 }
 0x20a   : > { %v2146_v16 = vpop.f32.mrf.mxu0  ;;  %3423 = vmatmul.msk.bf16.gmra.mxu1 %vm1085_vm2, %v5351_v26 }
 0x20b   : > { %3502 = vmatmul.msk.bf16.gmra.mxu3 %vm1085_vm2, %v5352_v44  ;;  %v4997_v29 = vadd.f32 %v2146_v16, %v2002_v13 }
 0x20e   : > { %v1965_v42 = vpop.f32.mrf.mxu3 }
 0x20f   : > { %v2003_v43 = vadd.f32 %v1965_v42, %v1841_v53  ;;  %v1805_v54 = vpop.f32.mrf.mxu2  ;;  %v1461_v7 = vpop.f32.mrf.mxu1  ;;  %v5357_v53 = vld [vmem:[#allocation13_spill] sm:$0xff] }
 0x210   : > { %v1842_v25 = vadd.f32 %v1805_v54, %v1457_v63  ;;  %v1462_v27 = vadd.f32 %v1461_v7, %v5356_v30  ;;  %v5358_v54 = vld [vmem:[#allocation12_spill] sm:$0xff] }
 0x212   : > { %v2149_v62 = vpop.f32.mrf.mxu0 }
 0x213   : > { %v5000_v24 = vadd.f32 %v2149_v62, %v2003_v43 }
 0x214   : > { %3463 = vmatmul.msk.bf16.gmra.mxu2 %vm1085_vm2, %v4660_v51 }
 0x215   : > { %3543 = vmatmul.msk.bf16.gmra.mxu0 %vm1085_vm2, %v5351_v26 }
 0x216   : > { %v1967_v17 = vpop.f32.mrf.mxu3 }
 0x217   : > { %v2004_v4 = vadd.f32 %v1967_v17, %v1842_v25  ;;  %v1808_v18 = vpop.f32.mrf.mxu2  ;;  %v2247_v40 = vpop.f32.mrf.mxu1 }
 0x218   : > { %v1843_v49 = vadd.f32 %v1808_v18, %v1460_v12  ;;  %v2327_v7 = vadd.f32 %v2247_v40, %v5358_v54  ;;  %v5359_v40 = vld [vmem:[#allocation21_spill] sm:$0xff] }
 0x21a   : > { %v2151_v31 = vpop.f32.mrf.mxu0  ;;  %3424 = vmatmul.msk.bf16.gmra.mxu1 %vm1085_vm2, %v4673_v52 }
 0x21b   : > { %3503 = vmatmul.msk.bf16.gmra.mxu3 %vm1085_vm2, %v5355_v28  ;;  %v5011_v1 = vadd.f32 %v2151_v31, %v2004_v4 }
 0x21e   : > { %v1970_v51 = vpop.f32.mrf.mxu3 }
 0x21f   : > { %v2005_v34 = vadd.f32 %v1970_v51, %v1843_v49  ;;  %v1810_v37 = vpop.f32.mrf.mxu2  ;;  %v2249_v2 = vpop.f32.mrf.mxu1 }
 0x220   : > { %v1844_v13 = vadd.f32 %v1810_v37, %v1462_v27  ;;  %v2328_v17 = vadd.f32 %v2249_v2, %v4698_v60  ;;  %v5360_v27 = vld [vmem:[#allocation18_spill] sm:$0xff] }
 0x222   : > { %v2154_v35 = vpop.f32.mrf.mxu0 }
 0x223   : > { %v5014_v9 = vadd.f32 %v2154_v35, %v2005_v34  ;;  %v5361_v34 = vld [vmem:[#allocation26_spill] sm:$0xff] }
 0x224   : > { %3464 = vmatmul.msk.bf16.gmra.mxu2 %vm1085_vm2, %v5357_v53 }
 0x225   : > { %3544 = vmatmul.msk.bf16.gmra.mxu0 %vm1085_vm2, %v4673_v52 }
 0x226   : > { %v1972_v16 = vpop.f32.mrf.mxu3 }
 0x227   : > { %v2006_v26 = vadd.f32 %v1972_v16, %v1844_v13  ;;  %v2409_v44 = vpop.f32.mrf.mxu2  ;;  %v2252_v42 = vpop.f32.mrf.mxu1 }
 0x228   : > { %v2489_v52 = vadd.f32 %v2409_v44, %v2327_v7  ;;  %v2329_v51 = vadd.f32 %v2252_v42, %v5359_v40  ;;  %v5362_v42 = vld [vmem:[#allocation20_spill] sm:$0xff] }
 0x22a   : > { %v2156_v22 = vpop.f32.mrf.mxu0  ;;  %3425 = vmatmul.msk.bf16.gmra.mxu1 %vm1085_vm2, %v4701_v0 }
 0x22b   : > { %3504 = vmatmul.msk.bf16.gmra.mxu3 %vm1085_vm2, %v5307_v61  ;;  %v5024_v63 = vadd.f32 %v2156_v22, %v2006_v26 }
 0x22e   : > { %v2593_v43 = vpop.f32.mrf.mxu3 }
 0x22f   : > { %v2411_v25 = vpop.f32.mrf.mxu2  ;;  %v2254_v62 = vpop.f32.mrf.mxu1  ;;  %v2673_v61 = vadd.f32 %v2593_v43, %v2489_v52 }
 0x230   : > { %v2490_v12 = vadd.f32 %v2411_v25, %v2328_v17  ;;  %v2330_v22 = vadd.f32 %v2254_v62, %v5362_v42  ;;  %v5363_v25 = vld [vmem:[#allocation3_spill] sm:$0xff] }
 0x232   : > { %v2761_v33 = vpop.f32.mrf.mxu0 }
 0x233   : > { %v2841_v28 = vadd.f32 %v2761_v33, %v2673_v61 }
 0x234   : > { %3465 = vmatmul.msk.bf16.gmra.mxu2 %vm1085_vm2, %v4715_v19 }
 0x235   : > { %3545 = vmatmul.msk.bf16.gmra.mxu0 %vm1085_vm2, %v4701_v0  ;;  %v2974_v0 = vmul.f32 %v2841_v28, %v2841_v28 }
 0x236   : > { %v2595_v4 = vpop.f32.mrf.mxu3 }
 0x237   : > { %v2674_v18 = vadd.f32 %v2595_v4, %v2490_v12  ;;  %v2414_v49 = vpop.f32.mrf.mxu2  ;;  %v2257_v31 = vpop.f32.mrf.mxu1 }
 0x238   : > { %v2491_v19 = vadd.f32 %v2414_v49, %v2329_v51  ;;  %v5364_v49 = vld [vmem:[#allocation22_spill] sm:$0xff] }
 0x239   : > { %v5365_v51 = vld [vmem:[#allocation6_spill] sm:$0xff] }
 0x23a   : > { %v2763_v30 = vpop.f32.mrf.mxu0  ;;  %3426 = vmatmul.msk.bf16.gmra.mxu1 %vm1085_vm2, %v5360_v27 }
 0x23b   : > { %v2842_v60 = vadd.f32 %v2763_v30, %v2674_v18  ;;  %3505 = vmatmul.msk.bf16.gmra.mxu3 %vm1085_vm2, %v5361_v34 }
 0x23d   : > { %v3631_v37 = vpack.c.bf16 %v2842_v60, %v2841_v28  ;;  %v2937_v2 = vadd.f32 %v2842_v60, %v2841_v28  ;;  %v2975_v13 = vmul.f32 %v2842_v60, %v2842_v60  ;;  %v2331_v28 = vadd.f32 %v2257_v31, %v5364_v49 }
 0x23e   : > { %v2598_v35 = vpop.f32.mrf.mxu3 }
 0x23f   : > { %3632 = vst [vmem:[%s5041_s8] sm:$0xff] %v3631_v37   ;;  %v3006_v53 = vadd.f32 %v2975_v13, %v2974_v0  ;;  %v2675_v16 = vadd.f32 %v2598_v35, %v2491_v19  ;;  %v2416_v26 = vpop.f32.mrf.mxu2  ;;  %v2259_v44 = vpop.f32.mrf.mxu1  ;;  %v5366_v35 = vld [vmem:[#allocation2_spill] sm:$0xff] }
 0x240   : > { %v2492_v7 = vadd.f32 %v2416_v26, %v2330_v22  ;;  %v2332_v31 = vadd.f32 %v2259_v44, %v5366_v35 }
 0x242   : > { %v2766_v43 = vpop.f32.mrf.mxu0 }
 0x243   : > { %v2843_v54 = vadd.f32 %v2766_v43, %v2675_v16 }
 0x244   : > { %3466 = vmatmul.msk.bf16.gmra.mxu2 %vm1085_vm2, %v5363_v25 }
 0x245   : > { %3546 = vmatmul.msk.bf16.gmra.mxu0 %vm1085_vm2, %v5360_v27  ;;  %v2938_v52 = vadd.f32 %v2937_v2, %v2843_v54  ;;  %v2976_v17 = vmul.f32 %v2843_v54, %v2843_v54 }
 0x246   : > { %v2600_v33 = vpop.f32.mrf.mxu3 }
 0x247   : > { %v3007_v12 = vadd.f32 %v3006_v53, %v2976_v17  ;;  %v2676_v61 = vadd.f32 %v2600_v33, %v2492_v7  ;;  %v2419_v4 = vpop.f32.mrf.mxu2  ;;  %v2262_v18 = vpop.f32.mrf.mxu1  ;;  %v5367_v17 = vld [vmem:[#allocation4_spill] sm:$0xff] }
 0x248   : > { %v2493_v30 = vadd.f32 %v2419_v4, %v2331_v28  ;;  %v2333_v33 = vadd.f32 %v2262_v18, %v5367_v17  ;;  %v5369_v4 = vld [vmem:[#allocation11_spill] sm:$0xff] }
 0x24a   : > { %v2768_v62 = vpop.f32.mrf.mxu0  ;;  %3427 = vmatmul.msk.bf16.gmra.mxu1 %vm1085_vm2, %v4766_v38 }
 0x24b   : > { %v2844_v40 = vadd.f32 %v2768_v62, %v2676_v61  ;;  %3506 = vmatmul.msk.bf16.gmra.mxu3 %vm1085_vm2, %v5365_v51 }
 0x24d   : > { %v3636_v27 = vpack.c.bf16 %v2844_v40, %v2843_v54  ;;  %v2939_v60 = vadd.f32 %v2938_v52, %v2844_v40  ;;  %v2977_v34 = vmul.f32 %v2844_v40, %v2844_v40 }
 0x24e   : > { %v2603_v19 = vpop.f32.mrf.mxu3 }
 0x24f   : > { %3716 = vst [vmem:[%s5041_s8 + $0x8] sm:$0xff] %v3636_v27   ;;  %v3008_v0 = vadd.f32 %v3007_v12, %v2977_v34  ;;  %v2677_v37 = vadd.f32 %v2603_v19, %v2493_v30  ;;  %v2421_v2 = vpop.f32.mrf.mxu2  ;;  %v2264_v13 = vpop.f32.mrf.mxu1  ;;  %v5368_v12 = vld [vmem:[#allocation7_spill] sm:$0xff] }
 0x250   : > { %v2494_v26 = vadd.f32 %v2421_v2, %v2332_v31 }
 0x252   : > { %v2771_v53 = vpop.f32.mrf.mxu0 }
 0x253   : > { %v2845_v16 = vadd.f32 %v2771_v53, %v2677_v37  ;;  %v5371_v37 = vld [vmem:[#allocation16_spill] sm:$0xff] }
 0x254   : > { %3467 = vmatmul.msk.bf16.gmra.mxu2 %vm1085_vm2, %v4780_v46 }
 0x255   : > { %3547 = vmatmul.msk.bf16.gmra.mxu0 %vm1085_vm2, %v4766_v38  ;;  %v2940_v42 = vadd.f32 %v2939_v60, %v2845_v16  ;;  %v2978_v22 = vmul.f32 %v2845_v16, %v2845_v16  ;;  %v5370_v60 = vld [vmem:[#allocation8_spill] sm:$0xff] }
 0x256   : > { %v2605_v43 = vpop.f32.mrf.mxu3  ;;  %v2334_v18 = vadd.f32 %v2264_v13, %v5370_v60  ;;  %v5376_v60 = vld [vmem:[#allocation15_spill] sm:$0xff] }
 0x257   : > { %v3009_v54 = vadd.f32 %v3008_v0, %v2978_v22  ;;  %v2678_v7 = vadd.f32 %v2605_v43, %v2494_v26  ;;  %v2424_v25 = vpop.f32.mrf.mxu2  ;;  %v2267_v52 = vpop.f32.mrf.mxu1  ;;  %v5372_v22 = vld [vmem:[#allocation9_spill] sm:$0xff] }
 0x258   : > { %v2495_v46 = vadd.f32 %v2424_v25, %v2333_v33  ;;  %v2335_v13 = vadd.f32 %v2267_v52, %v5372_v22  ;;  %v5374_v25 = vld [vmem:[#allocation19_spill] sm:$0xff] }
 0x259   : > { %v328_v33 = vld [vmem:[%s3861_s6 + $0xcc] sm:$0xff]  }
 0x25a   : > { %v2773_v44 = vpop.f32.mrf.mxu0  ;;  %3428 = vmatmul.msk.bf16.gmra.mxu1 %vm1085_vm2, %v5368_v12 }
 0x25b   : > { %v2846_v61 = vadd.f32 %v2773_v44, %v2678_v7  ;;  %3507 = vmatmul.msk.bf16.gmra.mxu3 %vm1085_vm2, %v5369_v4  ;;  %v382_v44 = vunpack.c.l.bf16 %v328_v33 }
 0x25d   : > { %v3641_v38 = vpack.c.bf16 %v2846_v61, %v2845_v16  ;;  %v2941_v49 = vadd.f32 %v2940_v42, %v2846_v61  ;;  %v2979_v28 = vmul.f32 %v2846_v61, %v2846_v61 }
 0x25e   : > { %v2608_v62 = vpop.f32.mrf.mxu3 }
 0x25f   : > { %3717 = vst [vmem:[%s5041_s8 + $0x10] sm:$0xff] %v3641_v38   ;;  %v3010_v40 = vadd.f32 %v3009_v54, %v2979_v28  ;;  %v2679_v51 = vadd.f32 %v2608_v62, %v2495_v46  ;;  %v2426_v30 = vpop.f32.mrf.mxu2  ;;  %v2269_v27 = vpop.f32.mrf.mxu1  ;;  %v5373_v54 = vld [vmem:[#allocation42_spill] sm:$0xff] }
 0x260   : > { %v2496_v0 = vadd.f32 %v2426_v30, %v2334_v18  ;;  %v2336_v18 = vadd.f32 %v2269_v27, %v5376_v60  ;;  %v2197_v60 = vrot.slane %v4872_v32, 5 }
 0x262   : > { %v2776_v34 = vpop.f32.mrf.mxu0 }
 0x263   : > { %v2847_v19 = vadd.f32 %v2776_v34, %v2679_v51  ;;  %v330_v34 = vld [vmem:[%s3861_s6 + $0xd4] sm:$0x1]  ;;  %s3182_s6 = sshll.u32 %s5386_s18, 1 }
 0x264   : > { %3468 = vmatmul.msk.bf16.gmra.mxu2 %vm1085_vm2, %v5371_v37  ;;  %s275_s11 = scalar_lea.vmem %s5188_s5, %s3182_s6 }
 0x265   : > { %3548 = vmatmul.msk.bf16.gmra.mxu0 %vm1085_vm2, %v5368_v12  ;;  %v2942_v2 = vadd.f32 %v2941_v49, %v2847_v19  ;;  %v2980_v35 = vmul.f32 %v2847_v19, %v2847_v19  ;;  %v383_v12 = vunpack.c.h.bf16 %v328_v33  ;;  %v2194_v33 = vrot.slane %v4854_v5, 5 }
 0x266   : > { %v2610_v31 = vpop.f32.mrf.mxu3 }
 0x267   : > { %v3011_v53 = vadd.f32 %v3010_v40, %v2980_v35  ;;  %v2680_v16 = vadd.f32 %v2610_v31, %v2496_v0  ;;  %v2429_v26 = vpop.f32.mrf.mxu2  ;;  %v2272_v42 = vpop.f32.mrf.mxu1  ;;  %v5375_v40 = vld [vmem:[#allocation25_spill] sm:$0xff]  ;;  %v2196_v5 = vrot.slane %v2194_v33, 4 }
 0x268   : > { %v2497_v17 = vadd.f32 %v2429_v26, %v2335_v13  ;;  %v440_v51 = vmul.f32 %v5375_v40, %v382_v44  ;;  %v441_v30 = vmul.f32 %v5375_v40, %v383_v12  ;;  %v5377_v31 = vld [vmem:[#allocation17_spill] sm:$0xff] }
 0x26a   : > { %v2778_v43 = vpop.f32.mrf.mxu0  ;;  %3429 = vmatmul.msk.bf16.gmra.mxu1 %vm1085_vm2, %v5373_v54 }
 0x26b   : > { %v2848_v7 = vadd.f32 %v2778_v43, %v2680_v16  ;;  %3508 = vmatmul.msk.bf16.gmra.mxu3 %vm1085_vm2, %v5374_v25  ;;  %v384_v16 = vunpack.c.l.bf16 %v330_v34 }
 0x26d   : > { %v3646_v61 = vpack.c.bf16 %v2848_v7, %v2847_v19  ;;  %v2943_v4 = vadd.f32 %v2942_v2, %v2848_v7  ;;  %v2981_v46 = vmul.f32 %v2848_v7, %v2848_v7  ;;  %v498_v19 = vadd.f32 %v5377_v31, %v440_v51  ;;  %v5378_v2 = vld [vmem:[#allocation43_spill] sm:$0xff] }
 0x26e   : > { %v2613_v38 = vpop.f32.mrf.mxu3  ;;  %v442_v12 = vmul.f32 %v5375_v40, %v384_v16 }
 0x26f   : > { %3718 = vst [vmem:[%s5041_s8 + $0x18] sm:$0xff] %v3646_v61   ;;  %v3012_v49 = vadd.f32 %v3011_v53, %v2981_v46  ;;  %v2681_v52 = vadd.f32 %v2613_v38, %v2497_v17  ;;  %v2431_v28 = vpop.f32.mrf.mxu2  ;;  %v2274_v62 = vpop.f32.mrf.mxu1  ;;  %v499_v53 = vadd.f32 %v5377_v31, %v441_v30  ;;  %v552_v17 = vmax.f32 %v498_v19, 0.0  ;;  %v5379_v61 = vld [vmem:[#allocation24_spill] sm:$0xff] }
 0x270   : > { %v2498_v35 = vadd.f32 %v2431_v28, %v2336_v18  ;;  %v2337_v46 = vadd.f32 %v2272_v42, %v5379_v61  ;;  %v500_v40 = vadd.f32 %v5377_v31, %v442_v12  ;;  %v2338_v32 = vadd.f32 %v2274_v62, %v4870_v57 }
 0x271   : > { %v553_v44 = vmax.f32 %v499_v53, 0.0 }
 0x272   : > { %v2781_v0 = vpop.f32.mrf.mxu0  ;;  %v554_v16 = vmax.f32 %v500_v40, 0.0 }
 0x273   : > { %v2849_v37 = vadd.f32 %v2781_v0, %v2681_v52  ;;  %v5096_v52 = vpack.c.bf16 %v552_v17, %v552_v17  ;;  %v5098_v28 = vpack.c.bf16 %v553_v44, %v553_v44 }
 0x274   : > { %3469 = vmatmul.msk.bf16.gmra.mxu2 %vm1085_vm2, %v5378_v2  ;;  %v5114_v44 = vpack.c.bf16 %v554_v16, %v554_v16 }
 0x275   : > { %3549 = vmatmul.msk.bf16.gmra.mxu0 %vm1085_vm2, %v5373_v54  ;;  %v2944_v26 = vadd.f32 %v2943_v4, %v2849_v37  ;;  %v2982_v22 = vmul.f32 %v2849_v37, %v2849_v37  ;;  %v3391_v54 = vrot.slane %v4846_v36, 9  ;;  %v2522_v2 = vshrl.u32 %v5096_v52, 16 }
 0x276   : > { %v2615_v13 = vpop.f32.mrf.mxu3  ;;  %v2525_v53 = vshll.u32 %v5096_v52, 16  ;;  %v2535_v31 = vshrl.u32 %v5098_v28, 16 }
 0x277   : > { %v3013_v43 = vadd.f32 %v3012_v49, %v2982_v22  ;;  %v2682_v27 = vadd.f32 %v2615_v13, %v2498_v35  ;;  %v2434_v7 = vpop.f32.mrf.mxu2  ;;  %v2277_v25 = vpop.f32.mrf.mxu1  ;;  %v2195_v36 = vsel %vm4377_vm6, %v3391_v54, %v2194_v33 }
 0x278   : > { %v2499_v49 = vadd.f32 %v2434_v7, %v2337_v46  ;;  %v2208_v13 = vunpack.c.l.b16 %v2195_v36  ;;  %v2524_v7 = vrot.slane %v2522_v2, 4  ;;  %v2527_v17 = vrot.slane %v2525_v53, 5 }
 0x279   : > { %v2537_v61 = vrot.slane %v2535_v31, 4  ;;  %v2370_v36 = vunpack.c.l.b16 %v5096_v52 }
 0x27a   : > { %v2783_v38 = vpop.f32.mrf.mxu0  ;;  %3430 = vmatmul.msk.bf16.gmra.mxu1 %vm1085_vm2, %v4875_v20 }
 0x27b   : > { %v2850_v4 = vadd.f32 %v2783_v38, %v2682_v27  ;;  %3509 = vmatmul.msk.bf16.gmra.mxu3 %vm1085_vm2, %v4385_v3 }
 0x27d   : > { %v3651_v42 = vpack.c.bf16 %v2850_v4, %v2849_v37  ;;  %v2945_v51 = vadd.f32 %v2944_v26, %v2850_v4  ;;  %v2983_v30 = vmul.f32 %v2850_v4, %v2850_v4  ;;  %v2531_v37 = vshll.u32 %v5098_v28, 16 }
 0x27e   : > { %v2618_v18 = vpop.f32.mrf.mxu3  ;;  %v2198_v26 = vsel %vm4377_vm6, %v2196_v5, %v2197_v60  ;;  %v2528_v5 = vor.u32 %v2527_v17, %v2524_v7 }
 0x27f   : > { %3719 = vst [vmem:[%s5041_s8 + $0x20] sm:$0xff] %v3651_v42   ;;  %v3014_v0 = vadd.f32 %v3013_v43, %v2983_v30  ;;  %v2683_v3 = vadd.f32 %v2618_v18, %v2499_v49  ;;  %v2436_v35 = vpop.f32.mrf.mxu2  ;;  %v2279_v19 = vpop.f32.mrf.mxu1  ;;  %v2209_v33 = vunpack.c.l.b16 %v2198_v26  ;;  %v2533_v12 = vrot.slane %v2531_v37, 5 }
 0x280   : > { %v2500_v27 = vadd.f32 %v2436_v35, %v2338_v32  ;;  %v2339_v30 = vadd.f32 %v2277_v25, %v4880_v39 }
 0x281   : > { %v2210_v40 = vpack.c.b16 %v2209_v33, %v2208_v13  ;;  %v2538_v42 = vor.u32 %v2537_v61, %v2533_v12  ;;  %v2340_v13 = vadd.f32 %v2279_v19, %v4897_v45 }
 0x282   : > { %v2786_v22 = vpop.f32.mrf.mxu0 }
 0x283   : > { %v2851_v43 = vadd.f32 %v2786_v22, %v2683_v3  ;;  %v2539_v3 = vrot.slane %v2538_v42, 4 }
 0x284   : > { %3470 = vmatmul.msk.bf16.gmra.mxu2 %vm1085_vm2, %v4887_v48  ;;  %v2541_v48 = vshll.u32 %v5114_v44, 16 }
 0x285   : > { %3550 = vmatmul.msk.bf16.gmra.mxu0 %vm1085_vm2, %v4875_v20  ;;  %v2946_v57 = vadd.f32 %v2945_v51, %v2851_v43  ;;  %v2984_v62 = vmul.f32 %v2851_v43, %v2851_v43  ;;  %v2529_v51 = vrot.slane %v2528_v5, 4 }
 0x286   : > { %v2620_v46 = vpop.f32.mrf.mxu3  ;;  %v2543_v35 = vrot.slane %v2541_v48, 5 }
 0x287   : > { %v3015_v38 = vadd.f32 %v3014_v0, %v2984_v62  ;;  %v2684_v54 = vadd.f32 %v2620_v46, %v2500_v27  ;;  %v2439_v4 = vpop.f32.mrf.mxu2  ;;  %v2282_v49 = vpop.f32.mrf.mxu1  ;;  %v2371_v0 = vunpack.c.l.b16 %v5098_v28 }
 0x288   : > { %v2501_v20 = vadd.f32 %v2439_v4, %v2339_v30  ;;  %v2544_v22 = vsel %vm3940_vm3, %v2539_v3, %v2543_v35  ;;  %v2341_v5 = vadd.f32 %v2282_v49, %v4902_v6 }
 0x289   : > { %v2372_v26 = vpack.c.b16 %v2371_v0, %v2370_v36  ;;  %v2555_v61 = vunpack.c.l.b16 %v2544_v22 }
 0x28a   : > { %v2788_v60 = vpop.f32.mrf.mxu0  ;;  %3431 = vmatmul.msk.bf16.gmra.mxu1 %vm1085_vm2, %v2210_v40 }
 0x28b   : > { %v2852_v18 = vadd.f32 %v2788_v60, %v2684_v54  ;;  %3510 = vmatmul.msk.bf16.gmra.mxu3 %vm1085_vm2, %v4900_v14  ;;  %v2534_v14 = vsel %vm3940_vm3, %v2529_v51, %v2533_v12  ;;  %v3512_v12 = vrot.slane %v5096_v52, 9 }
 0x28c   : > { %v2554_v33 = vunpack.c.l.b16 %v2534_v14 }
 0x28d   : > { %v3656_v2 = vpack.c.bf16 %v2852_v18, %v2851_v43  ;;  %v2947_v53 = vadd.f32 %v2946_v57, %v2852_v18  ;;  %v2985_v16 = vmul.f32 %v2852_v18, %v2852_v18  ;;  %v2708_v43 = vrot.slane %v5098_v28, 5 }
 0x28e   : > { %v2623_v37 = vpop.f32.mrf.mxu3  ;;  %v2556_v54 = vpack.c.b16 %v2555_v61, %v2554_v33 }
 0x28f   : > { %3720 = vst [vmem:[%s5041_s8 + $0x28] sm:$0xff] %v3656_v2   ;;  %v3016_v39 = vadd.f32 %v3015_v38, %v2985_v16  ;;  %v2685_v25 = vadd.f32 %v2623_v37, %v2501_v20  ;;  %v2441_v31 = vpop.f32.mrf.mxu2  ;;  %v2284_v32 = vpop.f32.mrf.mxu1  ;;  %v2710_v15 = vrot.slane %v2708_v43, 4  ;;  %v2711_v38 = vrot.slane %v5114_v44, 5 }
 0x290   : > { %v2502_v17 = vadd.f32 %v2441_v31, %v2340_v13  ;;  %v2709_v42 = vsel %vm4377_vm6, %v3512_v12, %v2708_v43  ;;  %v2342_v2 = vadd.f32 %v2284_v32, %v4913_v47 }
 0x291   : > { %v2712_v48 = vsel %vm4377_vm6, %v2710_v15, %v2711_v38  ;;  %v2722_v44 = vunpack.c.l.b16 %v2709_v42 }
 0x292   : > { %v2791_v27 = vpop.f32.mrf.mxu0  ;;  %v2723_v51 = vunpack.c.l.b16 %v2712_v48 }
 0x293   : > { %v2853_v7 = vadd.f32 %v2791_v27, %v2685_v25 }
 0x294   : > { %3471 = vmatmul.msk.bf16.gmra.mxu2 %vm1085_vm2, %v2372_v26  ;;  %v2724_v35 = vpack.c.b16 %v2723_v51, %v2722_v44 }
 0x295   : > { %3551 = vmatmul.msk.bf16.gmra.mxu0 %vm1085_vm2, %v2210_v40  ;;  %v2948_v57 = vadd.f32 %v2947_v53, %v2853_v7  ;;  %v2986_v62 = vmul.f32 %v2853_v7, %v2853_v7 }
 0x296   : > { %v2625_v46 = vpop.f32.mrf.mxu3 }
 0x297   : > { %v3017_v45 = vadd.f32 %v3016_v39, %v2986_v62  ;;  %v2686_v19 = vadd.f32 %v2625_v46, %v2502_v17  ;;  %v2444_v28 = vpop.f32.mrf.mxu2  ;;  %v2287_v4 = vpop.f32.mrf.mxu1 }
 0x298   : > { %v2503_v30 = vadd.f32 %v2444_v28, %v2341_v5  ;;  %v2343_v13 = vadd.f32 %v2287_v4, %v4916_v58 }
 0x29a   : > { %v2793_v40 = vpop.f32.mrf.mxu0 }
 0x29b   : > { %v2854_v52 = vadd.f32 %v2793_v40, %v2686_v19  ;;  %3511 = vmatmul.msk.bf16.gmra.mxu3 %vm1085_vm2, %v2556_v54 }
 0x29d   : > { %v3661_v60 = vpack.c.bf16 %v2854_v52, %v2853_v7  ;;  %v2949_v18 = vadd.f32 %v2948_v57, %v2854_v52  ;;  %v2987_v20 = vmul.f32 %v2854_v52, %v2854_v52 }
 0x29e   : > { %v2628_v36 = vpop.f32.mrf.mxu3 }
 0x29f   : > { %3721 = vst [vmem:[%s5041_s8 + $0x30] sm:$0xff] %v3661_v60   ;;  %v3018_v0 = vadd.f32 %v3017_v45, %v2987_v20  ;;  %v2687_v6 = vadd.f32 %v2628_v36, %v2503_v30  ;;  %v2446_v49 = vpop.f32.mrf.mxu2  ;;  %v2289_v3 = vpop.f32.mrf.mxu1 }
 0x2a0   : > { %v2504_v16 = vadd.f32 %v2446_v49, %v2342_v2  ;;  %v2344_v46 = vadd.f32 %v2289_v3, %v4927_v8 }
 0x2a2   : > { %v2796_v34 = vpop.f32.mrf.mxu0 }
 0x2a3   : > { %v2855_v53 = vadd.f32 %v2796_v34, %v2687_v6 }
 0x2a5   : > { %3552 = vmatmul.msk.bf16.gmra.mxu0 %vm1085_vm2, %v2724_v35  ;;  %v2950_v37 = vadd.f32 %v2949_v18, %v2855_v53  ;;  %v2988_v39 = vmul.f32 %v2855_v53, %v2855_v53 }
 0x2a6   : > { %v2630_v25 = vpop.f32.mrf.mxu3 }
 0x2a7   : > { %v3019_v31 = vadd.f32 %v3018_v0, %v2988_v39  ;;  %v2688_v26 = vadd.f32 %v2630_v25, %v2504_v16  ;;  %v2449_v14 = vpop.f32.mrf.mxu2  ;;  %v2292_v22 = vpop.f32.mrf.mxu1 }
 0x2a8   : > { %v2505_v7 = vadd.f32 %v2449_v14, %v2343_v13  ;;  %v2345_v40 = vadd.f32 %v2292_v22, %v4930_v21 }
 0x2aa   : > { %v2798_v27 = vpop.f32.mrf.mxu0 }
 0x2ab   : > { %v2856_v43 = vadd.f32 %v2798_v27, %v2688_v26 }
 0x2ad   : > { %v3666_v17 = vpack.c.bf16 %v2856_v43, %v2855_v53  ;;  %v2951_v47 = vadd.f32 %v2950_v37, %v2856_v43  ;;  %v2989_v32 = vmul.f32 %v2856_v43, %v2856_v43 }
 0x2ae   : > { %v2633_v33 = vpop.f32.mrf.mxu3 }
 0x2af   : > { %3722 = vst [vmem:[%s5041_s8 + $0x38] sm:$0xff] %v3666_v17   ;;  %v3020_v61 = vadd.f32 %v3019_v31, %v2989_v32  ;;  %v2689_v57 = vadd.f32 %v2633_v33, %v2505_v7  ;;  %v2451_v62 = vpop.f32.mrf.mxu2  ;;  %v2294_v12 = vpop.f32.mrf.mxu1 }
 0x2b0   : > { %v2506_v45 = vadd.f32 %v2451_v62, %v2344_v46  ;;  %v2346_v6 = vadd.f32 %v2294_v12, %v4941_v10 }
 0x2b2   : > { %v2801_v15 = vpop.f32.mrf.mxu0 }
 0x2b3   : > { %v2857_v38 = vadd.f32 %v2801_v15, %v2689_v57 }
 0x2b5   : > { %v2952_v19 = vadd.f32 %v2951_v47, %v2857_v38  ;;  %v2990_v58 = vmul.f32 %v2857_v38, %v2857_v38 }
 0x2b6   : > { %v2635_v54 = vpop.f32.mrf.mxu3 }
 0x2b7   : > { %v3021_v28 = vadd.f32 %v3020_v61, %v2990_v58  ;;  %v2690_v4 = vadd.f32 %v2635_v54, %v2506_v45  ;;  %v2454_v5 = vpop.f32.mrf.mxu2  ;;  %v2297_v42 = vpop.f32.mrf.mxu1 }
 0x2b8   : > { %v2507_v30 = vadd.f32 %v2454_v5, %v2345_v40  ;;  %v2347_v25 = vadd.f32 %v2297_v42, %v4944_v11 }
 0x2ba   : > { %v2803_v48 = vpop.f32.mrf.mxu0 }
 0x2bb   : > { %v2858_v52 = vadd.f32 %v2803_v48, %v2690_v4 }
 0x2bd   : > { %v3671_v44 = vpack.c.bf16 %v2858_v52, %v2857_v38  ;;  %v2953_v60 = vadd.f32 %v2952_v19, %v2858_v52  ;;  %v2991_v18 = vmul.f32 %v2858_v52, %v2858_v52 }
 0x2be   : > { %v2638_v8 = vpop.f32.mrf.mxu3 }
 0x2bf   : > { %3723 = vst [vmem:[%s5041_s8 + $0x40] sm:$0xff] %v3671_v44   ;;  %v3022_v20 = vadd.f32 %v3021_v28, %v2991_v18  ;;  %v2691_v51 = vadd.f32 %v2638_v8, %v2507_v30  ;;  %v2456_v36 = vpop.f32.mrf.mxu2  ;;  %v2299_v0 = vpop.f32.mrf.mxu1 }
 0x2c0   : > { %v2508_v35 = vadd.f32 %v2456_v36, %v2346_v6  ;;  %v2348_v32 = vadd.f32 %v2299_v0, %v4955_v56 }
 0x2c2   : > { %v2806_v49 = vpop.f32.mrf.mxu0 }
 0x2c3   : > { %v2859_v3 = vadd.f32 %v2806_v49, %v2691_v51 }
 0x2c5   : > { %v2954_v2 = vadd.f32 %v2953_v60, %v2859_v3  ;;  %v2992_v21 = vmul.f32 %v2859_v3, %v2859_v3 }
 0x2c6   : > { %v2640_v34 = vpop.f32.mrf.mxu3 }
 0x2c7   : > { %v3023_v53 = vadd.f32 %v3022_v20, %v2992_v21  ;;  %v2692_v16 = vadd.f32 %v2640_v34, %v2508_v35  ;;  %v2459_v37 = vpop.f32.mrf.mxu2  ;;  %v2302_v39 = vpop.f32.mrf.mxu1 }
 0x2c8   : > { %v2509_v14 = vadd.f32 %v2459_v37, %v2347_v25  ;;  %v2349_v19 = vadd.f32 %v2302_v39, %v4958_v59 }
 0x2ca   : > { %v2808_v31 = vpop.f32.mrf.mxu0 }
 0x2cb   : > { %v2860_v26 = vadd.f32 %v2808_v31, %v2692_v16 }
 0x2cd   : > { %v3676_v22 = vpack.c.bf16 %v2860_v26, %v2859_v3  ;;  %v2955_v13 = vadd.f32 %v2954_v2, %v2860_v26  ;;  %v2993_v27 = vmul.f32 %v2860_v26, %v2860_v26 }
 0x2ce   : > { %v2643_v10 = vpop.f32.mrf.mxu3 }
 0x2cf   : > { %3724 = vst [vmem:[%s5041_s8 + $0x48] sm:$0xff] %v3676_v22   ;;  %v3024_v43 = vadd.f32 %v3023_v53, %v2993_v27  ;;  %v2693_v7 = vadd.f32 %v2643_v10, %v2509_v14  ;;  %v2461_v17 = vpop.f32.mrf.mxu2  ;;  %v2304_v47 = vpop.f32.mrf.mxu1 }
 0x2d0   : > { %v2510_v57 = vadd.f32 %v2461_v17, %v2348_v32  ;;  %v2350_v30 = vadd.f32 %v2304_v47, %v4969_v50 }
 0x2d2   : > { %v2811_v33 = vpop.f32.mrf.mxu0 }
 0x2d3   : > { %v2861_v61 = vadd.f32 %v2811_v33, %v2693_v7 }
 0x2d5   : > { %v2956_v62 = vadd.f32 %v2955_v13, %v2861_v61  ;;  %v2994_v11 = vmul.f32 %v2861_v61, %v2861_v61 }
 0x2d6   : > { %v2645_v12 = vpop.f32.mrf.mxu3 }
 0x2d7   : > { %v3025_v46 = vadd.f32 %v3024_v43, %v2994_v11  ;;  %v2694_v15 = vadd.f32 %v2645_v12, %v2510_v57  ;;  %v2464_v38 = vpop.f32.mrf.mxu2  ;;  %v2307_v45 = vpop.f32.mrf.mxu1 }
 0x2d8   : > { %v2511_v28 = vadd.f32 %v2464_v38, %v2349_v19  ;;  %v2351_v49 = vadd.f32 %v2307_v45, %v4972_v41 }
 0x2da   : > { %v2813_v58 = vpop.f32.mrf.mxu0 }
 0x2db   : > { %v2862_v54 = vadd.f32 %v2813_v58, %v2694_v15 }
 0x2dd   : > { %v3681_v4 = vpack.c.bf16 %v2862_v54, %v2861_v61  ;;  %v2957_v5 = vadd.f32 %v2956_v62, %v2862_v54  ;;  %v2995_v42 = vmul.f32 %v2862_v54, %v2862_v54 }
 0x2de   : > { %v2648_v56 = vpop.f32.mrf.mxu3 }
 0x2df   : > { %3725 = vst [vmem:[%s5041_s8 + $0x50] sm:$0xff] %v3681_v4   ;;  %v3026_v40 = vadd.f32 %v3025_v46, %v2995_v42  ;;  %v2695_v48 = vadd.f32 %v2648_v56, %v2511_v28  ;;  %v2466_v52 = vpop.f32.mrf.mxu2  ;;  %v2309_v60 = vpop.f32.mrf.mxu1 }
 0x2e0   : > { %v2512_v8 = vadd.f32 %v2466_v52, %v2350_v30  ;;  %v2352_v31 = vadd.f32 %v2309_v60, %v4983_v23 }
 0x2e2   : > { %v2816_v44 = vpop.f32.mrf.mxu0 }
 0x2e3   : > { %v2863_v18 = vadd.f32 %v2816_v44, %v2695_v48 }
 0x2e5   : > { %v2958_v20 = vadd.f32 %v2957_v5, %v2863_v18  ;;  %v2996_v59 = vmul.f32 %v2863_v18, %v2863_v18 }
 0x2e6   : > { %v2650_v51 = vpop.f32.mrf.mxu3 }
 0x2e7   : > { %v3027_v36 = vadd.f32 %v3026_v40, %v2996_v59  ;;  %v2696_v0 = vadd.f32 %v2650_v51, %v2512_v8  ;;  %v2469_v6 = vpop.f32.mrf.mxu2  ;;  %v2312_v21 = vpop.f32.mrf.mxu1 }
 0x2e8   : > { %v2513_v2 = vadd.f32 %v2469_v6, %v2351_v49  ;;  %v2353_v47 = vadd.f32 %v2312_v21, %v4986_v55 }
 0x2ea   : > { %v2818_v3 = vpop.f32.mrf.mxu0 }
 0x2eb   : > { %v2864_v35 = vadd.f32 %v2818_v3, %v2696_v0 }
 0x2ed   : > { %v3686_v34 = vpack.c.bf16 %v2864_v35, %v2863_v18  ;;  %v2959_v53 = vadd.f32 %v2958_v20, %v2864_v35  ;;  %v2997_v50 = vmul.f32 %v2864_v35, %v2864_v35 }
 0x2ee   : > { %v2653_v16 = vpop.f32.mrf.mxu3 }
 0x2ef   : > { %3726 = vst [vmem:[%s5041_s8 + $0x58] sm:$0xff] %v3686_v34   ;;  %v3028_v37 = vadd.f32 %v3027_v36, %v2997_v50  ;;  %v2697_v39 = vadd.f32 %v2653_v16, %v2513_v2  ;;  %v2471_v25 = vpop.f32.mrf.mxu2  ;;  %v2314_v10 = vpop.f32.mrf.mxu1 }
 0x2f0   : > { %v2514_v22 = vadd.f32 %v2471_v25, %v2352_v31  ;;  %v2354_v45 = vadd.f32 %v2314_v10, %v4997_v29 }
 0x2f2   : > { %v2821_v26 = vpop.f32.mrf.mxu0 }
 0x2f3   : > { %v2865_v14 = vadd.f32 %v2821_v26, %v2697_v39 }
 0x2f5   : > { %v2960_v13 = vadd.f32 %v2959_v53, %v2865_v14  ;;  %v2998_v41 = vmul.f32 %v2865_v14, %v2865_v14 }
 0x2f6   : > { %v2655_v27 = vpop.f32.mrf.mxu3 }
 0x2f7   : > { %v3029_v43 = vadd.f32 %v3028_v37, %v2998_v41  ;;  %v2698_v7 = vadd.f32 %v2655_v27, %v2514_v22  ;;  %v2474_v17 = vpop.f32.mrf.mxu2  ;;  %v2317_v38 = vpop.f32.mrf.mxu1 }
 0x2f8   : > { %v2515_v61 = vadd.f32 %v2474_v17, %v2353_v47  ;;  %v2355_v40 = vadd.f32 %v2317_v38, %v5000_v24 }
 0x2fa   : > { %v2823_v32 = vpop.f32.mrf.mxu0 }
 0x2fb   : > { %v2866_v33 = vadd.f32 %v2823_v32, %v2698_v7 }
 0x2fd   : > { %v3691_v57 = vpack.c.bf16 %v2866_v33, %v2865_v14  ;;  %v2961_v62 = vadd.f32 %v2960_v13, %v2866_v33  ;;  %v2999_v11 = vmul.f32 %v2866_v33, %v2866_v33 }
 0x2fe   : > { %v2658_v23 = vpop.f32.mrf.mxu3 }
 0x2ff   : > { %3727 = vst [vmem:[%s5041_s8 + $0x60] sm:$0xff] %v3691_v57   ;;  %v3030_v12 = vadd.f32 %v3029_v43, %v2999_v11  ;;  %v2699_v46 = vadd.f32 %v2658_v23, %v2515_v61  ;;  %v2476_v15 = vpop.f32.mrf.mxu2  ;;  %v2319_v52 = vpop.f32.mrf.mxu1 }
 0x300   : > { %v2516_v54 = vadd.f32 %v2476_v15, %v2354_v45  ;;  %v2356_v36 = vadd.f32 %v2319_v52, %v5011_v1 }
 0x302   : > { %v2826_v19 = vpop.f32.mrf.mxu0 }
 0x303   : > { %v2867_v58 = vadd.f32 %v2826_v19, %v2699_v46 }
 0x305   : > { %v2962_v28 = vadd.f32 %v2961_v62, %v2867_v58  ;;  %v3000_v55 = vmul.f32 %v2867_v58, %v2867_v58 }
 0x306   : > { %v2660_v4 = vpop.f32.mrf.mxu3 }
 0x307   : > { %v3031_v5 = vadd.f32 %v3030_v12, %v3000_v55  ;;  %v2700_v42 = vadd.f32 %v2660_v4, %v2516_v54  ;;  %v2479_v56 = vpop.f32.mrf.mxu2  ;;  %v2322_v3 = vpop.f32.mrf.mxu1 }
 0x308   : > { %v2517_v44 = vadd.f32 %v2479_v56, %v2355_v40  ;;  %v2357_v50 = vadd.f32 %v2322_v3, %v5014_v9 }
 0x30a   : > { %v2828_v48 = vpop.f32.mrf.mxu0 }
 0x30b   : > { %v2868_v30 = vadd.f32 %v2828_v48, %v2700_v42 }
 0x30d   : > { %v3696_v60 = vpack.c.bf16 %v2868_v30, %v2867_v58  ;;  %v2963_v18 = vadd.f32 %v2962_v28, %v2868_v30  ;;  %v3001_v8 = vmul.f32 %v2868_v30, %v2868_v30 }
 0x30e   : > { %v2663_v29 = vpop.f32.mrf.mxu3 }
 0x30f   : > { %3728 = vst [vmem:[%s5041_s8 + $0x68] sm:$0xff] %v3696_v60   ;;  %v3032_v20 = vadd.f32 %v3031_v5, %v3001_v8  ;;  %v2701_v59 = vadd.f32 %v2663_v29, %v2517_v44  ;;  %v2481_v51 = vpop.f32.mrf.mxu2  ;;  %v2324_v14 = vpop.f32.mrf.mxu1 }
 0x310   : > { %v2518_v49 = vadd.f32 %v2481_v51, %v2356_v36  ;;  %v2358_v27 = vadd.f32 %v2324_v14, %v5024_v63 }
 0x312   : > { %v2831_v0 = vpop.f32.mrf.mxu0 }
 0x313   : > { %v2869_v6 = vadd.f32 %v2831_v0, %v2701_v59 }
 0x315   : > { %v2964_v24 = vadd.f32 %v2963_v18, %v2869_v6  ;;  %v3002_v35 = vmul.f32 %v2869_v6, %v2869_v6 }
 0x316   : > { %v2665_v2 = vpop.f32.mrf.mxu3 }
 0x317   : > { %v3033_v21 = vadd.f32 %v3032_v20, %v3002_v35  ;;  %v2702_v34 = vadd.f32 %v2665_v2, %v2518_v49  ;;  %v2484_v53 = vpop.f32.mrf.mxu2 }
 0x318   : > { %v2519_v39 = vadd.f32 %v2484_v53, %v2357_v50 }
 0x31a   : > { %v2833_v16 = vpop.f32.mrf.mxu0 }
 0x31b   : > { %v2870_v37 = vadd.f32 %v2833_v16, %v2702_v34 }
 0x31d   : > { %v3701_v25 = vpack.c.bf16 %v2870_v37, %v2869_v6  ;;  %v2965_v31 = vadd.f32 %v2964_v24, %v2870_v37  ;;  %v3003_v26 = vmul.f32 %v2870_v37, %v2870_v37 }
 0x31e   : > { %v2668_v1 = vpop.f32.mrf.mxu3 }
 0x31f   : > { %3729 = vst [vmem:[%s5041_s8 + $0x70] sm:$0xff] %v3701_v25   ;;  %v3034_v22 = vadd.f32 %v3033_v21, %v3003_v26  ;;  %v2703_v13 = vadd.f32 %v2668_v1, %v2519_v39  ;;  %v2486_v41 = vpop.f32.mrf.mxu2 }
 0x320   : > { %v2520_v7 = vadd.f32 %v2486_v41, %v2358_v27 }
 0x322   : > { %v2836_v10 = vpop.f32.mrf.mxu0 }
 0x323   : > { %v2871_v43 = vadd.f32 %v2836_v10, %v2703_v13 }
 0x325   : > { %v2966_v17 = vadd.f32 %v2965_v31, %v2871_v43  ;;  %v3004_v9 = vmul.f32 %v2871_v43, %v2871_v43 }
 0x326   : > { %v2670_v47 = vpop.f32.mrf.mxu3 }
 0x327   : > { %v3035_v32 = vadd.f32 %v3034_v22, %v3004_v9  ;;  %v2704_v33 = vadd.f32 %v2670_v47, %v2520_v7 }
 0x32a   : > { %v2838_v61 = vpop.f32.mrf.mxu0 }
 0x32b   : > { %v2872_v57 = vadd.f32 %v2838_v61, %v2704_v33 }
 0x32d   : > { %v3706_v62 = vpack.c.bf16 %v2872_v57, %v2871_v43  ;;  %v2967_v11 = vadd.f32 %v2966_v17, %v2872_v57  ;;  %v3005_v23 = vmul.f32 %v2872_v57, %v2872_v57 }
 0x32f   : > { %3730 = vst [vmem:[%s5041_s8 + $0x78] sm:$0xff] %v3706_v62   ;;  %v2968_v12 = vrot.slane %v2967_v11, 4  ;;  %v3036_v46 = vadd.f32 %v3035_v32, %v3005_v23 }
 0x331   : > { %v2969_v15 = vadd.f32 %v2968_v12, %v2967_v11  ;;  %v3037_v38 = vrot.slane %v3036_v46, 4 }
 0x333   : > { %v2970_v63 = vrot.slane %v2969_v15, 2  ;;  %v3038_v45 = vadd.f32 %v3037_v38, %v3036_v46 }
 0x335   : > { %v2971_v19 = vadd.f32 %v2970_v63, %v2969_v15  ;;  %v3039_v58 = vrot.slane %v3038_v45, 2 }
 0x337   : > { %v2972_v54 = vrot.slane %v2971_v19, 1  ;;  %v3040_v28 = vadd.f32 %v3039_v58, %v3038_v45 }
 0x339   : > { %v3041_v55 = vrot.slane %v3040_v28, 1  ;;  %v2973_v4 = vadd.f32 %v2972_v54, %v2971_v19 }
 0x33b   : > { %v3042_v5 = vadd.f32 %v3041_v55, %v3040_v28 }
 0x33d   : > { %v3044_v42 = vsel %vm3043_vm7, %v2973_v4, %v3042_v5 }
 0x33e   : > { %3045 = vst [vmem:[%s275_s11] sm:$0x3] %v3044_v42 }
 0x33f PF: > { %s16_s20 = sadd.s32 1, %s3796_s20   ;;  %s5381_s18 = smov %s3792_s19 }
 0x340   : > { %p13_p5 = scmp.ge.s32.totalorder %s16_s20, 4   ;;  %s5382_s19 = smov %s5384_s21 }
 0x342   :  { %15 = sbr.rel (!%p13_p5) target bundleno = 2 (0x2), region = 86 }

// kernel: estimate_forward.7
= control target key start
LH: loop header
LB: loop body
LE: loop exit
PB: predicated region body
PF: predicated region fallthrough
CT: control target
= control target key end

     0   :  { %s3954_s18 = smov 0   ;;  %s3956_s19 = smov 0   ;;  %s5322_s0 = inlined_call_operand.vmem [shape: bf16[2,18,18,128], index: 0, kind: input, shape index: {}]   ;;  %s5323_s1 = inlined_call_operand.vmem [shape: bf16[3,3,128,128], index: 1, kind: input, shape index: {}]   ;;  %s5324_s2 = inlined_call_operand.vmem [shape: f32[1,128], index: 2, kind: input, shape index: {}]   ;;  %s5325_s3 = inlined_call_operand.vmem [shape: f32[1,1,128], index: 3, kind: input, shape index: {}]   ;;  %s5326_s4 = inlined_call_operand.vmem [shape: f32[1,1,128], index: 4, kind: input, shape index: {}]   ;;  %s5327_s5 = inlined_call_operand.vmem [shape: f32[2,16,16,128], index: 5, kind: output, shape index: {}]  }
   0x1   :  { %s3958_s20 = smov 0  }
   0x2 LB: > { %s27_s21 = sadd.s32 1, %s3918_s19  ;;  %p3223_p0 = scmp.ge.s32.totalorder %s3922_s20, 1  ;;  %s3922_s20 = sphi %s3958_s20, %s15_s20   ;;  %s3918_s19 = sphi %s3956_s19, %s5523_s19   ;;  %s3914_s18 = sphi %s3954_s18, %s5522_s18  }
   0x3   : > { %p29_p1 = scmp.ge.s32.totalorder %s27_s21, 2  ;;  %p205_p2 = scmp.lt.s32.totalorder %s3922_s20, 3 }
   0x5   : > { %s5525_s21 = smov (%p29_p1, %s27_s21), 0  ;;  %p206_p3 = pnand %p3223_p0, %p205_p2 }
   0x7   : > { %209 = sbr.rel (%p206_p3) target bundleno = 823 (0x337), region = 40 }
   0xc   : > { %v3679_v0 = vld [vmem:[%s5323_s1 + $0x78] sm:$0xff]  ;;  %p240_p4 = scmp.lt.s32.totalorder %s3914_s18, 1  ;;  %v3678_v1 = vld [vmem:[%s5323_s1 + $0x70] sm:$0xff]  ;;  %v3677_v2 = vld [vmem:[%s5323_s1 + $0x68] sm:$0xff]  ;;  %vm605_vm0 = vsmask.f32 3328 }
   0xd   : > { %3780 = vmatpush.bf16.msra.mxu1 %v3679_v0  ;;  %3781 = vmatpush.bf16.msra.mxu2 %v3679_v0  ;;  %v3992_v3 = vld [vmem:[%s5325_s3] ss:$0 sm:$0xff]  ;;  %vm606_vm1 = vsmask.f32 7440  ;;  %v3675_v37 = vld [vmem:[%s5323_s1 + $0x58] sm:$0xff]  ;;  %v3674_v54 = vld [vmem:[%s5323_s1 + $0x50] sm:$0xff] }
   0xe   : > { %s5527_s18 = smov (!%p240_p4, %s3914_s18), 1  ;;  %3782 = vmatpush.bf16.msra.mxu3 %v3679_v0  ;;  %1121 = vmatpush.bf16.msra.mxu0 %v3679_v0  ;;  %v3997_v4 = vld [vmem:[%s5326_s4] ss:$0 sm:$0xff]  ;;  %vm4063_vm2 = vmor %vm605_vm0, %vm606_vm1  ;;  %vm1459_vm3 = vcmask 1042432   ;;  %vm1460_vm4 = vcmask 1046532  }
   0xf   : > { %s3804_s26 = smul.u32 216, %s5527_s18  ;;  %v3676_v20 = vld [vmem:[%s5323_s1 + $0x60] sm:$0xff]  ;;  %vm4549_vm5 = vmor %vm1459_vm3, %vm1460_vm4  ;;  %s3663_s23 = sshll.u32 %s5527_s18, 8 }
  0x11   : > { %3783 = vmatpush.bf16.msra.mxu1 %v3678_v1  ;;  %3784 = vmatpush.bf16.msra.mxu2 %v3678_v1  ;;  %s3987_s6 = scalar_lea.vmem %s5322_s0, %s3804_s26  ;;  %s5160_s26 = scalar_lea.vmem %s5327_s5, %s3663_s23 }
  0x12   : > { %3785 = vmatpush.bf16.msra.mxu3 %v3678_v1  ;;  %1122 = vmatpush.bf16.msra.mxu0 %v3678_v1  ;;  %v3773_v5 = vld [vmem:[%s3987_s6 + $0x30] sm:$0xff]   ;;  %v271_v6 = vld [vmem:[%s3987_s6 + $0x38] sm:$0x1]  ;;  %v3775_v7 = vld [vmem:[%s3987_s6 + $0x60] sm:$0xff]  }
  0x13   : > { %v3746_v8 = vunpack.c.l.bf16 %v3773_v5  ;;  %v3747_v9 = vunpack.c.h.bf16 %v3773_v5  ;;  %v325_v10 = vunpack.c.l.bf16 %v271_v6  ;;  %v3754_v11 = vunpack.c.l.bf16 %v3775_v7  ;;  %v283_v12 = vld [vmem:[%s3987_s6 + $0x68] sm:$0x1]  ;;  %v3777_v13 = vld [vmem:[%s3987_s6 + $0x90] sm:$0xff]   ;;  %v295_v14 = vld [vmem:[%s3987_s6 + $0x98] sm:$0x1] }
  0x14   : > { %v3755_v15 = vunpack.c.h.bf16 %v3775_v7  ;;  %v337_v16 = vunpack.c.l.bf16 %v283_v12  ;;  %v3762_v17 = vunpack.c.l.bf16 %v3777_v13  ;;  %v3763_v18 = vunpack.c.h.bf16 %v3777_v13  ;;  %v4006_v19 = vld [vmem:[%s3987_s6] sm:$0xff]  }
  0x15   : > { %3786 = vmatpush.bf16.msra.mxu1 %v3677_v2  ;;  %3787 = vmatpush.bf16.msra.mxu2 %v3677_v2  ;;  %v381_v21 = vmul.f32 %v3992_v3, %v3746_v8  ;;  %v382_v22 = vmul.f32 %v3992_v3, %v3747_v9  ;;  %v383_v23 = vmul.f32 %v3992_v3, %v325_v10  ;;  %v349_v24 = vunpack.c.l.bf16 %v295_v14  ;;  %v3673_v9 = vld [vmem:[%s5323_s1 + $0x48] sm:$0xff] }
  0x16   : > { %3788 = vmatpush.bf16.msra.mxu3 %v3677_v2  ;;  %1123 = vmatpush.bf16.msra.mxu0 %v3677_v2  ;;  %v393_v25 = vmul.f32 %v3992_v3, %v3754_v11  ;;  %v394_v26 = vmul.f32 %v3992_v3, %v3755_v15  ;;  %v395_v27 = vmul.f32 %v3992_v3, %v337_v16  ;;  %v3738_v28 = vunpack.c.l.bf16 %v4006_v19 }
  0x17   : > { %v439_v29 = vadd.f32 %v3997_v4, %v381_v21  ;;  %v440_v30 = vadd.f32 %v3997_v4, %v382_v22  ;;  %v441_v31 = vadd.f32 %v3997_v4, %v383_v23  ;;  %v405_v32 = vmul.f32 %v3992_v3, %v3762_v17 }
  0x18   : > { %v451_v33 = vadd.f32 %v3997_v4, %v393_v25  ;;  %v452_v34 = vadd.f32 %v3997_v4, %v394_v26  ;;  %v453_v35 = vadd.f32 %v3997_v4, %v395_v27  ;;  %v406_v36 = vmul.f32 %v3992_v3, %v3763_v18 }
  0x19   : > { %3789 = vmatpush.bf16.msra.mxu1 %v3676_v20  ;;  %3790 = vmatpush.bf16.msra.mxu2 %v3676_v20  ;;  %v493_v38 = vmax.f32 %v439_v29, 0.0  ;;  %v494_v39 = vmax.f32 %v440_v30, 0.0  ;;  %v495_v40 = vmax.f32 %v441_v31, 0.0  ;;  %v407_v41 = vmul.f32 %v3992_v3, %v349_v24  ;;  %v3672_v29 = vld [vmem:[%s5323_s1 + $0x40] sm:$0xff] }
  0x1a   : > { %3791 = vmatpush.bf16.msra.mxu3 %v3676_v20  ;;  %1124 = vmatpush.bf16.msra.mxu0 %v3676_v20  ;;  %v505_v42 = vmax.f32 %v451_v33, 0.0  ;;  %v506_v43 = vmax.f32 %v452_v34, 0.0  ;;  %v507_v44 = vmax.f32 %v453_v35, 0.0  ;;  %v463_v45 = vadd.f32 %v3997_v4, %v405_v32 }
  0x1b   : > { %v4031_v46 = vpack.c.bf16 %v493_v38, %v493_v38  ;;  %v4033_v47 = vpack.c.bf16 %v494_v39, %v494_v39  ;;  %v4035_v48 = vpack.c.bf16 %v495_v40, %v495_v40  ;;  %v464_v49 = vadd.f32 %v3997_v4, %v406_v36  ;;  %v259_v38 = vld [vmem:[%s3987_s6 + $0x8] sm:$0x1] }
  0x1c   : > { %v4038_v50 = vpack.c.bf16 %v505_v42, %v505_v42  ;;  %v4040_v51 = vpack.c.bf16 %v506_v43, %v506_v43  ;;  %v4042_v52 = vpack.c.bf16 %v507_v44, %v507_v44  ;;  %v465_v53 = vadd.f32 %v3997_v4, %v407_v41  ;;  %v3687_v43 = vld [vmem:[%s5323_s1 + $0xb8] sm:$0xff] }
  0x1d   : > { %3792 = vmatpush.bf16.msra.mxu1 %v3675_v37  ;;  %3793 = vmatpush.bf16.msra.mxu2 %v3675_v37  ;;  %v705_v55 = vshrl.u32 %v4031_v46, 16  ;;  %v708_v56 = vshll.u32 %v4031_v46, 16  ;;  %v714_v57 = vshll.u32 %v4033_v47, 16  ;;  %v718_v58 = vshrl.u32 %v4033_v47, 16  ;;  %v3695_v44 = vld [vmem:[%s5323_s1 + $0xf8] sm:$0xff] }
  0x1e   : > { %3794 = vmatpush.bf16.msra.mxu3 %v3675_v37  ;;  %1125 = vmatpush.bf16.msra.mxu0 %v3675_v37  ;;  %v724_v59 = vshll.u32 %v4035_v48, 16  ;;  %v801_v60 = vshrl.u32 %v4038_v50, 16  ;;  %v804_v61 = vshll.u32 %v4038_v50, 16  ;;  %v810_v62 = vshll.u32 %v4040_v51, 16 }
  0x1f   : > { %v707_v63 = vrot.slane %v705_v55, 4  ;;  %v710_v0 = vrot.slane %v708_v56, 5  ;;  %v716_v1 = vrot.slane %v714_v57, 5  ;;  %v720_v2 = vrot.slane %v718_v58, 4  ;;  %v3703_v55 = vld [vmem:[%s5323_s1 + $0x138] sm:$0xff] }
  0x20   : > { %v726_v5 = vrot.slane %v724_v59, 5  ;;  %v803_v6 = vrot.slane %v801_v60, 4  ;;  %v806_v7 = vrot.slane %v804_v61, 5  ;;  %v812_v8 = vrot.slane %v810_v62, 5  ;;  %v272_v56 = vld [vmem:[%s3987_s6 + $0x3c] sm:$0xff]  }
  0x21   : > { %3795 = vmatpush.bf16.msra.mxu1 %v3674_v54  ;;  %3796 = vmatpush.bf16.msra.mxu2 %v3674_v54  ;;  %v711_v10 = vor.u32 %v710_v0, %v707_v63  ;;  %v721_v11 = vor.u32 %v720_v2, %v716_v1  ;;  %v814_v12 = vshrl.u32 %v4040_v51, 16  ;;  %v820_v13 = vshll.u32 %v4042_v52, 16  ;;  %v3671_v61 = vld [vmem:[%s5323_s1 + $0x38] sm:$0xff]  ;;  %v274_v2 = vld [vmem:[%s3987_s6 + $0x44] sm:$0x1] }
  0x22   : > { %3797 = vmatpush.bf16.msra.mxu3 %v3674_v54  ;;  %1126 = vmatpush.bf16.msra.mxu0 %v3674_v54  ;;  %v807_v15 = vor.u32 %v806_v7, %v803_v6  ;;  %v517_v16 = vmax.f32 %v463_v45, 0.0  ;;  %v518_v17 = vmax.f32 %v464_v49, 0.0  ;;  %v519_v18 = vmax.f32 %v465_v53, 0.0 }
  0x23   : > { %v712_v20 = vrot.slane %v711_v10, 4  ;;  %v722_v21 = vrot.slane %v721_v11, 4  ;;  %v816_v22 = vrot.slane %v814_v12, 4  ;;  %v822_v23 = vrot.slane %v820_v13, 5 }
  0x24   : > { %v808_v24 = vrot.slane %v807_v15, 4  ;;  %v4067_v25 = vpack.c.bf16 %v517_v16, %v517_v16  ;;  %v4069_v26 = vpack.c.bf16 %v518_v17, %v518_v17  ;;  %v4071_v27 = vpack.c.bf16 %v519_v18, %v519_v18  ;;  %v3670_v17 = vld [vmem:[%s5323_s1 + $0x30] sm:$0xff] }
  0x25   : > { %3798 = vmatpush.bf16.msra.mxu1 %v3673_v9  ;;  %3799 = vmatpush.bf16.msra.mxu2 %v3673_v9  ;;  %v717_v30 = vsel %vm4063_vm2, %v712_v20, %v716_v1  ;;  %v727_v31 = vsel %vm4063_vm2, %v722_v21, %v726_v5  ;;  %v817_v32 = vor.u32 %v816_v22, %v812_v8  ;;  %v3739_v33 = vunpack.c.h.bf16 %v4006_v19 }
  0x26   : > { %5398 = vst [vmem:[#allocation2_spill] sm:$0xff] %v4067_v25  ;;  %3800 = vmatpush.bf16.msra.mxu3 %v3673_v9  ;;  %1127 = vmatpush.bf16.msra.mxu0 %v3673_v9  ;;  %v1017_v34 = vunpack.c.l.b16 %v717_v30  ;;  %v1018_v35 = vunpack.c.l.b16 %v727_v31  ;;  %v813_v36 = vsel %vm4063_vm2, %v808_v24, %v812_v8  ;;  %v897_v37 = vshrl.u32 %v4067_v25, 16  ;;  %v3686_v8 = vld [vmem:[%s5323_s1 + $0xb0] sm:$0xff] }
  0x27   : > { %5399 = vst [vmem:[#allocation3_spill] sm:$0xff] %v4069_v26  ;;  %v818_v39 = vrot.slane %v817_v32, 4  ;;  %v1025_v40 = vunpack.c.l.b16 %v813_v36  ;;  %v900_v41 = vshll.u32 %v4067_v25, 16  ;;  %v906_v42 = vshll.u32 %v4069_v26, 16  ;;  %v3694_v9 = vld [vmem:[%s5323_s1 + $0xf0] sm:$0xff] }
  0x28   : > { %5400 = vst [vmem:[#allocation4_spill] sm:$0xff] %v4071_v27  ;;  %v4093_v45 = vpack.c.b16 %v1018_v35, %v1017_v34  ;;  %v899_v49 = vrot.slane %v897_v37, 4  ;;  %v910_v53 = vshrl.u32 %v4069_v26, 16  ;;  %v916_v54 = vshll.u32 %v4071_v27, 16 }
  0x29   : > { %3801 = vmatpush.bf16.msra.mxu1 %v3672_v29  ;;  %3802 = vmatpush.bf16.msra.mxu2 %v3672_v29  ;;  %v823_v57 = vsel %vm4063_vm2, %v818_v39, %v822_v23  ;;  %v902_v58 = vrot.slane %v900_v41, 5  ;;  %v908_v59 = vrot.slane %v906_v42, 5  ;;  %v313_v60 = vunpack.c.l.bf16 %v259_v38 }
  0x2a   : > { %3803 = vmatpush.bf16.msra.mxu3 %v3672_v29  ;;  %1128 = vmatpush.bf16.msra.mxu0 %v3672_v29  ;;  %v1026_v62 = vunpack.c.l.b16 %v823_v57  ;;  %v912_v63 = vrot.slane %v910_v53, 4  ;;  %v918_v0 = vrot.slane %v916_v54, 5  ;;  %v369_v1 = vmul.f32 %v3992_v3, %v3738_v28 }
  0x2b   : > { %v903_v5 = vor.u32 %v902_v58, %v899_v49  ;;  %v370_v6 = vmul.f32 %v3992_v3, %v3739_v33  ;;  %v371_v7 = vmul.f32 %v3992_v3, %v313_v60  ;;  %v326_v10 = vunpack.c.l.bf16 %v272_v56 }
  0x2c   : > { %1149 = vmatmul.bf16.vlgmr.msra.gmra.mxu1 %v4093_v45  ;;  %v4119_v19 = vpack.c.b16 %v1026_v62, %v1025_v40  ;;  %v913_v28 = vor.u32 %v912_v63, %v908_v59  ;;  %v427_v11 = vadd.f32 %v3997_v4, %v369_v1  ;;  %v327_v12 = vunpack.c.h.bf16 %v272_v56 }
  0x2d   : > { %1703 = vmatpush.bf16.msrb.mxu2 %v3687_v43  ;;  %v904_v13 = vrot.slane %v903_v5, 4  ;;  %v428_v15 = vadd.f32 %v3997_v4, %v370_v6  ;;  %v429_v16 = vadd.f32 %v3997_v4, %v371_v7  ;;  %1354 = vmatpush.bf16.msrb.mxu1 %v3671_v61  ;;  %v328_v18 = vunpack.c.l.bf16 %v274_v2  ;;  %v286_v5 = vld [vmem:[%s3987_s6 + $0x74] sm:$0x1] }
  0x2e   : > { %1895 = vmatpush.bf16.msrb.mxu3 %v3695_v44  ;;  %5401 = vst [vmem:[#allocation5_spill] sm:$0xff] %v4119_v19  ;;  %2109 = vmatpush.bf16.msrb.mxu0 %v3703_v55  ;;  %v914_v20 = vrot.slane %v913_v28, 4  ;;  %v481_v21 = vmax.f32 %v427_v11, 0.0  ;;  %v384_v22 = vmul.f32 %v3992_v3, %v326_v10  ;;  %v385_v23 = vmul.f32 %v3992_v3, %v327_v12  ;;  %v284_v55 = vld [vmem:[%s3987_s6 + $0x6c] sm:$0xff]  }
  0x2f   : > { %1169 = vmatmul.bf16.vlgmr.msra.gmra.mxu2 %v4119_v19  ;;  %v909_v24 = vsel %vm4063_vm2, %v904_v13, %v908_v59  ;;  %v482_v29 = vmax.f32 %v428_v15, 0.0  ;;  %v483_v30 = vmax.f32 %v429_v16, 0.0  ;;  %v386_v31 = vmul.f32 %v3992_v3, %v328_v18  ;;  %v3685_v28 = vld [vmem:[%s5323_s1 + $0xa8] sm:$0xff] }
  0x30   : > { %v919_v32 = vsel %vm4063_vm2, %v914_v20, %v918_v0  ;;  %v1033_v33 = vunpack.c.l.b16 %v909_v24  ;;  %v4135_v34 = vpack.c.bf16 %v481_v21, %v481_v21  ;;  %v442_v35 = vadd.f32 %v3997_v4, %v384_v22 }
  0x31   : > { %1704 = vmatpush.bf16.msrb.mxu2 %v3686_v8  ;;  %v1034_v36 = vunpack.c.l.b16 %v919_v32  ;;  %v4138_v37 = vpack.c.bf16 %v482_v29, %v482_v29  ;;  %v4140_v38 = vpack.c.bf16 %v483_v30, %v483_v30  ;;  %1355 = vmatpush.bf16.msrb.mxu1 %v3670_v17  ;;  %v443_v39 = vadd.f32 %v3997_v4, %v385_v23  ;;  %v296_v29 = vld [vmem:[%s3987_s6 + $0x9c] sm:$0xff]  }
  0x32   : > { %1896 = vmatpush.bf16.msrb.mxu3 %v3694_v9  ;;  %v609_v40 = vshrl.u32 %v4135_v34, 16  ;;  %v612_v41 = vshll.u32 %v4135_v34, 16  ;;  %v444_v42 = vadd.f32 %v3997_v4, %v386_v31  ;;  %v496_v43 = vmax.f32 %v442_v35, 0.0 }
  0x33   : > { %v4146_v44 = vpack.c.b16 %v1034_v36, %v1033_v33  ;;  %v618_v49 = vshll.u32 %v4138_v37, 16  ;;  %v622_v53 = vshrl.u32 %v4138_v37, 16  ;;  %v628_v54 = vshll.u32 %v4140_v38, 16 }
  0x34   : > { %v611_v56 = vrot.slane %v609_v40, 4  ;;  %v614_v57 = vrot.slane %v612_v41, 5  ;;  %v497_v58 = vmax.f32 %v443_v39, 0.0  ;;  %v498_v59 = vmax.f32 %v444_v42, 0.0  ;;  %v298_v41 = vld [vmem:[%s3987_s6 + $0xa4] sm:$0x1] }
  0x35   : > { %5402 = vst [vmem:[#allocation6_spill] sm:$0xff] %v4146_v44  ;;  %1189 = vmatmul.bf16.vlgmr.msra.gmra.mxu3 %v4146_v44  ;;  %v620_v60 = vrot.slane %v618_v49, 5  ;;  %v624_v61 = vrot.slane %v622_v53, 4  ;;  %v630_v62 = vrot.slane %v628_v54, 5  ;;  %v4153_v63 = vpack.c.bf16 %v496_v43, %v496_v43  ;;  %1705 = vmatpush.bf16.msrb.mxu2 %v3685_v28 }
  0x36   : > { %v615_v0 = vor.u32 %v614_v57, %v611_v56  ;;  %v4155_v1 = vpack.c.bf16 %v497_v58, %v497_v58  ;;  %v4157_v2 = vpack.c.bf16 %v498_v59, %v498_v59  ;;  %v338_v6 = vunpack.c.l.bf16 %v284_v55 }
  0x37   : > { %v625_v7 = vor.u32 %v624_v61, %v620_v60  ;;  %v729_v8 = vshrl.u32 %v4153_v63, 16  ;;  %v732_v9 = vshll.u32 %v4153_v63, 16  ;;  %v339_v10 = vunpack.c.h.bf16 %v284_v55 }
  0x38   : > { %v616_v11 = vrot.slane %v615_v0, 4  ;;  %v738_v12 = vshll.u32 %v4155_v1, 16  ;;  %v742_v13 = vshrl.u32 %v4155_v1, 16  ;;  %v748_v15 = vshll.u32 %v4157_v2, 16 }
  0x39   : > { %v626_v16 = vrot.slane %v625_v7, 4  ;;  %v731_v17 = vrot.slane %v729_v8, 4  ;;  %v734_v18 = vrot.slane %v732_v9, 5  ;;  %v340_v20 = vunpack.c.l.bf16 %v286_v5 }
  0x3a   : > { %v621_v21 = vsel %vm4063_vm2, %v616_v11, %v620_v60  ;;  %v740_v22 = vrot.slane %v738_v12, 5  ;;  %v744_v23 = vrot.slane %v742_v13, 4  ;;  %v750_v24 = vrot.slane %v748_v15, 5  ;;  %v3693_v11 = vld [vmem:[%s5323_s1 + $0xe8] sm:$0xff]  ;;  %v3702_v12 = vld [vmem:[%s5323_s1 + $0x130] sm:$0xff] }
  0x3b   : > { %v631_v30 = vsel %vm4063_vm2, %v626_v16, %v630_v62  ;;  %v1009_v31 = vunpack.c.l.b16 %v621_v21  ;;  %v735_v32 = vor.u32 %v734_v18, %v731_v17  ;;  %v396_v33 = vmul.f32 %v3992_v3, %v338_v6  ;;  %v260_v62 = vld [vmem:[%s3987_s6 + $0xc] sm:$0xff]   ;;  %1897 = vmatpush.bf16.msrb.mxu3 %v3693_v11  ;;  %2110 = vmatpush.bf16.msrb.mxu0 %v3702_v12 }
  0x3c   : > { %v1010_v35 = vunpack.c.l.b16 %v631_v30  ;;  %v745_v36 = vor.u32 %v744_v23, %v740_v22  ;;  %v397_v39 = vmul.f32 %v3992_v3, %v339_v10  ;;  %v398_v40 = vmul.f32 %v3992_v3, %v340_v20  ;;  %v3669_v13 = vld [vmem:[%s5323_s1 + $0x28] sm:$0xff]  ;;  %v3684_v20 = vld [vmem:[%s5323_s1 + $0xa0] sm:$0xff] }
  0x3d   : > { %v736_v42 = vrot.slane %v735_v32, 4  ;;  %v454_v43 = vadd.f32 %v3997_v4, %v396_v33  ;;  %v350_v49 = vunpack.c.l.bf16 %v296_v29  ;;  %v351_v53 = vunpack.c.h.bf16 %v296_v29  ;;  %v3692_v29 = vld [vmem:[%s5323_s1 + $0xe0] sm:$0xff]  ;;  %v3701_v30 = vld [vmem:[%s5323_s1 + $0x128] sm:$0xff]  ;;  %1356 = vmatpush.bf16.msrb.mxu1 %v3669_v13  ;;  %1706 = vmatpush.bf16.msrb.mxu2 %v3684_v20 }
  0x3e   : > { %v1041_v54 = vpack.c.b16 %v1010_v35, %v1009_v31  ;;  %v746_v55 = vrot.slane %v745_v36, 4  ;;  %v455_v56 = vadd.f32 %v3997_v4, %v397_v39  ;;  %v456_v57 = vadd.f32 %v3997_v4, %v398_v40  ;;  %v3668_v36 = vld [vmem:[%s5323_s1 + $0x20] sm:$0xff] }
  0x3f   : > { %v741_v58 = vsel %vm4063_vm2, %v736_v42, %v740_v22  ;;  %v508_v59 = vmax.f32 %v454_v43, 0.0  ;;  %v352_v60 = vunpack.c.l.bf16 %v298_v41  ;;  %v408_v61 = vmul.f32 %v3992_v3, %v350_v49  ;;  %v262_v43 = vld [vmem:[%s3987_s6 + $0x14] sm:$0x1]  ;;  %1898 = vmatpush.bf16.msrb.mxu3 %v3692_v29  ;;  %2111 = vmatpush.bf16.msrb.mxu0 %v3701_v30 }
  0x40   : > { %1129 = vmatmul.bf16.vlgmr.msra.gmra.mxu0 %v1041_v54  ;;  %v751_v0 = vsel %vm4063_vm2, %v746_v55, %v750_v24  ;;  %v1019_v5 = vunpack.c.l.b16 %v741_v58  ;;  %v509_v6 = vmax.f32 %v455_v56, 0.0  ;;  %v510_v7 = vmax.f32 %v456_v57, 0.0 }
  0x41   : > { %v1020_v8 = vunpack.c.l.b16 %v751_v0  ;;  %v4186_v9 = vpack.c.bf16 %v508_v59, %v508_v59  ;;  %v409_v10 = vmul.f32 %v3992_v3, %v351_v53  ;;  %v410_v28 = vmul.f32 %v3992_v3, %v352_v60  ;;  %1357 = vmatpush.bf16.msrb.mxu1 %v3668_v36  ;;  %v277_v36 = vld [vmem:[%s3987_s6 + $0x50] sm:$0x1] }
  0x42   : > { %v4199_v15 = vpack.c.bf16 %v509_v6, %v509_v6  ;;  %v4201_v16 = vpack.c.bf16 %v510_v7, %v510_v7  ;;  %v466_v17 = vadd.f32 %v3997_v4, %v408_v61  ;;  %v314_v18 = vunpack.c.l.bf16 %v260_v62 }
  0x43   : > { %v4207_v21 = vpack.c.b16 %v1020_v8, %v1019_v5  ;;  %v825_v22 = vshrl.u32 %v4186_v9, 16  ;;  %v828_v23 = vshll.u32 %v4186_v9, 16  ;;  %v467_v24 = vadd.f32 %v3997_v4, %v409_v10 }
  0x44   : > { %v834_v31 = vshll.u32 %v4199_v15, 16  ;;  %v838_v32 = vshrl.u32 %v4199_v15, 16  ;;  %v844_v33 = vshll.u32 %v4201_v16, 16  ;;  %v468_v35 = vadd.f32 %v3997_v4, %v410_v28 }
  0x45   : > { %1154 = vmatmul.bf16.gmra.mxu1 %v4207_v21  ;;  %v827_v39 = vrot.slane %v825_v22, 4  ;;  %v830_v40 = vrot.slane %v828_v23, 5  ;;  %v520_v41 = vmax.f32 %v466_v17, 0.0  ;;  %v521_v42 = vmax.f32 %v467_v24, 0.0  ;;  %v3774_v22 = vld [vmem:[%s3987_s6 + $0x48] sm:$0xff]  }
  0x46   : > { %v836_v49 = vrot.slane %v834_v31, 5  ;;  %v840_v53 = vrot.slane %v838_v32, 4  ;;  %v846_v54 = vrot.slane %v844_v33, 5  ;;  %v522_v55 = vmax.f32 %v468_v35, 0.0 }
  0x47   : > { %v831_v56 = vor.u32 %v830_v40, %v827_v39  ;;  %v4227_v57 = vpack.c.bf16 %v520_v41, %v520_v41  ;;  %v4229_v58 = vpack.c.bf16 %v521_v42, %v521_v42  ;;  %v315_v59 = vunpack.c.h.bf16 %v260_v62 }
  0x48   : > { %v841_v60 = vor.u32 %v840_v53, %v836_v49  ;;  %v4231_v61 = vpack.c.bf16 %v522_v55, %v522_v55  ;;  %v316_v0 = vunpack.c.l.bf16 %v262_v43  ;;  %v372_v5 = vmul.f32 %v3992_v3, %v314_v18 }
  0x49   : > { %5403 = vst [vmem:[#allocation7_spill] sm:$0xff] %v4227_v57  ;;  %v832_v6 = vrot.slane %v831_v56, 4  ;;  %v921_v7 = vshrl.u32 %v4227_v57, 16  ;;  %v924_v8 = vshll.u32 %v4227_v57, 16  ;;  %v930_v10 = vshll.u32 %v4229_v58, 16 }
  0x4a   : > { %5404 = vst [vmem:[#allocation8_spill] sm:$0xff] %v4229_v58  ;;  %v842_v28 = vrot.slane %v841_v60, 4  ;;  %v934_v62 = vshrl.u32 %v4229_v58, 16  ;;  %v940_v11 = vshll.u32 %v4231_v61, 16  ;;  %v373_v12 = vmul.f32 %v3992_v3, %v315_v59 }
  0x4b   : > { %5405 = vst [vmem:[#allocation9_spill] sm:$0xff] %v4231_v61  ;;  %v837_v13 = vsel %vm4063_vm2, %v832_v6, %v836_v49  ;;  %v923_v17 = vrot.slane %v921_v7, 4  ;;  %v926_v18 = vrot.slane %v924_v8, 5  ;;  %v932_v20 = vrot.slane %v930_v10, 5 }
  0x4c   : > { %v847_v23 = vsel %vm4063_vm2, %v842_v28, %v846_v54  ;;  %v1027_v24 = vunpack.c.l.b16 %v837_v13  ;;  %v936_v29 = vrot.slane %v934_v62, 4  ;;  %v942_v30 = vrot.slane %v940_v11, 5 }
  0x4d   : > { %v1028_v31 = vunpack.c.l.b16 %v847_v23  ;;  %v927_v32 = vor.u32 %v926_v18, %v923_v17  ;;  %v374_v33 = vmul.f32 %v3992_v3, %v316_v0  ;;  %v430_v35 = vadd.f32 %v3997_v4, %v372_v5 }
  0x4e   : > { %v937_v39 = vor.u32 %v936_v29, %v932_v20  ;;  %v431_v40 = vadd.f32 %v3997_v4, %v373_v12  ;;  %v3750_v41 = vunpack.c.l.bf16 %v3774_v22  ;;  %v3751_v42 = vunpack.c.h.bf16 %v3774_v22 }
  0x4f   : > { %v4249_v43 = vpack.c.b16 %v1028_v31, %v1027_v24  ;;  %v928_v49 = vrot.slane %v927_v32, 4  ;;  %v432_v53 = vadd.f32 %v3997_v4, %v374_v33  ;;  %v484_v54 = vmax.f32 %v430_v35, 0.0  ;;  %v3776_v24 = vld [vmem:[%s3987_s6 + $0x78] sm:$0xff]  }
  0x50   : > { %v938_v55 = vrot.slane %v937_v39, 4  ;;  %v485_v56 = vmax.f32 %v431_v40, 0.0  ;;  %v331_v59 = vunpack.c.l.bf16 %v277_v36  ;;  %v387_v60 = vmul.f32 %v3992_v3, %v3750_v41  ;;  %v289_v40 = vld [vmem:[%s3987_s6 + $0x80] sm:$0x1] }
  0x51   : > { %5406 = vst [vmem:[#allocation10_spill] sm:$0xff] %v4249_v43  ;;  %1174 = vmatmul.bf16.gmra.mxu2 %v4249_v43  ;;  %v933_v0 = vsel %vm4063_vm2, %v928_v49, %v932_v20  ;;  %v486_v5 = vmax.f32 %v432_v53, 0.0  ;;  %v4256_v6 = vpack.c.bf16 %v484_v54, %v484_v54  ;;  %v388_v7 = vmul.f32 %v3992_v3, %v3751_v42 }
  0x52   : > { %v943_v8 = vsel %vm4063_vm2, %v938_v55, %v942_v30  ;;  %v1035_v10 = vunpack.c.l.b16 %v933_v0  ;;  %v4261_v28 = vpack.c.bf16 %v485_v56, %v485_v56  ;;  %v389_v62 = vmul.f32 %v3992_v3, %v331_v59 }
  0x53   : > { %v1036_v11 = vunpack.c.l.b16 %v943_v8  ;;  %v4264_v12 = vpack.c.bf16 %v486_v5, %v486_v5  ;;  %v633_v13 = vshrl.u32 %v4256_v6, 16  ;;  %v636_v17 = vshll.u32 %v4256_v6, 16  ;;  %v3683_v8 = vld [vmem:[%s5323_s1 + $0x98] sm:$0xff] }
  0x54   : > { %v642_v18 = vshll.u32 %v4261_v28, 16  ;;  %v646_v20 = vshrl.u32 %v4261_v28, 16  ;;  %v445_v22 = vadd.f32 %v3997_v4, %v387_v60  ;;  %v446_v23 = vadd.f32 %v3997_v4, %v388_v7  ;;  %1707 = vmatpush.bf16.msrb.mxu2 %v3683_v8 }
  0x55   : > { %v4273_v29 = vpack.c.b16 %v1036_v11, %v1035_v10  ;;  %v635_v30 = vrot.slane %v633_v13, 4  ;;  %v638_v31 = vrot.slane %v636_v17, 5  ;;  %v652_v32 = vshll.u32 %v4264_v12, 16 }
  0x56   : > { %v644_v33 = vrot.slane %v642_v18, 5  ;;  %v648_v35 = vrot.slane %v646_v20, 4  ;;  %v447_v36 = vadd.f32 %v3997_v4, %v389_v62  ;;  %v499_v39 = vmax.f32 %v445_v22, 0.0 }
  0x57   : > { %5407 = vst [vmem:[#allocation11_spill] sm:$0xff] %v4273_v29  ;;  %1194 = vmatmul.bf16.gmra.mxu3 %v4273_v29  ;;  %v639_v41 = vor.u32 %v638_v31, %v635_v30  ;;  %v654_v42 = vrot.slane %v652_v32, 5  ;;  %v500_v49 = vmax.f32 %v446_v23, 0.0  ;;  %v3758_v53 = vunpack.c.l.bf16 %v3776_v24  ;;  %v3778_v32 = vld [vmem:[%s3987_s6 + $0xa8] sm:$0xff]  }
  0x58   : > { %v649_v54 = vor.u32 %v648_v35, %v644_v33  ;;  %v501_v55 = vmax.f32 %v447_v36, 0.0  ;;  %v4279_v56 = vpack.c.bf16 %v499_v39, %v499_v39  ;;  %v3759_v59 = vunpack.c.h.bf16 %v3776_v24 }
  0x59   : > { %v640_v60 = vrot.slane %v639_v41, 4  ;;  %v4281_v0 = vpack.c.bf16 %v500_v49, %v500_v49  ;;  %v343_v5 = vunpack.c.l.bf16 %v289_v40  ;;  %v399_v7 = vmul.f32 %v3992_v3, %v3758_v53 }
  0x5a   : > { %v650_v10 = vrot.slane %v649_v54, 4  ;;  %v4287_v62 = vpack.c.bf16 %v501_v55, %v501_v55  ;;  %v753_v11 = vshrl.u32 %v4279_v56, 16  ;;  %v756_v13 = vshll.u32 %v4279_v56, 16  ;;  %v301_v54 = vld [vmem:[%s3987_s6 + $0xb0] sm:$0x1] }
  0x5b   : > { %v645_v17 = vsel %vm4063_vm2, %v640_v60, %v644_v33  ;;  %v762_v18 = vshll.u32 %v4281_v0, 16  ;;  %v766_v20 = vshrl.u32 %v4281_v0, 16  ;;  %v400_v22 = vmul.f32 %v3992_v3, %v3759_v59 }
  0x5c   : > { %v655_v23 = vsel %vm4063_vm2, %v650_v10, %v654_v42  ;;  %v1011_v24 = vunpack.c.l.b16 %v645_v17  ;;  %v755_v30 = vrot.slane %v753_v11, 4  ;;  %v758_v31 = vrot.slane %v756_v13, 5 }
  0x5d   : > { %v1012_v35 = vunpack.c.l.b16 %v655_v23  ;;  %v764_v36 = vrot.slane %v762_v18, 5  ;;  %v768_v39 = vrot.slane %v766_v20, 4  ;;  %v772_v33 = vshll.u32 %v4287_v62, 16 }
  0x5e   : > { %v759_v40 = vor.u32 %v758_v31, %v755_v30  ;;  %v401_v41 = vmul.f32 %v3992_v3, %v343_v5  ;;  %v457_v49 = vadd.f32 %v3997_v4, %v399_v7  ;;  %v458_v53 = vadd.f32 %v3997_v4, %v400_v22 }
  0x5f   : > { %v4304_v55 = vpack.c.b16 %v1012_v35, %v1011_v24  ;;  %v769_v42 = vor.u32 %v768_v39, %v764_v36  ;;  %v774_v59 = vrot.slane %v772_v33, 5  ;;  %v3766_v60 = vunpack.c.l.bf16 %v3778_v32  ;;  %v3691_v39 = vld [vmem:[%s5323_s1 + $0xd8] sm:$0xff] }
  0x60   : > { %v760_v8 = vrot.slane %v759_v40, 4  ;;  %v459_v10 = vadd.f32 %v3997_v4, %v401_v41  ;;  %v511_v11 = vmax.f32 %v457_v49, 0.0  ;;  %v512_v13 = vmax.f32 %v458_v53, 0.0  ;;  %v3667_v33 = vld [vmem:[%s5323_s1 + $0x18] sm:$0xff]  ;;  %1899 = vmatpush.bf16.msrb.mxu3 %v3691_v39 }
  0x61   : > { %1134 = vmatmul.bf16.gmra.mxu0 %v4304_v55  ;;  %v770_v17 = vrot.slane %v769_v42, 4  ;;  %v3767_v18 = vunpack.c.h.bf16 %v3778_v32  ;;  %v355_v5 = vunpack.c.l.bf16 %v301_v54  ;;  %v411_v7 = vmul.f32 %v3992_v3, %v3766_v60  ;;  %v3682_v54 = vld [vmem:[%s5323_s1 + $0x90] sm:$0xff]  ;;  %1358 = vmatpush.bf16.msrb.mxu1 %v3667_v33 }
  0x62   : > { %v765_v20 = vsel %vm4063_vm2, %v760_v8, %v764_v36  ;;  %v513_v22 = vmax.f32 %v459_v10, 0.0  ;;  %v4311_v23 = vpack.c.bf16 %v511_v11, %v511_v11  ;;  %v4313_v24 = vpack.c.bf16 %v512_v13, %v512_v13  ;;  %v3700_v36 = vld [vmem:[%s5323_s1 + $0x120] sm:$0xff]  ;;  %v3772_v10 = vld [vmem:[%s3987_s6 + $0x18] sm:$0xff]   ;;  %v3690_v11 = vld [vmem:[%s5323_s1 + $0xd0] sm:$0xff]  ;;  %1708 = vmatpush.bf16.msrb.mxu2 %v3682_v54 }
  0x63   : > { %v775_v30 = vsel %vm4063_vm2, %v770_v17, %v774_v59  ;;  %v1021_v31 = vunpack.c.l.b16 %v765_v20  ;;  %v412_v35 = vmul.f32 %v3992_v3, %v3767_v18  ;;  %v413_v32 = vmul.f32 %v3992_v3, %v355_v5  ;;  %2112 = vmatpush.bf16.msrb.mxu0 %v3700_v36  ;;  %v3699_v13 = vld [vmem:[%s5323_s1 + $0x118] sm:$0xff]  ;;  %v3666_v20 = vld [vmem:[%s5323_s1 + $0x10] sm:$0xff]  ;;  %v265_v36 = vld [vmem:[%s3987_s6 + $0x20] sm:$0x1] }
  0x64   : > { %5408 = vst [vmem:[#allocation12_spill] sm:$0xff] %v4311_v23  ;;  %v1022_v40 = vunpack.c.l.b16 %v775_v30  ;;  %v4328_v41 = vpack.c.bf16 %v513_v22, %v513_v22  ;;  %v849_v49 = vshrl.u32 %v4311_v23, 16  ;;  %v852_v53 = vshll.u32 %v4311_v23, 16  ;;  %1900 = vmatpush.bf16.msrb.mxu3 %v3690_v11 }
  0x65   : > { %v858_v42 = vshll.u32 %v4313_v24, 16  ;;  %v862_v59 = vshrl.u32 %v4313_v24, 16  ;;  %v469_v60 = vadd.f32 %v3997_v4, %v411_v7  ;;  %v470_v8 = vadd.f32 %v3997_v4, %v412_v35  ;;  %1359 = vmatpush.bf16.msrb.mxu1 %v3666_v20 }
  0x66   : > { %5409 = vst [vmem:[#allocation13_spill] sm:$0xff] %v4328_v41  ;;  %v4346_v17 = vpack.c.b16 %v1022_v40, %v1021_v31  ;;  %v851_v18 = vrot.slane %v849_v49, 4  ;;  %v854_v5 = vrot.slane %v852_v53, 5  ;;  %v868_v7 = vshll.u32 %v4328_v41, 16  ;;  %v268_v41 = vld [vmem:[%s3987_s6 + $0x2c] sm:$0x1] }
  0x67   : > { %v860_v22 = vrot.slane %v858_v42, 5  ;;  %v864_v30 = vrot.slane %v862_v59, 4  ;;  %v471_v35 = vadd.f32 %v3997_v4, %v413_v32  ;;  %v523_v39 = vmax.f32 %v469_v60, 0.0  ;;  %2113 = vmatpush.bf16.msrb.mxu0 %v3699_v13 }
  0x68   : > { %5410 = vst [vmem:[#allocation14_spill] sm:$0xff] %v4346_v17  ;;  %1159 = vmatmul.bf16.gmra.mxu1 %v4346_v17  ;;  %v855_v31 = vor.u32 %v854_v5, %v851_v18  ;;  %v870_v40 = vrot.slane %v868_v7, 5  ;;  %v524_v49 = vmax.f32 %v470_v8, 0.0  ;;  %v3742_v53 = vunpack.c.l.bf16 %v3772_v10 }
  0x69   : > { %v865_v29 = vor.u32 %v864_v30, %v860_v22  ;;  %v525_v61 = vmax.f32 %v471_v35, 0.0  ;;  %v4355_v33 = vpack.c.bf16 %v523_v39, %v523_v39  ;;  %v3743_v54 = vunpack.c.h.bf16 %v3772_v10  ;;  %v278_v35 = vld [vmem:[%s3987_s6 + $0x54] sm:$0xff]  }
  0x6a   : > { %v856_v44 = vrot.slane %v855_v31, 4  ;;  %v4357_v42 = vpack.c.bf16 %v524_v49, %v524_v49  ;;  %v319_v32 = vunpack.c.l.bf16 %v265_v36  ;;  %v375_v59 = vmul.f32 %v3992_v3, %v3742_v53 }
  0x6b   : > { %5411 = vst [vmem:[#allocation15_spill] sm:$0xff] %v4355_v33  ;;  %v866_v60 = vrot.slane %v865_v29, 4  ;;  %v4360_v18 = vpack.c.bf16 %v525_v61, %v525_v61  ;;  %v945_v8 = vshrl.u32 %v4355_v33, 16  ;;  %v948_v5 = vshll.u32 %v4355_v33, 16 }
  0x6c   : > { %5412 = vst [vmem:[#allocation16_spill] sm:$0xff] %v4357_v42  ;;  %v861_v10 = vsel %vm4063_vm2, %v856_v44, %v860_v22  ;;  %v954_v11 = vshll.u32 %v4357_v42, 16  ;;  %v958_v13 = vshrl.u32 %v4357_v42, 16  ;;  %v376_v7 = vmul.f32 %v3992_v3, %v3743_v54  ;;  %v280_v54 = vld [vmem:[%s3987_s6 + $0x5c] sm:$0x1] }
  0x6d   : > { %5413 = vst [vmem:[#allocation17_spill] sm:$0xff] %v4360_v18  ;;  %v871_v20 = vsel %vm4063_vm2, %v866_v60, %v870_v40  ;;  %v1029_v29 = vunpack.c.l.b16 %v861_v10  ;;  %v947_v61 = vrot.slane %v945_v8, 4  ;;  %v950_v30 = vrot.slane %v948_v5, 5 }
  0x6e   : > { %v1030_v39 = vunpack.c.l.b16 %v871_v20  ;;  %v956_v36 = vrot.slane %v954_v11, 5  ;;  %v960_v31 = vrot.slane %v958_v13, 4  ;;  %v964_v49 = vshll.u32 %v4360_v18, 16 }
  0x6f   : > { %v951_v44 = vor.u32 %v950_v30, %v947_v61  ;;  %v377_v22 = vmul.f32 %v3992_v3, %v319_v32  ;;  %v433_v53 = vadd.f32 %v3997_v4, %v375_v59  ;;  %v434_v33 = vadd.f32 %v3997_v4, %v376_v7 }
  0x70   : > { %v4377_v42 = vpack.c.b16 %v1030_v39, %v1029_v29  ;;  %v961_v40 = vor.u32 %v960_v31, %v956_v36  ;;  %v966_v60 = vrot.slane %v964_v49, 5  ;;  %v332_v8 = vunpack.c.l.bf16 %v278_v35 }
  0x71   : > { %v952_v5 = vrot.slane %v951_v44, 4  ;;  %v435_v10 = vadd.f32 %v3997_v4, %v377_v22  ;;  %v487_v11 = vmax.f32 %v433_v53, 0.0  ;;  %v488_v13 = vmax.f32 %v434_v33, 0.0 }
  0x72   : > { %5414 = vst [vmem:[#allocation18_spill] sm:$0xff] %v4377_v42  ;;  %1179 = vmatmul.bf16.gmra.mxu2 %v4377_v42  ;;  %v962_v20 = vrot.slane %v961_v40, 4  ;;  %v333_v61 = vunpack.c.h.bf16 %v278_v35  ;;  %v334_v32 = vunpack.c.l.bf16 %v280_v54  ;;  %v390_v59 = vmul.f32 %v3992_v3, %v332_v8  ;;  %v4401_v40 = vld [vmem:[%s5326_s4] ss:$0 sm:$0xff]  ;;  %v290_v8 = vld [vmem:[%s3987_s6 + $0x84] sm:$0xff]  }
  0x73   : > { %v957_v7 = vsel %vm4063_vm2, %v952_v5, %v956_v36  ;;  %v489_v29 = vmax.f32 %v435_v10, 0.0  ;;  %v4384_v30 = vpack.c.bf16 %v487_v11, %v487_v11  ;;  %v4386_v39 = vpack.c.bf16 %v488_v13, %v488_v13 }
  0x74   : > { %v967_v4 = vsel %vm4063_vm2, %v962_v20, %v966_v60  ;;  %v1037_v33 = vunpack.c.l.b16 %v957_v7  ;;  %v391_v31 = vmul.f32 %v3992_v3, %v333_v61  ;;  %v392_v35 = vmul.f32 %v3992_v3, %v334_v32 }
  0x75   : > { %v1038_v49 = vunpack.c.l.b16 %v967_v4  ;;  %v4392_v44 = vpack.c.bf16 %v489_v29, %v489_v29  ;;  %v657_v22 = vshrl.u32 %v4384_v30, 16  ;;  %v660_v36 = vshll.u32 %v4384_v30, 16  ;;  %v292_v29 = vld [vmem:[%s3987_s6 + $0x8c] sm:$0x1] }
  0x76   : > { %v666_v53 = vshll.u32 %v4386_v39, 16  ;;  %v670_v54 = vshrl.u32 %v4386_v39, 16  ;;  %v448_v60 = vadd.f32 %v4401_v40, %v390_v59  ;;  %v449_v3 = vadd.f32 %v4401_v40, %v391_v31 }
  0x77   : > { %v4406_v5 = vpack.c.b16 %v1038_v49, %v1037_v33  ;;  %v659_v10 = vrot.slane %v657_v22, 4  ;;  %v662_v11 = vrot.slane %v660_v36, 5  ;;  %v676_v13 = vshll.u32 %v4392_v44, 16 }
  0x78   : > { %v668_v20 = vrot.slane %v666_v53, 5  ;;  %v672_v61 = vrot.slane %v670_v54, 4  ;;  %v450_v32 = vadd.f32 %v4401_v40, %v392_v35  ;;  %v502_v7 = vmax.f32 %v448_v60, 0.0  ;;  %v4419_v35 = vld [vmem:[%s5325_s3] ss:$0 sm:$0xff]  ;;  %v3681_v60 = vld [vmem:[%s5323_s1 + $0x88] sm:$0xff] }
  0x79   : > { %5415 = vst [vmem:[#allocation19_spill] sm:$0xff] %v4406_v5  ;;  %1199 = vmatmul.bf16.gmra.mxu3 %v4406_v5  ;;  %v663_v4 = vor.u32 %v662_v11, %v659_v10  ;;  %v678_v18 = vrot.slane %v676_v13, 5  ;;  %v503_v59 = vmax.f32 %v449_v3, 0.0  ;;  %v344_v57 = vunpack.c.l.bf16 %v290_v8  ;;  %1709 = vmatpush.bf16.msrb.mxu2 %v3681_v60  ;;  %v304_v60 = vld [vmem:[%s3987_s6 + $0xbc] sm:$0x1] }
  0x7a   : > { %v673_v31 = vor.u32 %v672_v61, %v668_v20  ;;  %v504_v58 = vmax.f32 %v450_v32, 0.0  ;;  %v4412_v33 = vpack.c.bf16 %v502_v7, %v502_v7  ;;  %v345_v49 = vunpack.c.h.bf16 %v290_v8 }
  0x7b   : > { %v664_v22 = vrot.slane %v663_v4, 4  ;;  %v4414_v36 = vpack.c.bf16 %v503_v59, %v503_v59  ;;  %v346_v53 = vunpack.c.l.bf16 %v292_v29  ;;  %v402_v54 = vmul.f32 %v4419_v35, %v344_v57  ;;  %v302_v59 = vld [vmem:[%s3987_s6 + $0xb4] sm:$0xff]  }
  0x7c   : > { %v674_v3 = vrot.slane %v673_v31, 4  ;;  %v4425_v10 = vpack.c.bf16 %v504_v58, %v504_v58  ;;  %v777_v8 = vshrl.u32 %v4412_v33, 16  ;;  %v780_v11 = vshll.u32 %v4412_v33, 16 }
  0x7d   : > { %v669_v13 = vsel %vm4063_vm2, %v664_v22, %v668_v20  ;;  %v786_v61 = vshll.u32 %v4414_v36, 16  ;;  %v790_v32 = vshrl.u32 %v4414_v36, 16  ;;  %v403_v57 = vmul.f32 %v4419_v35, %v345_v49 }
  0x7e   : > { %v679_v7 = vsel %vm4063_vm2, %v674_v3, %v678_v18  ;;  %v1013_v58 = vunpack.c.l.b16 %v669_v13  ;;  %v779_v29 = vrot.slane %v777_v8, 4  ;;  %v782_v4 = vrot.slane %v780_v11, 5 }
  0x7f   : > { %v1014_v31 = vunpack.c.l.b16 %v679_v7  ;;  %v788_v5 = vrot.slane %v786_v61, 5  ;;  %v792_v27 = vrot.slane %v790_v32, 4  ;;  %v796_v20 = vshll.u32 %v4425_v10, 16 }
  0x80   : > { %v783_v22 = vor.u32 %v782_v4, %v779_v29  ;;  %v404_v25 = vmul.f32 %v4419_v35, %v346_v53  ;;  %v460_v26 = vadd.f32 %v4401_v40, %v402_v54  ;;  %v461_v49 = vadd.f32 %v4401_v40, %v403_v57 }
  0x81   : > { %v4442_v42 = vpack.c.b16 %v1014_v31, %v1013_v58  ;;  %v793_v18 = vor.u32 %v792_v27, %v788_v5  ;;  %v798_v3 = vrot.slane %v796_v20, 5  ;;  %v356_v8 = vunpack.c.l.bf16 %v302_v59  ;;  %v3689_v20 = vld [vmem:[%s5323_s1 + $0xc8] sm:$0xff] }
  0x82   : > { %v784_v11 = vrot.slane %v783_v22, 4  ;;  %v462_v13 = vadd.f32 %v4401_v40, %v404_v25  ;;  %v514_v61 = vmax.f32 %v460_v26, 0.0  ;;  %v515_v32 = vmax.f32 %v461_v49, 0.0  ;;  %v3665_v22 = vld [vmem:[%s5323_s1 + $0x8] sm:$0xff]  ;;  %1901 = vmatpush.bf16.msrb.mxu3 %v3689_v20 }
  0x83   : > { %1139 = vmatmul.bf16.gmra.mxu0 %v4442_v42  ;;  %v794_v7 = vrot.slane %v793_v18, 4  ;;  %v357_v29 = vunpack.c.h.bf16 %v302_v59  ;;  %v358_v53 = vunpack.c.l.bf16 %v304_v60  ;;  %v414_v54 = vmul.f32 %v4419_v35, %v356_v8  ;;  %v3680_v8 = vld [vmem:[%s5323_s1 + $0x80] sm:$0xff]  ;;  %1360 = vmatpush.bf16.msrb.mxu1 %v3665_v22 }
  0x84   : > { %v789_v57 = vsel %vm4063_vm2, %v784_v11, %v788_v5  ;;  %v516_v58 = vmax.f32 %v462_v13, 0.0  ;;  %v4449_v4 = vpack.c.bf16 %v514_v61, %v514_v61  ;;  %v4451_v27 = vpack.c.bf16 %v515_v32, %v515_v32  ;;  %v3698_v5 = vld [vmem:[%s5323_s1 + $0x110] sm:$0xff]  ;;  %1710 = vmatpush.bf16.msrb.mxu2 %v3680_v8 }
  0x85   : > { %v799_v25 = vsel %vm4063_vm2, %v794_v7, %v798_v3  ;;  %v1023_v26 = vunpack.c.l.b16 %v789_v57  ;;  %v415_v31 = vmul.f32 %v4419_v35, %v357_v29  ;;  %v416_v59 = vmul.f32 %v4419_v35, %v358_v53  ;;  %v266_v7 = vld [vmem:[%s3987_s6 + $0x24] sm:$0xff]   ;;  %2114 = vmatpush.bf16.msrb.mxu0 %v3698_v5 }
  0x86   : > { %5416 = vst [vmem:[#allocation20_spill] sm:$0xff] %v4449_v4  ;;  %v1024_v49 = vunpack.c.l.b16 %v799_v25  ;;  %v4466_v60 = vpack.c.bf16 %v516_v58, %v516_v58  ;;  %v873_v18 = vshrl.u32 %v4449_v4, 16  ;;  %v876_v3 = vshll.u32 %v4449_v4, 16  ;;  %v3688_v29 = vld [vmem:[%s5323_s1 + $0xc0] sm:$0xff]  ;;  %v3697_v53 = vld [vmem:[%s5323_s1 + $0x108] sm:$0xff] }
  0x87   : > { %5417 = vst [vmem:[#allocation21_spill] sm:$0xff] %v4451_v27  ;;  %v882_v11 = vshll.u32 %v4451_v27, 16  ;;  %v886_v13 = vshrl.u32 %v4451_v27, 16  ;;  %v472_v61 = vadd.f32 %v4401_v40, %v414_v54  ;;  %v473_v32 = vadd.f32 %v4401_v40, %v415_v31  ;;  %v3664_v31 = vld [vmem:[%s5323_s1] sm:$0xff]  ;;  %1902 = vmatpush.bf16.msrb.mxu3 %v3688_v29 }
  0x88   : > { %5418 = vst [vmem:[#allocation22_spill] sm:$0xff] %v4466_v60  ;;  %v4484_v57 = vpack.c.b16 %v1024_v49, %v1023_v26  ;;  %v875_v58 = vrot.slane %v873_v18, 4  ;;  %v878_v25 = vrot.slane %v876_v3, 5  ;;  %v892_v54 = vshll.u32 %v4466_v60, 16  ;;  %1361 = vmatpush.bf16.msrb.mxu1 %v3664_v31 }
  0x89   : > { %v884_v20 = vrot.slane %v882_v11, 5  ;;  %v888_v5 = vrot.slane %v886_v13, 4  ;;  %v474_v4 = vadd.f32 %v4401_v40, %v416_v59  ;;  %v526_v27 = vmax.f32 %v472_v61, 0.0  ;;  %2115 = vmatpush.bf16.msrb.mxu0 %v3697_v53  ;;  %v3696_v11 = vld [vmem:[%s5323_s1 + $0x100] sm:$0xff]  ;;  %v3719_v59 = vld [vmem:[%s5323_s1 + $0x1b8] sm:$0xff] }
  0x8a   : > { %5419 = vst [vmem:[#allocation23_spill] sm:$0xff] %v4484_v57  ;;  %1164 = vmatmul.bf16.gmra.mxu1 %v4484_v57  ;;  %v879_v26 = vor.u32 %v878_v25, %v875_v58  ;;  %v894_v49 = vrot.slane %v892_v54, 5  ;;  %v527_v18 = vmax.f32 %v473_v32, 0.0  ;;  %v320_v3 = vunpack.c.l.bf16 %v266_v7  ;;  %2499 = vmatpush.bf16.msra.mxu2 %v3719_v59 }
  0x8b   : > { %v889_v43 = vor.u32 %v888_v5, %v884_v20  ;;  %v528_v60 = vmax.f32 %v474_v4, 0.0  ;;  %v4493_v22 = vpack.c.bf16 %v526_v27, %v526_v27  ;;  %v321_v8 = vunpack.c.h.bf16 %v266_v7 }
  0x8c   : > { %v880_v13 = vrot.slane %v879_v26, 4  ;;  %v4501_v61 = vpack.c.bf16 %v527_v18, %v527_v18  ;;  %v322_v32 = vunpack.c.l.bf16 %v268_v41  ;;  %v378_v58 = vmul.f32 %v4419_v35, %v320_v3 }
  0x8d   : > { %5420 = vst [vmem:[#allocation24_spill] sm:$0xff] %v4493_v22  ;;  %v890_v4 = vrot.slane %v889_v43, 4  ;;  %v4504_v27 = vpack.c.bf16 %v528_v60, %v528_v60  ;;  %v969_v7 = vshrl.u32 %v4493_v22, 16  ;;  %v972_v29 = vshll.u32 %v4493_v22, 16  ;;  %2116 = vmatpush.bf16.msrb.mxu0 %v3696_v11 }
  0x8e   : > { %5421 = vst [vmem:[#allocation25_spill] sm:$0xff] %v4501_v61  ;;  %v885_v53 = vsel %vm4063_vm2, %v880_v13, %v884_v20  ;;  %v978_v25 = vshll.u32 %v4501_v61, 16  ;;  %v982_v54 = vshrl.u32 %v4501_v61, 16  ;;  %v379_v41 = vmul.f32 %v4419_v35, %v321_v8 }
  0x8f   : > { %v895_v31 = vsel %vm4063_vm2, %v890_v4, %v894_v49  ;;  %v1031_v43 = vunpack.c.l.b16 %v885_v53  ;;  %v971_v60 = vrot.slane %v969_v7, 4  ;;  %v974_v5 = vrot.slane %v972_v29, 5 }
  0x90   : > { %v1032_v26 = vunpack.c.l.b16 %v895_v31  ;;  %v980_v18 = vrot.slane %v978_v25, 5  ;;  %v984_v3 = vrot.slane %v982_v54, 4  ;;  %v988_v59 = vshll.u32 %v4504_v27, 16 }
  0x91   : > { %v975_v22 = vor.u32 %v974_v5, %v971_v60  ;;  %v380_v20 = vmul.f32 %v4419_v35, %v322_v32  ;;  %v436_v13 = vadd.f32 %v4401_v40, %v378_v58  ;;  %v437_v61 = vadd.f32 %v4401_v40, %v379_v41  ;;  %v3735_v60 = vld [vmem:[%s5323_s1 + $0x238] sm:$0xff] }
  0x92   : > { %v4519_v8 = vpack.c.b16 %v1032_v26, %v1031_v43  ;;  %v985_v23 = vor.u32 %v984_v3, %v980_v18  ;;  %v990_v49 = vrot.slane %v988_v59, 5  ;;  %v1242_v4 = vunpack.c.l.b16 %v4135_v34  ;;  %2911 = vmatpush.bf16.msra.mxu0 %v3735_v60 }
  0x93   : > { %v976_v7 = vrot.slane %v975_v22, 4  ;;  %v438_v11 = vadd.f32 %v4401_v40, %v380_v20  ;;  %v490_v29 = vmax.f32 %v436_v13, 0.0  ;;  %v491_v53 = vmax.f32 %v437_v61, 0.0  ;;  %v3727_v40 = vld [vmem:[%s5323_s1 + $0x1f8] sm:$0xff] }
  0x94   : > { %5422 = vst [vmem:[#allocation26_spill] sm:$0xff] %v4519_v8  ;;  %1184 = vmatmul.bf16.gmra.mxu2 %v4519_v8  ;;  %v986_v25 = vrot.slane %v985_v23, 4  ;;  %v1243_v35 = vunpack.c.l.b16 %v4138_v37  ;;  %v3711_v23 = vld [vmem:[%s5323_s1 + $0x178] sm:$0xff]  ;;  %v3307_v43 = vrot.slane %v4135_v34, 9  ;;  %v5423_v59 = vmov 0  ;;  %2713 = vmatpush.bf16.msra.mxu3 %v3727_v40 }
  0x95   : > { %v981_v32 = vsel %vm4063_vm2, %v976_v7, %v980_v18  ;;  %v492_v58 = vmax.f32 %v438_v11, 0.0  ;;  %v4527_v54 = vpack.c.bf16 %v490_v29, %v490_v29  ;;  %v4529_v41 = vpack.c.bf16 %v491_v53, %v491_v53  ;;  %2307 = vmatpush.bf16.msra.mxu1 %v3711_v23 }
  0x96   : > { %v991_v22 = vsel %vm4063_vm2, %v986_v25, %v990_v49  ;;  %v1039_v61 = vunpack.c.l.b16 %v981_v32  ;;  %v1274_v31 = vpack.c.b16 %v1243_v35, %v1242_v4  ;;  %v5424_v59 = vsel %vm4549_vm5, 4294967295, %v5423_v59 }
  0x97   : > { %v1040_v5 = vunpack.c.l.b16 %v991_v22  ;;  %v4543_v26 = vpack.c.bf16 %v492_v58, %v492_v58  ;;  %v681_v18 = vshrl.u32 %v4527_v54, 16  ;;  %v684_v3 = vshll.u32 %v4527_v54, 16  ;;  %5425 = vst [vmem:[#allocation27_spill] sm:$0xff] %v5424_v59 }
  0x98   : > { %v690_v34 = vshll.u32 %v4529_v41, 16  ;;  %v694_v20 = vshrl.u32 %v4529_v41, 16  ;;  %v1464_v13 = vrot.slane %v4138_v37, 5  ;;  %v1467_v49 = vrot.slane %v4140_v38, 5 }
  0x99   : > { %v4557_v4 = vpack.c.b16 %v1040_v5, %v1039_v61  ;;  %v683_v7 = vrot.slane %v681_v18, 4  ;;  %v686_v11 = vrot.slane %v684_v3, 5  ;;  %v700_v29 = vshll.u32 %v4543_v26, 16 }
  0x9a   : > { %v692_v53 = vrot.slane %v690_v34, 5  ;;  %v696_v25 = vrot.slane %v694_v20, 4  ;;  %1362 = vmatmul.bf16.vlgmr.msrb.gmra.mxu1 %v1274_v31  ;;  %v1465_v35 = vsel %vm4549_vm5, %v3307_v43, %v1464_v13  ;;  %v1466_v32 = vrot.slane %v1464_v13, 4 }
  0x9b   : > { %1204 = vmatmul.bf16.gmra.mxu3 %v4557_v4  ;;  %v687_v58 = vor.u32 %v686_v11, %v683_v7  ;;  %v702_v40 = vrot.slane %v700_v29, 5  ;;  %v1591_v23 = vunpack.c.l.b16 %v1465_v35  ;;  %v1246_v5 = vunpack.c.l.b16 %v4384_v30 }
  0x9c   : > { %v697_v37 = vor.u32 %v696_v25, %v692_v53  ;;  %v1468_v38 = vsel %vm4549_vm5, %v1466_v32, %v1467_v49  ;;  %v1247_v31 = vunpack.c.l.b16 %v4386_v39  ;;  %v1471_v49 = vrot.slane %v4261_v28, 5 }
  0x9d   : > { %v688_v22 = vrot.slane %v687_v58, 4  ;;  %v1592_v61 = vunpack.c.l.b16 %v1468_v38  ;;  %v1244_v11 = vunpack.c.l.b16 %v4256_v6  ;;  %v1245_v29 = vunpack.c.l.b16 %v4261_v28 }
  0x9e   : > { %v698_v60 = vrot.slane %v697_v37, 4  ;;  %v4571_v20 = vpack.c.b16 %v1247_v31, %v1246_v5  ;;  %v3308_v25 = vrot.slane %v4256_v6, 9  ;;  %v1473_v35 = vrot.slane %v1471_v49, 4  ;;  %v3726_v31 = vld [vmem:[%s5323_s1 + $0x1f0] sm:$0xff] }
  0x9f   : > { %v693_v43 = vsel %vm4063_vm2, %v688_v22, %v692_v53  ;;  %v1623_v34 = vpack.c.b16 %v1592_v61, %v1591_v23  ;;  %v1474_v53 = vrot.slane %v4264_v12, 5  ;;  %v3309_v32 = vrot.slane %v4384_v30, 9  ;;  %2714 = vmatpush.bf16.msra.mxu3 %v3726_v31 }
  0xa0   : > { %v703_v18 = vsel %vm4063_vm2, %v698_v60, %v702_v40  ;;  %v1015_v3 = vunpack.c.l.b16 %v693_v43  ;;  %v1478_v58 = vrot.slane %v4386_v39, 5  ;;  %v1481_v37 = vrot.slane %v4392_v44, 5  ;;  %v3718_v39 = vld [vmem:[%s5323_s1 + $0x1b0] sm:$0xff] }
  0xa1   : > { %v1016_v13 = vunpack.c.l.b16 %v703_v18  ;;  %v1275_v40 = vpack.c.b16 %v1245_v29, %v1244_v11  ;;  %v1472_v6 = vsel %vm4549_vm5, %v3308_v25, %v1471_v49  ;;  %v1475_v12 = vsel %vm4549_vm5, %v1473_v35, %v1474_v53  ;;  %2500 = vmatpush.bf16.msra.mxu2 %v3718_v39  ;;  %v3710_v43 = vld [vmem:[%s5323_s1 + $0x170] sm:$0xff] }
  0xa2   : > { %v1479_v38 = vsel %vm4549_vm5, %v3309_v32, %v1478_v58  ;;  %v1480_v23 = vrot.slane %v1478_v58, 4  ;;  %v1593_v44 = vunpack.c.l.b16 %v1472_v6  ;;  %v1594_v61 = vunpack.c.l.b16 %v1475_v12  ;;  %v3734_v18 = vld [vmem:[%s5323_s1 + $0x230] sm:$0xff]  ;;  %2308 = vmatpush.bf16.msra.mxu1 %v3710_v43  ;;  %v3725_v6 = vld [vmem:[%s5323_s1 + $0x1e8] sm:$0xff] }
  0xa3   : > { %v4574_v7 = vpack.c.b16 %v1016_v13, %v1015_v3  ;;  %v1595_v28 = vunpack.c.l.b16 %v1479_v38  ;;  %2912 = vmatpush.bf16.msra.mxu0 %v3734_v18  ;;  %v1248_v3 = vunpack.c.l.b16 %v4527_v54  ;;  %v3310_v13 = vrot.slane %v4527_v54, 9  ;;  %v3709_v12 = vld [vmem:[%s5323_s1 + $0x168] sm:$0xff]  ;;  %2715 = vmatpush.bf16.msra.mxu3 %v3725_v6 }
  0xa4   : > { %1711 = vmatmul.bf16.vlgmr.msrb.gmra.mxu2 %v1623_v34  ;;  %v1482_v22 = vsel %vm4549_vm5, %v1480_v23, %v1481_v37  ;;  %v4597_v5 = vpack.c.b16 %v1594_v61, %v1593_v44  ;;  %v1249_v34 = vunpack.c.l.b16 %v4529_v41  ;;  %v1488_v11 = vrot.slane %v4543_v26, 5 }
  0xa5   : > { %1144 = vmatmul.bf16.gmra.mxu0 %v4574_v7  ;;  %v1596_v30 = vunpack.c.l.b16 %v1482_v22  ;;  %v1492_v58 = vrot.slane %v4033_v47, 5  ;;  %v1250_v37 = vunpack.c.l.b16 %v4031_v46  ;;  %v3311_v38 = vrot.slane %v4031_v46, 9 }
  0xa6   : > { %v4619_v29 = vpack.c.b16 %v1249_v34, %v1248_v3  ;;  %2309 = vmatpush.bf16.msra.mxu1 %v3709_v12  ;;  %v1499_v18 = vrot.slane %v4155_v1, 5  ;;  %v1252_v3 = vunpack.c.l.b16 %v4153_v63  ;;  %v1253_v34 = vunpack.c.l.b16 %v4155_v1 }
  0xa7   : > { %v4595_v60 = vpack.c.b16 %v1596_v30, %v1595_v28  ;;  %v1494_v23 = vrot.slane %v1492_v58, 4  ;;  %v1495_v28 = vrot.slane %v4035_v48, 5  ;;  %v1493_v46 = vsel %vm4549_vm5, %v3311_v38, %v1492_v58 }
  0xa8   : > { %v1599_v44 = vunpack.c.l.b16 %v1493_v46  ;;  %v1254_v6 = vunpack.c.l.b16 %v4279_v56  ;;  %v1255_v12 = vunpack.c.l.b16 %v4281_v0  ;;  %v3313_v46 = vrot.slane %v4279_v56, 9 }
  0xa9   : > { %v4630_v32 = vpop.f32.mrf.mxu1  ;;  %v1496_v48 = vsel %vm4549_vm5, %v1494_v23, %v1495_v28  ;;  %v1506_v28 = vrot.slane %v4281_v0, 5  ;;  %v3732_v0 = vld [vmem:[%s5323_s1 + $0x220] sm:$0xff] }
  0xaa   : > { %1367 = vmatmul.bf16.gmra.mxu1 %v1275_v40  ;;  %v1600_v61 = vunpack.c.l.b16 %v1496_v48 }
  0xab   : > { %1903 = vmatmul.bf16.vlgmr.msrb.gmra.mxu3 %v1275_v40  ;;  %v1251_v40 = vunpack.c.l.b16 %v4033_v47  ;;  %v3733_v47 = vld [vmem:[%s5323_s1 + $0x228] sm:$0xff]  ;;  %v1508_v48 = vrot.slane %v1506_v28, 4 }
  0xac   : > { %2913 = vmatpush.bf16.msra.mxu0 %v3733_v47  ;;  %v4664_v43 = vpack.c.b16 %v1600_v61, %v1599_v44  ;;  %v1509_v44 = vrot.slane %v4287_v62, 5  ;;  %v3724_v61 = vld [vmem:[%s5323_s1 + $0x1e0] sm:$0xff]  ;;  %v1507_v62 = vsel %vm4549_vm5, %v3313_v46, %v1506_v28  ;;  %v1256_v28 = vunpack.c.l.b16 %v4412_v33 }
  0xad   : > { %v4652_v30 = vpack.c.b16 %v1251_v40, %v1250_v37  ;;  %2716 = vmatpush.bf16.msra.mxu3 %v3724_v61  ;;  %v1516_v61 = vrot.slane %v4425_v10, 5 }
  0xb0   : > { %2914 = vmatpush.bf16.msra.mxu0 %v3732_v0 }
  0xb1   : > { %v4650_v22 = vpop.f32.mrf.mxu1 }
  0xb2   : > { %v4660_v39 = vpop.f32.mrf.mxu2 }
  0xb4   : > { %1716 = vmatmul.bf16.gmra.mxu2 %v4597_v5 }
  0xb5   : > { %2117 = vmatmul.bf16.vlgmr.msrb.gmra.mxu0 %v4304_v55  ;;  %v1485_v55 = vrot.slane %v4529_v41, 5  ;;  %v3717_v41 = vld [vmem:[%s5323_s1 + $0x1a8] sm:$0xff] }
  0xb6   : > { %2501 = vmatpush.bf16.msra.mxu2 %v3717_v41  ;;  %v4679_v41 = vpack.c.b16 %v1253_v34, %v1252_v3  ;;  %v4720_v34 = vpack.c.b16 %v1255_v12, %v1254_v6  ;;  %v1257_v6 = vunpack.c.l.b16 %v4414_v36 }
  0xb7   : > { %v1487_v49 = vrot.slane %v1485_v55, 4  ;;  %v1486_v25 = vsel %vm4549_vm5, %v3310_v13, %v1485_v55 }
  0xb8   : > { %v1597_v54 = vunpack.c.l.b16 %v1486_v25  ;;  %v4667_v55 = vpop.f32.mrf.mxu3  ;;  %v1502_v25 = vrot.slane %v4157_v2, 5 }
  0xb9   : > { %v1489_v53 = vsel %vm4549_vm5, %v1487_v49, %v1488_v11  ;;  %v3312_v49 = vrot.slane %v4153_v63, 9  ;;  %v1501_v11 = vrot.slane %v1499_v18, 4  ;;  %v3716_v63 = vld [vmem:[%s5323_s1 + $0x1a0] sm:$0xff] }
  0xba   : > { %1372 = vmatmul.bf16.gmra.mxu1 %v4571_v20  ;;  %v1598_v35 = vunpack.c.l.b16 %v1489_v53  ;;  %v4673_v13 = vpop.f32.mrf.mxu2  ;;  %2502 = vmatpush.bf16.msra.mxu2 %v3716_v63 }
  0xbb   : > { %1908 = vmatmul.bf16.gmra.mxu3 %v4571_v20  ;;  %v1503_v1 = vsel %vm4549_vm5, %v1501_v11, %v1502_v25  ;;  %v1603_v25 = vunpack.c.l.b16 %v1507_v62 }
  0xbc   : > { %v4632_v26 = vpack.c.b16 %v1598_v35, %v1597_v54  ;;  %v1500_v54 = vsel %vm4549_vm5, %v3312_v49, %v1499_v18  ;;  %v1602_v37 = vunpack.c.l.b16 %v1503_v1  ;;  %v3708_v18 = vld [vmem:[%s5323_s1 + $0x160] sm:$0xff]  ;;  %v1510_v49 = vsel %vm4549_vm5, %v1508_v48, %v1509_v44 }
  0xbd   : > { %v4677_v53 = vpop.f32.mrf.mxu0  ;;  %v1601_v58 = vunpack.c.l.b16 %v1500_v54  ;;  %2310 = vmatpush.bf16.msra.mxu1 %v3708_v18  ;;  %v1604_v54 = vunpack.c.l.b16 %v1510_v49  ;;  %v3314_v48 = vrot.slane %v4412_v33, 9  ;;  %v4749_v18 = vpack.c.b16 %v1257_v6, %v1256_v28 }
  0xbf   : > { %v4698_v23 = vpack.c.b16 %v1602_v37, %v1601_v58  ;;  %v4736_v58 = vpack.c.b16 %v1604_v54, %v1603_v25  ;;  %v1513_v37 = vrot.slane %v4414_v36, 5  ;;  %5430 = vst [vmem:[#allocation32_spill] sm:$0xff] %v4749_v18 }
  0xc0   : > { %v4692_v2 = vpop.f32.mrf.mxu3 }
  0xc1   : > { %5426 = vst [vmem:[#allocation28_spill] sm:$0xff] %v4692_v2  ;;  %v1515_v44 = vrot.slane %v1513_v37, 4  ;;  %v1514_v36 = vsel %vm4549_vm5, %v3314_v48, %v1513_v37  ;;  %v1520_v37 = vrot.slane %v4040_v51, 5  ;;  %v3715_v48 = vld [vmem:[%s5323_s1 + $0x198] sm:$0xff] }
  0xc2   : > { %v4662_v31 = vpop.f32.mrf.mxu1  ;;  %5429 = vst [vmem:[#allocation31_spill] sm:$0xff] %v4736_v58  ;;  %v1605_v33 = vunpack.c.l.b16 %v1514_v36  ;;  %2503 = vmatpush.bf16.msra.mxu2 %v3715_v48 }
  0xc3   : > { %v1517_v62 = vsel %vm4549_vm5, %v1515_v44, %v1516_v61  ;;  %v1258_v44 = vunpack.c.l.b16 %v4038_v50  ;;  %v1259_v61 = vunpack.c.l.b16 %v4040_v51  ;;  %v3707_v51 = vld [vmem:[%s5323_s1 + $0x158] sm:$0xff] }
  0xc4   : > { %1721 = vmatmul.bf16.gmra.mxu2 %v4595_v60  ;;  %v1606_v25 = vunpack.c.l.b16 %v1517_v62  ;;  %v3315_v62 = vrot.slane %v4038_v50, 9  ;;  %2311 = vmatpush.bf16.msra.mxu1 %v3707_v51 }
  0xc5   : > { %2122 = vmatmul.bf16.gmra.mxu0 %v4442_v42  ;;  %v4696_v38 = vpop.f32.mrf.mxu0 }
  0xc6   : > { %v4767_v6 = vpack.c.b16 %v1606_v25, %v1605_v33  ;;  %v1522_v33 = vrot.slane %v1520_v37, 4  ;;  %v1523_v25 = vrot.slane %v4042_v52, 5  ;;  %v1521_v52 = vsel %vm4549_vm5, %v3315_v62, %v1520_v37 }
  0xc7   : > { %v1527_v62 = vrot.slane %v4199_v15, 5 }
  0xc8   : > { %5432 = vst [vmem:[#allocation34_spill] sm:$0xff] %v4767_v6  ;;  %v1524_v48 = vsel %vm4549_vm5, %v1522_v33, %v1523_v25  ;;  %v1260_v25 = vunpack.c.l.b16 %v4186_v9 }
  0xca   : > { %1377 = vmatmul.bf16.gmra.mxu1 %v4619_v29  ;;  %v4685_v35 = vpop.f32.mrf.mxu1 }
  0xcb   : > { %1913 = vmatmul.bf16.gmra.mxu3 %v4619_v29 }
  0xd4   : > { %1726 = vmatmul.bf16.gmra.mxu2 %v4632_v26  ;;  %v4694_v40 = vpop.f32.mrf.mxu2 }
  0xd5   : > { %2127 = vmatmul.bf16.gmra.mxu0 %v4574_v7 }
  0xda   : > { %1382 = vmatmul.bf16.gmra.mxu1 %v4652_v30  ;;  %v4718_v3 = vpop.f32.mrf.mxu3 }
  0xdb   : > { %1918 = vmatmul.bf16.gmra.mxu3 %v4652_v30  ;;  %5427 = vst [vmem:[#allocation29_spill] sm:$0xff] %v4718_v3 }
  0xdc   : > { %v4722_v56 = vpop.f32.mrf.mxu2 }
  0xde   : > { %v4728_v11 = vpop.f32.mrf.mxu0 }
  0xe2   : > { %v4734_v63 = vpop.f32.mrf.mxu3 }
  0xe3   : > { %5428 = vst [vmem:[#allocation30_spill] sm:$0xff] %v4734_v63  ;;  %v4787_v63 = vpack.c.b16 %v1259_v61, %v1258_v44  ;;  %v3731_v44 = vld [vmem:[%s5323_s1 + $0x218] sm:$0xff]  ;;  %v1607_v61 = vunpack.c.l.b16 %v1521_v52  ;;  %v3316_v52 = vrot.slane %v4186_v9, 9 }
  0xe4   : > { %1731 = vmatmul.bf16.gmra.mxu2 %v4664_v43  ;;  %2915 = vmatpush.bf16.msra.mxu0 %v3731_v44  ;;  %v1530_v44 = vrot.slane %v4201_v16, 5 }
  0xe5   : > { %2132 = vmatmul.bf16.gmra.mxu0 %v4093_v45  ;;  %v4703_v47 = vpop.f32.mrf.mxu1  ;;  %5434 = vst [vmem:[#allocation36_spill] sm:$0xff] %v4787_v63 }
  0xe6   : > { %v4743_v46 = vpop.f32.mrf.mxu0 }
  0xea   : > { %1387 = vmatmul.bf16.gmra.mxu1 %v4679_v41 }
  0xeb   : > { %1923 = vmatmul.bf16.gmra.mxu3 %v4679_v41 }
  0xed   : > { %v4732_v1 = vpop.f32.mrf.mxu1 }
  0xf4   : > { %1736 = vmatmul.bf16.gmra.mxu2 %v4698_v23 }
  0xf5   : > { %2137 = vmatmul.bf16.gmra.mxu0 %v4207_v21  ;;  %v4741_v12 = vpop.f32.mrf.mxu2 }
  0xfa   : > { %1392 = vmatmul.bf16.gmra.mxu1 %v4720_v34 }
  0xfb   : > { %1928 = vmatmul.bf16.gmra.mxu3 %v4720_v34 }
  0xfc   : > { %v4757_v49 = vpop.f32.mrf.mxu3 }
  0xfd   : > { %5431 = vst [vmem:[#allocation33_spill] sm:$0xff] %v4757_v49  ;;  %v4761_v54 = vpop.f32.mrf.mxu2  ;;  %v3723_v49 = vld [vmem:[%s5323_s1 + $0x1d8] sm:$0xff] }
  0xfe   : > { %2717 = vmatpush.bf16.msra.mxu3 %v3723_v49 }
 0x100   : > { %v4763_v10 = vpop.f32.mrf.mxu0 }
 0x104   : > { %1741 = vmatmul.bf16.gmra.mxu2 %v4736_v58  ;;  %v4775_v36 = vpop.f32.mrf.mxu3 }
 0x105   : > { %2142 = vmatmul.bf16.gmra.mxu0 %v4346_v17  ;;  %5433 = vst [vmem:[#allocation35_spill] sm:$0xff] %v4775_v36 }
 0x107   : > { %v4751_v0 = vpop.f32.mrf.mxu1 }
 0x108   : > { %v4791_v50 = vpop.f32.mrf.mxu0 }
 0x10a   : > { %1397 = vmatmul.bf16.gmra.mxu1 %v4749_v18 }
 0x10b   : > { %1933 = vmatmul.bf16.gmra.mxu3 %v4749_v18  ;;  %v1261_v18 = vunpack.c.l.b16 %v4199_v15  ;;  %v1528_v15 = vsel %vm4549_vm5, %v3316_v52, %v1527_v62 }
 0x10c   : > { %v1609_v9 = vunpack.c.l.b16 %v1528_v15 }
 0x10f   : > { %v4765_v28 = vpop.f32.mrf.mxu1 }
 0x114   : > { %1746 = vmatmul.bf16.gmra.mxu2 %v4767_v6 }
 0x115   : > { %2147 = vmatmul.bf16.gmra.mxu0 %v4484_v57  ;;  %v1608_v57 = vunpack.c.l.b16 %v1524_v48  ;;  %v1529_v48 = vrot.slane %v1527_v62, 4  ;;  %v1534_v62 = vrot.slane %v4313_v24, 5 }
 0x117   : > { %v4789_v36 = vpop.f32.mrf.mxu2  ;;  %v1363_v6 = vpop.f32.mrf.mxu1  ;;  %v4806_v37 = vpack.c.b16 %v1608_v57, %v1607_v61  ;;  %v4820_v61 = vpack.c.b16 %v1261_v18, %v1260_v25 }
 0x118   : > { %v1364_v57 = vadd.f32 %v1363_v6, %v4677_v53 }
 0x119   : > { %5436 = vst [vmem:[#allocation38_spill] sm:$0xff] %v4806_v37 }
 0x11a   : > { %1402 = vmatmul.bf16.gmra.mxu1 %v4787_v63  ;;  %5438 = vst [vmem:[#allocation40_spill] sm:$0xff] %v4820_v61 }
 0x11b   : > { %1938 = vmatmul.bf16.gmra.mxu3 %v4787_v63 }
 0x11e   : > { %v4802_v49 = vpop.f32.mrf.mxu3 }
 0x11f   : > { %5435 = vst [vmem:[#allocation37_spill] sm:$0xff] %v4802_v49  ;;  %v4804_v51 = vpop.f32.mrf.mxu2  ;;  %v1365_v3 = vpop.f32.mrf.mxu1 }
 0x120   : > { %v1366_v18 = vadd.f32 %v1365_v3, %v4696_v38  ;;  %v1536_v3 = vrot.slane %v1534_v62, 4 }
 0x122   : > { %v4809_v33 = vpop.f32.mrf.mxu0 }
 0x124   : > { %1751 = vmatmul.bf16.gmra.mxu2 %v4806_v37 }
 0x125   : > { %2152 = vmatmul.bf16.gmra.mxu0 %v4119_v19  ;;  %v1531_v19 = vsel %vm4549_vm5, %v1529_v48, %v1530_v44  ;;  %v3714_v48 = vld [vmem:[%s5323_s1 + $0x190] sm:$0xff] }
 0x126   : > { %v4817_v49 = vpop.f32.mrf.mxu3  ;;  %v1610_v16 = vunpack.c.l.b16 %v1531_v19  ;;  %v5440_v44 = vld [vmem:[#allocation12_spill] sm:$0xff]  ;;  %v1263_v19 = vunpack.c.l.b16 %v4313_v24  ;;  %2504 = vmatpush.bf16.msra.mxu2 %v3714_v48 }
 0x127   : > { %5437 = vst [vmem:[#allocation39_spill] sm:$0xff] %v4817_v49  ;;  %v1712_v63 = vpop.f32.mrf.mxu2  ;;  %v1368_v2 = vpop.f32.mrf.mxu1  ;;  %v3317_v38 = vrot.slane %v5440_v44, 9  ;;  %v3706_v24 = vld [vmem:[%s5323_s1 + $0x150] sm:$0xff] }
 0x128   : > { %v1792_v17 = vadd.f32 %v1712_v63, %v1364_v57  ;;  %v4831_v49 = vpack.c.b16 %v1610_v16, %v1609_v9  ;;  %v5443_v9 = vld [vmem:[#allocation13_spill] sm:$0xff]  ;;  %2312 = vmatpush.bf16.msra.mxu1 %v3706_v24 }
 0x129   : > { %v1537_v16 = vrot.slane %v5443_v9, 5  ;;  %v5444_v24 = vld [vmem:[#allocation21_spill] sm:$0xff] }
 0x12a   : > { %v4826_v37 = vpop.f32.mrf.mxu0  ;;  %1407 = vmatmul.bf16.gmra.mxu1 %v4820_v61  ;;  %5439 = vst [vmem:[#allocation41_spill] sm:$0xff] %v4831_v49 }
 0x12b   : > { %1943 = vmatmul.bf16.gmra.mxu3 %v4820_v61  ;;  %v1262_v61 = vunpack.c.l.b16 %v5440_v44 }
 0x12e   : > { %v1904_v53 = vpop.f32.mrf.mxu3 }
 0x12f   : > { %v1984_v6 = vadd.f32 %v1904_v53, %v1792_v17  ;;  %v1714_v25 = vpop.f32.mrf.mxu2  ;;  %v1370_v63 = vpop.f32.mrf.mxu1  ;;  %v5442_v17 = vld [vmem:[#allocation10_spill] sm:$0xff]  ;;  %v3722_v53 = vld [vmem:[%s5323_s1 + $0x1d0] sm:$0xff] }
 0x130   : > { %v1793_v57 = vadd.f32 %v1714_v25, %v1366_v18  ;;  %2718 = vmatpush.bf16.msra.mxu3 %v3722_v53 }
 0x132   : > { %v2118_v52 = vpop.f32.mrf.mxu0 }
 0x133   : > { %v4839_v15 = vadd.f32 %v2118_v52, %v1984_v6  ;;  %v1369_v6 = vadd.f32 %v1368_v2, %v4728_v11  ;;  %v4852_v52 = vpack.c.b16 %v1263_v19, %v1262_v61  ;;  %v3730_v2 = vld [vmem:[%s5323_s1 + $0x210] sm:$0xff] }
 0x134   : > { %1756 = vmatmul.bf16.gmra.mxu2 %v4831_v49  ;;  %v1538_v49 = vsel %vm4549_vm5, %v1536_v3, %v1537_v16  ;;  %2916 = vmatpush.bf16.msra.mxu0 %v3730_v2 }
 0x135   : > { %5441 = vst [vmem:[#allocation12_spill] sm:$0xff] %v4839_v15  ;;  %2157 = vmatmul.bf16.gmra.mxu0 %v5442_v17  ;;  %v1535_v17 = vsel %vm4549_vm5, %v3317_v38, %v1534_v62  ;;  %v1371_v62 = vadd.f32 %v1370_v63, %v4743_v46  ;;  %v5447_v46 = vld [vmem:[#allocation18_spill] sm:$0xff] }
 0x136   : > { %v1906_v18 = vpop.f32.mrf.mxu3  ;;  %v1611_v61 = vunpack.c.l.b16 %v1535_v17  ;;  %v1265_v17 = vunpack.c.l.b16 %v5444_v24 }
 0x137   : > { %v1985_v25 = vadd.f32 %v1906_v18, %v1793_v57  ;;  %v1717_v15 = vpop.f32.mrf.mxu2  ;;  %v1373_v44 = vpop.f32.mrf.mxu1  ;;  %v1612_v57 = vunpack.c.l.b16 %v1538_v49  ;;  %v1541_v18 = vrot.slane %v5444_v24, 5 }
 0x138   : > { %v1794_v9 = vadd.f32 %v1717_v15, %v1369_v6  ;;  %v1374_v48 = vadd.f32 %v1373_v44, %v4763_v10  ;;  %v5445_v44 = vld [vmem:[#allocation20_spill] sm:$0xff] }
 0x139   : > { %v4867_v16 = vpack.c.b16 %v1612_v57, %v1611_v61  ;;  %v3318_v63 = vrot.slane %v5445_v44, 9 }
 0x13a   : > { %v2120_v58 = vpop.f32.mrf.mxu0  ;;  %1412 = vmatmul.bf16.gmra.mxu1 %v4852_v52 }
 0x13b   : > { %1948 = vmatmul.bf16.gmra.mxu3 %v4852_v52  ;;  %v4864_v11 = vadd.f32 %v2120_v58, %v1985_v25  ;;  %v1264_v58 = vunpack.c.l.b16 %v5445_v44  ;;  %v1543_v25 = vrot.slane %v1541_v18, 4 }
 0x13d   : > { %v4879_v57 = vpack.c.b16 %v1265_v17, %v1264_v58 }
 0x13e   : > { %v1909_v10 = vpop.f32.mrf.mxu3 }
 0x13f   : > { %v1986_v19 = vadd.f32 %v1909_v10, %v1794_v9  ;;  %v1719_v15 = vpop.f32.mrf.mxu2  ;;  %v1375_v38 = vpop.f32.mrf.mxu1  ;;  %v5448_v9 = vld [vmem:[#allocation22_spill] sm:$0xff] }
 0x140   : > { %v1795_v3 = vadd.f32 %v1719_v15, %v1371_v62  ;;  %v1376_v53 = vadd.f32 %v1375_v38, %v4791_v50  ;;  %v1544_v2 = vrot.slane %v5448_v9, 5 }
 0x142   : > { %v2123_v6 = vpop.f32.mrf.mxu0  ;;  %v1545_v24 = vsel %vm4549_vm5, %v1543_v25, %v1544_v2 }
 0x143   : > { %v4873_v49 = vadd.f32 %v2123_v6, %v1986_v19  ;;  %v1542_v19 = vsel %vm4549_vm5, %v3318_v63, %v1541_v18  ;;  %v1614_v58 = vunpack.c.l.b16 %v1545_v24  ;;  %v5451_v63 = vld [vmem:[#allocation3_spill] sm:$0xff] }
 0x144   : > { %1761 = vmatmul.bf16.gmra.mxu2 %v4867_v16  ;;  %v1548_v25 = vrot.slane %v5451_v63, 5 }
 0x145   : > { %5446 = vst [vmem:[#allocation13_spill] sm:$0xff] %v4873_v49  ;;  %2162 = vmatmul.bf16.gmra.mxu0 %v5447_v46 }
 0x146   : > { %v1911_v61 = vpop.f32.mrf.mxu3 }
 0x147   : > { %v1987_v50 = vadd.f32 %v1911_v61, %v1795_v3  ;;  %v1722_v10 = vpop.f32.mrf.mxu2  ;;  %v1378_v62 = vpop.f32.mrf.mxu1  ;;  %v1613_v3 = vunpack.c.l.b16 %v1542_v19  ;;  %v1267_v19 = vunpack.c.l.b16 %v5451_v63 }
 0x148   : > { %v1796_v15 = vadd.f32 %v1722_v10, %v1374_v48  ;;  %v1379_v38 = vadd.f32 %v1378_v62, %v4809_v33  ;;  %v3713_v62 = vld [vmem:[%s5323_s1 + $0x188] sm:$0xff] }
 0x149   : > { %v4890_v10 = vpack.c.b16 %v1614_v58, %v1613_v3  ;;  %2505 = vmatpush.bf16.msra.mxu2 %v3713_v62  ;;  %v3721_v58 = vld [vmem:[%s5323_s1 + $0x1c8] sm:$0xff] }
 0x14a   : > { %v2125_v6 = vpop.f32.mrf.mxu0  ;;  %1417 = vmatmul.bf16.gmra.mxu1 %v4879_v57  ;;  %2719 = vmatpush.bf16.msra.mxu3 %v3721_v58 }
 0x14b   : > { %1953 = vmatmul.bf16.gmra.mxu3 %v4879_v57  ;;  %v4888_v44 = vadd.f32 %v2125_v6, %v1987_v50  ;;  %5450 = vst [vmem:[#allocation20_spill] sm:$0xff] %v4890_v10  ;;  %v5452_v50 = vld [vmem:[#allocation2_spill] sm:$0xff] }
 0x14c   : > { %v1266_v6 = vunpack.c.l.b16 %v5452_v50 }
 0x14d   : > { %5449 = vst [vmem:[#allocation21_spill] sm:$0xff] %v4888_v44 }
 0x14e   : > { %v1914_v17 = vpop.f32.mrf.mxu3 }
 0x14f   : > { %v1988_v9 = vadd.f32 %v1914_v17, %v1796_v15  ;;  %v1724_v48 = vpop.f32.mrf.mxu2  ;;  %v1380_v61 = vpop.f32.mrf.mxu1  ;;  %v5454_v15 = vld [vmem:[#allocation4_spill] sm:$0xff]  ;;  %v3705_v17 = vld [vmem:[%s5323_s1 + $0x148] sm:$0xff] }
 0x150   : > { %v1797_v33 = vadd.f32 %v1724_v48, %v1376_v53  ;;  %v1381_v18 = vadd.f32 %v1380_v61, %v4826_v37  ;;  %v3319_v53 = vrot.slane %v5452_v50, 9  ;;  %v1550_v37 = vrot.slane %v1548_v25, 4  ;;  %2313 = vmatpush.bf16.msra.mxu1 %v3705_v17 }
 0x151   : > { %v1551_v3 = vrot.slane %v5454_v15, 5  ;;  %v4911_v61 = vpack.c.b16 %v1267_v19, %v1266_v6 }
 0x152   : > { %v2128_v2 = vpop.f32.mrf.mxu0  ;;  %v1549_v62 = vsel %vm4549_vm5, %v3319_v53, %v1548_v25 }
 0x153   : > { %v4899_v24 = vadd.f32 %v2128_v2, %v1988_v9  ;;  %5455 = vst [vmem:[#allocation22_spill] sm:$0xff] %v4911_v61  ;;  %v1552_v15 = vsel %vm4549_vm5, %v1550_v37, %v1551_v3  ;;  %v1615_v19 = vunpack.c.l.b16 %v1549_v62  ;;  %v5458_v3 = vld [vmem:[#allocation8_spill] sm:$0xff]  ;;  %v5462_v62 = vld [vmem:[#allocation9_spill] sm:$0xff] }
 0x154   : > { %1766 = vmatmul.bf16.gmra.mxu2 %v4890_v10  ;;  %v1616_v58 = vunpack.c.l.b16 %v1552_v15  ;;  %v1269_v49 = vunpack.c.l.b16 %v5458_v3 }
 0x155   : > { %5453 = vst [vmem:[#allocation18_spill] sm:$0xff] %v4899_v24  ;;  %2167 = vmatmul.bf16.gmra.mxu0 %v4519_v8  ;;  %v5459_v8 = vld [vmem:[#allocation7_spill] sm:$0xff] }
 0x156   : > { %v1916_v9 = vpop.f32.mrf.mxu3  ;;  %v4924_v37 = vpack.c.b16 %v1616_v58, %v1615_v19  ;;  %v1268_v10 = vunpack.c.l.b16 %v5459_v8 }
 0x157   : > { %v1989_v48 = vadd.f32 %v1916_v9, %v1797_v33  ;;  %v1727_v63 = vpop.f32.mrf.mxu2  ;;  %v1383_v2 = vpop.f32.mrf.mxu1  ;;  %v3729_v33 = vld [vmem:[%s5323_s1 + $0x208] sm:$0xff] }
 0x158   : > { %v1798_v50 = vadd.f32 %v1727_v63, %v1379_v38  ;;  %2917 = vmatpush.bf16.msra.mxu0 %v3729_v33  ;;  %5457 = vst [vmem:[#allocation2_spill] sm:$0xff] %v4924_v37  ;;  %v1555_v63 = vrot.slane %v5458_v3, 5  ;;  %v1384_v33 = vadd.f32 %v1383_v2, %v4630_v32  ;;  %v4936_v58 = vpack.c.b16 %v1269_v49, %v1268_v10 }
 0x15a   : > { %v2130_v24 = vpop.f32.mrf.mxu0  ;;  %1422 = vmatmul.bf16.gmra.mxu1 %v4911_v61  ;;  %5463 = vst [vmem:[#allocation8_spill] sm:$0xff] %v4936_v58 }
 0x15b   : > { %1958 = vmatmul.bf16.gmra.mxu3 %v4911_v61  ;;  %v4922_v6 = vadd.f32 %v2130_v24, %v1989_v48  ;;  %v5461_v24 = vld [vmem:[#allocation6_spill] sm:$0xff]  ;;  %v3320_v48 = vrot.slane %v5459_v8, 9 }
 0x15d   : > { %5456 = vst [vmem:[#allocation3_spill] sm:$0xff] %v4922_v6 }
 0x15e   : > { %v1919_v38 = vpop.f32.mrf.mxu3 }
 0x15f   : > { %v1990_v17 = vadd.f32 %v1919_v38, %v1798_v50  ;;  %v1729_v25 = vpop.f32.mrf.mxu2  ;;  %v1385_v53 = vpop.f32.mrf.mxu1  ;;  %v1557_v50 = vrot.slane %v1555_v63, 4 }
 0x160   : > { %v1799_v9 = vadd.f32 %v1729_v25, %v1381_v18  ;;  %v1558_v18 = vrot.slane %v5462_v62, 5  ;;  %v1386_v2 = vadd.f32 %v1385_v53, %v4650_v22  ;;  %v5469_v53 = vld [vmem:[#allocation11_spill] sm:$0xff] }
 0x162   : > { %v2133_v44 = vpop.f32.mrf.mxu0 }
 0x163   : > { %v4929_v61 = vadd.f32 %v2133_v44, %v1990_v17  ;;  %v1556_v44 = vsel %vm4549_vm5, %v3320_v48, %v1555_v63  ;;  %v1559_v17 = vsel %vm4549_vm5, %v1557_v50, %v1558_v18  ;;  %v3779_v18 = vld [vmem:[%s3987_s6 + $0xc0] sm:$0xff]  }
 0x164   : > { %1771 = vmatmul.bf16.gmra.mxu2 %v4924_v37  ;;  %v1617_v32 = vunpack.c.l.b16 %v1556_v44  ;;  %v1618_v49 = vunpack.c.l.b16 %v1559_v17  ;;  %v3770_v22 = vunpack.c.l.bf16 %v3779_v18 }
 0x165   : > { %5460 = vst [vmem:[#allocation4_spill] sm:$0xff] %v4929_v61  ;;  %2172 = vmatmul.bf16.gmra.mxu0 %v5461_v24 }
 0x166   : > { %v1921_v15 = vpop.f32.mrf.mxu3  ;;  %v4947_v48 = vpack.c.b16 %v1618_v49, %v1617_v32  ;;  %v5470_v49 = vld [vmem:[#allocation17_spill] sm:$0xff] }
 0x167   : > { %v1991_v19 = vadd.f32 %v1921_v15, %v1799_v9  ;;  %v1732_v38 = vpop.f32.mrf.mxu2  ;;  %v1388_v25 = vpop.f32.mrf.mxu1 }
 0x168   : > { %v1800_v3 = vadd.f32 %v1732_v38, %v1384_v33  ;;  %5465 = vst [vmem:[#allocation9_spill] sm:$0xff] %v4947_v48  ;;  %v5466_v38 = vld [vmem:[#allocation16_spill] sm:$0xff] }
 0x169   : > { %v1562_v50 = vrot.slane %v5466_v38, 5  ;;  %v1271_v17 = vunpack.c.l.b16 %v5466_v38  ;;  %v3771_v38 = vunpack.c.h.bf16 %v3779_v18  ;;  %v3728_v18 = vld [vmem:[%s5323_s1 + $0x200] sm:$0xff] }
 0x16a   : > { %v2135_v8 = vpop.f32.mrf.mxu0  ;;  %1427 = vmatmul.bf16.gmra.mxu1 %v4936_v58  ;;  %2918 = vmatpush.bf16.msra.mxu0 %v3728_v18  ;;  %v5475_v18 = vld [vmem:[#allocation25_spill] sm:$0xff] }
 0x16b   : > { %1963 = vmatmul.bf16.gmra.mxu3 %v4936_v58  ;;  %v4944_v62 = vadd.f32 %v2135_v8, %v1991_v19  ;;  %v3712_v19 = vld [vmem:[%s5323_s1 + $0x180] sm:$0xff]  ;;  %v5467_v8 = vld [vmem:[#allocation15_spill] sm:$0xff]  ;;  %v1564_v32 = vrot.slane %v1562_v50, 4  ;;  %v1273_v37 = vunpack.c.l.b16 %v5475_v18 }
 0x16c   : > { %v1270_v44 = vunpack.c.l.b16 %v5467_v8  ;;  %2506 = vmatpush.bf16.msra.mxu2 %v3712_v19 }
 0x16d   : > { %5464 = vst [vmem:[#allocation7_spill] sm:$0xff] %v4944_v62 }
 0x16e   : > { %v1924_v10 = vpop.f32.mrf.mxu3 }
 0x16f   : > { %v1992_v9 = vadd.f32 %v1924_v10, %v1800_v3  ;;  %v1734_v15 = vpop.f32.mrf.mxu2  ;;  %v1390_v33 = vpop.f32.mrf.mxu1  ;;  %v3321_v3 = vrot.slane %v5467_v8, 9  ;;  %v1565_v10 = vrot.slane %v5470_v49, 5  ;;  %v4974_v49 = vld [vmem:[%s5325_s3] ss:$0 sm:$0xff] }
 0x170   : > { %v1801_v63 = vadd.f32 %v1734_v15, %v1386_v2  ;;  %v3720_v2 = vld [vmem:[%s5323_s1 + $0x1c0] sm:$0xff]  ;;  %v1389_v15 = vadd.f32 %v1388_v25, %v4662_v31  ;;  %5472 = vst [vmem:[#allocation17_spill] sm:$0xff] %v4974_v49  ;;  %v417_v58 = vmul.f32 %v4974_v49, %v3770_v22 }
 0x171   : > { %2720 = vmatpush.bf16.msra.mxu3 %v3720_v2  ;;  %v1563_v31 = vsel %vm4549_vm5, %v3321_v3, %v1562_v50  ;;  %v1566_v25 = vsel %vm4549_vm5, %v1564_v32, %v1565_v10  ;;  %v4993_v50 = vld [vmem:[%s5326_s4] ss:$0 sm:$0xff] }
 0x172   : > { %v2138_v61 = vpop.f32.mrf.mxu0  ;;  %v1619_v22 = vunpack.c.l.b16 %v1563_v31  ;;  %5474 = vst [vmem:[#allocation43_spill] sm:$0xff] %v4993_v50  ;;  %v475_v3 = vadd.f32 %v4993_v50, %v417_v58  ;;  %v5476_v58 = vld [vmem:[#allocation24_spill] sm:$0xff] }
 0x173   : > { %v4956_v62 = vadd.f32 %v2138_v61, %v1992_v9  ;;  %v3704_v61 = vld [vmem:[%s5323_s1 + $0x140] sm:$0xff] }
 0x174   : > { %1776 = vmatmul.bf16.gmra.mxu2 %v4947_v48  ;;  %2314 = vmatpush.bf16.msra.mxu1 %v3704_v61  ;;  %v1620_v61 = vunpack.c.l.b16 %v1566_v25  ;;  %v529_v25 = vmax.f32 %v475_v3, 0.0 }
 0x175   : > { %5468 = vst [vmem:[#allocation16_spill] sm:$0xff] %v4956_v62  ;;  %2177 = vmatmul.bf16.gmra.mxu0 %v5469_v53  ;;  %v4969_v53 = vpack.c.b16 %v1271_v17, %v1270_v44  ;;  %v418_v44 = vmul.f32 %v4974_v49, %v3771_v38  ;;  %v307_v17 = vld [vmem:[%s3987_s6 + $0xc8] sm:$0x1] }
 0x176   : > { %v1926_v9 = vpop.f32.mrf.mxu3  ;;  %v361_v32 = vunpack.c.l.bf16 %v307_v17  ;;  %v4998_v31 = vpack.c.b16 %v1620_v61, %v1619_v22  ;;  %v1272_v17 = vunpack.c.l.b16 %v5476_v58  ;;  %v1572_v61 = vrot.slane %v4504_v27, 5 }
 0x177   : > { %v1993_v62 = vadd.f32 %v1926_v9, %v1801_v63  ;;  %5471 = vst [vmem:[#allocation15_spill] sm:$0xff] %v4969_v53  ;;  %v1737_v8 = vpop.f32.mrf.mxu2  ;;  %v1393_v48 = vpop.f32.mrf.mxu1  ;;  %v1391_v9 = vadd.f32 %v1390_v33, %v4685_v35  ;;  %v5007_v33 = vpack.c.bf16 %v529_v25, %v529_v25 }
 0x178   : > { %v1802_v19 = vadd.f32 %v1737_v8, %v1389_v15  ;;  %v476_v15 = vadd.f32 %v4993_v50, %v418_v44  ;;  %v3322_v44 = vrot.slane %v5476_v58, 9 }
 0x17a   : > { %v2140_v63 = vpop.f32.mrf.mxu0  ;;  %1432 = vmatmul.bf16.gmra.mxu1 %v4969_v53  ;;  %v530_v24 = vmax.f32 %v476_v15, 0.0  ;;  %v5016_v15 = vpack.c.b16 %v1273_v37, %v1272_v17 }
 0x17b   : > { %1968 = vmatmul.bf16.gmra.mxu3 %v4969_v53  ;;  %v4988_v2 = vadd.f32 %v2140_v63, %v1993_v62  ;;  %v419_v53 = vmul.f32 %v4974_v49, %v361_v32 }
 0x17c   : > { %5479 = vst [vmem:[#allocation24_spill] sm:$0xff] %v5016_v15 }
 0x17d   : > { %5473 = vst [vmem:[#allocation42_spill] sm:$0xff] %v4988_v2  ;;  %v1569_v2 = vrot.slane %v5475_v18, 5  ;;  %v477_v3 = vadd.f32 %v4993_v50, %v419_v53  ;;  %v2017_v53 = vshrl.u32 %v5007_v33, 16 }
 0x17e   : > { %v1929_v10 = vpop.f32.mrf.mxu3 }
 0x17f   : > { %v1994_v38 = vadd.f32 %v1929_v10, %v1802_v19  ;;  %v1739_v8 = vpop.f32.mrf.mxu2  ;;  %v1395_v62 = vpop.f32.mrf.mxu1  ;;  %v5478_v19 = vld [vmem:[#allocation19_spill] sm:$0xff]  ;;  %v1571_v22 = vrot.slane %v1569_v2, 4  ;;  %v1394_v10 = vadd.f32 %v1393_v48, %v4703_v47  ;;  %v1570_v18 = vsel %vm4549_vm5, %v3322_v44, %v1569_v2 }
 0x180   : > { %v1803_v63 = vadd.f32 %v1739_v8, %v1391_v9  ;;  %v5014_v9 = vpack.c.bf16 %v530_v24, %v530_v24  ;;  %v531_v27 = vmax.f32 %v477_v3, 0.0  ;;  %v2020_v47 = vshll.u32 %v5007_v33, 16 }
 0x181   : > { %v1573_v58 = vsel %vm4549_vm5, %v1571_v22, %v1572_v61  ;;  %v1621_v2 = vunpack.c.l.b16 %v1570_v18  ;;  %v2019_v44 = vrot.slane %v2017_v53, 4  ;;  %v1396_v61 = vadd.f32 %v1395_v62, %v4732_v1 }
 0x182   : > { %v2143_v6 = vpop.f32.mrf.mxu0  ;;  %v2026_v37 = vshll.u32 %v5014_v9, 16  ;;  %v2030_v24 = vshrl.u32 %v5014_v9, 16  ;;  %v5030_v17 = vpack.c.bf16 %v531_v27, %v531_v27  ;;  %v2022_v3 = vrot.slane %v2020_v47, 5 }
 0x183   : > { %v5004_v35 = vadd.f32 %v2143_v6, %v1994_v38  ;;  %v1844_v27 = vunpack.c.l.b16 %v5014_v9 }
 0x184   : > { %1781 = vmatmul.bf16.gmra.mxu2 %v4998_v31  ;;  %v2036_v18 = vshll.u32 %v5030_v17, 16 }
 0x185   : > { %5477 = vst [vmem:[#allocation25_spill] sm:$0xff] %v5004_v35  ;;  %2182 = vmatmul.bf16.gmra.mxu0 %v5478_v19 }
 0x186   : > { %v1931_v32 = vpop.f32.mrf.mxu3  ;;  %v2038_v47 = vrot.slane %v2036_v18, 5 }
 0x187   : > { %v1995_v6 = vadd.f32 %v1931_v32, %v1803_v63  ;;  %v1742_v38 = vpop.f32.mrf.mxu2  ;;  %v1398_v8 = vpop.f32.mrf.mxu1  ;;  %v1622_v63 = vunpack.c.l.b16 %v1573_v58  ;;  %v2028_v32 = vrot.slane %v2026_v37, 5  ;;  %v1843_v58 = vunpack.c.l.b16 %v5007_v33 }
 0x188   : > { %v1804_v25 = vadd.f32 %v1742_v38, %v1394_v10  ;;  %v2032_v10 = vrot.slane %v2030_v24, 4 }
 0x189   : > { %v5033_v19 = vpack.c.b16 %v1622_v63, %v1621_v2  ;;  %v5043_v24 = vpack.c.b16 %v1844_v27, %v1843_v58 }
 0x18a   : > { %v2145_v35 = vpop.f32.mrf.mxu0  ;;  %1437 = vmatmul.bf16.gmra.mxu1 %v5016_v15 }
 0x18b   : > { %1973 = vmatmul.bf16.gmra.mxu3 %v5016_v15  ;;  %v5028_v48 = vadd.f32 %v2145_v35, %v1995_v6  ;;  %v2023_v35 = vor.u32 %v2022_v3, %v2019_v44  ;;  %v2033_v6 = vor.u32 %v2032_v10, %v2028_v32 }
 0x18d   : > { %v2024_v62 = vrot.slane %v2023_v35, 4 }
 0x18e   : > { %v1934_v22 = vpop.f32.mrf.mxu3 }
 0x18f   : > { %v1996_v38 = vadd.f32 %v1934_v22, %v1804_v25  ;;  %v1744_v59 = vpop.f32.mrf.mxu2  ;;  %v1400_v50 = vpop.f32.mrf.mxu1  ;;  %v2034_v25 = vrot.slane %v2033_v6, 4 }
 0x190   : > { %v1805_v49 = vadd.f32 %v1744_v59, %v1396_v61  ;;  %v1399_v59 = vadd.f32 %v1398_v8, %v4751_v0  ;;  %v1401_v10 = vadd.f32 %v1400_v50, %v4765_v28 }
 0x191   : > { %v2039_v61 = vsel %vm4063_vm2, %v2034_v25, %v2038_v47 }
 0x192   : > { %v2148_v15 = vpop.f32.mrf.mxu0 }
 0x193   : > { %v5038_v53 = vadd.f32 %v2148_v15, %v1996_v38  ;;  %v2029_v15 = vsel %vm4063_vm2, %v2024_v62, %v2028_v32 }
 0x194   : > { %1786 = vmatmul.bf16.gmra.mxu2 %v5033_v19  ;;  %v2057_v8 = vunpack.c.l.b16 %v2029_v15 }
 0x195   : > { %2187 = vmatmul.bf16.gmra.mxu0 %v4557_v4 }
 0x196   : > { %v1936_v1 = vpop.f32.mrf.mxu3 }
 0x197   : > { %v1997_v37 = vadd.f32 %v1936_v1, %v1805_v49  ;;  %v1747_v2 = vpop.f32.mrf.mxu2  ;;  %v1403_v63 = vpop.f32.mrf.mxu1  ;;  %v2058_v49 = vunpack.c.l.b16 %v2039_v61 }
 0x198   : > { %v1806_v44 = vadd.f32 %v1747_v2, %v1399_v59  ;;  %v1404_v1 = vadd.f32 %v1403_v63, %v4660_v39 }
 0x199   : > { %v5054_v58 = vpack.c.b16 %v2058_v49, %v2057_v8 }
 0x19a   : > { %v2150_v22 = vpop.f32.mrf.mxu0  ;;  %2315 = vmatmul.bf16.vlgmr.msra.gmra.mxu1 %v4597_v5 }
 0x19b   : > { %1978 = vmatmul.bf16.gmra.mxu3 %v5043_v24  ;;  %v5051_v0 = vadd.f32 %v2150_v22, %v1997_v37 }
 0x19e   : > { %v1939_v3 = vpop.f32.mrf.mxu3 }
 0x19f   : > { %v1998_v38 = vadd.f32 %v1939_v3, %v1806_v44  ;;  %v1749_v35 = vpop.f32.mrf.mxu2  ;;  %v1405_v6 = vpop.f32.mrf.mxu1 }
 0x1a0   : > { %v1807_v18 = vadd.f32 %v1749_v35, %v1401_v10  ;;  %v1406_v2 = vadd.f32 %v1405_v6, %v4673_v13 }
 0x1a2   : > { %v2153_v32 = vpop.f32.mrf.mxu0 }
 0x1a3   : > { %v5056_v27 = vadd.f32 %v2153_v32, %v1998_v38 }
 0x1a4   : > { %2507 = vmatmul.bf16.vlgmr.msra.gmra.mxu2 %v4571_v20 }
 0x1a5   : > { %2192 = vmatmul.bf16.gmra.mxu0 %v5054_v58 }
 0x1a6   : > { %v1941_v5 = vpop.f32.mrf.mxu3 }
 0x1a7   : > { %v1999_v59 = vadd.f32 %v1941_v5, %v1807_v18  ;;  %v1752_v62 = vpop.f32.mrf.mxu2  ;;  %v1408_v25 = vpop.f32.mrf.mxu1 }
 0x1a8   : > { %v1808_v28 = vadd.f32 %v1752_v62, %v1404_v1  ;;  %v1409_v8 = vadd.f32 %v1408_v25, %v4694_v40 }
 0x1aa   : > { %v2155_v50 = vpop.f32.mrf.mxu0  ;;  %2320 = vmatmul.bf16.gmra.mxu1 %v4595_v60 }
 0x1ab   : > { %2721 = vmatmul.bf16.vlgmr.msra.gmra.mxu3 %v4442_v42  ;;  %v5063_v47 = vadd.f32 %v2155_v50, %v1999_v59 }
 0x1ae   : > { %v1944_v37 = vpop.f32.mrf.mxu3 }
 0x1af   : > { %v2000_v20 = vadd.f32 %v1944_v37, %v1808_v28  ;;  %v1754_v44 = vpop.f32.mrf.mxu2  ;;  %v1410_v22 = vpop.f32.mrf.mxu1 }
 0x1b0   : > { %v1809_v15 = vadd.f32 %v1754_v44, %v1406_v2  ;;  %v1411_v6 = vadd.f32 %v1410_v22, %v4722_v56 }
 0x1b2   : > { %v2158_v61 = vpop.f32.mrf.mxu0 }
 0x1b3   : > { %v5066_v39 = vadd.f32 %v2158_v61, %v2000_v20 }
 0x1b4   : > { %2512 = vmatmul.bf16.gmra.mxu2 %v4619_v29 }
 0x1b5   : > { %2919 = vmatmul.bf16.vlgmr.msra.gmra.mxu0 %v4595_v60 }
 0x1b6   : > { %v1946_v63 = vpop.f32.mrf.mxu3 }
 0x1b7   : > { %v2001_v42 = vadd.f32 %v1946_v63, %v1809_v15  ;;  %v1757_v49 = vpop.f32.mrf.mxu2  ;;  %v1413_v3 = vpop.f32.mrf.mxu1 }
 0x1b8   : > { %v1810_v10 = vadd.f32 %v1757_v49, %v1409_v8  ;;  %v1414_v59 = vadd.f32 %v1413_v3, %v4741_v12 }
 0x1ba   : > { %v2160_v38 = vpop.f32.mrf.mxu0  ;;  %2325 = vmatmul.bf16.gmra.mxu1 %v4632_v26 }
 0x1bb   : > { %2726 = vmatmul.bf16.gmra.mxu3 %v4574_v7  ;;  %v5073_v13 = vadd.f32 %v2160_v38, %v2001_v42 }
 0x1be   : > { %v1949_v35 = vpop.f32.mrf.mxu3 }
 0x1bf   : > { %v2002_v29 = vadd.f32 %v1949_v35, %v1810_v10  ;;  %v1759_v18 = vpop.f32.mrf.mxu2  ;;  %v1415_v60 = vpop.f32.mrf.mxu1 }
 0x1c0   : > { %v1811_v32 = vadd.f32 %v1759_v18, %v1411_v6  ;;  %v1416_v2 = vadd.f32 %v1415_v60, %v4761_v54 }
 0x1c2   : > { %v2163_v5 = vpop.f32.mrf.mxu0 }
 0x1c3   : > { %v5076_v40 = vadd.f32 %v2163_v5, %v2002_v29 }
 0x1c4   : > { %2517 = vmatmul.bf16.gmra.mxu2 %v4652_v30 }
 0x1c5   : > { %2924 = vmatmul.bf16.gmra.mxu0 %v4632_v26 }
 0x1c6   : > { %v1951_v1 = vpop.f32.mrf.mxu3 }
 0x1c7   : > { %v2003_v7 = vadd.f32 %v1951_v1, %v1811_v32  ;;  %v1762_v62 = vpop.f32.mrf.mxu2  ;;  %v1418_v25 = vpop.f32.mrf.mxu1 }
 0x1c8   : > { %v1812_v28 = vadd.f32 %v1762_v62, %v1414_v59  ;;  %v1419_v61 = vadd.f32 %v1418_v25, %v4789_v36  ;;  %v5481_v59 = vld [vmem:[#allocation14_spill] sm:$0xff]  ;;  %v5482_v25 = vld [vmem:[#allocation28_spill] sm:$0xff] }
 0x1ca   : > { %v2165_v50 = vpop.f32.mrf.mxu0  ;;  %2330 = vmatmul.bf16.gmra.mxu1 %v4664_v43 }
 0x1cb   : > { %2731 = vmatmul.bf16.gmra.mxu3 %v4093_v45  ;;  %v5083_v56 = vadd.f32 %v2165_v50, %v2003_v7 }
 0x1ce   : > { %v1954_v37 = vpop.f32.mrf.mxu3 }
 0x1cf   : > { %v2004_v30 = vadd.f32 %v1954_v37, %v1812_v28  ;;  %v1764_v20 = vpop.f32.mrf.mxu2  ;;  %v1420_v26 = vpop.f32.mrf.mxu1 }
 0x1d0   : > { %v1813_v44 = vadd.f32 %v1764_v20, %v1416_v2  ;;  %v1421_v10 = vadd.f32 %v1420_v26, %v4804_v51  ;;  %v5480_v51 = vld [vmem:[#allocation31_spill] sm:$0xff]  ;;  %v5484_v26 = vld [vmem:[#allocation29_spill] sm:$0xff] }
 0x1d2   : > { %v2168_v22 = vpop.f32.mrf.mxu0 }
 0x1d3   : > { %v5086_v12 = vadd.f32 %v2168_v22, %v2004_v30  ;;  %v5483_v30 = vld [vmem:[#allocation32_spill] sm:$0xff] }
 0x1d4   : > { %2522 = vmatmul.bf16.gmra.mxu2 %v4679_v41 }
 0x1d5   : > { %2929 = vmatmul.bf16.gmra.mxu0 %v4664_v43 }
 0x1d6   : > { %v1956_v15 = vpop.f32.mrf.mxu3 }
 0x1d7   : > { %v2005_v45 = vadd.f32 %v1956_v15, %v1813_v44  ;;  %v1767_v63 = vpop.f32.mrf.mxu2  ;;  %v1423_v8 = vpop.f32.mrf.mxu1 }
 0x1d8   : > { %v1814_v42 = vadd.f32 %v1767_v63, %v1419_v61  ;;  %v1424_v18 = vadd.f32 %v1423_v8, %v4667_v55  ;;  %v5485_v8 = vld [vmem:[#allocation34_spill] sm:$0xff] }
 0x1da   : > { %v2170_v49 = vpop.f32.mrf.mxu0  ;;  %2335 = vmatmul.bf16.gmra.mxu1 %v4698_v23 }
 0x1db   : > { %2736 = vmatmul.bf16.gmra.mxu3 %v4207_v21  ;;  %v5093_v54 = vadd.f32 %v2170_v49, %v2005_v45 }
 0x1de   : > { %v1959_v3 = vpop.f32.mrf.mxu3 }
 0x1df   : > { %v2006_v41 = vadd.f32 %v1959_v3, %v1814_v42  ;;  %v1769_v38 = vpop.f32.mrf.mxu2  ;;  %v1425_v43 = vpop.f32.mrf.mxu1  ;;  %v5486_v42 = vld [vmem:[#allocation23_spill] sm:$0xff] }
 0x1e0   : > { %v1815_v35 = vadd.f32 %v1769_v38, %v1421_v10  ;;  %v1426_v28 = vadd.f32 %v1425_v43, %v5482_v25  ;;  %v5487_v10 = vld [vmem:[#allocation30_spill] sm:$0xff] }
 0x1e2   : > { %v2173_v6 = vpop.f32.mrf.mxu0 }
 0x1e3   : > { %v5096_v36 = vadd.f32 %v2173_v6, %v2006_v41 }
 0x1e4   : > { %2527 = vmatmul.bf16.gmra.mxu2 %v4720_v34 }
 0x1e5   : > { %2934 = vmatmul.bf16.gmra.mxu0 %v4698_v23 }
 0x1e6   : > { %v1961_v29 = vpop.f32.mrf.mxu3 }
 0x1e7   : > { %v2007_v21 = vadd.f32 %v1961_v29, %v1815_v35  ;;  %v1772_v60 = vpop.f32.mrf.mxu2  ;;  %v1428_v32 = vpop.f32.mrf.mxu1 }
 0x1e8   : > { %v1816_v5 = vadd.f32 %v1772_v60, %v1424_v18  ;;  %v1429_v44 = vadd.f32 %v1428_v32, %v5484_v26  ;;  %v5489_v32 = vld [vmem:[#allocation33_spill] sm:$0xff] }
 0x1ea   : > { %v2175_v1 = vpop.f32.mrf.mxu0  ;;  %2340 = vmatmul.bf16.gmra.mxu1 %v5480_v51 }
 0x1eb   : > { %2741 = vmatmul.bf16.gmra.mxu3 %v5481_v59  ;;  %v5103_v7 = vadd.f32 %v2175_v1, %v2007_v21  ;;  %v5488_v21 = vld [vmem:[#allocation36_spill] sm:$0xff] }
 0x1ee   : > { %v1964_v62 = vpop.f32.mrf.mxu3 }
 0x1ef   : > { %v2008_v34 = vadd.f32 %v1964_v62, %v1816_v5  ;;  %v1774_v50 = vpop.f32.mrf.mxu2  ;;  %v1430_v23 = vpop.f32.mrf.mxu1 }
 0x1f0   : > { %v1817_v37 = vadd.f32 %v1774_v50, %v1426_v28  ;;  %v1431_v41 = vadd.f32 %v1430_v23, %v5487_v10  ;;  %v5490_v28 = vld [vmem:[#allocation38_spill] sm:$0xff] }
 0x1f2   : > { %v2178_v2 = vpop.f32.mrf.mxu0 }
 0x1f3   : > { %v5106_v55 = vadd.f32 %v2178_v2, %v2008_v34  ;;  %v5491_v34 = vld [vmem:[#allocation5_spill] sm:$0xff] }
 0x1f4   : > { %2532 = vmatmul.bf16.gmra.mxu2 %v5483_v30 }
 0x1f5   : > { %2939 = vmatmul.bf16.gmra.mxu0 %v5480_v51 }
 0x1f6   : > { %v1966_v20 = vpop.f32.mrf.mxu3 }
 0x1f7   : > { %v2009_v22 = vadd.f32 %v1966_v20, %v1817_v37  ;;  %v1777_v15 = vpop.f32.mrf.mxu2  ;;  %v1433_v61 = vpop.f32.mrf.mxu1  ;;  %v5492_v37 = vld [vmem:[#allocation35_spill] sm:$0xff] }
 0x1f8   : > { %v1818_v45 = vadd.f32 %v1777_v15, %v1429_v44  ;;  %v1434_v5 = vadd.f32 %v1433_v61, %v5489_v32  ;;  %v5493_v61 = vld [vmem:[#allocation40_spill] sm:$0xff] }
 0x1fa   : > { %v2180_v63 = vpop.f32.mrf.mxu0  ;;  %2345 = vmatmul.bf16.gmra.mxu1 %v5485_v8 }
 0x1fb   : > { %2746 = vmatmul.bf16.gmra.mxu3 %v5486_v42  ;;  %v5113_v49 = vadd.f32 %v2180_v63, %v2009_v22  ;;  %v5494_v63 = vld [vmem:[#allocation37_spill] sm:$0xff] }
 0x1fe   : > { %v1969_v3 = vpop.f32.mrf.mxu3 }
 0x1ff   : > { %v2010_v38 = vadd.f32 %v1969_v3, %v1818_v45  ;;  %v1779_v43 = vpop.f32.mrf.mxu2  ;;  %v1435_v35 = vpop.f32.mrf.mxu1 }
 0x200   : > { %v1819_v6 = vadd.f32 %v1779_v43, %v1431_v41  ;;  %v1436_v2 = vadd.f32 %v1435_v35, %v5492_v37  ;;  %v5495_v43 = vld [vmem:[#allocation41_spill] sm:$0xff]  ;;  %v5496_v35 = vld [vmem:[#allocation10_spill] sm:$0xff]  ;;  %v5498_v37 = vld [vmem:[#allocation12_spill] sm:$0xff] }
 0x202   : > { %v2183_v29 = vpop.f32.mrf.mxu0 }
 0x203   : > { %v5116_v18 = vadd.f32 %v2183_v29, %v2010_v38 }
 0x204   : > { %2537 = vmatmul.bf16.gmra.mxu2 %v5488_v21  ;;  %v5497_v21 = vld [vmem:[#allocation39_spill] sm:$0xff] }
 0x205   : > { %2944 = vmatmul.bf16.gmra.mxu0 %v5485_v8 }
 0x206   : > { %v1971_v60 = vpop.f32.mrf.mxu3 }
 0x207   : > { %v2011_v1 = vadd.f32 %v1971_v60, %v1819_v6  ;;  %v1782_v51 = vpop.f32.mrf.mxu2  ;;  %v1438_v59 = vpop.f32.mrf.mxu1 }
 0x208   : > { %v1820_v62 = vadd.f32 %v1782_v51, %v1434_v5  ;;  %v1439_v8 = vadd.f32 %v1438_v59, %v5494_v63 }
 0x20a   : > { %v2185_v25 = vpop.f32.mrf.mxu0  ;;  %2350 = vmatmul.bf16.gmra.mxu1 %v5490_v28 }
 0x20b   : > { %2751 = vmatmul.bf16.gmra.mxu3 %v5491_v34  ;;  %v5123_v50 = vadd.f32 %v2185_v25, %v2011_v1 }
 0x20e   : > { %v1974_v23 = vpop.f32.mrf.mxu3 }
 0x20f   : > { %v2012_v30 = vadd.f32 %v1974_v23, %v1820_v62  ;;  %v1784_v20 = vpop.f32.mrf.mxu2  ;;  %v1440_v26 = vpop.f32.mrf.mxu1 }
 0x210   : > { %v1821_v44 = vadd.f32 %v1784_v20, %v1436_v2  ;;  %v1441_v60 = vadd.f32 %v1440_v26, %v5497_v21 }
 0x212   : > { %v2188_v22 = vpop.f32.mrf.mxu0 }
 0x213   : > { %v5126_v15 = vadd.f32 %v2188_v22, %v2012_v30 }
 0x214   : > { %2542 = vmatmul.bf16.gmra.mxu2 %v5493_v61 }
 0x215   : > { %2949 = vmatmul.bf16.gmra.mxu0 %v5490_v28 }
 0x216   : > { %v1976_v45 = vpop.f32.mrf.mxu3 }
 0x217   : > { %v2013_v42 = vadd.f32 %v1976_v45, %v1821_v44  ;;  %v1787_v3 = vpop.f32.mrf.mxu2  ;;  %v2316_v10 = vpop.f32.mrf.mxu1  ;;  %v5148_v45 = vld [vmem:[%s5324_s2] ss:$0 sm:$0xff] }
 0x218   : > { %v1822_v41 = vadd.f32 %v1787_v3, %v1439_v8  ;;  %v2396_v2 = vadd.f32 %v2316_v10, %v5498_v37 }
 0x21a   : > { %v2190_v38 = vpop.f32.mrf.mxu0  ;;  %2355 = vmatmul.bf16.gmra.mxu1 %v5495_v43 }
 0x21b   : > { %2756 = vmatmul.bf16.gmra.mxu3 %v5496_v35  ;;  %v5133_v6 = vadd.f32 %v2190_v38, %v2013_v42  ;;  %v5499_v35 = vld [vmem:[#allocation13_spill] sm:$0xff] }
 0x21e   : > { %v1979_v29 = vpop.f32.mrf.mxu3 }
 0x21f   : > { %v2014_v32 = vadd.f32 %v1979_v29, %v1822_v41  ;;  %v1789_v5 = vpop.f32.mrf.mxu2  ;;  %v2318_v1 = vpop.f32.mrf.mxu1 }
 0x220   : > { %v1823_v51 = vadd.f32 %v1789_v5, %v1441_v60  ;;  %v2397_v63 = vadd.f32 %v2318_v1, %v4864_v11  ;;  %v5500_v60 = vld [vmem:[#allocation20_spill] sm:$0xff] }
 0x222   : > { %v2193_v62 = vpop.f32.mrf.mxu0 }
 0x223   : > { %v5136_v59 = vadd.f32 %v2193_v62, %v2014_v32 }
 0x224   : > { %2547 = vmatmul.bf16.gmra.mxu2 %v4852_v52 }
 0x225   : > { %2954 = vmatmul.bf16.gmra.mxu0 %v5495_v43 }
 0x226   : > { %v1981_v25 = vpop.f32.mrf.mxu3 }
 0x227   : > { %v2015_v28 = vadd.f32 %v1981_v25, %v1823_v51  ;;  %v2508_v34 = vpop.f32.mrf.mxu2  ;;  %v2321_v23 = vpop.f32.mrf.mxu1 }
 0x228   : > { %v2588_v20 = vadd.f32 %v2508_v34, %v2396_v2  ;;  %v2398_v29 = vadd.f32 %v2321_v23, %v5499_v35 }
 0x22a   : > { %v2195_v30 = vpop.f32.mrf.mxu0  ;;  %2360 = vmatmul.bf16.gmra.mxu1 %v4867_v16 }
 0x22b   : > { %2761 = vmatmul.bf16.gmra.mxu3 %v5447_v46  ;;  %v5143_v26 = vadd.f32 %v2195_v30, %v2015_v28  ;;  %v5502_v28 = vld [vmem:[#allocation21_spill] sm:$0xff]  ;;  %v5503_v30 = vld [vmem:[#allocation22_spill] sm:$0xff] }
 0x22e   : > { %v2722_v44 = vpop.f32.mrf.mxu3 }
 0x22f   : > { %v2802_v22 = vadd.f32 %v2722_v44, %v2588_v20  ;;  %v2510_v52 = vpop.f32.mrf.mxu2  ;;  %v2323_v61 = vpop.f32.mrf.mxu1 }
 0x230   : > { %v2589_v3 = vadd.f32 %v2510_v52, %v2397_v63  ;;  %v2399_v34 = vadd.f32 %v2323_v61, %v5502_v28 }
 0x232   : > { %v2920_v8 = vpop.f32.mrf.mxu0 }
 0x233   : > { %v3000_v42 = vadd.f32 %v2920_v8, %v2802_v22 }
 0x234   : > { %2552 = vmatmul.bf16.gmra.mxu2 %v4879_v57 }
 0x235   : > { %2959 = vmatmul.bf16.gmra.mxu0 %v4867_v16  ;;  %v3036_v46 = vadd.f32 %v5148_v45, %v3000_v42  ;;  %v5501_v16 = vld [vmem:[#allocation26_spill] sm:$0xff] }
 0x236   : > { %v2724_v10 = vpop.f32.mrf.mxu3  ;;  %v5504_v42 = vld [vmem:[#allocation18_spill] sm:$0xff] }
 0x237   : > { %3832 = vtanh.f32 %v3036_v46  ;;  %v2803_v41 = vadd.f32 %v2724_v10, %v2589_v3  ;;  %v2513_v38 = vpop.f32.mrf.mxu2  ;;  %v2326_v43 = vpop.f32.mrf.mxu1  ;;  %v5505_v46 = vld [vmem:[#allocation2_spill] sm:$0xff] }
 0x238   : > { %v2590_v57 = vadd.f32 %v2513_v38, %v2398_v29  ;;  %v2400_v3 = vadd.f32 %v2326_v43, %v5504_v42 }
 0x23a   : > { %v2922_v21 = vpop.f32.mrf.mxu0  ;;  %2365 = vmatmul.bf16.gmra.mxu1 %v5500_v60 }
 0x23b   : > { %v3001_v11 = vadd.f32 %v2922_v21, %v2803_v41  ;;  %2766 = vmatmul.bf16.gmra.mxu3 %v5501_v16  ;;  %v5506_v41 = vld [vmem:[#allocation6_spill] sm:$0xff] }
 0x23d   : > { %v3833_v32 = vpop.eup %3832  ;;  %v3037_v5 = vadd.f32 %v5148_v45, %v3001_v11 }
 0x23e   : > { %3100 = vst [vmem:[%s5160_s26] sm:$0xff] %v3833_v32  ;;  %v2727_v1 = vpop.f32.mrf.mxu3 }
 0x23f   : > { %3834 = vtanh.f32 %v3037_v5  ;;  %v2804_v51 = vadd.f32 %v2727_v1, %v2590_v57  ;;  %v2515_v62 = vpop.f32.mrf.mxu2  ;;  %v2328_v25 = vpop.f32.mrf.mxu1  ;;  %v5507_v57 = vld [vmem:[#allocation3_spill] sm:$0xff] }
 0x240   : > { %v2591_v2 = vadd.f32 %v2515_v62, %v2399_v34  ;;  %v2401_v32 = vadd.f32 %v2328_v25, %v5507_v57 }
 0x242   : > { %v2925_v23 = vpop.f32.mrf.mxu0 }
 0x243   : > { %v3002_v37 = vadd.f32 %v2925_v23, %v2804_v51  ;;  %v5508_v51 = vld [vmem:[#allocation8_spill] sm:$0xff] }
 0x244   : > { %2557 = vmatmul.bf16.gmra.mxu2 %v5503_v30  ;;  %v5509_v30 = vld [vmem:[#allocation4_spill] sm:$0xff] }
 0x245   : > { %v3835_v20 = vpop.eup %3834  ;;  %2964 = vmatmul.bf16.gmra.mxu0 %v5500_v60  ;;  %v3038_v44 = vadd.f32 %v5148_v45, %v3002_v37 }
 0x246   : > { %3101 = vst [vmem:[%s5160_s26 + $0x8] sm:$0xff] %v3835_v20  ;;  %v2729_v22 = vpop.f32.mrf.mxu3 }
 0x247   : > { %3836 = vtanh.f32 %v3038_v44  ;;  %v2805_v52 = vadd.f32 %v2729_v22, %v2591_v2  ;;  %v2518_v63 = vpop.f32.mrf.mxu2  ;;  %v2331_v8 = vpop.f32.mrf.mxu1  ;;  %v5510_v44 = vld [vmem:[#allocation9_spill] sm:$0xff] }
 0x248   : > { %v2592_v38 = vadd.f32 %v2518_v63, %v2400_v3  ;;  %v2402_v20 = vadd.f32 %v2331_v8, %v5509_v30 }
 0x24a   : > { %v2927_v61 = vpop.f32.mrf.mxu0  ;;  %2370 = vmatmul.bf16.gmra.mxu1 %v5505_v46 }
 0x24b   : > { %v3003_v10 = vadd.f32 %v2927_v61, %v2805_v52  ;;  %2771 = vmatmul.bf16.gmra.mxu3 %v5506_v41  ;;  %v5511_v52 = vld [vmem:[#allocation11_spill] sm:$0xff] }
 0x24d   : > { %v3837_v35 = vpop.eup %3836  ;;  %v3039_v29 = vadd.f32 %v5148_v45, %v3003_v10 }
 0x24e   : > { %3102 = vst [vmem:[%s5160_s26 + $0x10] sm:$0xff] %v3837_v35  ;;  %v2732_v21 = vpop.f32.mrf.mxu3 }
 0x24f   : > { %3838 = vtanh.f32 %v3039_v29  ;;  %v2806_v60 = vadd.f32 %v2732_v21, %v2592_v38  ;;  %v2520_v11 = vpop.f32.mrf.mxu2  ;;  %v2333_v16 = vpop.f32.mrf.mxu1  ;;  %v5512_v38 = vld [vmem:[#allocation7_spill] sm:$0xff] }
 0x250   : > { %v2593_v1 = vadd.f32 %v2520_v11, %v2401_v32  ;;  %v2403_v35 = vadd.f32 %v2333_v16, %v5512_v38  ;;  %v310_v38 = vld [vmem:[%s3987_s6 + $0xd4] sm:$0x1] }
 0x252   : > { %v2930_v43 = vpop.f32.mrf.mxu0 }
 0x253   : > { %v3004_v5 = vadd.f32 %v2930_v43, %v2806_v60  ;;  %v5513_v60 = vld [vmem:[#allocation15_spill] sm:$0xff] }
 0x254   : > { %2562 = vmatmul.bf16.gmra.mxu2 %v5508_v51  ;;  %v5514_v51 = vld [vmem:[#allocation16_spill] sm:$0xff] }
 0x255   : > { %v3839_v62 = vpop.eup %3838  ;;  %2969 = vmatmul.bf16.gmra.mxu0 %v5505_v46  ;;  %v3040_v28 = vadd.f32 %v5148_v45, %v3004_v5 }
 0x256   : > { %3103 = vst [vmem:[%s5160_s26 + $0x18] sm:$0xff] %v3839_v62  ;;  %v2734_v34 = vpop.f32.mrf.mxu3 }
 0x257   : > { %3840 = vtanh.f32 %v3040_v28  ;;  %v2807_v23 = vadd.f32 %v2734_v34, %v2593_v1  ;;  %v2523_v37 = vpop.f32.mrf.mxu2  ;;  %v2336_v2 = vpop.f32.mrf.mxu1  ;;  %v5515_v34 = vld [vmem:[#allocation19_spill] sm:$0xff] }
 0x258   : > { %v2594_v63 = vadd.f32 %v2523_v37, %v2402_v20  ;;  %v2404_v16 = vadd.f32 %v2336_v2, %v5514_v51  ;;  %v308_v37 = vld [vmem:[%s3987_s6 + $0xcc] sm:$0xff]  }
 0x259   : > { %v362_v30 = vunpack.c.l.bf16 %v308_v37  ;;  %v363_v20 = vunpack.c.h.bf16 %v308_v37  ;;  %v5520_v37 = vld [vmem:[#allocation25_spill] sm:$0xff] }
 0x25a   : > { %v2932_v25 = vpop.f32.mrf.mxu0  ;;  %2375 = vmatmul.bf16.gmra.mxu1 %v5510_v44 }
 0x25b   : > { %v3005_v22 = vadd.f32 %v2932_v25, %v2807_v23  ;;  %2776 = vmatmul.bf16.gmra.mxu3 %v5511_v52 }
 0x25d   : > { %v3841_v42 = vpop.eup %3840  ;;  %v3041_v3 = vadd.f32 %v5148_v45, %v3005_v22 }
 0x25e   : > { %3104 = vst [vmem:[%s5160_s26 + $0x20] sm:$0xff] %v3841_v42  ;;  %v2737_v61 = vpop.f32.mrf.mxu3  ;;  %v5516_v42 = vld [vmem:[#allocation17_spill] sm:$0xff] }
 0x25f   : > { %3842 = vtanh.f32 %v3041_v3  ;;  %v2808_v46 = vadd.f32 %v2737_v61, %v2594_v63  ;;  %v2525_v10 = vpop.f32.mrf.mxu2  ;;  %v2338_v41 = vpop.f32.mrf.mxu1  ;;  %v420_v3 = vmul.f32 %v5516_v42, %v362_v30  ;;  %v421_v61 = vmul.f32 %v5516_v42, %v363_v20 }
 0x260   : > { %v2595_v21 = vadd.f32 %v2525_v10, %v2403_v35  ;;  %v2233_v20 = vrot.slane %v5014_v9, 5  ;;  %v2236_v9 = vrot.slane %v5030_v17, 5 }
 0x262   : > { %v2935_v8 = vpop.f32.mrf.mxu0 }
 0x263   : > { %v3006_v29 = vadd.f32 %v2935_v8, %v2808_v46  ;;  %v5517_v46 = vld [vmem:[#allocation42_spill] sm:$0xff] }
 0x264   : > { %2567 = vmatmul.bf16.gmra.mxu2 %v5513_v60  ;;  %v2405_v10 = vadd.f32 %v2338_v41, %v5517_v46 }
 0x265   : > { %v3843_v11 = vpop.eup %3842  ;;  %2974 = vmatmul.bf16.gmra.mxu0 %v5510_v44  ;;  %v3042_v57 = vadd.f32 %v5148_v45, %v3006_v29 }
 0x266   : > { %3105 = vst [vmem:[%s5160_s26 + $0x28] sm:$0xff] %v3843_v11  ;;  %v2739_v32 = vpop.f32.mrf.mxu3  ;;  %v5519_v11 = vld [vmem:[#allocation24_spill] sm:$0xff] }
 0x267   : > { %3844 = vtanh.f32 %v3042_v57  ;;  %v2809_v43 = vadd.f32 %v2739_v32, %v2595_v21  ;;  %v2528_v5 = vpop.f32.mrf.mxu2  ;;  %v2341_v1 = vpop.f32.mrf.mxu1  ;;  %v5518_v21 = vld [vmem:[#allocation43_spill] sm:$0xff]  ;;  %v364_v32 = vunpack.c.l.bf16 %v310_v38 }
 0x268   : > { %v2596_v23 = vadd.f32 %v2528_v5, %v2404_v16  ;;  %v478_v60 = vadd.f32 %v5518_v21, %v420_v3  ;;  %v479_v57 = vadd.f32 %v5518_v21, %v421_v61  ;;  %v2406_v30 = vadd.f32 %v2341_v1, %v5520_v37 }
 0x269   : > { %v2235_v61 = vrot.slane %v2233_v20, 4 }
 0x26a   : > { %v2937_v62 = vpop.f32.mrf.mxu0  ;;  %2380 = vmatmul.bf16.gmra.mxu1 %v4998_v31 }
 0x26b   : > { %v3007_v28 = vadd.f32 %v2937_v62, %v2809_v43  ;;  %2781 = vmatmul.bf16.gmra.mxu3 %v5515_v34  ;;  %v533_v34 = vmax.f32 %v479_v57, 0.0  ;;  %v2237_v57 = vsel %vm4549_vm5, %v2235_v61, %v2236_v9 }
 0x26d   : > { %v3845_v25 = vpop.eup %3844  ;;  %v3043_v44 = vadd.f32 %v5148_v45, %v3007_v28  ;;  %v532_v28 = vmax.f32 %v478_v60, 0.0 }
 0x26e   : > { %3106 = vst [vmem:[%s5160_s26 + $0x30] sm:$0xff] %v3845_v25  ;;  %v2742_v22 = vpop.f32.mrf.mxu3 }
 0x26f   : > { %3846 = vtanh.f32 %v3043_v44  ;;  %v2810_v52 = vadd.f32 %v2742_v22, %v2596_v23  ;;  %v2530_v63 = vpop.f32.mrf.mxu2  ;;  %v2343_v2 = vpop.f32.mrf.mxu1  ;;  %v422_v23 = vmul.f32 %v5516_v42, %v364_v32 }
 0x270   : > { %v2597_v29 = vadd.f32 %v2530_v63, %v2405_v10  ;;  %v5214_v63 = vpack.c.bf16 %v533_v34, %v533_v34  ;;  %v2407_v17 = vadd.f32 %v2343_v2, %v5028_v48 }
 0x271   : > { %v480_v42 = vadd.f32 %v5518_v21, %v422_v23 }
 0x272   : > { %v2940_v35 = vpop.f32.mrf.mxu0  ;;  %v2630_v60 = vshll.u32 %v5214_v63, 16 }
 0x273   : > { %v3008_v8 = vadd.f32 %v2940_v35, %v2810_v52  ;;  %v5212_v52 = vpack.c.bf16 %v532_v28, %v532_v28  ;;  %v534_v21 = vmax.f32 %v480_v42, 0.0  ;;  %v2256_v28 = vunpack.c.l.b16 %v2237_v57 }
 0x274   : > { %2572 = vmatmul.bf16.gmra.mxu2 %v5519_v11  ;;  %v2634_v11 = vshrl.u32 %v5214_v63, 16  ;;  %v2632_v23 = vrot.slane %v2630_v60, 5 }
 0x275   : > { %v3847_v43 = vpop.eup %3846  ;;  %2979 = vmatmul.bf16.gmra.mxu0 %v4998_v31  ;;  %v3044_v5 = vadd.f32 %v5148_v45, %v3008_v8  ;;  %v3467_v31 = vrot.slane %v5007_v33, 9  ;;  %v2621_v8 = vshrl.u32 %v5212_v52, 16  ;;  %v5230_v34 = vpack.c.bf16 %v534_v21, %v534_v21 }
 0x276   : > { %3107 = vst [vmem:[%s5160_s26 + $0x38] sm:$0xff] %v3847_v43  ;;  %v2744_v51 = vpop.f32.mrf.mxu3  ;;  %v2636_v37 = vrot.slane %v2634_v11, 4 }
 0x277   : > { %3848 = vtanh.f32 %v3044_v5  ;;  %v2811_v41 = vadd.f32 %v2744_v51, %v2597_v29  ;;  %v2533_v16 = vpop.f32.mrf.mxu2  ;;  %v2346_v62 = vpop.f32.mrf.mxu1  ;;  %v2234_v33 = vsel %vm4549_vm5, %v3467_v31, %v2233_v20  ;;  %v2624_v29 = vshll.u32 %v5212_v52, 16 }
 0x278   : > { %v2598_v22 = vadd.f32 %v2533_v16, %v2406_v30  ;;  %v2255_v43 = vunpack.c.l.b16 %v2234_v33  ;;  %v2640_v42 = vshll.u32 %v5230_v34, 16  ;;  %v2448_v33 = vunpack.c.l.b16 %v5214_v63 }
 0x279   : > { %v2626_v16 = vrot.slane %v2624_v29, 5 }
 0x27a   : > { %v2942_v25 = vpop.f32.mrf.mxu0  ;;  %2385 = vmatmul.bf16.gmra.mxu1 %v5033_v19 }
 0x27b   : > { %v3009_v44 = vadd.f32 %v2942_v25, %v2811_v41  ;;  %2786 = vmatmul.bf16.gmra.mxu3 %v4557_v4  ;;  %v2623_v41 = vrot.slane %v2621_v8, 4 }
 0x27d   : > { %v3849_v3 = vpop.eup %3848  ;;  %v3045_v1 = vadd.f32 %v5148_v45, %v3009_v44  ;;  %v2627_v44 = vor.u32 %v2626_v16, %v2623_v41 }
 0x27e   : > { %3108 = vst [vmem:[%s5160_s26 + $0x40] sm:$0xff] %v3849_v3  ;;  %v2747_v46 = vpop.f32.mrf.mxu3  ;;  %v2408_v3 = vadd.f32 %v2346_v62, %v5038_v53 }
 0x27f   : > { %3850 = vtanh.f32 %v3045_v1  ;;  %v2812_v4 = vadd.f32 %v2747_v46, %v2598_v22  ;;  %v2535_v38 = vpop.f32.mrf.mxu2  ;;  %v2348_v35 = vpop.f32.mrf.mxu1  ;;  %v2257_v22 = vpack.c.b16 %v2256_v28, %v2255_v43  ;;  %v2628_v9 = vrot.slane %v2627_v44, 4 }
 0x280   : > { %v2599_v51 = vadd.f32 %v2535_v38, %v2407_v17  ;;  %v2447_v46 = vunpack.c.l.b16 %v5212_v52  ;;  %v2642_v38 = vrot.slane %v2640_v42, 5  ;;  %v2409_v57 = vadd.f32 %v2348_v35, %v5051_v0 }
 0x281   : > { %v2837_v43 = vrot.slane %v5214_v63, 5 }
 0x282   : > { %v2945_v32 = vpop.f32.mrf.mxu0  ;;  %v2449_v11 = vpack.c.b16 %v2448_v33, %v2447_v46 }
 0x283   : > { %v3010_v5 = vadd.f32 %v2945_v32, %v2812_v4  ;;  %v2839_v14 = vrot.slane %v2837_v43, 4 }
 0x284   : > { %2577 = vmatmul.bf16.gmra.mxu2 %v5043_v24  ;;  %v2637_v24 = vor.u32 %v2636_v37, %v2632_v23 }
 0x285   : > { %v3851_v30 = vpop.eup %3850  ;;  %2984 = vmatmul.bf16.gmra.mxu0 %v5033_v19  ;;  %v3046_v48 = vadd.f32 %v5148_v45, %v3010_v5 }
 0x286   : > { %3109 = vst [vmem:[%s5160_s26 + $0x48] sm:$0xff] %v3851_v30  ;;  %v2749_v2 = vpop.f32.mrf.mxu3  ;;  %v2638_v4 = vrot.slane %v2637_v24, 4 }
 0x287   : > { %3852 = vtanh.f32 %v3046_v48  ;;  %v2813_v20 = vadd.f32 %v2749_v2, %v2599_v51  ;;  %v2538_v25 = vpop.f32.mrf.mxu2  ;;  %v2351_v31 = vpop.f32.mrf.mxu1  ;;  %v2840_v48 = vrot.slane %v5230_v34, 5 }
 0x288   : > { %v2600_v19 = vadd.f32 %v2538_v25, %v2408_v3  ;;  %v2643_v17 = vsel %vm4063_vm2, %v2638_v4, %v2642_v38 }
 0x289   : > { %v2662_v16 = vunpack.c.l.b16 %v2643_v17 }
 0x28a   : > { %v2947_v1 = vpop.f32.mrf.mxu0  ;;  %2390 = vmatmul.bf16.gmra.mxu1 %v2257_v22 }
 0x28b   : > { %v3011_v61 = vadd.f32 %v2947_v1, %v2813_v20  ;;  %2791 = vmatmul.bf16.gmra.mxu3 %v5054_v58  ;;  %v2633_v58 = vsel %vm4063_vm2, %v2628_v9, %v2632_v23  ;;  %v3612_v23 = vrot.slane %v5212_v52, 9  ;;  %v2410_v20 = vadd.f32 %v2351_v31, %v5056_v27 }
 0x28c   : > { %v2661_v41 = vunpack.c.l.b16 %v2633_v58 }
 0x28d   : > { %v3853_v8 = vpop.eup %3852  ;;  %v3047_v29 = vadd.f32 %v5148_v45, %v3011_v61  ;;  %v2838_v44 = vsel %vm4549_vm5, %v3612_v23, %v2837_v43 }
 0x28e   : > { %3110 = vst [vmem:[%s5160_s26 + $0x50] sm:$0xff] %v3853_v8  ;;  %v2752_v21 = vpop.f32.mrf.mxu3  ;;  %v2663_v63 = vpack.c.b16 %v2662_v16, %v2661_v41  ;;  %v2859_v3 = vunpack.c.l.b16 %v2838_v44 }
 0x28f   : > { %3854 = vtanh.f32 %v3047_v29  ;;  %v2814_v53 = vadd.f32 %v2752_v21, %v2600_v19  ;;  %v2540_v62 = vpop.f32.mrf.mxu2  ;;  %v2353_v60 = vpop.f32.mrf.mxu1 }
 0x290   : > { %v2601_v51 = vadd.f32 %v2540_v62, %v2409_v57  ;;  %v2411_v46 = vadd.f32 %v2353_v60, %v5063_v47 }
 0x292   : > { %v2950_v32 = vpop.f32.mrf.mxu0 }
 0x293   : > { %v3012_v5 = vadd.f32 %v2950_v32, %v2814_v53 }
 0x294   : > { %2582 = vmatmul.bf16.gmra.mxu2 %v2449_v11 }
 0x295   : > { %v3855_v28 = vpop.eup %3854  ;;  %2989 = vmatmul.bf16.gmra.mxu0 %v2257_v22  ;;  %v3048_v37 = vadd.f32 %v5148_v45, %v3012_v5  ;;  %v2841_v22 = vsel %vm4549_vm5, %v2839_v14, %v2840_v48 }
 0x296   : > { %3111 = vst [vmem:[%s5160_s26 + $0x58] sm:$0xff] %v3855_v28  ;;  %v2754_v30 = vpop.f32.mrf.mxu3  ;;  %v2860_v1 = vunpack.c.l.b16 %v2841_v22 }
 0x297   : > { %3856 = vtanh.f32 %v3048_v37  ;;  %v2815_v0 = vadd.f32 %v2754_v30, %v2601_v51  ;;  %v2543_v35 = vpop.f32.mrf.mxu2  ;;  %v2356_v2 = vpop.f32.mrf.mxu1 }
 0x298   : > { %v2602_v52 = vadd.f32 %v2543_v35, %v2410_v20  ;;  %v2861_v9 = vpack.c.b16 %v2860_v1, %v2859_v3  ;;  %v2412_v11 = vadd.f32 %v2356_v2, %v5066_v39 }
 0x29a   : > { %v2952_v25 = vpop.f32.mrf.mxu0 }
 0x29b   : > { %v3013_v24 = vadd.f32 %v2952_v25, %v2815_v0  ;;  %2796 = vmatmul.bf16.gmra.mxu3 %v2663_v63 }
 0x29d   : > { %v3857_v42 = vpop.eup %3856  ;;  %v3049_v34 = vadd.f32 %v5148_v45, %v3013_v24 }
 0x29e   : > { %3112 = vst [vmem:[%s5160_s26 + $0x60] sm:$0xff] %v3857_v42  ;;  %v2757_v61 = vpop.f32.mrf.mxu3 }
 0x29f   : > { %3858 = vtanh.f32 %v3049_v34  ;;  %v2816_v27 = vadd.f32 %v2757_v61, %v2602_v52  ;;  %v2545_v31 = vpop.f32.mrf.mxu2  ;;  %v2358_v19 = vpop.f32.mrf.mxu1 }
 0x2a0   : > { %v2603_v4 = vadd.f32 %v2545_v31, %v2411_v46  ;;  %v2413_v41 = vadd.f32 %v2358_v19, %v5073_v13 }
 0x2a2   : > { %v2955_v10 = vpop.f32.mrf.mxu0 }
 0x2a3   : > { %v3014_v33 = vadd.f32 %v2955_v10, %v2816_v27 }
 0x2a5   : > { %v3859_v38 = vpop.eup %3858  ;;  %2994 = vmatmul.bf16.gmra.mxu0 %v2861_v9  ;;  %v3050_v8 = vadd.f32 %v5148_v45, %v3014_v33 }
 0x2a6   : > { %3113 = vst [vmem:[%s5160_s26 + $0x68] sm:$0xff] %v3859_v38  ;;  %v2759_v29 = vpop.f32.mrf.mxu3 }
 0x2a7   : > { %3860 = vtanh.f32 %v3050_v8  ;;  %v2817_v21 = vadd.f32 %v2759_v29, %v2603_v4  ;;  %v2548_v53 = vpop.f32.mrf.mxu2  ;;  %v2361_v62 = vpop.f32.mrf.mxu1 }
 0x2a8   : > { %v2604_v47 = vadd.f32 %v2548_v53, %v2412_v11  ;;  %v2414_v63 = vadd.f32 %v2361_v62, %v5076_v40 }
 0x2aa   : > { %v2957_v58 = vpop.f32.mrf.mxu0 }
 0x2ab   : > { %v3015_v17 = vadd.f32 %v2957_v58, %v2817_v21 }
 0x2ad   : > { %v3861_v60 = vpop.eup %3860  ;;  %v3051_v57 = vadd.f32 %v5148_v45, %v3015_v17 }
 0x2ae   : > { %3114 = vst [vmem:[%s5160_s26 + $0x70] sm:$0xff] %v3861_v60  ;;  %v2762_v32 = vpop.f32.mrf.mxu3 }
 0x2af   : > { %3862 = vtanh.f32 %v3051_v57  ;;  %v2818_v43 = vadd.f32 %v2762_v32, %v2604_v47  ;;  %v2550_v5 = vpop.f32.mrf.mxu2  ;;  %v2363_v51 = vpop.f32.mrf.mxu1 }
 0x2b0   : > { %v2605_v37 = vadd.f32 %v2550_v5, %v2413_v41  ;;  %v2415_v42 = vadd.f32 %v2363_v51, %v5083_v56 }
 0x2b2   : > { %v2960_v16 = vpop.f32.mrf.mxu0 }
 0x2b3   : > { %v3016_v28 = vadd.f32 %v2960_v16, %v2818_v43 }
 0x2b5   : > { %v3863_v39 = vpop.eup %3862  ;;  %v3052_v30 = vadd.f32 %v5148_v45, %v3016_v28 }
 0x2b6   : > { %3115 = vst [vmem:[%s5160_s26 + $0x78] sm:$0xff] %v3863_v39  ;;  %v2764_v23 = vpop.f32.mrf.mxu3 }
 0x2b7   : > { %3864 = vtanh.f32 %v3052_v30  ;;  %v2819_v14 = vadd.f32 %v2764_v23, %v2605_v37  ;;  %v2553_v48 = vpop.f32.mrf.mxu2  ;;  %v2366_v0 = vpop.f32.mrf.mxu1 }
 0x2b8   : > { %v2606_v20 = vadd.f32 %v2553_v48, %v2414_v63  ;;  %v2416_v46 = vadd.f32 %v2366_v0, %v5086_v12 }
 0x2ba   : > { %v2962_v35 = vpop.f32.mrf.mxu0 }
 0x2bb   : > { %v3017_v2 = vadd.f32 %v2962_v35, %v2819_v14 }
 0x2bd   : > { %v3865_v13 = vpop.eup %3864  ;;  %v3053_v25 = vadd.f32 %v5148_v45, %v3017_v2 }
 0x2be   : > { %3116 = vst [vmem:[%s5160_s26 + $0x80] sm:$0xff] %v3865_v13  ;;  %v2767_v44 = vpop.f32.mrf.mxu3 }
 0x2bf   : > { %3866 = vtanh.f32 %v3053_v25  ;;  %v2820_v22 = vadd.f32 %v2767_v44, %v2606_v20  ;;  %v2555_v24 = vpop.f32.mrf.mxu2  ;;  %v2368_v52 = vpop.f32.mrf.mxu1 }
 0x2c0   : > { %v2607_v1 = vadd.f32 %v2555_v24, %v2415_v42  ;;  %v2417_v62 = vadd.f32 %v2368_v52, %v5093_v54 }
 0x2c2   : > { %v2965_v34 = vpop.f32.mrf.mxu0 }
 0x2c3   : > { %v3018_v3 = vadd.f32 %v2965_v34, %v2820_v22 }
 0x2c5   : > { %v3867_v40 = vpop.eup %3866  ;;  %v3054_v61 = vadd.f32 %v5148_v45, %v3018_v3 }
 0x2c6   : > { %3117 = vst [vmem:[%s5160_s26 + $0x88] sm:$0xff] %v3867_v40  ;;  %v2769_v27 = vpop.f32.mrf.mxu3 }
 0x2c7   : > { %3868 = vtanh.f32 %v3054_v61  ;;  %v2821_v31 = vadd.f32 %v2769_v27, %v2607_v1  ;;  %v2558_v19 = vpop.f32.mrf.mxu2  ;;  %v2371_v9 = vpop.f32.mrf.mxu1 }
 0x2c8   : > { %v2608_v4 = vadd.f32 %v2558_v19, %v2416_v46  ;;  %v2418_v5 = vadd.f32 %v2371_v9, %v5096_v36 }
 0x2ca   : > { %v2967_v10 = vpop.f32.mrf.mxu0 }
 0x2cb   : > { %v3019_v33 = vadd.f32 %v2967_v10, %v2821_v31 }
 0x2cd   : > { %v3869_v56 = vpop.eup %3868  ;;  %v3055_v38 = vadd.f32 %v5148_v45, %v3019_v33 }
 0x2ce   : > { %3118 = vst [vmem:[%s5160_s26 + $0x90] sm:$0xff] %v3869_v56  ;;  %v2772_v8 = vpop.f32.mrf.mxu3 }
 0x2cf   : > { %3870 = vtanh.f32 %v3055_v38  ;;  %v2822_v29 = vadd.f32 %v2772_v8, %v2608_v4  ;;  %v2560_v21 = vpop.f32.mrf.mxu2  ;;  %v2373_v53 = vpop.f32.mrf.mxu1 }
 0x2d0   : > { %v2609_v17 = vadd.f32 %v2560_v21, %v2417_v62  ;;  %v2419_v23 = vadd.f32 %v2373_v53, %v5103_v7 }
 0x2d2   : > { %v2970_v11 = vpop.f32.mrf.mxu0 }
 0x2d3   : > { %v3020_v58 = vadd.f32 %v2970_v11, %v2822_v29 }
 0x2d5   : > { %v3871_v12 = vpop.eup %3870  ;;  %v3056_v47 = vadd.f32 %v5148_v45, %v3020_v58 }
 0x2d6   : > { %3119 = vst [vmem:[%s5160_s26 + $0x98] sm:$0xff] %v3871_v12  ;;  %v2774_v60 = vpop.f32.mrf.mxu3 }
 0x2d7   : > { %3872 = vtanh.f32 %v3056_v47  ;;  %v2823_v57 = vadd.f32 %v2774_v60, %v2609_v17  ;;  %v2563_v32 = vpop.f32.mrf.mxu2  ;;  %v2376_v43 = vpop.f32.mrf.mxu1 }
 0x2d8   : > { %v2610_v16 = vadd.f32 %v2563_v32, %v2418_v5  ;;  %v2420_v25 = vadd.f32 %v2376_v43, %v5106_v55 }
 0x2da   : > { %v2972_v51 = vpop.f32.mrf.mxu0 }
 0x2db   : > { %v3021_v41 = vadd.f32 %v2972_v51, %v2823_v57 }
 0x2dd   : > { %v3873_v54 = vpop.eup %3872  ;;  %v3057_v28 = vadd.f32 %v5148_v45, %v3021_v41 }
 0x2de   : > { %3120 = vst [vmem:[%s5160_s26 + $0xa0] sm:$0xff] %v3873_v54  ;;  %v2777_v37 = vpop.f32.mrf.mxu3 }
 0x2df   : > { %3874 = vtanh.f32 %v3057_v28  ;;  %v2824_v39 = vadd.f32 %v2777_v37, %v2610_v16  ;;  %v2565_v30 = vpop.f32.mrf.mxu2  ;;  %v2378_v48 = vpop.f32.mrf.mxu1 }
 0x2e0   : > { %v2611_v63 = vadd.f32 %v2565_v30, %v2419_v23  ;;  %v2421_v40 = vadd.f32 %v2378_v48, %v5113_v49 }
 0x2e2   : > { %v2975_v14 = vpop.f32.mrf.mxu0 }
 0x2e3   : > { %v3022_v0 = vadd.f32 %v2975_v14, %v2824_v39 }
 0x2e5   : > { %v3875_v36 = vpop.eup %3874  ;;  %v3058_v35 = vadd.f32 %v5148_v45, %v3022_v0 }
 0x2e6   : > { %3121 = vst [vmem:[%s5160_s26 + $0xa8] sm:$0xff] %v3875_v36  ;;  %v2779_v2 = vpop.f32.mrf.mxu3 }
 0x2e7   : > { %3876 = vtanh.f32 %v3058_v35  ;;  %v2825_v20 = vadd.f32 %v2779_v2, %v2611_v63  ;;  %v2568_v13 = vpop.f32.mrf.mxu2  ;;  %v2381_v7 = vpop.f32.mrf.mxu1 }
 0x2e8   : > { %v2612_v24 = vadd.f32 %v2568_v13, %v2420_v25  ;;  %v2422_v4 = vadd.f32 %v2381_v7, %v5116_v18 }
 0x2ea   : > { %v2977_v44 = vpop.f32.mrf.mxu0 }
 0x2eb   : > { %v3023_v22 = vadd.f32 %v2977_v44, %v2825_v20 }
 0x2ed   : > { %v3877_v52 = vpop.eup %3876  ;;  %v3059_v42 = vadd.f32 %v5148_v45, %v3023_v22 }
 0x2ee   : > { %3122 = vst [vmem:[%s5160_s26 + $0xb0] sm:$0xff] %v3877_v52  ;;  %v2782_v34 = vpop.f32.mrf.mxu3 }
 0x2ef   : > { %3878 = vtanh.f32 %v3059_v42  ;;  %v2826_v3 = vadd.f32 %v2782_v34, %v2612_v24  ;;  %v2570_v1 = vpop.f32.mrf.mxu2  ;;  %v2383_v46 = vpop.f32.mrf.mxu1 }
 0x2f0   : > { %v2613_v31 = vadd.f32 %v2570_v1, %v2421_v40  ;;  %v2423_v58 = vadd.f32 %v2383_v46, %v5123_v50 }
 0x2f2   : > { %v2980_v61 = vpop.f32.mrf.mxu0 }
 0x2f3   : > { %v3024_v27 = vadd.f32 %v2980_v61, %v2826_v3 }
 0x2f5   : > { %v3879_v55 = vpop.eup %3878  ;;  %v3060_v19 = vadd.f32 %v5148_v45, %v3024_v27 }
 0x2f6   : > { %3123 = vst [vmem:[%s5160_s26 + $0xb8] sm:$0xff] %v3879_v55  ;;  %v2784_v9 = vpop.f32.mrf.mxu3 }
 0x2f7   : > { %3880 = vtanh.f32 %v3060_v19  ;;  %v2827_v10 = vadd.f32 %v2784_v9, %v2613_v31  ;;  %v2573_v33 = vpop.f32.mrf.mxu2  ;;  %v2386_v11 = vpop.f32.mrf.mxu1 }
 0x2f8   : > { %v2614_v8 = vadd.f32 %v2573_v33, %v2422_v4  ;;  %v2424_v5 = vadd.f32 %v2386_v11, %v5126_v15 }
 0x2fa   : > { %v2982_v56 = vpop.f32.mrf.mxu0 }
 0x2fb   : > { %v3025_v38 = vadd.f32 %v2982_v56, %v2827_v10 }
 0x2fd   : > { %v3881_v49 = vpop.eup %3880  ;;  %v3061_v29 = vadd.f32 %v5148_v45, %v3025_v38 }
 0x2fe   : > { %3124 = vst [vmem:[%s5160_s26 + $0xc0] sm:$0xff] %v3881_v49  ;;  %v2787_v21 = vpop.f32.mrf.mxu3 }
 0x2ff   : > { %3882 = vtanh.f32 %v3061_v29  ;;  %v2828_v53 = vadd.f32 %v2787_v21, %v2614_v8  ;;  %v2575_v62 = vpop.f32.mrf.mxu2  ;;  %v2388_v41 = vpop.f32.mrf.mxu1 }
 0x300   : > { %v2615_v47 = vadd.f32 %v2575_v62, %v2423_v58  ;;  %v2425_v23 = vadd.f32 %v2388_v41, %v5133_v6 }
 0x302   : > { %v2985_v17 = vpop.f32.mrf.mxu0 }
 0x303   : > { %v3026_v12 = vadd.f32 %v2985_v17, %v2828_v53 }
 0x305   : > { %v3883_v18 = vpop.eup %3882  ;;  %v3062_v60 = vadd.f32 %v5148_v45, %v3026_v12 }
 0x306   : > { %3125 = vst [vmem:[%s5160_s26 + $0xc8] sm:$0xff] %v3883_v18  ;;  %v2789_v57 = vpop.f32.mrf.mxu3 }
 0x307   : > { %3884 = vtanh.f32 %v3062_v60  ;;  %v2829_v32 = vadd.f32 %v2789_v57, %v2615_v47  ;;  %v2578_v43 = vpop.f32.mrf.mxu2  ;;  %v2391_v15 = vpop.f32.mrf.mxu1 }
 0x308   : > { %v2616_v54 = vadd.f32 %v2578_v43, %v2424_v5  ;;  %v2426_v13 = vadd.f32 %v2391_v15, %v5136_v59 }
 0x30a   : > { %v2987_v51 = vpop.f32.mrf.mxu0 }
 0x30b   : > { %v3027_v16 = vadd.f32 %v2987_v51, %v2829_v32 }
 0x30d   : > { %v3885_v50 = vpop.eup %3884  ;;  %v3063_v28 = vadd.f32 %v5148_v45, %v3027_v16 }
 0x30e   : > { %3126 = vst [vmem:[%s5160_s26 + $0xd0] sm:$0xff] %v3885_v50  ;;  %v2792_v37 = vpop.f32.mrf.mxu3 }
 0x30f   : > { %3886 = vtanh.f32 %v3063_v28  ;;  %v2830_v39 = vadd.f32 %v2792_v37, %v2616_v54  ;;  %v2580_v30 = vpop.f32.mrf.mxu2  ;;  %v2393_v52 = vpop.f32.mrf.mxu1 }
 0x310   : > { %v2617_v0 = vadd.f32 %v2580_v30, %v2425_v23  ;;  %v2427_v3 = vadd.f32 %v2393_v52, %v5143_v26 }
 0x312   : > { %v2990_v14 = vpop.f32.mrf.mxu0 }
 0x313   : > { %v3028_v48 = vadd.f32 %v2990_v14, %v2830_v39 }
 0x315   : > { %v3887_v63 = vpop.eup %3886  ;;  %v3064_v36 = vadd.f32 %v5148_v45, %v3028_v48 }
 0x316   : > { %3127 = vst [vmem:[%s5160_s26 + $0xd8] sm:$0xff] %v3887_v63  ;;  %v2794_v35 = vpop.f32.mrf.mxu3 }
 0x317   : > { %3888 = vtanh.f32 %v3064_v36  ;;  %v2831_v2 = vadd.f32 %v2794_v35, %v2617_v0  ;;  %v2583_v20 = vpop.f32.mrf.mxu2 }
 0x318   : > { %v2618_v22 = vadd.f32 %v2583_v20, %v2426_v13 }
 0x31a   : > { %v2992_v25 = vpop.f32.mrf.mxu0 }
 0x31b   : > { %v3029_v44 = vadd.f32 %v2992_v25, %v2831_v2 }
 0x31d   : > { %v3889_v6 = vpop.eup %3888  ;;  %v3065_v24 = vadd.f32 %v5148_v45, %v3029_v44 }
 0x31e   : > { %3128 = vst [vmem:[%s5160_s26 + $0xe0] sm:$0xff] %v3889_v6  ;;  %v2797_v7 = vpop.f32.mrf.mxu3 }
 0x31f   : > { %3890 = vtanh.f32 %v3065_v24  ;;  %v2832_v42 = vadd.f32 %v2797_v7, %v2618_v22  ;;  %v2585_v34 = vpop.f32.mrf.mxu2 }
 0x320   : > { %v2619_v59 = vadd.f32 %v2585_v34, %v2427_v3 }
 0x322   : > { %v2995_v1 = vpop.f32.mrf.mxu0 }
 0x323   : > { %v3030_v40 = vadd.f32 %v2995_v1, %v2832_v42 }
 0x325   : > { %v3891_v61 = vpop.eup %3890  ;;  %v3066_v27 = vadd.f32 %v5148_v45, %v3030_v40 }
 0x326   : > { %3129 = vst [vmem:[%s5160_s26 + $0xe8] sm:$0xff] %v3891_v61  ;;  %v2799_v31 = vpop.f32.mrf.mxu3 }
 0x327   : > { %3892 = vtanh.f32 %v3066_v27  ;;  %v2833_v55 = vadd.f32 %v2799_v31, %v2619_v59 }
 0x32a   : > { %v2997_v19 = vpop.f32.mrf.mxu0 }
 0x32b   : > { %v3031_v9 = vadd.f32 %v2997_v19, %v2833_v55 }
 0x32d   : > { %v3893_v46 = vpop.eup %3892  ;;  %v3067_v10 = vadd.f32 %v5148_v45, %v3031_v9 }
 0x32e   : > { %3130 = vst [vmem:[%s5160_s26 + $0xf0] sm:$0xff] %v3893_v46 }
 0x32f   : > { %3894 = vtanh.f32 %v3067_v10 }
 0x335   : > { %v3895_v33 = vpop.eup %3894 }
 0x336   : > { %3131 = vst [vmem:[%s5160_s26 + $0xf8] sm:$0xff] %v3895_v33 }
 0x337 PF: > { %s15_s20 = sadd.s32 1, %s3922_s20   ;;  %s5522_s18 = smov %s3918_s19 }
 0x338   : > { %p12_p5 = scmp.ge.s32.totalorder %s15_s20, 4   ;;  %s5523_s19 = smov %s5525_s21 }
 0x33a   :  { %14 = sbr.rel (!%p12_p5) target bundleno = 2 (0x2), region = 78 }

</bundles_post_ra>
